<compile_context>
chip_gen: v6e
topology: v6e:2x2x1
jax: 0.10.0
libtpu: 0.0.40
codegen_flags: <defaults>
</compile_context>

<pallas_src>
import functools

import jax
import jax.numpy as jnp
from jax import lax
from jax.experimental import pallas as pl
from jax.experimental.pallas import tpu as pltpu


_L_IN = 93          # required input length
_NB = 8             # samples per grid step (= one f32 sublane tile)

# (c_in, c_out, K, stride, pad, c_in_pad, c_out_pad) for the four conv layers.
_CONV_CFG = [
    (6,   32,  3,  1, 1, 128, 128),
    (32,  64,  9,  2, 1, 128, 128),
    (64,  256, 15, 3, 2, 128, 256),
    (256, 100, 10, 2, 2, 256, 128),
]


def _conv_lens():
    """Per conv layer: (L_in, L_padded(=multiple of stride), L_out)."""
    lens = []
    l = _L_IN
    for (_, _, k, s, p, _, _) in _CONV_CFG:
        lp_real = l + 2 * p
        lr = -(-lp_real // s)          # ceil
        lp = lr * s                    # aligned padded length (extra rows = 0)
        lo = (lp_real - k) // s + 1
        lens.append((l, lp, lo))
        l = lo
    return lens


_LENS = _conv_lens()                   # [(93,95,93), (93,96,44), (44,48,12), (12,16,4)]


# ----------------------------------------------------------------------------
# In-kernel helpers
# ----------------------------------------------------------------------------
def _leaky(y):
    return jnp.where(y >= 0.0, y, 0.1 * y)


def _conv_taps(av, w_ref, b_ref, *, stride, l_out):
    """Tap-sum Conv1d on a zero-padded, lane-major activation buffer.

    av:    (Lp*_NB, C_in_pad) f32 value, row = position*_NB + sample.
    w_ref: (K, C_in_pad, C_out_pad) bf16 ref, w_ref[k] = tap-k weight matrix.
    b_ref: (1, C_out_pad) f32 ref.
    Returns (L_out*_NB, C_out_pad) f32 after bias + LeakyReLU(0.1).
    """
    rows, c_in = av.shape
    k = w_ref.shape[0]
    c_out = w_ref.shape[-1]

    if stride == 1:
        phases = [av]
    else:
        lr = rows // (_NB * stride)
        # Leading-dim-only reshape: rows stay grouped in blocks of _NB=8, last
        # dim (multiple of 128) untouched -> layout-preserving on TPU.
        a4 = av.reshape(lr, stride, _NB, c_in)
        phases = [a4[:, p].reshape(lr * _NB, c_in) for p in range(stride)]

    acc = jnp.zeros((l_out * _NB, c_out), jnp.float32)
    for kk in range(k):
        q, p = divmod(kk, stride)
        xk = phases[p][q * _NB:(q + l_out) * _NB, :]          # aligned 2-D slice
        acc = acc + jnp.dot(xk.astype(jnp.bfloat16), w_ref[kk],
                            preferred_element_type=jnp.float32)
    return _leaky(acc + b_ref[...])


def _net_kernel(x_ref,
                w1_ref, b1_ref, w2_ref, b2_ref, w3_ref, b3_ref, w4_ref, b4_ref,
                wf1_ref, bf1_ref, wf2_ref, bf2_ref,
                o_ref,
                a2_ref, a3_ref, a4_ref):
    (_, _, l1), (_, _, l2), (_, _, l3), (_, _, l4) = _LENS

    # conv1 (stride 1); its padded input buffer is prepared outside the kernel.
    act1 = _conv_taps(x_ref[...], w1_ref, b1_ref, stride=1, l_out=l1)

    # conv2: stage act1 into a zero-padded VMEM buffer (pad = 1 position).
    a2_ref[...] = jnp.zeros(a2_ref.shape, a2_ref.dtype)
    a2_ref[1 * _NB:(1 + l1) * _NB, :] = act1
    act2 = _conv_taps(a2_ref[...], w2_ref, b2_ref, stride=2, l_out=l2)

    # conv3 (pad = 2)
    a3_ref[...] = jnp.zeros(a3_ref.shape, a3_ref.dtype)
    a3_ref[2 * _NB:(2 + l2) * _NB, :] = act2
    act3 = _conv_taps(a3_ref[...], w3_ref, b3_ref, stride=3, l_out=l3)

    # conv4 (pad = 2)
    a4_ref[...] = jnp.zeros(a4_ref.shape, a4_ref.dtype)
    a4_ref[2 * _NB:(2 + l3) * _NB, :] = act3
    act4 = _conv_taps(a4_ref[...], w4_ref, b4_ref, stride=2, l_out=l4)  # (4*8,128)

    # MaxPool1d(kernel_size=2, stride=2) over positions, fused in the epilogue.
    p0 = jnp.maximum(act4[0 * _NB:1 * _NB, :], act4[1 * _NB:2 * _NB, :])  # (8,128)
    p1 = jnp.maximum(act4[2 * _NB:3 * _NB, :], act4[3 * _NB:4 * _NB, :])  # (8,128)

    # fc1: PyTorch's channel-major view(N,-1) is folded into the weight layout:
    # wf1[l][c, o] = fc1.weight[o, c*2 + l].
    h = (jnp.dot(p0.astype(jnp.bfloat16), wf1_ref[0],
                 preferred_element_type=jnp.float32)
         + jnp.dot(p1.astype(jnp.bfloat16), wf1_ref[1],
                   preferred_element_type=jnp.float32)
         + bf1_ref[...])
    h = _leaky(h)

    # fc2 + LeakyReLU + Sigmoid
    y = jnp.dot(h.astype(jnp.bfloat16), wf2_ref[...],
                preferred_element_type=jnp.float32)
    y = _leaky(y + bf2_ref[...])
    o_ref[...] = 1.0 / (1.0 + jnp.exp(-y))


# ----------------------------------------------------------------------------
# Host-side wrapper
# ----------------------------------------------------------------------------
def prepare_params(params):
    """One-time conversion of PyTorch-layout params into kernel-ready tensors
    (transposed to (K, C_in, C_out), zero-padded to lane multiples, bf16)."""
    def conv(w, b, c_in_pad, c_out_pad):
        c_out, c_in, _ = w.shape
        wt = jnp.transpose(w, (2, 1, 0))                          # (K, C_in, C_out)
        wt = jnp.pad(wt, ((0, 0), (0, c_in_pad - c_in), (0, c_out_pad - c_out)))
        bt = jnp.pad(b, (0, c_out_pad - c_out)).reshape(1, c_out_pad)
        return wt.astype(jnp.bfloat16), bt.astype(jnp.float32)

    prep = {}
    prep["w1"], prep["b1"] = conv(params["conv1_w"], params["conv1_b"], 128, 128)
    prep["w2"], prep["b2"] = conv(params["conv2_w"], params["conv2_b"], 128, 128)
    prep["w3"], prep["b3"] = conv(params["conv3_w"], params["conv3_b"], 128, 256)
    prep["w4"], prep["b4"] = conv(params["conv4_w"], params["conv4_b"], 256, 128)

    # fc1 expects input feature f = c*2 + l (channel-major flatten of (100, 2)).
    w = params["fc1_w"].reshape(100, 100, 2)                      # (out, c, l)
    wf1 = jnp.transpose(w, (2, 1, 0))                             # (l, c, out)
    prep["wf1"] = jnp.pad(wf1, ((0, 0), (0, 28), (0, 28))).astype(jnp.bfloat16)
    prep["bf1"] = jnp.pad(params["fc1_b"], (0, 28)).reshape(1, 128).astype(jnp.float32)

    wf2 = jnp.transpose(params["fc2_w"])                          # (100, 26)
    prep["wf2"] = jnp.pad(wf2, ((0, 28), (0, 102))).astype(jnp.bfloat16)
    prep["bf2"] = jnp.pad(params["fc2_b"], (0, 102)).reshape(1, 128).astype(jnp.float32)
    return prep


@jax.jit
def net_forward(prep, x):
    """x: (N, 6, 93) f32 -> (N, 26) f32 (sigmoid outputs)."""
    n, c_in, l_in = x.shape
    g = pl.cdiv(n, _NB)
    (l0, lp1, l1), (_, lp2, _), (_, lp3, _), (_, lp4, _) = _LENS

    # One-time input packing (tiny tensor): NCL -> (batch group, position*8, lanes),
    # conv1's zero padding folded in, channels padded 6 -> 128.
    xt = jnp.transpose(x, (2, 0, 1)).astype(jnp.float32)          # (L, N, C)
    xt = jnp.pad(xt, ((1, lp1 - l0 - 1), (0, g * _NB - n), (0, 128 - c_in)))
    xt = xt.reshape(lp1, g, _NB, 128).transpose(1, 0, 2, 3).reshape(g, lp1 * _NB, 128)

    grid_spec = pltpu.PrefetchScalarGridSpec(
        num_scalar_prefetch=0,
        grid=(g,),
        in_specs=[
            pl.BlockSpec((None, lp1 * _NB, 128), lambda i: (i, 0, 0)),   # x
            pl.BlockSpec((3, 128, 128),  lambda i: (0, 0, 0)),           # w1
            pl.BlockSpec((1, 128),       lambda i: (0, 0)),              # b1
            pl.BlockSpec((9, 128, 128),  lambda i: (0, 0, 0)),           # w2
            pl.BlockSpec((1, 128),       lambda i: (0, 0)),              # b2
            pl.BlockSpec((15, 128, 256), lambda i: (0, 0, 0)),           # w3
            pl.BlockSpec((1, 256),       lambda i: (0, 0)),              # b3
            pl.BlockSpec((10, 256, 128), lambda i: (0, 0, 0)),           # w4
            pl.BlockSpec((1, 128),       lambda i: (0, 0)),              # b4
            pl.BlockSpec((2, 128, 128),  lambda i: (0, 0, 0)),           # wf1
            pl.BlockSpec((1, 128),       lambda i: (0, 0)),              # bf1
            pl.BlockSpec((128, 128),     lambda i: (0, 0)),              # wf2
            pl.BlockSpec((1, 128),       lambda i: (0, 0)),              # bf2
        ],
        out_specs=pl.BlockSpec((None, _NB, 128), lambda i: (i, 0, 0)),
        scratch_shapes=[
            pltpu.VMEM((lp2 * _NB, 128), jnp.float32),   # conv2 padded input
            pltpu.VMEM((lp3 * _NB, 128), jnp.float32),   # conv3 padded input
            pltpu.VMEM((lp4 * _NB, 256), jnp.float32),   # conv4 padded input
        ],
    )

    out = pl.pallas_call(
        _net_kernel,
        out_shape=jax.ShapeDtypeStruct((g, _NB, 128), jnp.float32),
        grid_spec=grid_spec,
        compiler_params=pltpu.CompilerParams(
            dimension_semantics=("parallel",),
            vmem_limit_bytes=32 * 1024 * 1024,
        ),
    )(xt, prep["w1"], prep["b1"], prep["w2"], prep["b2"],
      prep["w3"], prep["b3"], prep["w4"], prep["b4"],
      prep["wf1"], prep["bf1"], prep["wf2"], prep["bf2"])

    return out.reshape(g * _NB, 128)[:n, :26]


# ----------------------------------------------------------------------------
# Pure-JAX reference (f32) used only for the self-check in __main__.
# ----------------------------------------------------------------------------
def _ref_conv1d(x, w, b, stride, padding):
    out = lax.conv_general_dilated(
        x, w, window_strides=(stride,), padding=[(padding, padding)],
        dimension_numbers=("NCH", "OIH", "NCH"),
        precision=lax.Precision.HIGHEST)
    return out + b[None, :, None]


def net_forward_reference(params, x):
    lk = lambda v: jnp.where(v >= 0.0, v, 0.1 * v)
    h = lk(_ref_conv1d(x, params["conv1_w"], params["conv1_b"], 1, 1))
    h = lk(_ref_conv1d(h, params["conv2_w"], params["conv2_b"], 2, 1))
    h = lk(_ref_conv1d(h, params["conv3_w"], params["conv3_b"], 3, 2))
    h = lk(_ref_conv1d(h, params["conv4_w"], params["conv4_b"], 2, 2))
    n, c, l = h.shape
    h = h.reshape(n, c, l // 2, 2).max(axis=-1)
    h = h.reshape(n, -1)
    h = lk(h @ params["fc1_w"].T + params["fc1_b"])
    h = lk(h @ params["fc2_w"].T + params["fc2_b"])
    return jax.nn.sigmoid(h)


# ----------------------------------------------------------------------------
# Deterministic parameter init (PyTorch-style uniform(-1/sqrt(fan_in), +..))
# ----------------------------------------------------------------------------
def _uniform(key, shape, fan_in):
    bound = 1.0 / jnp.sqrt(jnp.asarray(fan_in, jnp.float32))
    return jax.random.uniform(key, shape, jnp.float32, -bound, bound)


def init_params(key):
    keys = jax.random.split(key, 12)
    p = {}
    p["conv1_w"] = _uniform(keys[0], (32, 6, 3), 6 * 3)
    p["conv1_b"] = _uniform(keys[1], (32,), 6 * 3)
    p["conv2_w"] = _uniform(keys[2], (64, 32, 9), 32 * 9)
    p["conv2_b"] = _uniform(keys[3], (64,), 32 * 9)
    p["conv3_w"] = _uniform(keys[4], (256, 64, 15), 64 * 15)
    p["conv3_b"] = _uniform(keys[5], (256,), 64 * 15)
    p["conv4_w"] = _uniform(keys[6], (100, 256, 10), 256 * 10)
    p["conv4_b"] = _uniform(keys[7], (100,), 256 * 10)
    p["fc1_w"] = _uniform(keys[8], (100, 200), 200)
    p["fc1_b"] = _uniform(keys[9], (100,), 200)
    p["fc2_w"] = _uniform(keys[10], (26, 100), 100)
    p["fc2_b"] = _uniform(keys[11], (26,), 100)
    # TODO(synk): fc3, tanh and dropout exist in __init__ but are unused in
    # forward(), so they are intentionally not instantiated here.
    return p


if __name__ == "__main__":
    key = jax.random.PRNGKey(0)
    pkey, xkey = jax.random.split(key)
    params = init_params(pkey)
    prep = prepare_params(params)

    # Input length 93 is required so the flattened feature size equals 200.
    batch = 2
    x = jax.random.normal(xkey, (batch, 6, _L_IN), jnp.float32)

    out = jax.block_until_ready(net_forward(prep, x))
    ref = jax.block_until_ready(jax.jit(net_forward_reference)(params, x))

    assert out.shape == (batch, 26), out.shape
    assert bool(jnp.all((out >= 0.0) & (out <= 1.0))), "sigmoid range violated"
    max_err = float(jnp.max(jnp.abs(out - ref)))
    assert max_err < 0.1, f"mismatch vs reference: {max_err}"
    print("KERNEL_OK")
</pallas_src>

<mosaic_0001>
module attributes {stable_mosaic.version = 11 : i64} {
  func.func @_net_kernel(%arg0: i32, %arg1: memref<1x760x128xf32, #tpu.memory_space<vmem>>, %arg2: memref<3x128x128xbf16, #tpu.memory_space<vmem>>, %arg3: memref<1x128xf32, #tpu.memory_space<vmem>>, %arg4: memref<9x128x128xbf16, #tpu.memory_space<vmem>>, %arg5: memref<1x128xf32, #tpu.memory_space<vmem>>, %arg6: memref<15x128x256xbf16, #tpu.memory_space<vmem>>, %arg7: memref<1x256xf32, #tpu.memory_space<vmem>>, %arg8: memref<10x256x128xbf16, #tpu.memory_space<vmem>>, %arg9: memref<1x128xf32, #tpu.memory_space<vmem>>, %arg10: memref<2x128x128xbf16, #tpu.memory_space<vmem>>, %arg11: memref<1x128xf32, #tpu.memory_space<vmem>>, %arg12: memref<128x128xbf16, #tpu.memory_space<vmem>>, %arg13: memref<1x128xf32, #tpu.memory_space<vmem>>, %arg14: memref<1x8x128xf32, #tpu.memory_space<vmem>>, %arg15: memref<768x128xf32, #tpu.memory_space<vmem>>, %arg16: memref<384x128xf32, #tpu.memory_space<vmem>>, %arg17: memref<128x256xf32, #tpu.memory_space<vmem>>) attributes {dimension_semantics = [#tpu.dimension_semantics<parallel>], iteration_bounds = array<i64: 1>, scalar_prefetch = 0 : i64, scratch_operands = 3 : i64, tpu.core_type = #tpu.core_type<tc>, window_params = [{transform_indices = @transform_0, window_bounds = array<i64: 1, 760, 128>}, {pipeline_mode = #tpu.pipeline_mode<synchronous>, transform_indices = @transform_1, window_bounds = array<i64: 3, 128, 128>}, {pipeline_mode = #tpu.pipeline_mode<synchronous>, transform_indices = @transform_2, window_bounds = array<i64: 1, 128>}, {pipeline_mode = #tpu.pipeline_mode<synchronous>, transform_indices = @transform_3, window_bounds = array<i64: 9, 128, 128>}, {pipeline_mode = #tpu.pipeline_mode<synchronous>, transform_indices = @transform_4, window_bounds = array<i64: 1, 128>}, {pipeline_mode = #tpu.pipeline_mode<synchronous>, transform_indices = @transform_5, window_bounds = array<i64: 15, 128, 256>}, {pipeline_mode = #tpu.pipeline_mode<synchronous>, transform_indices = @transform_6, window_bounds = array<i64: 1, 256>}, {pipeline_mode = #tpu.pipeline_mode<synchronous>, transform_indices = @transform_7, window_bounds = array<i64: 10, 256, 128>}, {pipeline_mode = #tpu.pipeline_mode<synchronous>, transform_indices = @transform_8, window_bounds = array<i64: 1, 128>}, {pipeline_mode = #tpu.pipeline_mode<synchronous>, transform_indices = @transform_9, window_bounds = array<i64: 2, 128, 128>}, {pipeline_mode = #tpu.pipeline_mode<synchronous>, transform_indices = @transform_10, window_bounds = array<i64: 1, 128>}, {pipeline_mode = #tpu.pipeline_mode<synchronous>, transform_indices = @transform_11, window_bounds = array<i64: 128, 128>}, {pipeline_mode = #tpu.pipeline_mode<synchronous>, transform_indices = @transform_12, window_bounds = array<i64: 1, 128>}, {transform_indices = @transform_13, window_bounds = array<i64: 1, 8, 128>}]} {
    %c0 = arith.constant 0 : index
    %c0_0 = arith.constant 0 : index
    %c0_1 = arith.constant 0 : index
    %0 = vector.load %arg1[%c0, %c0_0, %c0_1] : memref<1x760x128xf32, #tpu.memory_space<vmem>>, vector<1x760x128xf32>
    %1 = vector.shape_cast %0 : vector<1x760x128xf32> to vector<760x128xf32>
    %cst = arith.constant 0.000000e+00 : f32
    %2 = vector.broadcast %cst : f32 to vector<744x128xf32>
    %3 = vector.extract_strided_slice %1 {offsets = [0, 0], sizes = [744, 128], strides = [1, 1]} : vector<760x128xf32> to vector<744x128xf32>
    %4 = arith.truncf %3 : vector<744x128xf32> to vector<744x128xbf16>
    %c0_2 = arith.constant 0 : index
    %c0_3 = arith.constant 0 : index
    %c0_4 = arith.constant 0 : index
    %5 = vector.load %arg2[%c0_2, %c0_3, %c0_4] : memref<3x128x128xbf16, #tpu.memory_space<vmem>>, vector<1x128x128xbf16>
    %6 = vector.shape_cast %5 : vector<1x128x128xbf16> to vector<128x128xbf16>
    %cst_5 = arith.constant dense<0.000000e+00> : vector<744x128xf32>
    %7 = tpu.matmul %4, %6, %cst_5 {dimension_numbers = #tpu.dot_dimension_numbers<[1], [0], [0], [1], [0, 0, 1, 1], [], []>} : vector<744x128xbf16>, vector<128x128xbf16>, vector<744x128xf32> -> vector<744x128xf32>
    %8 = arith.addf %2, %7 : vector<744x128xf32>
    %9 = vector.extract_strided_slice %1 {offsets = [8, 0], sizes = [744, 128], strides = [1, 1]} : vector<760x128xf32> to vector<744x128xf32>
    %10 = arith.truncf %9 : vector<744x128xf32> to vector<744x128xbf16>
    %c1 = arith.constant 1 : index
    %c0_6 = arith.constant 0 : index
    %c0_7 = arith.constant 0 : index
    %11 = vector.load %arg2[%c1, %c0_6, %c0_7] : memref<3x128x128xbf16, #tpu.memory_space<vmem>>, vector<1x128x128xbf16>
    %12 = vector.shape_cast %11 : vector<1x128x128xbf16> to vector<128x128xbf16>
    %cst_8 = arith.constant dense<0.000000e+00> : vector<744x128xf32>
    %13 = tpu.matmul %10, %12, %cst_8 {dimension_numbers = #tpu.dot_dimension_numbers<[1], [0], [0], [1], [0, 0, 1, 1], [], []>} : vector<744x128xbf16>, vector<128x128xbf16>, vector<744x128xf32> -> vector<744x128xf32>
    %14 = arith.addf %8, %13 : vector<744x128xf32>
    %15 = vector.extract_strided_slice %1 {offsets = [16, 0], sizes = [744, 128], strides = [1, 1]} : vector<760x128xf32> to vector<744x128xf32>
    %16 = arith.truncf %15 : vector<744x128xf32> to vector<744x128xbf16>
    %c2 = arith.constant 2 : index
    %c0_9 = arith.constant 0 : index
    %c0_10 = arith.constant 0 : index
    %17 = vector.load %arg2[%c2, %c0_9, %c0_10] : memref<3x128x128xbf16, #tpu.memory_space<vmem>>, vector<1x128x128xbf16>
    %18 = vector.shape_cast %17 : vector<1x128x128xbf16> to vector<128x128xbf16>
    %cst_11 = arith.constant dense<0.000000e+00> : vector<744x128xf32>
    %19 = tpu.matmul %16, %18, %cst_11 {dimension_numbers = #tpu.dot_dimension_numbers<[1], [0], [0], [1], [0, 0, 1, 1], [], []>} : vector<744x128xbf16>, vector<128x128xbf16>, vector<744x128xf32> -> vector<744x128xf32>
    %20 = arith.addf %14, %19 : vector<744x128xf32>
    %c0_12 = arith.constant 0 : index
    %c0_13 = arith.constant 0 : index
    %21 = vector.load %arg3[%c0_12, %c0_13] : memref<1x128xf32, #tpu.memory_space<vmem>>, vector<1x128xf32>
    %22 = vector.broadcast %21 : vector<1x128xf32> to vector<744x128xf32>
    %23 = arith.addf %20, %22 : vector<744x128xf32>
    %cst_14 = arith.constant 0.000000e+00 : f32
    %24 = vector.broadcast %cst_14 : f32 to vector<744x128xf32>
    %25 = arith.cmpf oge, %23, %24 : vector<744x128xf32>
    %cst_15 = arith.constant 1.000000e-01 : f32
    %26 = vector.broadcast %cst_15 : f32 to vector<744x128xf32>
    %27 = arith.mulf %26, %23 : vector<744x128xf32>
    %28 = arith.select %25, %23, %27 : vector<744x128xi1>, vector<744x128xf32>
    %cst_16 = arith.constant 0.000000e+00 : f32
    %29 = vector.broadcast %cst_16 : f32 to vector<768x128xf32>
    %c0_17 = arith.constant 0 : index
    %c0_18 = arith.constant 0 : index
    %30 = vector.load %arg15[%c0_17, %c0_18] : memref<768x128xf32, #tpu.memory_space<vmem>>, vector<768x128xf32>
    tpu.vector_store %arg15[%c0_17, %c0_18], %29 {strides = array<i32>} : memref<768x128xf32, #tpu.memory_space<vmem>>, vector<768x128xf32>,
    %c8 = arith.constant 8 : index
    %c0_19 = arith.constant 0 : index
    %31 = vector.load %arg15[%c8, %c0_19] : memref<768x128xf32, #tpu.memory_space<vmem>>, vector<744x128xf32>
    tpu.vector_store %arg15[%c8, %c0_19], %28 {strides = array<i32>} : memref<768x128xf32, #tpu.memory_space<vmem>>, vector<744x128xf32>,
    %c0_20 = arith.constant 0 : index
    %c0_21 = arith.constant 0 : index
    %32 = vector.load %arg15[%c0_20, %c0_21] : memref<768x128xf32, #tpu.memory_space<vmem>>, vector<768x128xf32>
    %33 = vector.shape_cast %32 : vector<768x128xf32> to vector<48x2x8x128xf32>
    %34 = vector.extract_strided_slice %33 {offsets = [0, 0, 0, 0], sizes = [48, 1, 8, 128], strides = [1, 1, 1, 1]} : vector<48x2x8x128xf32> to vector<48x1x8x128xf32>
    %35 = vector.shape_cast %34 : vector<48x1x8x128xf32> to vector<48x8x128xf32>
    %36 = vector.shape_cast %35 : vector<48x8x128xf32> to vector<384x128xf32>
    %37 = vector.extract_strided_slice %33 {offsets = [0, 1, 0, 0], sizes = [48, 1, 8, 128], strides = [1, 1, 1, 1]} : vector<48x2x8x128xf32> to vector<48x1x8x128xf32>
    %38 = vector.shape_cast %37 : vector<48x1x8x128xf32> to vector<48x8x128xf32>
    %39 = vector.shape_cast %38 : vector<48x8x128xf32> to vector<384x128xf32>
    %cst_22 = arith.constant 0.000000e+00 : f32
    %40 = vector.broadcast %cst_22 : f32 to vector<352x128xf32>
    %41 = vector.extract_strided_slice %36 {offsets = [0, 0], sizes = [352, 128], strides = [1, 1]} : vector<384x128xf32> to vector<352x128xf32>
    %42 = arith.truncf %41 : vector<352x128xf32> to vector<352x128xbf16>
    %c0_23 = arith.constant 0 : index
    %c0_24 = arith.constant 0 : index
    %c0_25 = arith.constant 0 : index
    %43 = vector.load %arg4[%c0_23, %c0_24, %c0_25] : memref<9x128x128xbf16, #tpu.memory_space<vmem>>, vector<1x128x128xbf16>
    %44 = vector.shape_cast %43 : vector<1x128x128xbf16> to vector<128x128xbf16>
    %cst_26 = arith.constant dense<0.000000e+00> : vector<352x128xf32>
    %45 = tpu.matmul %42, %44, %cst_26 {dimension_numbers = #tpu.dot_dimension_numbers<[1], [0], [0], [1], [0, 0, 1, 1], [], []>} : vector<352x128xbf16>, vector<128x128xbf16>, vector<352x128xf32> -> vector<352x128xf32>
    %46 = arith.addf %40, %45 : vector<352x128xf32>
    %47 = vector.extract_strided_slice %39 {offsets = [0, 0], sizes = [352, 128], strides = [1, 1]} : vector<384x128xf32> to vector<352x128xf32>
    %48 = arith.truncf %47 : vector<352x128xf32> to vector<352x128xbf16>
    %c1_27 = arith.constant 1 : index
    %c0_28 = arith.constant 0 : index
    %c0_29 = arith.constant 0 : index
    %49 = vector.load %arg4[%c1_27, %c0_28, %c0_29] : memref<9x128x128xbf16, #tpu.memory_space<vmem>>, vector<1x128x128xbf16>
    %50 = vector.shape_cast %49 : vector<1x128x128xbf16> to vector<128x128xbf16>
    %cst_30 = arith.constant dense<0.000000e+00> : vector<352x128xf32>
    %51 = tpu.matmul %48, %50, %cst_30 {dimension_numbers = #tpu.dot_dimension_numbers<[1], [0], [0], [1], [0, 0, 1, 1], [], []>} : vector<352x128xbf16>, vector<128x128xbf16>, vector<352x128xf32> -> vector<352x128xf32>
    %52 = arith.addf %46, %51 : vector<352x128xf32>
    %53 = vector.extract_strided_slice %36 {offsets = [8, 0], sizes = [352, 128], strides = [1, 1]} : vector<384x128xf32> to vector<352x128xf32>
    %54 = arith.truncf %53 : vector<352x128xf32> to vector<352x128xbf16>
    %c2_31 = arith.constant 2 : index
    %c0_32 = arith.constant 0 : index
    %c0_33 = arith.constant 0 : index
    %55 = vector.load %arg4[%c2_31, %c0_32, %c0_33] : memref<9x128x128xbf16, #tpu.memory_space<vmem>>, vector<1x128x128xbf16>
    %56 = vector.shape_cast %55 : vector<1x128x128xbf16> to vector<128x128xbf16>
    %cst_34 = arith.constant dense<0.000000e+00> : vector<352x128xf32>
    %57 = tpu.matmul %54, %56, %cst_34 {dimension_numbers = #tpu.dot_dimension_numbers<[1], [0], [0], [1], [0, 0, 1, 1], [], []>} : vector<352x128xbf16>, vector<128x128xbf16>, vector<352x128xf32> -> vector<352x128xf32>
    %58 = arith.addf %52, %57 : vector<352x128xf32>
    %59 = vector.extract_strided_slice %39 {offsets = [8, 0], sizes = [352, 128], strides = [1, 1]} : vector<384x128xf32> to vector<352x128xf32>
    %60 = arith.truncf %59 : vector<352x128xf32> to vector<352x128xbf16>
    %c3 = arith.constant 3 : index
    %c0_35 = arith.constant 0 : index
    %c0_36 = arith.constant 0 : index
    %61 = vector.load %arg4[%c3, %c0_35, %c0_36] : memref<9x128x128xbf16, #tpu.memory_space<vmem>>, vector<1x128x128xbf16>
    %62 = vector.shape_cast %61 : vector<1x128x128xbf16> to vector<128x128xbf16>
    %cst_37 = arith.constant dense<0.000000e+00> : vector<352x128xf32>
    %63 = tpu.matmul %60, %62, %cst_37 {dimension_numbers = #tpu.dot_dimension_numbers<[1], [0], [0], [1], [0, 0, 1, 1], [], []>} : vector<352x128xbf16>, vector<128x128xbf16>, vector<352x128xf32> -> vector<352x128xf32>
    %64 = arith.addf %58, %63 : vector<352x128xf32>
    %65 = vector.extract_strided_slice %36 {offsets = [16, 0], sizes = [352, 128], strides = [1, 1]} : vector<384x128xf32> to vector<352x128xf32>
    %66 = arith.truncf %65 : vector<352x128xf32> to vector<352x128xbf16>
    %c4 = arith.constant 4 : index
    %c0_38 = arith.constant 0 : index
    %c0_39 = arith.constant 0 : index
    %67 = vector.load %arg4[%c4, %c0_38, %c0_39] : memref<9x128x128xbf16, #tpu.memory_space<vmem>>, vector<1x128x128xbf16>
    %68 = vector.shape_cast %67 : vector<1x128x128xbf16> to vector<128x128xbf16>
    %cst_40 = arith.constant dense<0.000000e+00> : vector<352x128xf32>
    %69 = tpu.matmul %66, %68, %cst_40 {dimension_numbers = #tpu.dot_dimension_numbers<[1], [0], [0], [1], [0, 0, 1, 1], [], []>} : vector<352x128xbf16>, vector<128x128xbf16>, vector<352x128xf32> -> vector<352x128xf32>
    %70 = arith.addf %64, %69 : vector<352x128xf32>
    %71 = vector.extract_strided_slice %39 {offsets = [16, 0], sizes = [352, 128], strides = [1, 1]} : vector<384x128xf32> to vector<352x128xf32>
    %72 = arith.truncf %71 : vector<352x128xf32> to vector<352x128xbf16>
    %c5 = arith.constant 5 : index
    %c0_41 = arith.constant 0 : index
    %c0_42 = arith.constant 0 : index
    %73 = vector.load %arg4[%c5, %c0_41, %c0_42] : memref<9x128x128xbf16, #tpu.memory_space<vmem>>, vector<1x128x128xbf16>
    %74 = vector.shape_cast %73 : vector<1x128x128xbf16> to vector<128x128xbf16>
    %cst_43 = arith.constant dense<0.000000e+00> : vector<352x128xf32>
    %75 = tpu.matmul %72, %74, %cst_43 {dimension_numbers = #tpu.dot_dimension_numbers<[1], [0], [0], [1], [0, 0, 1, 1], [], []>} : vector<352x128xbf16>, vector<128x128xbf16>, vector<352x128xf32> -> vector<352x128xf32>
    %76 = arith.addf %70, %75 : vector<352x128xf32>
    %77 = vector.extract_strided_slice %36 {offsets = [24, 0], sizes = [352, 128], strides = [1, 1]} : vector<384x128xf32> to vector<352x128xf32>
    %78 = arith.truncf %77 : vector<352x128xf32> to vector<352x128xbf16>
    %c6 = arith.constant 6 : index
    %c0_44 = arith.constant 0 : index
    %c0_45 = arith.constant 0 : index
    %79 = vector.load %arg4[%c6, %c0_44, %c0_45] : memref<9x128x128xbf16, #tpu.memory_space<vmem>>, vector<1x128x128xbf16>
    %80 = vector.shape_cast %79 : vector<1x128x128xbf16> to vector<128x128xbf16>
    %cst_46 = arith.constant dense<0.000000e+00> : vector<352x128xf32>
    %81 = tpu.matmul %78, %80, %cst_46 {dimension_numbers = #tpu.dot_dimension_numbers<[1], [0], [0], [1], [0, 0, 1, 1], [], []>} : vector<352x128xbf16>, vector<128x128xbf16>, vector<352x128xf32> -> vector<352x128xf32>
    %82 = arith.addf %76, %81 : vector<352x128xf32>
    %83 = vector.extract_strided_slice %39 {offsets = [24, 0], sizes = [352, 128], strides = [1, 1]} : vector<384x128xf32> to vector<352x128xf32>
    %84 = arith.truncf %83 : vector<352x128xf32> to vector<352x128xbf16>
    %c7 = arith.constant 7 : index
    %c0_47 = arith.constant 0 : index
    %c0_48 = arith.constant 0 : index
    %85 = vector.load %arg4[%c7, %c0_47, %c0_48] : memref<9x128x128xbf16, #tpu.memory_space<vmem>>, vector<1x128x128xbf16>
    %86 = vector.shape_cast %85 : vector<1x128x128xbf16> to vector<128x128xbf16>
    %cst_49 = arith.constant dense<0.000000e+00> : vector<352x128xf32>
    %87 = tpu.matmul %84, %86, %cst_49 {dimension_numbers = #tpu.dot_dimension_numbers<[1], [0], [0], [1], [0, 0, 1, 1], [], []>} : vector<352x128xbf16>, vector<128x128xbf16>, vector<352x128xf32> -> vector<352x128xf32>
    %88 = arith.addf %82, %87 : vector<352x128xf32>
    %89 = vector.extract_strided_slice %36 {offsets = [32, 0], sizes = [352, 128], strides = [1, 1]} : vector<384x128xf32> to vector<352x128xf32>
    %90 = arith.truncf %89 : vector<352x128xf32> to vector<352x128xbf16>
    %c8_50 = arith.constant 8 : index
    %c0_51 = arith.constant 0 : index
    %c0_52 = arith.constant 0 : index
    %91 = vector.load %arg4[%c8_50, %c0_51, %c0_52] : memref<9x128x128xbf16, #tpu.memory_space<vmem>>, vector<1x128x128xbf16>
    %92 = vector.shape_cast %91 : vector<1x128x128xbf16> to vector<128x128xbf16>
    %cst_53 = arith.constant dense<0.000000e+00> : vector<352x128xf32>
    %93 = tpu.matmul %90, %92, %cst_53 {dimension_numbers = #tpu.dot_dimension_numbers<[1], [0], [0], [1], [0, 0, 1, 1], [], []>} : vector<352x128xbf16>, vector<128x128xbf16>, vector<352x128xf32> -> vector<352x128xf32>
    %94 = arith.addf %88, %93 : vector<352x128xf32>
    %c0_54 = arith.constant 0 : index
    %c0_55 = arith.constant 0 : index
    %95 = vector.load %arg5[%c0_54, %c0_55] : memref<1x128xf32, #tpu.memory_space<vmem>>, vector<1x128xf32>
    %96 = vector.broadcast %95 : vector<1x128xf32> to vector<352x128xf32>
    %97 = arith.addf %94, %96 : vector<352x128xf32>
    %cst_56 = arith.constant 0.000000e+00 : f32
    %98 = vector.broadcast %cst_56 : f32 to vector<352x128xf32>
    %99 = arith.cmpf oge, %97, %98 : vector<352x128xf32>
    %cst_57 = arith.constant 1.000000e-01 : f32
    %100 = vector.broadcast %cst_57 : f32 to vector<352x128xf32>
    %101 = arith.mulf %100, %97 : vector<352x128xf32>
    %102 = arith.select %99, %97, %101 : vector<352x128xi1>, vector<352x128xf32>
    %cst_58 = arith.constant 0.000000e+00 : f32
    %103 = vector.broadcast %cst_58 : f32 to vector<384x128xf32>
    %c0_59 = arith.constant 0 : index
    %c0_60 = arith.constant 0 : index
    %104 = vector.load %arg16[%c0_59, %c0_60] : memref<384x128xf32, #tpu.memory_space<vmem>>, vector<384x128xf32>
    tpu.vector_store %arg16[%c0_59, %c0_60], %103 {strides = array<i32>} : memref<384x128xf32, #tpu.memory_space<vmem>>, vector<384x128xf32>,
    %c16 = arith.constant 16 : index
    %c0_61 = arith.constant 0 : index
    %105 = vector.load %arg16[%c16, %c0_61] : memref<384x128xf32, #tpu.memory_space<vmem>>, vector<352x128xf32>
    tpu.vector_store %arg16[%c16, %c0_61], %102 {strides = array<i32>} : memref<384x128xf32, #tpu.memory_space<vmem>>, vector<352x128xf32>,
    %c0_62 = arith.constant 0 : index
    %c0_63 = arith.constant 0 : index
    %106 = vector.load %arg16[%c0_62, %c0_63] : memref<384x128xf32, #tpu.memory_space<vmem>>, vector<384x128xf32>
    %107 = vector.shape_cast %106 : vector<384x128xf32> to vector<16x3x8x128xf32>
    %108 = vector.extract_strided_slice %107 {offsets = [0, 0, 0, 0], sizes = [16, 1, 8, 128], strides = [1, 1, 1, 1]} : vector<16x3x8x128xf32> to vector<16x1x8x128xf32>
    %109 = vector.shape_cast %108 : vector<16x1x8x128xf32> to vector<16x8x128xf32>
    %110 = vector.shape_cast %109 : vector<16x8x128xf32> to vector<128x128xf32>
    %111 = vector.extract_strided_slice %107 {offsets = [0, 1, 0, 0], sizes = [16, 1, 8, 128], strides = [1, 1, 1, 1]} : vector<16x3x8x128xf32> to vector<16x1x8x128xf32>
    %112 = vector.shape_cast %111 : vector<16x1x8x128xf32> to vector<16x8x128xf32>
    %113 = vector.shape_cast %112 : vector<16x8x128xf32> to vector<128x128xf32>
    %114 = vector.extract_strided_slice %107 {offsets = [0, 2, 0, 0], sizes = [16, 1, 8, 128], strides = [1, 1, 1, 1]} : vector<16x3x8x128xf32> to vector<16x1x8x128xf32>
    %115 = vector.shape_cast %114 : vector<16x1x8x128xf32> to vector<16x8x128xf32>
    %116 = vector.shape_cast %115 : vector<16x8x128xf32> to vector<128x128xf32>
    %cst_64 = arith.constant 0.000000e+00 : f32
    %117 = vector.broadcast %cst_64 : f32 to vector<96x256xf32>
    %118 = vector.extract_strided_slice %110 {offsets = [0, 0], sizes = [96, 128], strides = [1, 1]} : vector<128x128xf32> to vector<96x128xf32>
    %119 = arith.truncf %118 : vector<96x128xf32> to vector<96x128xbf16>
    %c0_65 = arith.constant 0 : index
    %c0_66 = arith.constant 0 : index
    %c0_67 = arith.constant 0 : index
    %120 = vector.load %arg6[%c0_65, %c0_66, %c0_67] : memref<15x128x256xbf16, #tpu.memory_space<vmem>>, vector<1x128x256xbf16>
    %121 = vector.shape_cast %120 : vector<1x128x256xbf16> to vector<128x256xbf16>
    %cst_68 = arith.constant dense<0.000000e+00> : vector<96x256xf32>
    %122 = tpu.matmul %119, %121, %cst_68 {dimension_numbers = #tpu.dot_dimension_numbers<[1], [0], [0], [1], [0, 0, 1, 1], [], []>} : vector<96x128xbf16>, vector<128x256xbf16>, vector<96x256xf32> -> vector<96x256xf32>
    %123 = arith.addf %117, %122 : vector<96x256xf32>
    %124 = vector.extract_strided_slice %113 {offsets = [0, 0], sizes = [96, 128], strides = [1, 1]} : vector<128x128xf32> to vector<96x128xf32>
    %125 = arith.truncf %124 : vector<96x128xf32> to vector<96x128xbf16>
    %c1_69 = arith.constant 1 : index
    %c0_70 = arith.constant 0 : index
    %c0_71 = arith.constant 0 : index
    %126 = vector.load %arg6[%c1_69, %c0_70, %c0_71] : memref<15x128x256xbf16, #tpu.memory_space<vmem>>, vector<1x128x256xbf16>
    %127 = vector.shape_cast %126 : vector<1x128x256xbf16> to vector<128x256xbf16>
    %cst_72 = arith.constant dense<0.000000e+00> : vector<96x256xf32>
    %128 = tpu.matmul %125, %127, %cst_72 {dimension_numbers = #tpu.dot_dimension_numbers<[1], [0], [0], [1], [0, 0, 1, 1], [], []>} : vector<96x128xbf16>, vector<128x256xbf16>, vector<96x256xf32> -> vector<96x256xf32>
    %129 = arith.addf %123, %128 : vector<96x256xf32>
    %130 = vector.extract_strided_slice %116 {offsets = [0, 0], sizes = [96, 128], strides = [1, 1]} : vector<128x128xf32> to vector<96x128xf32>
    %131 = arith.truncf %130 : vector<96x128xf32> to vector<96x128xbf16>
    %c2_73 = arith.constant 2 : index
    %c0_74 = arith.constant 0 : index
    %c0_75 = arith.constant 0 : index
    %132 = vector.load %arg6[%c2_73, %c0_74, %c0_75] : memref<15x128x256xbf16, #tpu.memory_space<vmem>>, vector<1x128x256xbf16>
    %133 = vector.shape_cast %132 : vector<1x128x256xbf16> to vector<128x256xbf16>
    %cst_76 = arith.constant dense<0.000000e+00> : vector<96x256xf32>
    %134 = tpu.matmul %131, %133, %cst_76 {dimension_numbers = #tpu.dot_dimension_numbers<[1], [0], [0], [1], [0, 0, 1, 1], [], []>} : vector<96x128xbf16>, vector<128x256xbf16>, vector<96x256xf32> -> vector<96x256xf32>
    %135 = arith.addf %129, %134 : vector<96x256xf32>
    %136 = vector.extract_strided_slice %110 {offsets = [8, 0], sizes = [96, 128], strides = [1, 1]} : vector<128x128xf32> to vector<96x128xf32>
    %137 = arith.truncf %136 : vector<96x128xf32> to vector<96x128xbf16>
    %c3_77 = arith.constant 3 : index
    %c0_78 = arith.constant 0 : index
    %c0_79 = arith.constant 0 : index
    %138 = vector.load %arg6[%c3_77, %c0_78, %c0_79] : memref<15x128x256xbf16, #tpu.memory_space<vmem>>, vector<1x128x256xbf16>
    %139 = vector.shape_cast %138 : vector<1x128x256xbf16> to vector<128x256xbf16>
    %cst_80 = arith.constant dense<0.000000e+00> : vector<96x256xf32>
    %140 = tpu.matmul %137, %139, %cst_80 {dimension_numbers = #tpu.dot_dimension_numbers<[1], [0], [0], [1], [0, 0, 1, 1], [], []>} : vector<96x128xbf16>, vector<128x256xbf16>, vector<96x256xf32> -> vector<96x256xf32>
    %141 = arith.addf %135, %140 : vector<96x256xf32>
    %142 = vector.extract_strided_slice %113 {offsets = [8, 0], sizes = [96, 128], strides = [1, 1]} : vector<128x128xf32> to vector<96x128xf32>
    %143 = arith.truncf %142 : vector<96x128xf32> to vector<96x128xbf16>
    %c4_81 = arith.constant 4 : index
    %c0_82 = arith.constant 0 : index
    %c0_83 = arith.constant 0 : index
    %144 = vector.load %arg6[%c4_81, %c0_82, %c0_83] : memref<15x128x256xbf16, #tpu.memory_space<vmem>>, vector<1x128x256xbf16>
    %145 = vector.shape_cast %144 : vector<1x128x256xbf16> to vector<128x256xbf16>
    %cst_84 = arith.constant dense<0.000000e+00> : vector<96x256xf32>
    %146 = tpu.matmul %143, %145, %cst_84 {dimension_numbers = #tpu.dot_dimension_numbers<[1], [0], [0], [1], [0, 0, 1, 1], [], []>} : vector<96x128xbf16>, vector<128x256xbf16>, vector<96x256xf32> -> vector<96x256xf32>
    %147 = arith.addf %141, %146 : vector<96x256xf32>
    %148 = vector.extract_strided_slice %116 {offsets = [8, 0], sizes = [96, 128], strides = [1, 1]} : vector<128x128xf32> to vector<96x128xf32>
    %149 = arith.truncf %148 : vector<96x128xf32> to vector<96x128xbf16>
    %c5_85 = arith.constant 5 : index
    %c0_86 = arith.constant 0 : index
    %c0_87 = arith.constant 0 : index
    %150 = vector.load %arg6[%c5_85, %c0_86, %c0_87] : memref<15x128x256xbf16, #tpu.memory_space<vmem>>, vector<1x128x256xbf16>
    %151 = vector.shape_cast %150 : vector<1x128x256xbf16> to vector<128x256xbf16>
    %cst_88 = arith.constant dense<0.000000e+00> : vector<96x256xf32>
    %152 = tpu.matmul %149, %151, %cst_88 {dimension_numbers = #tpu.dot_dimension_numbers<[1], [0], [0], [1], [0, 0, 1, 1], [], []>} : vector<96x128xbf16>, vector<128x256xbf16>, vector<96x256xf32> -> vector<96x256xf32>
    %153 = arith.addf %147, %152 : vector<96x256xf32>
    %154 = vector.extract_strided_slice %110 {offsets = [16, 0], sizes = [96, 128], strides = [1, 1]} : vector<128x128xf32> to vector<96x128xf32>
    %155 = arith.truncf %154 : vector<96x128xf32> to vector<96x128xbf16>
    %c6_89 = arith.constant 6 : index
    %c0_90 = arith.constant 0 : index
    %c0_91 = arith.constant 0 : index
    %156 = vector.load %arg6[%c6_89, %c0_90, %c0_91] : memref<15x128x256xbf16, #tpu.memory_space<vmem>>, vector<1x128x256xbf16>
    %157 = vector.shape_cast %156 : vector<1x128x256xbf16> to vector<128x256xbf16>
    %cst_92 = arith.constant dense<0.000000e+00> : vector<96x256xf32>
    %158 = tpu.matmul %155, %157, %cst_92 {dimension_numbers = #tpu.dot_dimension_numbers<[1], [0], [0], [1], [0, 0, 1, 1], [], []>} : vector<96x128xbf16>, vector<128x256xbf16>, vector<96x256xf32> -> vector<96x256xf32>
    %159 = arith.addf %153, %158 : vector<96x256xf32>
    %160 = vector.extract_strided_slice %113 {offsets = [16, 0], sizes = [96, 128], strides = [1, 1]} : vector<128x128xf32> to vector<96x128xf32>
    %161 = arith.truncf %160 : vector<96x128xf32> to vector<96x128xbf16>
    %c7_93 = arith.constant 7 : index
    %c0_94 = arith.constant 0 : index
    %c0_95 = arith.constant 0 : index
    %162 = vector.load %arg6[%c7_93, %c0_94, %c0_95] : memref<15x128x256xbf16, #tpu.memory_space<vmem>>, vector<1x128x256xbf16>
    %163 = vector.shape_cast %162 : vector<1x128x256xbf16> to vector<128x256xbf16>
    %cst_96 = arith.constant dense<0.000000e+00> : vector<96x256xf32>
    %164 = tpu.matmul %161, %163, %cst_96 {dimension_numbers = #tpu.dot_dimension_numbers<[1], [0], [0], [1], [0, 0, 1, 1], [], []>} : vector<96x128xbf16>, vector<128x256xbf16>, vector<96x256xf32> -> vector<96x256xf32>
    %165 = arith.addf %159, %164 : vector<96x256xf32>
    %166 = vector.extract_strided_slice %116 {offsets = [16, 0], sizes = [96, 128], strides = [1, 1]} : vector<128x128xf32> to vector<96x128xf32>
    %167 = arith.truncf %166 : vector<96x128xf32> to vector<96x128xbf16>
    %c8_97 = arith.constant 8 : index
    %c0_98 = arith.constant 0 : index
    %c0_99 = arith.constant 0 : index
    %168 = vector.load %arg6[%c8_97, %c0_98, %c0_99] : memref<15x128x256xbf16, #tpu.memory_space<vmem>>, vector<1x128x256xbf16>
    %169 = vector.shape_cast %168 : vector<1x128x256xbf16> to vector<128x256xbf16>
    %cst_100 = arith.constant dense<0.000000e+00> : vector<96x256xf32>
    %170 = tpu.matmul %167, %169, %cst_100 {dimension_numbers = #tpu.dot_dimension_numbers<[1], [0], [0], [1], [0, 0, 1, 1], [], []>} : vector<96x128xbf16>, vector<128x256xbf16>, vector<96x256xf32> -> vector<96x256xf32>
    %171 = arith.addf %165, %170 : vector<96x256xf32>
    %172 = vector.extract_strided_slice %110 {offsets = [24, 0], sizes = [96, 128], strides = [1, 1]} : vector<128x128xf32> to vector<96x128xf32>
    %173 = arith.truncf %172 : vector<96x128xf32> to vector<96x128xbf16>
    %c9 = arith.constant 9 : index
    %c0_101 = arith.constant 0 : index
    %c0_102 = arith.constant 0 : index
    %174 = vector.load %arg6[%c9, %c0_101, %c0_102] : memref<15x128x256xbf16, #tpu.memory_space<vmem>>, vector<1x128x256xbf16>
    %175 = vector.shape_cast %174 : vector<1x128x256xbf16> to vector<128x256xbf16>
    %cst_103 = arith.constant dense<0.000000e+00> : vector<96x256xf32>
    %176 = tpu.matmul %173, %175, %cst_103 {dimension_numbers = #tpu.dot_dimension_numbers<[1], [0], [0], [1], [0, 0, 1, 1], [], []>} : vector<96x128xbf16>, vector<128x256xbf16>, vector<96x256xf32> -> vector<96x256xf32>
    %177 = arith.addf %171, %176 : vector<96x256xf32>
    %178 = vector.extract_strided_slice %113 {offsets = [24, 0], sizes = [96, 128], strides = [1, 1]} : vector<128x128xf32> to vector<96x128xf32>
    %179 = arith.truncf %178 : vector<96x128xf32> to vector<96x128xbf16>
    %c10 = arith.constant 10 : index
    %c0_104 = arith.constant 0 : index
    %c0_105 = arith.constant 0 : index
    %180 = vector.load %arg6[%c10, %c0_104, %c0_105] : memref<15x128x256xbf16, #tpu.memory_space<vmem>>, vector<1x128x256xbf16>
    %181 = vector.shape_cast %180 : vector<1x128x256xbf16> to vector<128x256xbf16>
    %cst_106 = arith.constant dense<0.000000e+00> : vector<96x256xf32>
    %182 = tpu.matmul %179, %181, %cst_106 {dimension_numbers = #tpu.dot_dimension_numbers<[1], [0], [0], [1], [0, 0, 1, 1], [], []>} : vector<96x128xbf16>, vector<128x256xbf16>, vector<96x256xf32> -> vector<96x256xf32>
    %183 = arith.addf %177, %182 : vector<96x256xf32>
    %184 = vector.extract_strided_slice %116 {offsets = [24, 0], sizes = [96, 128], strides = [1, 1]} : vector<128x128xf32> to vector<96x128xf32>
    %185 = arith.truncf %184 : vector<96x128xf32> to vector<96x128xbf16>
    %c11 = arith.constant 11 : index
    %c0_107 = arith.constant 0 : index
    %c0_108 = arith.constant 0 : index
    %186 = vector.load %arg6[%c11, %c0_107, %c0_108] : memref<15x128x256xbf16, #tpu.memory_space<vmem>>, vector<1x128x256xbf16>
    %187 = vector.shape_cast %186 : vector<1x128x256xbf16> to vector<128x256xbf16>
    %cst_109 = arith.constant dense<0.000000e+00> : vector<96x256xf32>
    %188 = tpu.matmul %185, %187, %cst_109 {dimension_numbers = #tpu.dot_dimension_numbers<[1], [0], [0], [1], [0, 0, 1, 1], [], []>} : vector<96x128xbf16>, vector<128x256xbf16>, vector<96x256xf32> -> vector<96x256xf32>
    %189 = arith.addf %183, %188 : vector<96x256xf32>
    %190 = vector.extract_strided_slice %110 {offsets = [32, 0], sizes = [96, 128], strides = [1, 1]} : vector<128x128xf32> to vector<96x128xf32>
    %191 = arith.truncf %190 : vector<96x128xf32> to vector<96x128xbf16>
    %c12 = arith.constant 12 : index
    %c0_110 = arith.constant 0 : index
    %c0_111 = arith.constant 0 : index
    %192 = vector.load %arg6[%c12, %c0_110, %c0_111] : memref<15x128x256xbf16, #tpu.memory_space<vmem>>, vector<1x128x256xbf16>
    %193 = vector.shape_cast %192 : vector<1x128x256xbf16> to vector<128x256xbf16>
    %cst_112 = arith.constant dense<0.000000e+00> : vector<96x256xf32>
    %194 = tpu.matmul %191, %193, %cst_112 {dimension_numbers = #tpu.dot_dimension_numbers<[1], [0], [0], [1], [0, 0, 1, 1], [], []>} : vector<96x128xbf16>, vector<128x256xbf16>, vector<96x256xf32> -> vector<96x256xf32>
    %195 = arith.addf %189, %194 : vector<96x256xf32>
    %196 = vector.extract_strided_slice %113 {offsets = [32, 0], sizes = [96, 128], strides = [1, 1]} : vector<128x128xf32> to vector<96x128xf32>
    %197 = arith.truncf %196 : vector<96x128xf32> to vector<96x128xbf16>
    %c13 = arith.constant 13 : index
    %c0_113 = arith.constant 0 : index
    %c0_114 = arith.constant 0 : index
    %198 = vector.load %arg6[%c13, %c0_113, %c0_114] : memref<15x128x256xbf16, #tpu.memory_space<vmem>>, vector<1x128x256xbf16>
    %199 = vector.shape_cast %198 : vector<1x128x256xbf16> to vector<128x256xbf16>
    %cst_115 = arith.constant dense<0.000000e+00> : vector<96x256xf32>
    %200 = tpu.matmul %197, %199, %cst_115 {dimension_numbers = #tpu.dot_dimension_numbers<[1], [0], [0], [1], [0, 0, 1, 1], [], []>} : vector<96x128xbf16>, vector<128x256xbf16>, vector<96x256xf32> -> vector<96x256xf32>
    %201 = arith.addf %195, %200 : vector<96x256xf32>
    %202 = vector.extract_strided_slice %116 {offsets = [32, 0], sizes = [96, 128], strides = [1, 1]} : vector<128x128xf32> to vector<96x128xf32>
    %203 = arith.truncf %202 : vector<96x128xf32> to vector<96x128xbf16>
    %c14 = arith.constant 14 : index
    %c0_116 = arith.constant 0 : index
    %c0_117 = arith.constant 0 : index
    %204 = vector.load %arg6[%c14, %c0_116, %c0_117] : memref<15x128x256xbf16, #tpu.memory_space<vmem>>, vector<1x128x256xbf16>
    %205 = vector.shape_cast %204 : vector<1x128x256xbf16> to vector<128x256xbf16>
    %cst_118 = arith.constant dense<0.000000e+00> : vector<96x256xf32>
    %206 = tpu.matmul %203, %205, %cst_118 {dimension_numbers = #tpu.dot_dimension_numbers<[1], [0], [0], [1], [0, 0, 1, 1], [], []>} : vector<96x128xbf16>, vector<128x256xbf16>, vector<96x256xf32> -> vector<96x256xf32>
    %207 = arith.addf %201, %206 : vector<96x256xf32>
    %c0_119 = arith.constant 0 : index
    %c0_120 = arith.constant 0 : index
    %208 = vector.load %arg7[%c0_119, %c0_120] : memref<1x256xf32, #tpu.memory_space<vmem>>, vector<1x256xf32>
    %209 = vector.broadcast %208 : vector<1x256xf32> to vector<96x256xf32>
    %210 = arith.addf %207, %209 : vector<96x256xf32>
    %cst_121 = arith.constant 0.000000e+00 : f32
    %211 = vector.broadcast %cst_121 : f32 to vector<96x256xf32>
    %212 = arith.cmpf oge, %210, %211 : vector<96x256xf32>
    %cst_122 = arith.constant 1.000000e-01 : f32
    %213 = vector.broadcast %cst_122 : f32 to vector<96x256xf32>
    %214 = arith.mulf %213, %210 : vector<96x256xf32>
    %215 = arith.select %212, %210, %214 : vector<96x256xi1>, vector<96x256xf32>
    %cst_123 = arith.constant 0.000000e+00 : f32
    %216 = vector.broadcast %cst_123 : f32 to vector<128x256xf32>
    %c0_124 = arith.constant 0 : index
    %c0_125 = arith.constant 0 : index
    %217 = vector.load %arg17[%c0_124, %c0_125] : memref<128x256xf32, #tpu.memory_space<vmem>>, vector<128x256xf32>
    tpu.vector_store %arg17[%c0_124, %c0_125], %216 {strides = array<i32>} : memref<128x256xf32, #tpu.memory_space<vmem>>, vector<128x256xf32>,
    %c16_126 = arith.constant 16 : index
    %c0_127 = arith.constant 0 : index
    %218 = vector.load %arg17[%c16_126, %c0_127] : memref<128x256xf32, #tpu.memory_space<vmem>>, vector<96x256xf32>
    tpu.vector_store %arg17[%c16_126, %c0_127], %215 {strides = array<i32>} : memref<128x256xf32, #tpu.memory_space<vmem>>, vector<96x256xf32>,
    %c0_128 = arith.constant 0 : index
    %c0_129 = arith.constant 0 : index
    %219 = vector.load %arg17[%c0_128, %c0_129] : memref<128x256xf32, #tpu.memory_space<vmem>>, vector<128x256xf32>
    %220 = vector.shape_cast %219 : vector<128x256xf32> to vector<8x2x8x256xf32>
    %221 = vector.extract_strided_slice %220 {offsets = [0, 0, 0, 0], sizes = [8, 1, 8, 256], strides = [1, 1, 1, 1]} : vector<8x2x8x256xf32> to vector<8x1x8x256xf32>
    %222 = vector.shape_cast %221 : vector<8x1x8x256xf32> to vector<8x8x256xf32>
    %223 = vector.shape_cast %222 : vector<8x8x256xf32> to vector<64x256xf32>
    %224 = vector.extract_strided_slice %220 {offsets = [0, 1, 0, 0], sizes = [8, 1, 8, 256], strides = [1, 1, 1, 1]} : vector<8x2x8x256xf32> to vector<8x1x8x256xf32>
    %225 = vector.shape_cast %224 : vector<8x1x8x256xf32> to vector<8x8x256xf32>
    %226 = vector.shape_cast %225 : vector<8x8x256xf32> to vector<64x256xf32>
    %cst_130 = arith.constant 0.000000e+00 : f32
    %227 = vector.broadcast %cst_130 : f32 to vector<32x128xf32>
    %228 = vector.extract_strided_slice %223 {offsets = [0, 0], sizes = [32, 256], strides = [1, 1]} : vector<64x256xf32> to vector<32x256xf32>
    %229 = arith.truncf %228 : vector<32x256xf32> to vector<32x256xbf16>
    %c0_131 = arith.constant 0 : index
    %c0_132 = arith.constant 0 : index
    %c0_133 = arith.constant 0 : index
    %230 = vector.load %arg8[%c0_131, %c0_132, %c0_133] : memref<10x256x128xbf16, #tpu.memory_space<vmem>>, vector<1x256x128xbf16>
    %231 = vector.shape_cast %230 : vector<1x256x128xbf16> to vector<256x128xbf16>
    %cst_134 = arith.constant dense<0.000000e+00> : vector<32x128xf32>
    %232 = tpu.matmul %229, %231, %cst_134 {dimension_numbers = #tpu.dot_dimension_numbers<[1], [0], [0], [1], [0, 0, 1, 1], [], []>} : vector<32x256xbf16>, vector<256x128xbf16>, vector<32x128xf32> -> vector<32x128xf32>
    %233 = arith.addf %227, %232 : vector<32x128xf32>
    %234 = vector.extract_strided_slice %226 {offsets = [0, 0], sizes = [32, 256], strides = [1, 1]} : vector<64x256xf32> to vector<32x256xf32>
    %235 = arith.truncf %234 : vector<32x256xf32> to vector<32x256xbf16>
    %c1_135 = arith.constant 1 : index
    %c0_136 = arith.constant 0 : index
    %c0_137 = arith.constant 0 : index
    %236 = vector.load %arg8[%c1_135, %c0_136, %c0_137] : memref<10x256x128xbf16, #tpu.memory_space<vmem>>, vector<1x256x128xbf16>
    %237 = vector.shape_cast %236 : vector<1x256x128xbf16> to vector<256x128xbf16>
    %cst_138 = arith.constant dense<0.000000e+00> : vector<32x128xf32>
    %238 = tpu.matmul %235, %237, %cst_138 {dimension_numbers = #tpu.dot_dimension_numbers<[1], [0], [0], [1], [0, 0, 1, 1], [], []>} : vector<32x256xbf16>, vector<256x128xbf16>, vector<32x128xf32> -> vector<32x128xf32>
    %239 = arith.addf %233, %238 : vector<32x128xf32>
    %240 = vector.extract_strided_slice %223 {offsets = [8, 0], sizes = [32, 256], strides = [1, 1]} : vector<64x256xf32> to vector<32x256xf32>
    %241 = arith.truncf %240 : vector<32x256xf32> to vector<32x256xbf16>
    %c2_139 = arith.constant 2 : index
    %c0_140 = arith.constant 0 : index
    %c0_141 = arith.constant 0 : index
    %242 = vector.load %arg8[%c2_139, %c0_140, %c0_141] : memref<10x256x128xbf16, #tpu.memory_space<vmem>>, vector<1x256x128xbf16>
    %243 = vector.shape_cast %242 : vector<1x256x128xbf16> to vector<256x128xbf16>
    %cst_142 = arith.constant dense<0.000000e+00> : vector<32x128xf32>
    %244 = tpu.matmul %241, %243, %cst_142 {dimension_numbers = #tpu.dot_dimension_numbers<[1], [0], [0], [1], [0, 0, 1, 1], [], []>} : vector<32x256xbf16>, vector<256x128xbf16>, vector<32x128xf32> -> vector<32x128xf32>
    %245 = arith.addf %239, %244 : vector<32x128xf32>
    %246 = vector.extract_strided_slice %226 {offsets = [8, 0], sizes = [32, 256], strides = [1, 1]} : vector<64x256xf32> to vector<32x256xf32>
    %247 = arith.truncf %246 : vector<32x256xf32> to vector<32x256xbf16>
    %c3_143 = arith.constant 3 : index
    %c0_144 = arith.constant 0 : index
    %c0_145 = arith.constant 0 : index
    %248 = vector.load %arg8[%c3_143, %c0_144, %c0_145] : memref<10x256x128xbf16, #tpu.memory_space<vmem>>, vector<1x256x128xbf16>
    %249 = vector.shape_cast %248 : vector<1x256x128xbf16> to vector<256x128xbf16>
    %cst_146 = arith.constant dense<0.000000e+00> : vector<32x128xf32>
    %250 = tpu.matmul %247, %249, %cst_146 {dimension_numbers = #tpu.dot_dimension_numbers<[1], [0], [0], [1], [0, 0, 1, 1], [], []>} : vector<32x256xbf16>, vector<256x128xbf16>, vector<32x128xf32> -> vector<32x128xf32>
    %251 = arith.addf %245, %250 : vector<32x128xf32>
    %252 = vector.extract_strided_slice %223 {offsets = [16, 0], sizes = [32, 256], strides = [1, 1]} : vector<64x256xf32> to vector<32x256xf32>
    %253 = arith.truncf %252 : vector<32x256xf32> to vector<32x256xbf16>
    %c4_147 = arith.constant 4 : index
    %c0_148 = arith.constant 0 : index
    %c0_149 = arith.constant 0 : index
    %254 = vector.load %arg8[%c4_147, %c0_148, %c0_149] : memref<10x256x128xbf16, #tpu.memory_space<vmem>>, vector<1x256x128xbf16>
    %255 = vector.shape_cast %254 : vector<1x256x128xbf16> to vector<256x128xbf16>
    %cst_150 = arith.constant dense<0.000000e+00> : vector<32x128xf32>
    %256 = tpu.matmul %253, %255, %cst_150 {dimension_numbers = #tpu.dot_dimension_numbers<[1], [0], [0], [1], [0, 0, 1, 1], [], []>} : vector<32x256xbf16>, vector<256x128xbf16>, vector<32x128xf32> -> vector<32x128xf32>
    %257 = arith.addf %251, %256 : vector<32x128xf32>
    %258 = vector.extract_strided_slice %226 {offsets = [16, 0], sizes = [32, 256], strides = [1, 1]} : vector<64x256xf32> to vector<32x256xf32>
    %259 = arith.truncf %258 : vector<32x256xf32> to vector<32x256xbf16>
    %c5_151 = arith.constant 5 : index
    %c0_152 = arith.constant 0 : index
    %c0_153 = arith.constant 0 : index
    %260 = vector.load %arg8[%c5_151, %c0_152, %c0_153] : memref<10x256x128xbf16, #tpu.memory_space<vmem>>, vector<1x256x128xbf16>
    %261 = vector.shape_cast %260 : vector<1x256x128xbf16> to vector<256x128xbf16>
    %cst_154 = arith.constant dense<0.000000e+00> : vector<32x128xf32>
    %262 = tpu.matmul %259, %261, %cst_154 {dimension_numbers = #tpu.dot_dimension_numbers<[1], [0], [0], [1], [0, 0, 1, 1], [], []>} : vector<32x256xbf16>, vector<256x128xbf16>, vector<32x128xf32> -> vector<32x128xf32>
    %263 = arith.addf %257, %262 : vector<32x128xf32>
    %264 = vector.extract_strided_slice %223 {offsets = [24, 0], sizes = [32, 256], strides = [1, 1]} : vector<64x256xf32> to vector<32x256xf32>
    %265 = arith.truncf %264 : vector<32x256xf32> to vector<32x256xbf16>
    %c6_155 = arith.constant 6 : index
    %c0_156 = arith.constant 0 : index
    %c0_157 = arith.constant 0 : index
    %266 = vector.load %arg8[%c6_155, %c0_156, %c0_157] : memref<10x256x128xbf16, #tpu.memory_space<vmem>>, vector<1x256x128xbf16>
    %267 = vector.shape_cast %266 : vector<1x256x128xbf16> to vector<256x128xbf16>
    %cst_158 = arith.constant dense<0.000000e+00> : vector<32x128xf32>
    %268 = tpu.matmul %265, %267, %cst_158 {dimension_numbers = #tpu.dot_dimension_numbers<[1], [0], [0], [1], [0, 0, 1, 1], [], []>} : vector<32x256xbf16>, vector<256x128xbf16>, vector<32x128xf32> -> vector<32x128xf32>
    %269 = arith.addf %263, %268 : vector<32x128xf32>
    %270 = vector.extract_strided_slice %226 {offsets = [24, 0], sizes = [32, 256], strides = [1, 1]} : vector<64x256xf32> to vector<32x256xf32>
    %271 = arith.truncf %270 : vector<32x256xf32> to vector<32x256xbf16>
    %c7_159 = arith.constant 7 : index
    %c0_160 = arith.constant 0 : index
    %c0_161 = arith.constant 0 : index
    %272 = vector.load %arg8[%c7_159, %c0_160, %c0_161] : memref<10x256x128xbf16, #tpu.memory_space<vmem>>, vector<1x256x128xbf16>
    %273 = vector.shape_cast %272 : vector<1x256x128xbf16> to vector<256x128xbf16>
    %cst_162 = arith.constant dense<0.000000e+00> : vector<32x128xf32>
    %274 = tpu.matmul %271, %273, %cst_162 {dimension_numbers = #tpu.dot_dimension_numbers<[1], [0], [0], [1], [0, 0, 1, 1], [], []>} : vector<32x256xbf16>, vector<256x128xbf16>, vector<32x128xf32> -> vector<32x128xf32>
    %275 = arith.addf %269, %274 : vector<32x128xf32>
    %276 = vector.extract_strided_slice %223 {offsets = [32, 0], sizes = [32, 256], strides = [1, 1]} : vector<64x256xf32> to vector<32x256xf32>
    %277 = arith.truncf %276 : vector<32x256xf32> to vector<32x256xbf16>
    %c8_163 = arith.constant 8 : index
    %c0_164 = arith.constant 0 : index
    %c0_165 = arith.constant 0 : index
    %278 = vector.load %arg8[%c8_163, %c0_164, %c0_165] : memref<10x256x128xbf16, #tpu.memory_space<vmem>>, vector<1x256x128xbf16>
    %279 = vector.shape_cast %278 : vector<1x256x128xbf16> to vector<256x128xbf16>
    %cst_166 = arith.constant dense<0.000000e+00> : vector<32x128xf32>
    %280 = tpu.matmul %277, %279, %cst_166 {dimension_numbers = #tpu.dot_dimension_numbers<[1], [0], [0], [1], [0, 0, 1, 1], [], []>} : vector<32x256xbf16>, vector<256x128xbf16>, vector<32x128xf32> -> vector<32x128xf32>
    %281 = arith.addf %275, %280 : vector<32x128xf32>
    %282 = vector.extract_strided_slice %226 {offsets = [32, 0], sizes = [32, 256], strides = [1, 1]} : vector<64x256xf32> to vector<32x256xf32>
    %283 = arith.truncf %282 : vector<32x256xf32> to vector<32x256xbf16>
    %c9_167 = arith.constant 9 : index
    %c0_168 = arith.constant 0 : index
    %c0_169 = arith.constant 0 : index
    %284 = vector.load %arg8[%c9_167, %c0_168, %c0_169] : memref<10x256x128xbf16, #tpu.memory_space<vmem>>, vector<1x256x128xbf16>
    %285 = vector.shape_cast %284 : vector<1x256x128xbf16> to vector<256x128xbf16>
    %cst_170 = arith.constant dense<0.000000e+00> : vector<32x128xf32>
    %286 = tpu.matmul %283, %285, %cst_170 {dimension_numbers = #tpu.dot_dimension_numbers<[1], [0], [0], [1], [0, 0, 1, 1], [], []>} : vector<32x256xbf16>, vector<256x128xbf16>, vector<32x128xf32> -> vector<32x128xf32>
    %287 = arith.addf %281, %286 : vector<32x128xf32>
    %c0_171 = arith.constant 0 : index
    %c0_172 = arith.constant 0 : index
    %288 = vector.load %arg9[%c0_171, %c0_172] : memref<1x128xf32, #tpu.memory_space<vmem>>, vector<1x128xf32>
    %289 = vector.broadcast %288 : vector<1x128xf32> to vector<32x128xf32>
    %290 = arith.addf %287, %289 : vector<32x128xf32>
    %cst_173 = arith.constant 0.000000e+00 : f32
    %291 = vector.broadcast %cst_173 : f32 to vector<32x128xf32>
    %292 = arith.cmpf oge, %290, %291 : vector<32x128xf32>
    %cst_174 = arith.constant 1.000000e-01 : f32
    %293 = vector.broadcast %cst_174 : f32 to vector<32x128xf32>
    %294 = arith.mulf %293, %290 : vector<32x128xf32>
    %295 = arith.select %292, %290, %294 : vector<32x128xi1>, vector<32x128xf32>
    %296 = vector.extract_strided_slice %295 {offsets = [0, 0], sizes = [8, 128], strides = [1, 1]} : vector<32x128xf32> to vector<8x128xf32>
    %297 = vector.extract_strided_slice %295 {offsets = [8, 0], sizes = [8, 128], strides = [1, 1]} : vector<32x128xf32> to vector<8x128xf32>
    %298 = arith.maximumf %296, %297 : vector<8x128xf32>
    %299 = vector.extract_strided_slice %295 {offsets = [16, 0], sizes = [8, 128], strides = [1, 1]} : vector<32x128xf32> to vector<8x128xf32>
    %300 = vector.extract_strided_slice %295 {offsets = [24, 0], sizes = [8, 128], strides = [1, 1]} : vector<32x128xf32> to vector<8x128xf32>
    %301 = arith.maximumf %299, %300 : vector<8x128xf32>
    %302 = arith.truncf %298 : vector<8x128xf32> to vector<8x128xbf16>
    %c0_175 = arith.constant 0 : index
    %c0_176 = arith.constant 0 : index
    %c0_177 = arith.constant 0 : index
    %303 = vector.load %arg10[%c0_175, %c0_176, %c0_177] : memref<2x128x128xbf16, #tpu.memory_space<vmem>>, vector<1x128x128xbf16>
    %304 = vector.shape_cast %303 : vector<1x128x128xbf16> to vector<128x128xbf16>
    %cst_178 = arith.constant dense<0.000000e+00> : vector<8x128xf32>
    %305 = tpu.matmul %302, %304, %cst_178 {dimension_numbers = #tpu.dot_dimension_numbers<[1], [0], [0], [1], [0, 0, 1, 1], [], []>} : vector<8x128xbf16>, vector<128x128xbf16>, vector<8x128xf32> -> vector<8x128xf32>
    %306 = arith.truncf %301 : vector<8x128xf32> to vector<8x128xbf16>
    %c1_179 = arith.constant 1 : index
    %c0_180 = arith.constant 0 : index
    %c0_181 = arith.constant 0 : index
    %307 = vector.load %arg10[%c1_179, %c0_180, %c0_181] : memref<2x128x128xbf16, #tpu.memory_space<vmem>>, vector<1x128x128xbf16>
    %308 = vector.shape_cast %307 : vector<1x128x128xbf16> to vector<128x128xbf16>
    %cst_182 = arith.constant dense<0.000000e+00> : vector<8x128xf32>
    %309 = tpu.matmul %306, %308, %cst_182 {dimension_numbers = #tpu.dot_dimension_numbers<[1], [0], [0], [1], [0, 0, 1, 1], [], []>} : vector<8x128xbf16>, vector<128x128xbf16>, vector<8x128xf32> -> vector<8x128xf32>
    %310 = arith.addf %305, %309 : vector<8x128xf32>
    %c0_183 = arith.constant 0 : index
    %c0_184 = arith.constant 0 : index
    %311 = vector.load %arg11[%c0_183, %c0_184] : memref<1x128xf32, #tpu.memory_space<vmem>>, vector<1x128xf32>
    %312 = vector.broadcast %311 : vector<1x128xf32> to vector<8x128xf32>
    %313 = arith.addf %310, %312 : vector<8x128xf32>
    %cst_185 = arith.constant 0.000000e+00 : f32
    %314 = vector.broadcast %cst_185 : f32 to vector<8x128xf32>
    %315 = arith.cmpf oge, %313, %314 : vector<8x128xf32>
    %cst_186 = arith.constant 1.000000e-01 : f32
    %316 = vector.broadcast %cst_186 : f32 to vector<8x128xf32>
    %317 = arith.mulf %316, %313 : vector<8x128xf32>
    %318 = arith.select %315, %313, %317 : vector<8x128xi1>, vector<8x128xf32>
    %319 = arith.truncf %318 : vector<8x128xf32> to vector<8x128xbf16>
    %c0_187 = arith.constant 0 : index
    %c0_188 = arith.constant 0 : index
    %320 = vector.load %arg12[%c0_187, %c0_188] : memref<128x128xbf16, #tpu.memory_space<vmem>>, vector<128x128xbf16>
    %cst_189 = arith.constant dense<0.000000e+00> : vector<8x128xf32>
    %321 = tpu.matmul %319, %320, %cst_189 {dimension_numbers = #tpu.dot_dimension_numbers<[1], [0], [0], [1], [0, 0, 1, 1], [], []>} : vector<8x128xbf16>, vector<128x128xbf16>, vector<8x128xf32> -> vector<8x128xf32>
    %c0_190 = arith.constant 0 : index
    %c0_191 = arith.constant 0 : index
    %322 = vector.load %arg13[%c0_190, %c0_191] : memref<1x128xf32, #tpu.memory_space<vmem>>, vector<1x128xf32>
    %323 = vector.broadcast %322 : vector<1x128xf32> to vector<8x128xf32>
    %324 = arith.addf %321, %323 : vector<8x128xf32>
    %cst_192 = arith.constant 0.000000e+00 : f32
    %325 = vector.broadcast %cst_192 : f32 to vector<8x128xf32>
    %326 = arith.cmpf oge, %324, %325 : vector<8x128xf32>
    %cst_193 = arith.constant 1.000000e-01 : f32
    %327 = vector.broadcast %cst_193 : f32 to vector<8x128xf32>
    %328 = arith.mulf %327, %324 : vector<8x128xf32>
    %329 = arith.select %326, %324, %328 : vector<8x128xi1>, vector<8x128xf32>
    %cst_194 = arith.constant 0.000000e+00 : f32
    %330 = vector.broadcast %cst_194 : f32 to vector<8x128xf32>
    %331 = arith.subf %330, %329 : vector<8x128xf32>
    %332 = math.exp %331 : vector<8x128xf32>
    %cst_195 = arith.constant 1.000000e+00 : f32
    %333 = vector.broadcast %cst_195 : f32 to vector<8x128xf32>
    %334 = arith.addf %333, %332 : vector<8x128xf32>
    %cst_196 = arith.constant 1.000000e+00 : f32
    %335 = vector.broadcast %cst_196 : f32 to vector<8x128xf32>
    %336 = arith.divf %335, %334 : vector<8x128xf32>
    %c0_197 = arith.constant 0 : index
    %c0_198 = arith.constant 0 : index
    %c0_199 = arith.constant 0 : index
    %337 = vector.load %arg14[%c0_197, %c0_198, %c0_199] : memref<1x8x128xf32, #tpu.memory_space<vmem>>, vector<1x8x128xf32>
    %338 = vector.shape_cast %337 : vector<1x8x128xf32> to vector<8x128xf32>
    %339 = vector.shape_cast %336 : vector<8x128xf32> to vector<1x8x128xf32>
    tpu.vector_store %arg14[%c0_197, %c0_198, %c0_199], %339 {strides = array<i32>} : memref<1x8x128xf32, #tpu.memory_space<vmem>>, vector<1x8x128xf32>,
    return
  }
  func.func @transform_0(%arg0: i32) -> (i32, i32, i32) {
    %c0_i32 = arith.constant 0 : i32
    %c0_i32_0 = arith.constant 0 : i32
    %c0_i32_1 = arith.constant 0 : i32
    return %arg0, %c0_i32, %c0_i32_0 : i32, i32, i32
  }
  func.func @transform_1(%arg0: i32) -> (i32, i32, i32) {
    %c0_i32 = arith.constant 0 : i32
    %c0_i32_0 = arith.constant 0 : i32
    %c0_i32_1 = arith.constant 0 : i32
    %c0_i32_2 = arith.constant 0 : i32
    return %c0_i32, %c0_i32_0, %c0_i32_1 : i32, i32, i32
  }
  func.func @transform_2(%arg0: i32) -> (i32, i32) {
    %c0_i32 = arith.constant 0 : i32
    %c0_i32_0 = arith.constant 0 : i32
    %c0_i32_1 = arith.constant 0 : i32
    return %c0_i32, %c0_i32_0 : i32, i32
  }
  func.func @transform_3(%arg0: i32) -> (i32, i32, i32) {
    %c0_i32 = arith.constant 0 : i32
    %c0_i32_0 = arith.constant 0 : i32
    %c0_i32_1 = arith.constant 0 : i32
    %c0_i32_2 = arith.constant 0 : i32
    return %c0_i32, %c0_i32_0, %c0_i32_1 : i32, i32, i32
  }
  func.func @transform_4(%arg0: i32) -> (i32, i32) {
    %c0_i32 = arith.constant 0 : i32
    %c0_i32_0 = arith.constant 0 : i32
    %c0_i32_1 = arith.constant 0 : i32
    return %c0_i32, %c0_i32_0 : i32, i32
  }
  func.func @transform_5(%arg0: i32) -> (i32, i32, i32) {
    %c0_i32 = arith.constant 0 : i32
    %c0_i32_0 = arith.constant 0 : i32
    %c0_i32_1 = arith.constant 0 : i32
    %c0_i32_2 = arith.constant 0 : i32
    return %c0_i32, %c0_i32_0, %c0_i32_1 : i32, i32, i32
  }
  func.func @transform_6(%arg0: i32) -> (i32, i32) {
    %c0_i32 = arith.constant 0 : i32
    %c0_i32_0 = arith.constant 0 : i32
    %c0_i32_1 = arith.constant 0 : i32
    return %c0_i32, %c0_i32_0 : i32, i32
  }
  func.func @transform_7(%arg0: i32) -> (i32, i32, i32) {
    %c0_i32 = arith.constant 0 : i32
    %c0_i32_0 = arith.constant 0 : i32
    %c0_i32_1 = arith.constant 0 : i32
    %c0_i32_2 = arith.constant 0 : i32
    return %c0_i32, %c0_i32_0, %c0_i32_1 : i32, i32, i32
  }
  func.func @transform_8(%arg0: i32) -> (i32, i32) {
    %c0_i32 = arith.constant 0 : i32
    %c0_i32_0 = arith.constant 0 : i32
    %c0_i32_1 = arith.constant 0 : i32
    return %c0_i32, %c0_i32_0 : i32, i32
  }
  func.func @transform_9(%arg0: i32) -> (i32, i32, i32) {
    %c0_i32 = arith.constant 0 : i32
    %c0_i32_0 = arith.constant 0 : i32
    %c0_i32_1 = arith.constant 0 : i32
    %c0_i32_2 = arith.constant 0 : i32
    return %c0_i32, %c0_i32_0, %c0_i32_1 : i32, i32, i32
  }
  func.func @transform_10(%arg0: i32) -> (i32, i32) {
    %c0_i32 = arith.constant 0 : i32
    %c0_i32_0 = arith.constant 0 : i32
    %c0_i32_1 = arith.constant 0 : i32
    return %c0_i32, %c0_i32_0 : i32, i32
  }
  func.func @transform_11(%arg0: i32) -> (i32, i32) {
    %c0_i32 = arith.constant 0 : i32
    %c0_i32_0 = arith.constant 0 : i32
    %c0_i32_1 = arith.constant 0 : i32
    return %c0_i32, %c0_i32_0 : i32, i32
  }
  func.func @transform_12(%arg0: i32) -> (i32, i32) {
    %c0_i32 = arith.constant 0 : i32
    %c0_i32_0 = arith.constant 0 : i32
    %c0_i32_1 = arith.constant 0 : i32
    return %c0_i32, %c0_i32_0 : i32, i32
  }
  func.func @transform_13(%arg0: i32) -> (i32, i32, i32) {
    %c0_i32 = arith.constant 0 : i32
    %c0_i32_0 = arith.constant 0 : i32
    %c0_i32_1 = arith.constant 0 : i32
    return %arg0, %c0_i32, %c0_i32_0 : i32, i32, i32
  }
}

</mosaic_0001>

<bundles_post_ra>
// kernel: net_forward.1
= control target key start
LH: loop header
LB: loop body
LE: loop exit
PB: predicated region body
PF: predicated region fallthrough
CT: control target
= control target key end

     0   :  { %18 = vsyncpa [#allocation6], 0  ;;  %s19256_s0 = inlined_call_operand.vmem [shape: f32[1,760,128], index: 0, kind: input, shape index: {}]   ;;  %s19257_s1 = inlined_call_operand.vmem [shape: bf16[3,128,128], index: 1, kind: input, shape index: {}]   ;;  %s19258_s2 = inlined_call_operand.vmem [shape: f32[1,128], index: 2, kind: input, shape index: {}]   ;;  %s19259_s3 = inlined_call_operand.vmem [shape: bf16[9,128,128], index: 3, kind: input, shape index: {}]   ;;  %s19260_s4 = inlined_call_operand.vmem [shape: f32[1,128], index: 4, kind: input, shape index: {}]   ;;  %s19261_s5 = inlined_call_operand.hbm [shape: bf16[15,128,256], index: 5, kind: input, shape index: {}]   ;;  %s19262_s6 = inlined_call_operand.vmem [shape: f32[1,256], index: 6, kind: input, shape index: {}]   ;;  %s19263_s7 = inlined_call_operand.hbm [shape: bf16[10,256,128], index: 7, kind: input, shape index: {}]   ;;  %s19264_s8 = inlined_call_operand.vmem [shape: f32[1,128], index: 8, kind: input, shape index: {}]   ;;  %s19265_s9 = inlined_call_operand.vmem [shape: bf16[2,128,128], index: 9, kind: input, shape index: {}]   ;;  %s19266_s10 = inlined_call_operand.vmem [shape: f32[1,128], index: 10, kind: input, shape index: {}]   ;;  %s19267_s11 = inlined_call_operand.vmem [shape: bf16[128,128], index: 11, kind: input, shape index: {}]   ;;  %s19268_s12 = inlined_call_operand.vmem [shape: f32[1,128], index: 12, kind: input, shape index: {}]   ;;  %s19269_s13 = inlined_call_operand.vmem [shape: f32[1,8,128], index: 13, kind: output, shape index: {}]  }
   0x1   :  { %19 = vsyncpa [#allocation8], 0  ;;  %s14598_s25 = smov [#allocation5]  }
   0x2   :  { %s35_s26 = sshll.u32 %s14598_s25, 4  ;;  %s36_s26 = int_to_ptr.vmem [resolvable:$true] %s35_s26 }
   0x3   :  { %s14562_s27 = scalar_lea.vmem %s36_s26, 30720  ;;  %p14567_p1 = scmp.lt.s32.totalorder %s36_s26, %s36_s26 }
   0x4   :  { %p14563_p0 = scmp.ne.s32.totalorder %s36_s26, %s14562_s27  ;;  %p14568_p2 = scmp.lt.s32.totalorder %s14562_s27, %s14562_s27 }
   0x6   :  { %p14569_p3 = por %p14568_p2, %p14567_p1 }
   0x8   :  { %p14570_p4 = pnand %p14569_p3, %p14563_p0 }
   0xa   :  { %14573 = shalt.err (!%p14570_p4)
}
   0xb   :  { %s14599_s28 = smov 128   ;;  %s14600_s29 = smov 8  }
   0xc   :  { %41 = dma.hbm_to_vmem [thread:$0]  %s19261_s5, 30720, %s36_s26, [#allocation6], %s14599_s28, %s14599_s28, %s14600_s29  }
   0xd   :  { %s14601_s15 = smov [#allocation7]  }
   0xe   :  { %s49_s16 = sshll.u32 %s14601_s15, 4  ;;  %s50_s16 = int_to_ptr.vmem [resolvable:$true] %s49_s16 }
   0xf   :  { %s14582_s17 = scalar_lea.vmem %s50_s16, 20480  ;;  %p14587_p6 = scmp.lt.s32.totalorder %s50_s16, %s50_s16 }
  0x10   :  { %p14583_p5 = scmp.ne.s32.totalorder %s50_s16, %s14582_s17  ;;  %p14588_p7 = scmp.lt.s32.totalorder %s14582_s17, %s14582_s17 }
  0x12   :  { %p14589_p8 = por %p14588_p7, %p14587_p6 }
  0x14   :  { %p14590_p9 = pnand %p14589_p8, %p14583_p5 }
  0x16   :  { %14593 = shalt.err (!%p14590_p9)
}
  0x17   :  { %s14602_s18 = smov 64   ;;  %s14603_s19 = smov 4  }
  0x18   :  { %55 = dma.hbm_to_vmem [thread:$0]  %s19263_s7, 20480, %s50_s16, [#allocation8], %s14602_s18, %s14602_s18, %s14603_s19  }
  0x19   :  { %14594 = dma.done.wait [#allocation6], 30720  }
  0x1a   :  { %14595 = vsyncadd [#allocation6], 4294936576 }
  0x1b   :  { %14596 = dma.done.wait [#allocation8], 20480  }
  0x1c   :  { %14597 = vsyncadd [#allocation8], 4294946816  ;;  %v19282_v0 = vmov 0.0   ;;  %vm14605_vm0 = vmmov 0   ;;  %v13907_v1 = vld [vmem:[%s19257_s1 + $0x78] sm:$0xff]   ;;  %v13909_v3 = vld [vmem:[%s19257_s1 + $0x70] sm:$0xff]  }
  0x1d   :  { %12686 = vmatprep.subr.bf16.mxu0 %v19282_v0  ;;  %12890 = vmatprep.subr.bf16.mxu1 %v19282_v0  ;;  %v13908_v2 = vld [vmem:[%s19257_s1 + $0x38] sm:$0xff]   ;;  %v13910_v4 = vld [vmem:[%s19257_s1 + $0x30] sm:$0xff]   ;;  %v13911_v5 = vld [vmem:[%s19257_s1 + $0x68] sm:$0xff]  }
  0x1e   :  { %12702 = vmatprep.mubr.msk.bf16.mxu0 %vm14605_vm0, %v19282_v0  ;;  %12906 = vmatprep.mubr.msk.bf16.mxu1 %vm14605_vm0, %v19282_v0  ;;  %v13912_v6 = vld [vmem:[%s19257_s1 + $0x28] sm:$0xff]   ;;  %v13913_v7 = vld [vmem:[%s19257_s1 + $0x60] sm:$0xff]   ;;  %v13915_v9 = vld [vmem:[%s19257_s1 + $0x58] sm:$0xff]  }
  0x1f   :  { %12687 = vmatpush3.bf16.msra.mxu0 %v13907_v1  ;;  %12891 = vmatpush3.bf16.msra.mxu1 %v13908_v2  ;;  %v13914_v8 = vld [vmem:[%s19257_s1 + $0x20] sm:$0xff]   ;;  %v13916_v10 = vld [vmem:[%s19257_s1 + $0x18] sm:$0xff]   ;;  %v13917_v11 = vld [vmem:[%s19257_s1 + $0x50] sm:$0xff]  }
  0x20   :  { %12688 = vmatprep.subr.bf16.mxu0 %v19282_v0  ;;  %12892 = vmatprep.subr.bf16.mxu1 %v19282_v0  ;;  %v13918_v12 = vld [vmem:[%s19257_s1 + $0x10] sm:$0xff]   ;;  %v13919_v13 = vld [vmem:[%s19257_s1 + $0x48] sm:$0xff]   ;;  %v13921_v15 = vld [vmem:[%s19257_s1 + $0x40] sm:$0xff]  }
  0x21   :  { %v13920_v14 = vld [vmem:[%s19257_s1 + $0x8] sm:$0xff]   ;;  %v75_v17 = vld [vmem:[%s19256_s0 + $0x10] sm:$0xff]  ;;  %v13922_v18 = vld [vmem:[%s19257_s1] sm:$0xff]  }
  0x22   :  { %v74_v16 = vld [vmem:[%s19256_s0 + $0x8] sm:$0xff]  ;;  %v73_v19 = vld [vmem:[%s19256_s0] sm:$0xff]  ;;  %v13923_v22 = vld [vmem:[%s19257_s1 + $0xb8] sm:$0xff]  }
  0x23   :  { %12689 = vmatpush3.bf16.msra.mxu0 %v13909_v3  ;;  %12893 = vmatpush3.bf16.msra.mxu1 %v13910_v4  ;;  %v231_v20 = vpack.c.bf16 %v75_v17, %v74_v16  ;;  %v168_v21 = vpack.c.bf16 %v74_v16, %v73_v19  ;;  %v76_v23 = vld [vmem:[%s19256_s0 + $0x18] sm:$0xff]  ;;  %v77_v24 = vld [vmem:[%s19256_s0 + $0x20] sm:$0xff]  ;;  %v13924_v25 = vld [vmem:[%s19257_s1 + $0xb0] sm:$0xff]  }
  0x24   :  { %12690 = vmatprep.subr.bf16.mxu0 %v19282_v0  ;;  %12894 = vmatprep.subr.bf16.mxu1 %v19282_v0  ;;  %v232_v26 = vpack.c.bf16 %v77_v24, %v76_v23  ;;  %v13925_v27 = vld [vmem:[%s19257_s1 + $0xa8] sm:$0xff]   ;;  %v14781_v28 = vpack.c.bf16 %v76_v23, %v75_v17  ;;  %v79_v30 = vld [vmem:[%s19256_s0 + $0x30] sm:$0xff]  ;;  %v13926_v31 = vld [vmem:[%s19257_s1 + $0xa0] sm:$0xff]  }
  0x25   :  { %v78_v29 = vld [vmem:[%s19256_s0 + $0x28] sm:$0xff]  ;;  %v80_v34 = vld [vmem:[%s19256_s0 + $0x38] sm:$0xff]  ;;  %v81_v35 = vld [vmem:[%s19256_s0 + $0x40] sm:$0xff] }
  0x26   :  { %v233_v32 = vpack.c.bf16 %v79_v30, %v78_v29  ;;  %v14799_v33 = vpack.c.bf16 %v78_v29, %v77_v24  ;;  %v234_v36 = vpack.c.bf16 %v81_v35, %v80_v34  ;;  %v14813_v37 = vpack.c.bf16 %v80_v34, %v79_v30  ;;  %v82_v38 = vld [vmem:[%s19256_s0 + $0x48] sm:$0xff]  ;;  %v83_v39 = vld [vmem:[%s19256_s0 + $0x50] sm:$0xff]  ;;  %v84_v42 = vld [vmem:[%s19256_s0 + $0x58] sm:$0xff] }
  0x27   :  { %12691 = vmatpush3.bf16.msra.mxu0 %v13911_v5  ;;  %12895 = vmatpush3.bf16.msra.mxu1 %v13912_v6  ;;  %v235_v40 = vpack.c.bf16 %v83_v39, %v82_v38  ;;  %v14826_v41 = vpack.c.bf16 %v82_v38, %v81_v35  ;;  %v85_v43 = vld [vmem:[%s19256_s0 + $0x60] sm:$0xff]  ;;  %v14839_v45 = vpack.c.bf16 %v84_v42, %v83_v39  ;;  %v86_v46 = vld [vmem:[%s19256_s0 + $0x68] sm:$0xff]  ;;  %v87_v47 = vld [vmem:[%s19256_s0 + $0x70] sm:$0xff] }
  0x28   :  { %12692 = vmatprep.subr.bf16.mxu0 %v19282_v0  ;;  %12896 = vmatprep.subr.bf16.mxu1 %v19282_v0  ;;  %v236_v44 = vpack.c.bf16 %v85_v43, %v84_v42  ;;  %v237_v48 = vpack.c.bf16 %v87_v47, %v86_v46  ;;  %v14852_v49 = vpack.c.bf16 %v86_v46, %v85_v43  ;;  %v88_v50 = vld [vmem:[%s19256_s0 + $0x78] sm:$0xff]  ;;  %v89_v51 = vld [vmem:[%s19256_s0 + $0x80] sm:$0xff]  ;;  %v90_v54 = vld [vmem:[%s19256_s0 + $0x88] sm:$0xff] }
  0x29   :  { %v238_v52 = vpack.c.bf16 %v89_v51, %v88_v50  ;;  %v14865_v53 = vpack.c.bf16 %v88_v50, %v87_v47  ;;  %v91_v55 = vld [vmem:[%s19256_s0 + $0x90] sm:$0xff]  ;;  %v13927_v56 = vld [vmem:[%s19257_s1 + $0x98] sm:$0xff]   ;;  %v14882_v58 = vpack.c.bf16 %v90_v54, %v89_v51  ;;  %v93_v60 = vld [vmem:[%s19256_s0 + $0xa0] sm:$0xff] }
  0x2a   :  { %v239_v57 = vpack.c.bf16 %v91_v55, %v90_v54  ;;  %v92_v59 = vld [vmem:[%s19256_s0 + $0x98] sm:$0xff]  ;;  %v94_v63 = vld [vmem:[%s19256_s0 + $0xa8] sm:$0xff]  ;;  %v95_v1 = vld [vmem:[%s19256_s0 + $0xb0] sm:$0xff] }
  0x2b   :  { %12693 = vmatpush3.bf16.msra.mxu0 %v13913_v7  ;;  %12897 = vmatpush3.bf16.msra.mxu1 %v13914_v8  ;;  %v240_v61 = vpack.c.bf16 %v93_v60, %v92_v59  ;;  %v14895_v62 = vpack.c.bf16 %v92_v59, %v91_v55  ;;  %v241_v2 = vpack.c.bf16 %v95_v1, %v94_v63  ;;  %v96_v4 = vld [vmem:[%s19256_s0 + $0xb8] sm:$0xff]  ;;  %v97_v5 = vld [vmem:[%s19256_s0 + $0xc0] sm:$0xff]  ;;  %v98_v8 = vld [vmem:[%s19256_s0 + $0xc8] sm:$0xff] }
  0x2c   :  { %12694 = vmatprep.subr.bf16.mxu0 %v19282_v0  ;;  %12898 = vmatprep.subr.bf16.mxu1 %v19282_v0  ;;  %v14908_v3 = vpack.c.bf16 %v94_v63, %v93_v60  ;;  %v242_v6 = vpack.c.bf16 %v97_v5, %v96_v4  ;;  %v14921_v7 = vpack.c.bf16 %v96_v4, %v95_v1  ;;  %v102_v16 = vld [vmem:[%s19256_s0 + $0xe8] sm:$0xff]  ;;  %v103_v17 = vld [vmem:[%s19256_s0 + $0xf0] sm:$0xff]  ;;  %v108_v30 = vld [vmem:[%s19256_s0 + $0x118] sm:$0xff] }
  0x2d   :  { %v110_v35 = vld [vmem:[%s19256_s0 + $0x128] sm:$0xff]  ;;  %v113_v42 = vld [vmem:[%s19256_s0 + $0x140] sm:$0xff]  ;;  %v115_v47 = vld [vmem:[%s19256_s0 + $0x150] sm:$0xff] }
  0x2e   :  { %v114_v46 = vld [vmem:[%s19256_s0 + $0x148] sm:$0xff]  ;;  %v117_v54 = vld [vmem:[%s19256_s0 + $0x160] sm:$0xff]  ;;  %v119_v59 = vld [vmem:[%s19256_s0 + $0x170] sm:$0xff] }
  0x2f   :  { %12695 = vmatpush3.bf16.msra.mxu0 %v13915_v9  ;;  %12899 = vmatpush3.bf16.msra.mxu1 %v13916_v10  ;;  %v99_v9 = vld [vmem:[%s19256_s0 + $0xd0] sm:$0xff]  ;;  %v251_v50 = vpack.c.bf16 %v115_v47, %v114_v46  ;;  %v15045_v51 = vpack.c.bf16 %v114_v46, %v113_v42  ;;  %v120_v63 = vld [vmem:[%s19256_s0 + $0x178] sm:$0xff]  ;;  %v121_v1 = vld [vmem:[%s19256_s0 + $0x180] sm:$0xff] }
  0x30   :  { %12696 = vmatprep.subr.bf16.mxu0 %v19282_v0  ;;  %12900 = vmatprep.subr.bf16.mxu1 %v19282_v0  ;;  %v243_v10 = vpack.c.bf16 %v99_v9, %v98_v8  ;;  %v15085_v4 = vpack.c.bf16 %v120_v63, %v119_v59 }
  0x33   :  { %12697 = vmatpush3.bf16.msra.mxu0 %v13917_v11  ;;  %12901 = vmatpush3.bf16.msra.mxu1 %v13918_v12  ;;  %v14934_v11 = vpack.c.bf16 %v98_v8, %v97_v5  ;;  %v100_v12 = vld [vmem:[%s19256_s0 + $0xd8] sm:$0xff]  ;;  %v122_v5 = vld [vmem:[%s19256_s0 + $0x188] sm:$0xff] }
  0x34   :  { %12698 = vmatprep.subr.bf16.mxu0 %v19282_v0  ;;  %12902 = vmatprep.subr.bf16.mxu1 %v19282_v0 }
  0x37   :  { %12699 = vmatpush3.bf16.msra.mxu0 %v13919_v13  ;;  %12903 = vmatpush3.bf16.msra.mxu1 %v13920_v14  ;;  %v101_v13 = vld [vmem:[%s19256_s0 + $0xe0] sm:$0xff] }
  0x38   :  { %12700 = vmatprep.subr.bf16.mxu0 %v19282_v0  ;;  %12904 = vmatprep.subr.bf16.mxu1 %v19282_v0  ;;  %v244_v14 = vpack.c.bf16 %v101_v13, %v100_v12  ;;  %v14960_v19 = vpack.c.bf16 %v102_v16, %v101_v13 }
  0x3b   :  { %12701 = vmatpush3.bf16.msra.mxu0 %v13921_v15  ;;  %12905 = vmatpush3.bf16.msra.mxu1 %v13922_v18  ;;  %v14947_v15 = vpack.c.bf16 %v100_v12, %v99_v9  ;;  %v245_v18 = vpack.c.bf16 %v103_v17, %v102_v16  ;;  %v15098_v9 = vpack.c.bf16 %v122_v5, %v121_v1  ;;  %v125_v12 = vld [vmem:[%s19256_s0 + $0x1a0] sm:$0xff] }
  0x3c   :  { %13094 = vmatprep.subr.bf16.mxu0 %v19282_v0 }
  0x3e   :  { %12703 = vmatmul.mubr.bf16.vlgmr.msra.gmra.mxu0 %v231_v20  ;;  %12907 = vmatmul.mubr.bf16.vlgmr.msra.gmra.mxu1 %v168_v21  ;;  %v13928_v20 = vld [vmem:[%s19257_s1 + $0x90] sm:$0xff]   ;;  %v104_v21 = vld [vmem:[%s19256_s0 + $0xf8] sm:$0xff] }
  0x3f   :  { %13095 = vmatpush3.bf16.msra.mxu0 %v13923_v22  ;;  %12706 = vmatprep.mubr.msk.bf16.mxu0 %vm14605_vm0, %v19282_v0  ;;  %v105_v22 = vld [vmem:[%s19256_s0 + $0x100] sm:$0xff]  ;;  %v14977_v24 = vpack.c.bf16 %v104_v21, %v103_v17 }
  0x40   :  { %12910 = vmatprep.mubr.msk.bf16.mxu1 %vm14605_vm0, %v19282_v0  ;;  %13096 = vmatprep.subr.bf16.mxu0 %v19282_v0  ;;  %v246_v23 = vpack.c.bf16 %v105_v22, %v104_v21 }
  0x43   :  { %13097 = vmatpush3.bf16.msra.mxu0 %v13924_v25  ;;  %v106_v25 = vld [vmem:[%s19256_s0 + $0x108] sm:$0xff] }
  0x44   :  { %13098 = vmatprep.subr.bf16.mxu0 %v19282_v0  ;;  %v14990_v29 = vpack.c.bf16 %v106_v25, %v105_v22 }
  0x46   :  { %12707 = vmatmul.mubr.bf16.gmra.mxu0 %v232_v26  ;;  %12911 = vmatmul.mubr.bf16.gmra.mxu1 %v14781_v28  ;;  %v107_v26 = vld [vmem:[%s19256_s0 + $0x110] sm:$0xff] }
  0x47   :  { %12710 = vmatprep.mubr.msk.bf16.mxu0 %vm14605_vm0, %v19282_v0  ;;  %12914 = vmatprep.mubr.msk.bf16.mxu1 %vm14605_vm0, %v19282_v0  ;;  %v15003_v34 = vpack.c.bf16 %v108_v30, %v107_v26 }
  0x48   :  { %13099 = vmatpush3.bf16.msra.mxu0 %v13925_v27  ;;  %v247_v27 = vpack.c.bf16 %v107_v26, %v106_v25 }
  0x49   :  { %13100 = vmatprep.subr.bf16.mxu0 %v19282_v0 }
  0x4c   :  { %13101 = vmatpush3.bf16.msra.mxu0 %v13926_v31  ;;  %v109_v31 = vld [vmem:[%s19256_s0 + $0x120] sm:$0xff] }
  0x4d   :  { %13102 = vmatprep.subr.bf16.mxu0 %v19282_v0  ;;  %v15016_v39 = vpack.c.bf16 %v110_v35, %v109_v31 }
  0x4e   :  { %12711 = vmatmul.mubr.bf16.gmra.mxu0 %v233_v32  ;;  %12915 = vmatmul.mubr.bf16.gmra.mxu1 %v14799_v33  ;;  %v248_v32 = vpack.c.bf16 %v109_v31, %v108_v30  ;;  %v126_v30 = vld [vmem:[%s19256_s0 + $0x1a8] sm:$0xff]  ;;  %v127_v31 = vld [vmem:[%s19256_s0 + $0x1b0] sm:$0xff] }
  0x4f   :  { %12714 = vmatprep.mubr.msk.bf16.mxu0 %vm14605_vm0, %v19282_v0  ;;  %12918 = vmatprep.mubr.msk.bf16.mxu1 %vm14605_vm0, %v19282_v0  ;;  %v257_v46 = vpack.c.bf16 %v127_v31, %v126_v30 }
  0x50   :  { %13103 = vmatpush3.bf16.msra.mxu0 %v13927_v56 }
  0x51   :  { %13104 = vmatprep.subr.bf16.mxu0 %v19282_v0 }
  0x54   :  { %13105 = vmatpush3.bf16.msra.mxu0 %v13928_v20 }
  0x55   :  { %13106 = vmatprep.subr.bf16.mxu0 %v19282_v0 }
  0x56   :  { %12715 = vmatmul.mubr.bf16.gmra.mxu0 %v234_v36  ;;  %12919 = vmatmul.mubr.bf16.gmra.mxu1 %v14813_v37  ;;  %v111_v36 = vld [vmem:[%s19256_s0 + $0x130] sm:$0xff] }
  0x57   :  { %12718 = vmatprep.mubr.msk.bf16.mxu0 %vm14605_vm0, %v19282_v0  ;;  %12922 = vmatprep.mubr.msk.bf16.mxu1 %vm14605_vm0, %v19282_v0  ;;  %v249_v38 = vpack.c.bf16 %v111_v36, %v110_v35 }
  0x5e   :  { %12719 = vmatmul.mubr.bf16.gmra.mxu0 %v235_v40  ;;  %12923 = vmatmul.mubr.bf16.gmra.mxu1 %v14826_v41  ;;  %v112_v40 = vld [vmem:[%s19256_s0 + $0x138] sm:$0xff] }
  0x5f   :  { %12722 = vmatprep.mubr.msk.bf16.mxu0 %vm14605_vm0, %v19282_v0  ;;  %12926 = vmatprep.mubr.msk.bf16.mxu1 %vm14605_vm0, %v19282_v0  ;;  %v250_v43 = vpack.c.bf16 %v113_v42, %v112_v40  ;;  %v13930_v42 = vld [vmem:[%s19257_s1 + $0x80] sm:$0xff]  }
  0x66   :  { %12723 = vmatmul.mubr.bf16.gmra.mxu0 %v236_v44  ;;  %12927 = vmatmul.mubr.bf16.gmra.mxu1 %v14839_v45  ;;  %v15029_v44 = vpack.c.bf16 %v112_v40, %v111_v36 }
  0x67   :  { %12726 = vmatprep.mubr.msk.bf16.mxu0 %vm14605_vm0, %v19282_v0  ;;  %12930 = vmatprep.mubr.msk.bf16.mxu1 %vm14605_vm0, %v19282_v0 }
  0x6e   :  { %12727 = vmatmul.mubr.bf16.gmra.mxu0 %v237_v48  ;;  %12931 = vmatmul.mubr.bf16.gmra.mxu1 %v14852_v49  ;;  %v13929_v48 = vld [vmem:[%s19257_s1 + $0x88] sm:$0xff]  }
  0x6f   :  { %12730 = vmatprep.mubr.msk.bf16.mxu0 %vm14605_vm0, %v19282_v0  ;;  %12934 = vmatprep.mubr.msk.bf16.mxu1 %vm14605_vm0, %v19282_v0 }
  0x70   :  { %13107 = vmatpush3.bf16.msra.mxu0 %v13929_v48  ;;  %v15133_v48 = vpack.c.bf16 %v126_v30, %v125_v12 }
  0x71   :  { %13108 = vmatprep.subr.bf16.mxu0 %v19282_v0 }
  0x74   :  { %13109 = vmatpush3.bf16.msra.mxu0 %v13930_v42 }
  0x76   :  { %12731 = vmatmul.mubr.bf16.gmra.mxu0 %v238_v52  ;;  %12935 = vmatmul.mubr.bf16.gmra.mxu1 %v14865_v53  ;;  %v116_v52 = vld [vmem:[%s19256_s0 + $0x158] sm:$0xff] }
  0x77   :  { %12734 = vmatprep.mubr.msk.bf16.mxu0 %vm14605_vm0, %v19282_v0  ;;  %12938 = vmatprep.mubr.msk.bf16.mxu1 %vm14605_vm0, %v19282_v0  ;;  %v252_v55 = vpack.c.bf16 %v117_v54, %v116_v52  ;;  %v15059_v56 = vpack.c.bf16 %v116_v52, %v115_v47 }
  0x7e   :  { %12735 = vmatmul.mubr.bf16.gmra.mxu0 %v239_v57  ;;  %12939 = vmatmul.mubr.bf16.gmra.mxu1 %v14882_v58  ;;  %v118_v57 = vld [vmem:[%s19256_s0 + $0x168] sm:$0xff] }
  0x7f   :  { %12738 = vmatprep.mubr.msk.bf16.mxu0 %vm14605_vm0, %v19282_v0  ;;  %12942 = vmatprep.mubr.msk.bf16.mxu1 %vm14605_vm0, %v19282_v0  ;;  %v253_v60 = vpack.c.bf16 %v119_v59, %v118_v57 }
  0x86   :  { %12739 = vmatmul.mubr.bf16.gmra.mxu0 %v240_v61  ;;  %12943 = vmatmul.mubr.bf16.gmra.mxu1 %v14895_v62  ;;  %v15072_v61 = vpack.c.bf16 %v118_v57, %v117_v54  ;;  %v129_v57 = vld [vmem:[%s19256_s0 + $0x1c0] sm:$0xff] }
  0x87   :  { %12742 = vmatprep.mubr.msk.bf16.mxu0 %vm14605_vm0, %v19282_v0  ;;  %12946 = vmatprep.mubr.msk.bf16.mxu1 %vm14605_vm0, %v19282_v0 }
  0x8e   :  { %12743 = vmatmul.mubr.bf16.gmra.mxu0 %v241_v2  ;;  %12947 = vmatmul.mubr.bf16.gmra.mxu1 %v14908_v3  ;;  %v254_v2 = vpack.c.bf16 %v121_v1, %v120_v63 }
  0x8f   :  { %12746 = vmatprep.mubr.msk.bf16.mxu0 %vm14605_vm0, %v19282_v0  ;;  %12950 = vmatprep.mubr.msk.bf16.mxu1 %vm14605_vm0, %v19282_v0 }
  0x96   :  { %12747 = vmatmul.mubr.bf16.gmra.mxu0 %v242_v6  ;;  %12951 = vmatmul.mubr.bf16.gmra.mxu1 %v14921_v7  ;;  %v123_v6 = vld [vmem:[%s19256_s0 + $0x190] sm:$0xff] }
  0x97   :  { %12750 = vmatprep.mubr.msk.bf16.mxu0 %vm14605_vm0, %v19282_v0  ;;  %12954 = vmatprep.mubr.msk.bf16.mxu1 %vm14605_vm0, %v19282_v0  ;;  %v255_v8 = vpack.c.bf16 %v123_v6, %v122_v5 }
  0x9e   :  { %12751 = vmatmul.mubr.bf16.gmra.mxu0 %v243_v10  ;;  %12955 = vmatmul.mubr.bf16.gmra.mxu1 %v14934_v11  ;;  %v124_v10 = vld [vmem:[%s19256_s0 + $0x198] sm:$0xff] }
  0x9f   :  { %12754 = vmatprep.mubr.msk.bf16.mxu0 %vm14605_vm0, %v19282_v0  ;;  %12958 = vmatprep.mubr.msk.bf16.mxu1 %vm14605_vm0, %v19282_v0  ;;  %v256_v21 = vpack.c.bf16 %v125_v12, %v124_v10 }
  0xa6   :  { %12755 = vmatmul.mubr.bf16.gmra.mxu0 %v244_v14  ;;  %12959 = vmatmul.mubr.bf16.gmra.mxu1 %v14947_v15 }
  0xa7   :  { %12758 = vmatprep.mubr.msk.bf16.mxu0 %vm14605_vm0, %v19282_v0  ;;  %12962 = vmatprep.mubr.msk.bf16.mxu1 %vm14605_vm0, %v19282_v0 }
  0xae   :  { %12759 = vmatmul.mubr.bf16.gmra.mxu0 %v245_v18  ;;  %12963 = vmatmul.mubr.bf16.gmra.mxu1 %v14960_v19 }
  0xaf   :  { %12762 = vmatprep.mubr.msk.bf16.mxu0 %vm14605_vm0, %v19282_v0  ;;  %12966 = vmatprep.mubr.msk.bf16.mxu1 %vm14605_vm0, %v19282_v0 }
  0xb6   :  { %12763 = vmatmul.mubr.bf16.gmra.mxu0 %v246_v23  ;;  %12967 = vmatmul.mubr.bf16.gmra.mxu1 %v14977_v24  ;;  %v15113_v23 = vpack.c.bf16 %v124_v10, %v123_v6 }
  0xb7   :  { %12766 = vmatprep.mubr.msk.bf16.mxu0 %vm14605_vm0, %v19282_v0  ;;  %12970 = vmatprep.mubr.msk.bf16.mxu1 %vm14605_vm0, %v19282_v0 }
  0xbe   :  { %12767 = vmatmul.mubr.bf16.gmra.mxu0 %v247_v27  ;;  %12971 = vmatmul.mubr.bf16.gmra.mxu1 %v14990_v29 }
  0xbf   :  { %12770 = vmatprep.mubr.msk.bf16.mxu0 %vm14605_vm0, %v19282_v0  ;;  %12974 = vmatprep.mubr.msk.bf16.mxu1 %vm14605_vm0, %v19282_v0 }
  0xc6   :  { %12771 = vmatmul.mubr.bf16.gmra.mxu0 %v248_v32  ;;  %12975 = vmatmul.mubr.bf16.gmra.mxu1 %v15003_v34 }
  0xc7   :  { %12774 = vmatprep.mubr.msk.bf16.mxu0 %vm14605_vm0, %v19282_v0  ;;  %12978 = vmatprep.mubr.msk.bf16.mxu1 %vm14605_vm0, %v19282_v0 }
  0xce   :  { %12775 = vmatmul.mubr.bf16.gmra.mxu0 %v249_v38  ;;  %12979 = vmatmul.mubr.bf16.gmra.mxu1 %v15016_v39 }
  0xcf   :  { %12778 = vmatprep.mubr.msk.bf16.mxu0 %vm14605_vm0, %v19282_v0  ;;  %12982 = vmatprep.mubr.msk.bf16.mxu1 %vm14605_vm0, %v19282_v0 }
  0xd6   :  { %12779 = vmatmul.mubr.bf16.gmra.mxu0 %v250_v43  ;;  %12983 = vmatmul.mubr.bf16.gmra.mxu1 %v15029_v44 }
  0xd7   :  { %12782 = vmatprep.mubr.msk.bf16.mxu0 %vm14605_vm0, %v19282_v0  ;;  %12986 = vmatprep.mubr.msk.bf16.mxu1 %vm14605_vm0, %v19282_v0 }
  0xde   :  { %12783 = vmatmul.mubr.bf16.gmra.mxu0 %v251_v50  ;;  %12987 = vmatmul.mubr.bf16.gmra.mxu1 %v15045_v51 }
  0xdf   :  { %12786 = vmatprep.mubr.msk.bf16.mxu0 %vm14605_vm0, %v19282_v0  ;;  %12990 = vmatprep.mubr.msk.bf16.mxu1 %vm14605_vm0, %v19282_v0 }
  0xe6   :  { %12787 = vmatmul.mubr.bf16.gmra.mxu0 %v252_v55  ;;  %12991 = vmatmul.mubr.bf16.gmra.mxu1 %v15059_v56  ;;  %v128_v55 = vld [vmem:[%s19256_s0 + $0x1b8] sm:$0xff] }
  0xe7   :  { %12790 = vmatprep.mubr.msk.bf16.mxu0 %vm14605_vm0, %v19282_v0  ;;  %12994 = vmatprep.mubr.msk.bf16.mxu1 %vm14605_vm0, %v19282_v0  ;;  %v258_v6 = vpack.c.bf16 %v129_v57, %v128_v55  ;;  %v15150_v10 = vpack.c.bf16 %v128_v55, %v127_v31 }
  0xee   :  { %12791 = vmatmul.mubr.bf16.gmra.mxu0 %v253_v60  ;;  %12995 = vmatmul.mubr.bf16.gmra.mxu1 %v15072_v61 }
  0xef   :  { %12794 = vmatprep.mubr.msk.bf16.mxu0 %vm14605_vm0, %v19282_v0  ;;  %12998 = vmatprep.mubr.msk.bf16.mxu1 %vm14605_vm0, %v19282_v0 }
  0xf6   :  { %12795 = vmatmul.mubr.bf16.gmra.mxu0 %v254_v2  ;;  %12999 = vmatmul.mubr.bf16.gmra.mxu1 %v15085_v4 }
  0xf7   :  { %12798 = vmatprep.mubr.msk.bf16.mxu0 %vm14605_vm0, %v19282_v0  ;;  %13002 = vmatprep.mubr.msk.bf16.mxu1 %vm14605_vm0, %v19282_v0 }
  0xfe   :  { %v377_v13 = vpop.f32.mrf.mxu0  ;;  %12799 = vmatmul.mubr.bf16.gmra.mxu0 %v255_v8  ;;  %v833_v14 = vpop.f32.mrf.mxu1  ;;  %13003 = vmatmul.mubr.bf16.gmra.mxu1 %v15098_v9 }
  0xff   :  { %12802 = vmatprep.mubr.msk.bf16.mxu0 %vm14605_vm0, %v19282_v0  ;;  %v15109_v16 = vadd.f32 %v833_v14, %v377_v13  ;;  %13006 = vmatprep.mubr.msk.bf16.mxu1 %vm14605_vm0, %v19282_v0 }
 0x100   :  { %v12704_v17 = vpop.f32.mrf.mxu0  ;;  %v12908_v18 = vpop.f32.mrf.mxu1 }
 0x101   :  { %v130_v17 = vld [vmem:[%s19256_s0 + $0x1c8] sm:$0xff]  ;;  %v131_v18 = vld [vmem:[%s19256_s0 + $0x1d0] sm:$0xff] }
 0x102   :  { %v380_v20 = vpop.f32.mrf.mxu0  ;;  %v836_v22 = vpop.f32.mrf.mxu1  ;;  %v259_v31 = vpack.c.bf16 %v131_v18, %v130_v17 }
 0x103   :  { %v15115_v25 = vadd.f32 %v836_v22, %v380_v20 }
 0x104   :  { %v12705_v26 = vpop.f32.mrf.mxu0  ;;  %v12909_v27 = vpop.f32.mrf.mxu1 }
 0x106   :  { %v385_v32 = vpop.f32.mrf.mxu0  ;;  %12803 = vmatmul.mubr.bf16.gmra.mxu0 %v256_v21  ;;  %v841_v35 = vpop.f32.mrf.mxu1  ;;  %13007 = vmatmul.mubr.bf16.gmra.mxu1 %v15113_v23 }
 0x107   :  { %12806 = vmatprep.mubr.msk.bf16.mxu0 %vm14605_vm0, %v19282_v0  ;;  %v15126_v36 = vadd.f32 %v841_v35, %v385_v32  ;;  %13010 = vmatprep.mubr.msk.bf16.mxu1 %vm14605_vm0, %v19282_v0  ;;  %v15167_v32 = vpack.c.bf16 %v130_v17, %v129_v57 }
 0x108   :  { %v12708_v38 = vpop.f32.mrf.mxu0  ;;  %v12912_v40 = vpop.f32.mrf.mxu1 }
 0x10a   :  { %v388_v43 = vpop.f32.mrf.mxu0  ;;  %v844_v47 = vpop.f32.mrf.mxu1 }
 0x10b   :  { %v15135_v50 = vadd.f32 %v844_v47, %v388_v43  ;;  %v132_v43 = vld [vmem:[%s19256_s0 + $0x1d8] sm:$0xff] }
 0x10c   :  { %v12709_v52 = vpop.f32.mrf.mxu0  ;;  %v12913_v54 = vpop.f32.mrf.mxu1 }
 0x10e   :  { %v393_v59 = vpop.f32.mrf.mxu0  ;;  %12807 = vmatmul.mubr.bf16.gmra.mxu0 %v257_v46  ;;  %v849_v60 = vpop.f32.mrf.mxu1  ;;  %13011 = vmatmul.mubr.bf16.gmra.mxu1 %v15133_v48  ;;  %v133_v46 = vld [vmem:[%s19256_s0 + $0x1e0] sm:$0xff] }
 0x10f   :  { %12810 = vmatprep.mubr.msk.bf16.mxu0 %vm14605_vm0, %v19282_v0  ;;  %v15146_v63 = vadd.f32 %v849_v60, %v393_v59  ;;  %13014 = vmatprep.mubr.msk.bf16.mxu1 %vm14605_vm0, %v19282_v0  ;;  %v260_v60 = vpack.c.bf16 %v133_v46, %v132_v43 }
 0x110   :  { %v12712_v1 = vpop.f32.mrf.mxu0  ;;  %v12916_v2 = vpop.f32.mrf.mxu1 }
 0x111   :  { %v15184_v2 = vpack.c.bf16 %v132_v43, %v131_v18 }
 0x112   :  { %v396_v5 = vpop.f32.mrf.mxu0  ;;  %v852_v8 = vpop.f32.mrf.mxu1 }
 0x113   :  { %v15152_v12 = vadd.f32 %v852_v8, %v396_v5 }
 0x114   :  { %v12713_v13 = vpop.f32.mrf.mxu0  ;;  %v12917_v14 = vpop.f32.mrf.mxu1 }
 0x115   :  { %v134_v13 = vld [vmem:[%s19256_s0 + $0x1e8] sm:$0xff]  ;;  %v135_v14 = vld [vmem:[%s19256_s0 + $0x1f0] sm:$0xff] }
 0x116   :  { %v401_v20 = vpop.f32.mrf.mxu0  ;;  %12811 = vmatmul.mubr.bf16.gmra.mxu0 %v258_v6  ;;  %v857_v21 = vpop.f32.mrf.mxu1  ;;  %13015 = vmatmul.mubr.bf16.gmra.mxu1 %v15150_v10 }
 0x117   :  { %12814 = vmatprep.mubr.msk.bf16.mxu0 %vm14605_vm0, %v19282_v0  ;;  %v15163_v22 = vadd.f32 %v857_v21, %v401_v20  ;;  %13018 = vmatprep.mubr.msk.bf16.mxu1 %vm14605_vm0, %v19282_v0 }
 0x118   :  { %v12716_v26 = vpop.f32.mrf.mxu0  ;;  %v12920_v27 = vpop.f32.mrf.mxu1 }
 0x11a   :  { %v404_v30 = vpop.f32.mrf.mxu0  ;;  %v860_v35 = vpop.f32.mrf.mxu1 }
 0x11b   :  { %v15169_v38 = vadd.f32 %v860_v35, %v404_v30  ;;  %v261_v30 = vpack.c.bf16 %v135_v14, %v134_v13  ;;  %v15201_v35 = vpack.c.bf16 %v134_v13, %v133_v46 }
 0x11c   :  { %v12717_v40 = vpop.f32.mrf.mxu0  ;;  %v12921_v42 = vpop.f32.mrf.mxu1 }
 0x11e   :  { %v409_v47 = vpop.f32.mrf.mxu0  ;;  %12815 = vmatmul.mubr.bf16.gmra.mxu0 %v259_v31  ;;  %v865_v52 = vpop.f32.mrf.mxu1  ;;  %13019 = vmatmul.mubr.bf16.gmra.mxu1 %v15167_v32 }
 0x11f   :  { %12818 = vmatprep.mubr.msk.bf16.mxu0 %vm14605_vm0, %v19282_v0  ;;  %v15180_v54 = vadd.f32 %v865_v52, %v409_v47  ;;  %13022 = vmatprep.mubr.msk.bf16.mxu1 %vm14605_vm0, %v19282_v0  ;;  %v136_v47 = vld [vmem:[%s19256_s0 + $0x1f8] sm:$0xff]  ;;  %v137_v52 = vld [vmem:[%s19256_s0 + $0x200] sm:$0xff] }
 0x120   :  { %v12720_v55 = vpop.f32.mrf.mxu0  ;;  %v12924_v57 = vpop.f32.mrf.mxu1  ;;  %v15218_v13 = vpack.c.bf16 %v136_v47, %v135_v14 }
 0x122   :  { %v412_v59 = vpop.f32.mrf.mxu0  ;;  %v868_v1 = vpop.f32.mrf.mxu1 }
 0x123   :  { %v15186_v5 = vadd.f32 %v868_v1, %v412_v59 }
 0x124   :  { %v12721_v6 = vpop.f32.mrf.mxu0  ;;  %v12925_v8 = vpop.f32.mrf.mxu1 }
 0x125   :  { %v262_v6 = vpack.c.bf16 %v137_v52, %v136_v47 }
 0x126   :  { %v417_v17 = vpop.f32.mrf.mxu0  ;;  %12819 = vmatmul.mubr.bf16.gmra.mxu0 %v260_v60  ;;  %v873_v20 = vpop.f32.mrf.mxu1  ;;  %13023 = vmatmul.mubr.bf16.gmra.mxu1 %v15184_v2 }
 0x127   :  { %12822 = vmatprep.mubr.msk.bf16.mxu0 %vm14605_vm0, %v19282_v0  ;;  %v15197_v18 = vadd.f32 %v873_v20, %v417_v17  ;;  %13026 = vmatprep.mubr.msk.bf16.mxu1 %vm14605_vm0, %v19282_v0 }
 0x128   :  { %v12724_v21 = vpop.f32.mrf.mxu0  ;;  %v12928_v26 = vpop.f32.mrf.mxu1 }
 0x129   :  { %v138_v26 = vld [vmem:[%s19256_s0 + $0x208] sm:$0xff] }
 0x12a   :  { %v420_v27 = vpop.f32.mrf.mxu0  ;;  %v876_v31 = vpop.f32.mrf.mxu1 }
 0x12b   :  { %v15203_v40 = vadd.f32 %v876_v31, %v420_v27  ;;  %v139_v27 = vld [vmem:[%s19256_s0 + $0x210] sm:$0xff] }
 0x12c   :  { %v12725_v42 = vpop.f32.mrf.mxu0  ;;  %v12929_v43 = vpop.f32.mrf.mxu1 }
 0x12e   :  { %v425_v55 = vpop.f32.mrf.mxu0  ;;  %12823 = vmatmul.mubr.bf16.gmra.mxu0 %v261_v30  ;;  %v881_v57 = vpop.f32.mrf.mxu1  ;;  %13027 = vmatmul.mubr.bf16.gmra.mxu1 %v15201_v35 }
 0x12f   :  { %12826 = vmatprep.mubr.msk.bf16.mxu0 %vm14605_vm0, %v19282_v0  ;;  %v15214_v46 = vadd.f32 %v881_v57, %v425_v55  ;;  %13030 = vmatprep.mubr.msk.bf16.mxu1 %vm14605_vm0, %v19282_v0  ;;  %v263_v55 = vpack.c.bf16 %v139_v27, %v138_v26 }
 0x130   :  { %v12728_v59 = vpop.f32.mrf.mxu0  ;;  %v12932_v60 = vpop.f32.mrf.mxu1 }
 0x131   :  { %v15235_v59 = vpack.c.bf16 %v138_v26, %v137_v52 }
 0x132   :  { %v428_v1 = vpop.f32.mrf.mxu0  ;;  %v884_v8 = vpop.f32.mrf.mxu1 }
 0x133   :  { %v15220_v17 = vadd.f32 %v884_v8, %v428_v1  ;;  %v140_v8 = vld [vmem:[%s19256_s0 + $0x218] sm:$0xff] }
 0x134   :  { %v12729_v20 = vpop.f32.mrf.mxu0  ;;  %v12933_v21 = vpop.f32.mrf.mxu1 }
 0x135   :  { %v141_v20 = vld [vmem:[%s19256_s0 + $0x220] sm:$0xff] }
 0x136   :  { %v433_v30 = vpop.f32.mrf.mxu0  ;;  %12827 = vmatmul.mubr.bf16.gmra.mxu0 %v262_v6  ;;  %v889_v31 = vpop.f32.mrf.mxu1  ;;  %13031 = vmatmul.mubr.bf16.gmra.mxu1 %v15218_v13 }
 0x137   :  { %12830 = vmatprep.mubr.msk.bf16.mxu0 %vm14605_vm0, %v19282_v0  ;;  %v15231_v14 = vadd.f32 %v889_v31, %v433_v30  ;;  %13034 = vmatprep.mubr.msk.bf16.mxu1 %vm14605_vm0, %v19282_v0 }
 0x138   :  { %v12732_v42 = vpop.f32.mrf.mxu0  ;;  %v12936_v43 = vpop.f32.mrf.mxu1 }
 0x139   :  { %19385 = vst [vmem:[#allocation11_spill] sm:$0xff] %v15231_v14  ;;  %v264_v43 = vpack.c.bf16 %v141_v20, %v140_v8 }
 0x13a   :  { %v436_v47 = vpop.f32.mrf.mxu0  ;;  %v892_v57 = vpop.f32.mrf.mxu1 }
 0x13b   :  { %v15237_v60 = vadd.f32 %v892_v57, %v436_v47  ;;  %v15252_v57 = vpack.c.bf16 %v140_v8, %v139_v27 }
 0x13c   :  { %v12733_v1 = vpop.f32.mrf.mxu0  ;;  %v12937_v6 = vpop.f32.mrf.mxu1 }
 0x13d   :  { %19386 = vst [vmem:[#allocation12_spill] sm:$0xff] %v15237_v60  ;;  %19388 = vst [vmem:[#allocation14_spill] sm:$0xff] %v15252_v57  ;;  %v142_v60 = vld [vmem:[%s19256_s0 + $0x228] sm:$0xff] }
 0x13e   :  { %v441_v21 = vpop.f32.mrf.mxu0  ;;  %12831 = vmatmul.mubr.bf16.gmra.mxu0 %v263_v55  ;;  %v897_v30 = vpop.f32.mrf.mxu1  ;;  %13035 = vmatmul.mubr.bf16.gmra.mxu1 %v15235_v59 }
 0x13f   :  { %12834 = vmatprep.mubr.msk.bf16.mxu0 %vm14605_vm0, %v19282_v0  ;;  %v15248_v52 = vadd.f32 %v897_v30, %v441_v21  ;;  %13038 = vmatprep.mubr.msk.bf16.mxu1 %vm14605_vm0, %v19282_v0  ;;  %v143_v21 = vld [vmem:[%s19256_s0 + $0x230] sm:$0xff] }
 0x140   :  { %v12736_v26 = vpop.f32.mrf.mxu0  ;;  %v12940_v31 = vpop.f32.mrf.mxu1 }
 0x141   :  { %19387 = vst [vmem:[#allocation13_spill] sm:$0xff] %v15248_v52 }
 0x142   :  { %v444_v42 = vpop.f32.mrf.mxu0  ;;  %v900_v47 = vpop.f32.mrf.mxu1 }
 0x143   :  { %v15254_v1 = vadd.f32 %v900_v47, %v444_v42  ;;  %v265_v47 = vpack.c.bf16 %v143_v21, %v142_v60 }
 0x144   :  { %v12737_v55 = vpop.f32.mrf.mxu0  ;;  %v12941_v6 = vpop.f32.mrf.mxu1 }
 0x145   :  { %19389 = vst [vmem:[#allocation15_spill] sm:$0xff] %v15254_v1  ;;  %v15269_v6 = vpack.c.bf16 %v142_v60, %v141_v20  ;;  %v145_v60 = vld [vmem:[%s19256_s0 + $0x240] sm:$0xff] }
 0x146   :  { %v449_v30 = vpop.f32.mrf.mxu0  ;;  %12835 = vmatmul.mubr.bf16.gmra.mxu0 %v264_v43  ;;  %v905_v26 = vpop.f32.mrf.mxu1  ;;  %13039 = vmatmul.mubr.bf16.gmra.mxu1 %v15252_v57 }
 0x147   :  { %12838 = vmatprep.mubr.msk.bf16.mxu0 %vm14605_vm0, %v19282_v0  ;;  %v15265_v27 = vadd.f32 %v905_v26, %v449_v30  ;;  %13042 = vmatprep.mubr.msk.bf16.mxu1 %vm14605_vm0, %v19282_v0  ;;  %19391 = vst [vmem:[#allocation17_spill] sm:$0xff] %v15269_v6  ;;  %v144_v30 = vld [vmem:[%s19256_s0 + $0x238] sm:$0xff] }
 0x148   :  { %v12740_v8 = vpop.f32.mrf.mxu0  ;;  %v12944_v31 = vpop.f32.mrf.mxu1 }
 0x149   :  { %19390 = vst [vmem:[#allocation16_spill] sm:$0xff] %v15265_v27  ;;  %v266_v31 = vpack.c.bf16 %v145_v60, %v144_v30 }
 0x14a   :  { %v452_v42 = vpop.f32.mrf.mxu0  ;;  %v908_v55 = vpop.f32.mrf.mxu1 }
 0x14b   :  { %v15271_v1 = vadd.f32 %v908_v55, %v452_v42 }
 0x14c   :  { %v12741_v43 = vpop.f32.mrf.mxu0  ;;  %v12945_v52 = vpop.f32.mrf.mxu1 }
 0x14d   :  { %19392 = vst [vmem:[#allocation18_spill] sm:$0xff] %v15271_v1 }
 0x14e   :  { %v457_v57 = vpop.f32.mrf.mxu0  ;;  %12839 = vmatmul.mubr.bf16.gmra.mxu0 %v265_v47  ;;  %v913_v14 = vpop.f32.mrf.mxu1  ;;  %13043 = vmatmul.mubr.bf16.gmra.mxu1 %v15269_v6  ;;  %v15286_v47 = vpack.c.bf16 %v144_v30, %v143_v21 }
 0x14f   :  { %12842 = vmatprep.mubr.msk.bf16.mxu0 %vm14605_vm0, %v19282_v0  ;;  %v15282_v20 = vadd.f32 %v913_v14, %v457_v57  ;;  %13046 = vmatprep.mubr.msk.bf16.mxu1 %vm14605_vm0, %v19282_v0  ;;  %v146_v14 = vld [vmem:[%s19256_s0 + $0x248] sm:$0xff]  ;;  %v147_v57 = vld [vmem:[%s19256_s0 + $0x250] sm:$0xff] }
 0x150   :  { %v12744_v26 = vpop.f32.mrf.mxu0  ;;  %v12948_v52 = vpop.f32.mrf.mxu1  ;;  %19394 = vst [vmem:[#allocation20_spill] sm:$0xff] %v15286_v47 }
 0x151   :  { %19393 = vst [vmem:[#allocation19_spill] sm:$0xff] %v15282_v20  ;;  %v267_v52 = vpack.c.bf16 %v147_v57, %v146_v14 }
 0x152   :  { %v460_v8 = vpop.f32.mrf.mxu0  ;;  %v916_v42 = vpop.f32.mrf.mxu1 }
 0x153   :  { %v15288_v55 = vadd.f32 %v916_v42, %v460_v8 }
 0x154   :  { %v12745_v43 = vpop.f32.mrf.mxu0  ;;  %v12949_v1 = vpop.f32.mrf.mxu1 }
 0x155   :  { %19395 = vst [vmem:[#allocation21_spill] sm:$0xff] %v15288_v55 }
 0x156   :  { %v465_v27 = vpop.f32.mrf.mxu0  ;;  %12843 = vmatmul.mubr.bf16.gmra.mxu0 %v266_v31  ;;  %v921_v6 = vpop.f32.mrf.mxu1  ;;  %13047 = vmatmul.mubr.bf16.gmra.mxu1 %v15286_v47  ;;  %v15303_v31 = vpack.c.bf16 %v146_v14, %v145_v60 }
 0x157   :  { %12846 = vmatprep.mubr.msk.bf16.mxu0 %vm14605_vm0, %v19282_v0  ;;  %v15299_v21 = vadd.f32 %v921_v6, %v465_v27  ;;  %13050 = vmatprep.mubr.msk.bf16.mxu1 %vm14605_vm0, %v19282_v0  ;;  %v148_v27 = vld [vmem:[%s19256_s0 + $0x258] sm:$0xff]  ;;  %v149_v6 = vld [vmem:[%s19256_s0 + $0x260] sm:$0xff] }
 0x158   :  { %v12748_v30 = vpop.f32.mrf.mxu0  ;;  %v12952_v1 = vpop.f32.mrf.mxu1  ;;  %19397 = vst [vmem:[#allocation23_spill] sm:$0xff] %v15303_v31 }
 0x159   :  { %19396 = vst [vmem:[#allocation22_spill] sm:$0xff] %v15299_v21  ;;  %v268_v1 = vpack.c.bf16 %v149_v6, %v148_v27 }
 0x15a   :  { %v468_v26 = vpop.f32.mrf.mxu0  ;;  %v924_v8 = vpop.f32.mrf.mxu1 }
 0x15b   :  { %v15305_v42 = vadd.f32 %v924_v8, %v468_v26 }
 0x15c   :  { %v12749_v43 = vpop.f32.mrf.mxu0  ;;  %v12953_v55 = vpop.f32.mrf.mxu1 }
 0x15d   :  { %19398 = vst [vmem:[#allocation24_spill] sm:$0xff] %v15305_v42 }
 0x15e   :  { %v473_v20 = vpop.f32.mrf.mxu0  ;;  %12847 = vmatmul.mubr.bf16.gmra.mxu0 %v267_v52  ;;  %v929_v47 = vpop.f32.mrf.mxu1  ;;  %13051 = vmatmul.mubr.bf16.gmra.mxu1 %v15303_v31  ;;  %v15320_v52 = vpack.c.bf16 %v148_v27, %v147_v57 }
 0x15f   :  { %12850 = vmatprep.mubr.msk.bf16.mxu0 %vm14605_vm0, %v19282_v0  ;;  %v15316_v60 = vadd.f32 %v929_v47, %v473_v20  ;;  %13054 = vmatprep.mubr.msk.bf16.mxu1 %vm14605_vm0, %v19282_v0  ;;  %v150_v20 = vld [vmem:[%s19256_s0 + $0x268] sm:$0xff]  ;;  %v151_v47 = vld [vmem:[%s19256_s0 + $0x270] sm:$0xff] }
 0x160   :  { %v12752_v14 = vpop.f32.mrf.mxu0  ;;  %v12956_v55 = vpop.f32.mrf.mxu1  ;;  %19400 = vst [vmem:[#allocation26_spill] sm:$0xff] %v15320_v52 }
 0x161   :  { %19399 = vst [vmem:[#allocation25_spill] sm:$0xff] %v15316_v60  ;;  %v269_v55 = vpack.c.bf16 %v151_v47, %v150_v20 }
 0x162   :  { %v476_v30 = vpop.f32.mrf.mxu0  ;;  %v932_v26 = vpop.f32.mrf.mxu1 }
 0x163   :  { %v15322_v8 = vadd.f32 %v932_v26, %v476_v30 }
 0x164   :  { %v12753_v43 = vpop.f32.mrf.mxu0  ;;  %v12957_v42 = vpop.f32.mrf.mxu1 }
 0x165   :  { %19401 = vst [vmem:[#allocation27_spill] sm:$0xff] %v15322_v8 }
 0x166   :  { %v481_v21 = vpop.f32.mrf.mxu0  ;;  %12851 = vmatmul.mubr.bf16.gmra.mxu0 %v268_v1  ;;  %v937_v31 = vpop.f32.mrf.mxu1  ;;  %13055 = vmatmul.mubr.bf16.gmra.mxu1 %v15320_v52  ;;  %v15337_v1 = vpack.c.bf16 %v150_v20, %v149_v6 }
 0x167   :  { %12854 = vmatprep.mubr.msk.bf16.mxu0 %vm14605_vm0, %v19282_v0  ;;  %v15333_v57 = vadd.f32 %v937_v31, %v481_v21  ;;  %13058 = vmatprep.mubr.msk.bf16.mxu1 %vm14605_vm0, %v19282_v0  ;;  %v152_v21 = vld [vmem:[%s19256_s0 + $0x278] sm:$0xff]  ;;  %v153_v31 = vld [vmem:[%s19256_s0 + $0x280] sm:$0xff] }
 0x168   :  { %v12756_v27 = vpop.f32.mrf.mxu0  ;;  %v12960_v42 = vpop.f32.mrf.mxu1  ;;  %19403 = vst [vmem:[#allocation29_spill] sm:$0xff] %v15337_v1 }
 0x169   :  { %19402 = vst [vmem:[#allocation28_spill] sm:$0xff] %v15333_v57  ;;  %v270_v42 = vpack.c.bf16 %v153_v31, %v152_v21 }
 0x16a   :  { %v484_v14 = vpop.f32.mrf.mxu0  ;;  %v940_v30 = vpop.f32.mrf.mxu1 }
 0x16b   :  { %v15339_v26 = vadd.f32 %v940_v30, %v484_v14 }
 0x16c   :  { %v12757_v43 = vpop.f32.mrf.mxu0  ;;  %v12961_v8 = vpop.f32.mrf.mxu1 }
 0x16d   :  { %19404 = vst [vmem:[#allocation30_spill] sm:$0xff] %v15339_v26 }
 0x16e   :  { %v489_v60 = vpop.f32.mrf.mxu0  ;;  %12855 = vmatmul.mubr.bf16.gmra.mxu0 %v269_v55  ;;  %v945_v52 = vpop.f32.mrf.mxu1  ;;  %13059 = vmatmul.mubr.bf16.gmra.mxu1 %v15337_v1  ;;  %v15354_v55 = vpack.c.bf16 %v152_v21, %v151_v47 }
 0x16f   :  { %12858 = vmatprep.mubr.msk.bf16.mxu0 %vm14605_vm0, %v19282_v0  ;;  %v15350_v6 = vadd.f32 %v945_v52, %v489_v60  ;;  %13062 = vmatprep.mubr.msk.bf16.mxu1 %vm14605_vm0, %v19282_v0  ;;  %v154_v60 = vld [vmem:[%s19256_s0 + $0x288] sm:$0xff]  ;;  %v155_v52 = vld [vmem:[%s19256_s0 + $0x290] sm:$0xff] }
 0x170   :  { %v12760_v20 = vpop.f32.mrf.mxu0  ;;  %v12964_v8 = vpop.f32.mrf.mxu1  ;;  %19406 = vst [vmem:[#allocation32_spill] sm:$0xff] %v15354_v55 }
 0x171   :  { %19405 = vst [vmem:[#allocation31_spill] sm:$0xff] %v15350_v6  ;;  %v271_v8 = vpack.c.bf16 %v155_v52, %v154_v60 }
 0x172   :  { %v492_v27 = vpop.f32.mrf.mxu0  ;;  %v948_v14 = vpop.f32.mrf.mxu1 }
 0x173   :  { %v15356_v30 = vadd.f32 %v948_v14, %v492_v27 }
 0x174   :  { %v12761_v43 = vpop.f32.mrf.mxu0  ;;  %v12965_v26 = vpop.f32.mrf.mxu1 }
 0x175   :  { %19407 = vst [vmem:[#allocation33_spill] sm:$0xff] %v15356_v30 }
 0x176   :  { %v497_v57 = vpop.f32.mrf.mxu0  ;;  %12859 = vmatmul.mubr.bf16.gmra.mxu0 %v270_v42  ;;  %v953_v1 = vpop.f32.mrf.mxu1  ;;  %13063 = vmatmul.mubr.bf16.gmra.mxu1 %v15354_v55  ;;  %v15371_v42 = vpack.c.bf16 %v154_v60, %v153_v31 }
 0x177   :  { %12862 = vmatprep.mubr.msk.bf16.mxu0 %vm14605_vm0, %v19282_v0  ;;  %v15367_v47 = vadd.f32 %v953_v1, %v497_v57  ;;  %13066 = vmatprep.mubr.msk.bf16.mxu1 %vm14605_vm0, %v19282_v0  ;;  %v156_v57 = vld [vmem:[%s19256_s0 + $0x298] sm:$0xff]  ;;  %v157_v1 = vld [vmem:[%s19256_s0 + $0x2a0] sm:$0xff] }
 0x178   :  { %v12764_v21 = vpop.f32.mrf.mxu0  ;;  %v12968_v26 = vpop.f32.mrf.mxu1  ;;  %19409 = vst [vmem:[#allocation35_spill] sm:$0xff] %v15371_v42 }
 0x179   :  { %19408 = vst [vmem:[#allocation34_spill] sm:$0xff] %v15367_v47  ;;  %v272_v26 = vpack.c.bf16 %v157_v1, %v156_v57 }
 0x17a   :  { %v500_v20 = vpop.f32.mrf.mxu0  ;;  %v956_v27 = vpop.f32.mrf.mxu1 }
 0x17b   :  { %v15373_v14 = vadd.f32 %v956_v27, %v500_v20 }
 0x17c   :  { %v12765_v43 = vpop.f32.mrf.mxu0  ;;  %v12969_v30 = vpop.f32.mrf.mxu1 }
 0x17d   :  { %19410 = vst [vmem:[#allocation36_spill] sm:$0xff] %v15373_v14 }
 0x17e   :  { %v505_v6 = vpop.f32.mrf.mxu0  ;;  %12863 = vmatmul.mubr.bf16.gmra.mxu0 %v271_v8  ;;  %v961_v55 = vpop.f32.mrf.mxu1  ;;  %13067 = vmatmul.mubr.bf16.gmra.mxu1 %v15371_v42  ;;  %v15388_v8 = vpack.c.bf16 %v156_v57, %v155_v52 }
 0x17f   :  { %12866 = vmatprep.mubr.msk.bf16.mxu0 %vm14605_vm0, %v19282_v0  ;;  %v15384_v31 = vadd.f32 %v961_v55, %v505_v6  ;;  %13070 = vmatprep.mubr.msk.bf16.mxu1 %vm14605_vm0, %v19282_v0  ;;  %v158_v6 = vld [vmem:[%s19256_s0 + $0x2a8] sm:$0xff]  ;;  %v159_v55 = vld [vmem:[%s19256_s0 + $0x2b0] sm:$0xff] }
 0x180   :  { %v12768_v60 = vpop.f32.mrf.mxu0  ;;  %v12972_v30 = vpop.f32.mrf.mxu1  ;;  %19412 = vst [vmem:[#allocation38_spill] sm:$0xff] %v15388_v8 }
 0x181   :  { %19411 = vst [vmem:[#allocation37_spill] sm:$0xff] %v15384_v31  ;;  %v273_v30 = vpack.c.bf16 %v159_v55, %v158_v6 }
 0x182   :  { %v508_v21 = vpop.f32.mrf.mxu0  ;;  %v964_v20 = vpop.f32.mrf.mxu1 }
 0x183   :  { %v15390_v27 = vadd.f32 %v964_v20, %v508_v21 }
 0x184   :  { %v12769_v43 = vpop.f32.mrf.mxu0  ;;  %v12973_v14 = vpop.f32.mrf.mxu1 }
 0x185   :  { %19413 = vst [vmem:[#allocation39_spill] sm:$0xff] %v15390_v27 }
 0x186   :  { %v513_v47 = vpop.f32.mrf.mxu0  ;;  %12867 = vmatmul.mubr.bf16.gmra.mxu0 %v272_v26  ;;  %v969_v42 = vpop.f32.mrf.mxu1  ;;  %13071 = vmatmul.mubr.bf16.gmra.mxu1 %v15388_v8  ;;  %v15405_v26 = vpack.c.bf16 %v158_v6, %v157_v1 }
 0x187   :  { %12870 = vmatprep.mubr.msk.bf16.mxu0 %vm14605_vm0, %v19282_v0  ;;  %v15401_v52 = vadd.f32 %v969_v42, %v513_v47  ;;  %13074 = vmatprep.mubr.msk.bf16.mxu1 %vm14605_vm0, %v19282_v0  ;;  %v160_v47 = vld [vmem:[%s19256_s0 + $0x2b8] sm:$0xff]  ;;  %v161_v42 = vld [vmem:[%s19256_s0 + $0x2c0] sm:$0xff] }
 0x188   :  { %v12772_v57 = vpop.f32.mrf.mxu0  ;;  %v12976_v14 = vpop.f32.mrf.mxu1  ;;  %19415 = vst [vmem:[#allocation41_spill] sm:$0xff] %v15405_v26 }
 0x189   :  { %19414 = vst [vmem:[#allocation40_spill] sm:$0xff] %v15401_v52  ;;  %v13931_v57 = vld [vmem:[%s19259_s3 + $0x78] sm:$0xff]  }
 0x18a   :  { %v516_v60 = vpop.f32.mrf.mxu0  ;;  %v972_v21 = vpop.f32.mrf.mxu1  ;;  %13298 = vmatprep.subr.bf16.mxu1 %v13931_v57 }
 0x18b   :  { %v15407_v20 = vadd.f32 %v972_v21, %v516_v60  ;;  %v274_v60 = vpack.c.bf16 %v161_v42, %v160_v47  ;;  %v15425_v21 = vpack.c.bf16 %v160_v47, %v159_v55  ;;  %13299 = vmatpush3.bf16.msra.mxu1 %v13931_v57  ;;  %v163_v55 = vld [vmem:[%s19256_s0 + $0x2d0] sm:$0xff] }
 0x18c   :  { %v12773_v43 = vpop.f32.mrf.mxu0  ;;  %v12977_v27 = vpop.f32.mrf.mxu1 }
 0x18d   :  { %19416 = vst [vmem:[#allocation42_spill] sm:$0xff] %v15407_v20  ;;  %19418 = vst [vmem:[#allocation44_spill] sm:$0xff] %v15425_v21 }
 0x18e   :  { %v521_v31 = vpop.f32.mrf.mxu0  ;;  %12871 = vmatmul.mubr.bf16.gmra.mxu0 %v273_v30  ;;  %v977_v8 = vpop.f32.mrf.mxu1  ;;  %13075 = vmatmul.mubr.bf16.gmra.mxu1 %v15405_v26 }
 0x18f   :  { %12874 = vmatprep.mubr.msk.bf16.mxu0 %vm14605_vm0, %v19282_v0  ;;  %v15418_v1 = vadd.f32 %v977_v8, %v521_v31  ;;  %13078 = vmatprep.mubr.msk.bf16.mxu1 %vm14605_vm0, %v19282_v0 }
 0x190   :  { %v12776_v6 = vpop.f32.mrf.mxu0  ;;  %v12980_v27 = vpop.f32.mrf.mxu1 }
 0x191   :  { %19417 = vst [vmem:[#allocation43_spill] sm:$0xff] %v15418_v1  ;;  %v162_v27 = vld [vmem:[%s19256_s0 + $0x2c8] sm:$0xff] }
 0x192   :  { %v524_v14 = vpop.f32.mrf.mxu0  ;;  %v980_v30 = vpop.f32.mrf.mxu1 }
 0x193   :  { %v15427_v43 = vadd.f32 %v980_v30, %v524_v14 }
 0x194   :  { %v12777_v20 = vpop.f32.mrf.mxu0  ;;  %v12981_v31 = vpop.f32.mrf.mxu1 }
 0x195   :  { %19419 = vst [vmem:[#allocation45_spill] sm:$0xff] %v15427_v43  ;;  %v15442_v31 = vpack.c.bf16 %v162_v27, %v161_v42  ;;  %v165_v42 = vld [vmem:[%s19256_s0 + $0x2e0] sm:$0xff] }
 0x196   :  { %v529_v8 = vpop.f32.mrf.mxu0  ;;  %12875 = vmatmul.mubr.bf16.gmra.mxu0 %v274_v60  ;;  %v985_v6 = vpop.f32.mrf.mxu1  ;;  %13079 = vmatmul.mubr.bf16.gmra.mxu1 %v15425_v21  ;;  %v275_v60 = vpack.c.bf16 %v163_v55, %v162_v27 }
 0x197   :  { %12878 = vmatprep.mubr.msk.bf16.mxu0 %vm14605_vm0, %v19282_v0  ;;  %v15438_v47 = vadd.f32 %v985_v6, %v529_v8  ;;  %13082 = vmatprep.mubr.msk.bf16.mxu1 %vm14605_vm0, %v19282_v0  ;;  %19421 = vst [vmem:[#allocation47_spill] sm:$0xff] %v15442_v31  ;;  %v164_v8 = vld [vmem:[%s19256_s0 + $0x2d8] sm:$0xff] }
 0x198   :  { %v12780_v20 = vpop.f32.mrf.mxu0  ;;  %v12984_v57 = vpop.f32.mrf.mxu1 }
 0x199   :  { %19420 = vst [vmem:[#allocation46_spill] sm:$0xff] %v15438_v47  ;;  %v276_v20 = vpack.c.bf16 %v165_v42, %v164_v8 }
 0x19a   :  { %v532_v14 = vpop.f32.mrf.mxu0  ;;  %v988_v30 = vpop.f32.mrf.mxu1 }
 0x19b   :  { %v15444_v43 = vadd.f32 %v988_v30, %v532_v14  ;;  %v15459_v14 = vpack.c.bf16 %v164_v8, %v163_v55 }
 0x19c   :  { %v12781_v1 = vpop.f32.mrf.mxu0  ;;  %v12985_v21 = vpop.f32.mrf.mxu1 }
 0x19d   :  { %19422 = vst [vmem:[#allocation48_spill] sm:$0xff] %v15444_v43 }
 0x19e   :  { %v537_v52 = vpop.f32.mrf.mxu0  ;;  %12879 = vmatmul.mubr.bf16.gmra.mxu0 %v275_v60  ;;  %v993_v26 = vpop.f32.mrf.mxu1  ;;  %13083 = vmatmul.mubr.bf16.gmra.mxu1 %v15442_v31 }
 0x19f   :  { %12882 = vmatprep.mubr.msk.bf16.mxu0 %vm14605_vm0, %v19282_v0  ;;  %v15455_v6 = vadd.f32 %v993_v26, %v537_v52  ;;  %13086 = vmatprep.mubr.msk.bf16.mxu1 %vm14605_vm0, %v19282_v0  ;;  %v166_v52 = vld [vmem:[%s19256_s0 + $0x2e8] sm:$0xff] }
 0x1a0   :  { %v12784_v1 = vpop.f32.mrf.mxu0  ;;  %v12988_v21 = vpop.f32.mrf.mxu1 }
 0x1a1   :  { %19423 = vst [vmem:[#allocation49_spill] sm:$0xff] %v15455_v6  ;;  %v277_v1 = vpack.c.bf16 %v166_v52, %v166_v52 }
 0x1a2   :  { %v540_v27 = vpop.f32.mrf.mxu0  ;;  %v996_v57 = vpop.f32.mrf.mxu1 }
 0x1a3   :  { %v15461_v60 = vadd.f32 %v996_v57, %v540_v27  ;;  %v214_v27 = vpack.c.bf16 %v165_v42, %v165_v42 }
 0x1a4   :  { %v12785_v30 = vpop.f32.mrf.mxu0  ;;  %v12989_v43 = vpop.f32.mrf.mxu1 }
 0x1a5   :  { %19424 = vst [vmem:[#allocation50_spill] sm:$0xff] %v15461_v60 }
 0x1a6   :  { %v545_v47 = vpop.f32.mrf.mxu0  ;;  %12883 = vmatmul.mubr.bf16.gmra.mxu0 %v276_v20  ;;  %v1001_v31 = vpop.f32.mrf.mxu1  ;;  %13087 = vmatmul.mubr.bf16.gmra.mxu1 %v15459_v14 }
 0x1a7   :  { %12886 = vmatprep.mubr.msk.bf16.mxu0 %vm14605_vm0, %v19282_v0  ;;  %v15469_v26 = vadd.f32 %v1001_v31, %v545_v47  ;;  %13090 = vmatprep.mubr.msk.bf16.mxu1 %vm14605_vm0, %v19282_v0 }
 0x1a8   :  { %v12788_v55 = vpop.f32.mrf.mxu0  ;;  %v12992_v8 = vpop.f32.mrf.mxu1 }
 0x1a9   :  { %19425 = vst [vmem:[#allocation51_spill] sm:$0xff] %v15469_v26 }
 0x1aa   :  { %v548_v43 = vpop.f32.mrf.mxu0  ;;  %v1004_v21 = vpop.f32.mrf.mxu1 }
 0x1ab   :  { %v15473_v20 = vadd.f32 %v1004_v21, %v548_v43 }
 0x1ac   :  { %v12789_v57 = vpop.f32.mrf.mxu0  ;;  %v12993_v30 = vpop.f32.mrf.mxu1 }
 0x1ae   :  { %v553_v60 = vpop.f32.mrf.mxu0  ;;  %12887 = vmatmul.mubr.bf16.gmra.mxu0 %v277_v1  ;;  %v1009_v6 = vpop.f32.mrf.mxu1  ;;  %13091 = vmatmul.mubr.bf16.gmra.mxu1 %v214_v27 }
 0x1af   :  { %13110 = vmatprep.mubr.msk.bf16.mxu0 %vm14605_vm0, %v19282_v0  ;;  %v15477_v47 = vadd.f32 %v1009_v6, %v553_v60 }
 0x1b0   :  { %v12792_v31 = vpop.f32.mrf.mxu0  ;;  %v12996_v55 = vpop.f32.mrf.mxu1 }
 0x1b2   :  { %v556_v8 = vpop.f32.mrf.mxu0  ;;  %v1012_v26 = vpop.f32.mrf.mxu1 }
 0x1b3   :  { %v15479_v52 = vadd.f32 %v1012_v26, %v556_v8 }
 0x1b4   :  { %v12793_v42 = vpop.f32.mrf.mxu0  ;;  %v12997_v43 = vpop.f32.mrf.mxu1 }
 0x1b6   :  { %v561_v21 = vpop.f32.mrf.mxu0  ;;  %13111 = vmatmul.mubr.bf16.vlgmr.msra.gmra.mxu0 %v14781_v28  ;;  %v1017_v57 = vpop.f32.mrf.mxu1 }
 0x1b7   :  { %13114 = vmatprep.mubr.msk.bf16.mxu0 %vm14605_vm0, %v19282_v0  ;;  %v15484_v1 = vadd.f32 %v1017_v57, %v561_v21  ;;  %v13932_v21 = vld [vmem:[%s19259_s3 + $0x70] sm:$0xff]  }
 0x1b8   :  { %v12796_v27 = vpop.f32.mrf.mxu0  ;;  %v13000_v6 = vpop.f32.mrf.mxu1  ;;  %13300 = vmatprep.subr.bf16.mxu1 %v13932_v21 }
 0x1b9   :  { %13301 = vmatpush3.bf16.msra.mxu1 %v13932_v21 }
 0x1ba   :  { %v564_v60 = vpop.f32.mrf.mxu0  ;;  %v1020_v30 = vpop.f32.mrf.mxu1 }
 0x1bb   :  { %v15486_v31 = vadd.f32 %v1020_v30, %v564_v60 }
 0x1bc   :  { %v12797_v55 = vpop.f32.mrf.mxu0  ;;  %v13001_v26 = vpop.f32.mrf.mxu1 }
 0x1bd   :  { %19426 = vst [vmem:[#allocation52_spill] sm:$0xff] %v15486_v31 }
 0x1be   :  { %v569_v8 = vpop.f32.mrf.mxu0  ;;  %13115 = vmatmul.mubr.bf16.gmra.mxu0 %v14799_v33  ;;  %v1025_v42 = vpop.f32.mrf.mxu1 }
 0x1bf   :  { %13118 = vmatprep.mubr.msk.bf16.mxu0 %vm14605_vm0, %v19282_v0  ;;  %v15491_v28 = vadd.f32 %v1025_v42, %v569_v8 }
 0x1c0   :  { %v12800_v43 = vpop.f32.mrf.mxu0  ;;  %v13004_v57 = vpop.f32.mrf.mxu1 }
 0x1c1   :  { %19427 = vst [vmem:[#allocation53_spill] sm:$0xff] %v15491_v28 }
 0x1c2   :  { %v572_v27 = vpop.f32.mrf.mxu0  ;;  %v1028_v6 = vpop.f32.mrf.mxu1 }
 0x1c3   :  { %v15496_v60 = vadd.f32 %v1028_v6, %v572_v27 }
 0x1c4   :  { %v12801_v30 = vpop.f32.mrf.mxu0  ;;  %v13005_v33 = vpop.f32.mrf.mxu1 }
 0x1c6   :  { %v577_v55 = vpop.f32.mrf.mxu0  ;;  %13119 = vmatmul.mubr.bf16.gmra.mxu0 %v14813_v37  ;;  %v1033_v26 = vpop.f32.mrf.mxu1 }
 0x1c7   :  { %13122 = vmatprep.mubr.msk.bf16.mxu0 %vm14605_vm0, %v19282_v0  ;;  %v15501_v8 = vadd.f32 %v1033_v26, %v577_v55 }
 0x1c8   :  { %v12804_v42 = vpop.f32.mrf.mxu0  ;;  %v13008_v43 = vpop.f32.mrf.mxu1 }
 0x1c9   :  { %19428 = vst [vmem:[#allocation54_spill] sm:$0xff] %v15501_v8 }
 0x1ca   :  { %v580_v57 = vpop.f32.mrf.mxu0  ;;  %v1036_v28 = vpop.f32.mrf.mxu1 }
 0x1cb   :  { %v15503_v31 = vadd.f32 %v1036_v28, %v580_v57 }
 0x1cc   :  { %v12805_v21 = vpop.f32.mrf.mxu0  ;;  %v13009_v27 = vpop.f32.mrf.mxu1 }
 0x1ce   :  { %v585_v6 = vpop.f32.mrf.mxu0  ;;  %13123 = vmatmul.mubr.bf16.gmra.mxu0 %v14826_v41  ;;  %v1041_v30 = vpop.f32.mrf.mxu1 }
 0x1cf   :  { %13126 = vmatprep.mubr.msk.bf16.mxu0 %vm14605_vm0, %v19282_v0  ;;  %v15508_v37 = vadd.f32 %v1041_v30, %v585_v6 }
 0x1d0   :  { %v12808_v33 = vpop.f32.mrf.mxu0  ;;  %v13012_v55 = vpop.f32.mrf.mxu1 }
 0x1d1   :  { %19429 = vst [vmem:[#allocation55_spill] sm:$0xff] %v15508_v37 }
 0x1d2   :  { %v588_v26 = vpop.f32.mrf.mxu0  ;;  %v1044_v42 = vpop.f32.mrf.mxu1 }
 0x1d3   :  { %v15510_v43 = vadd.f32 %v1044_v42, %v588_v26 }
 0x1d4   :  { %v12809_v8 = vpop.f32.mrf.mxu0  ;;  %v13013_v28 = vpop.f32.mrf.mxu1 }
 0x1d6   :  { %v593_v57 = vpop.f32.mrf.mxu0  ;;  %13127 = vmatmul.mubr.bf16.gmra.mxu0 %v14839_v45  ;;  %v1049_v21 = vpop.f32.mrf.mxu1 }
 0x1d7   :  { %13130 = vmatprep.mubr.msk.bf16.mxu0 %vm14605_vm0, %v19282_v0  ;;  %v15515_v41 = vadd.f32 %v1049_v21, %v593_v57 }
 0x1d8   :  { %v12812_v27 = vpop.f32.mrf.mxu0  ;;  %v13016_v6 = vpop.f32.mrf.mxu1 }
 0x1d9   :  { %19430 = vst [vmem:[#allocation56_spill] sm:$0xff] %v15515_v41 }
 0x1da   :  { %v596_v30 = vpop.f32.mrf.mxu0  ;;  %v1052_v33 = vpop.f32.mrf.mxu1 }
 0x1db   :  { %v15517_v55 = vadd.f32 %v1052_v33, %v596_v30 }
 0x1dc   :  { %v12813_v37 = vpop.f32.mrf.mxu0  ;;  %v13017_v26 = vpop.f32.mrf.mxu1 }
 0x1de   :  { %v601_v42 = vpop.f32.mrf.mxu0  ;;  %13131 = vmatmul.mubr.bf16.gmra.mxu0 %v14852_v49  ;;  %v1057_v8 = vpop.f32.mrf.mxu1 }
 0x1df   :  { %13134 = vmatprep.mubr.msk.bf16.mxu0 %vm14605_vm0, %v19282_v0  ;;  %v15522_v45 = vadd.f32 %v1057_v8, %v601_v42 }
 0x1e0   :  { %v12816_v28 = vpop.f32.mrf.mxu0  ;;  %v13020_v57 = vpop.f32.mrf.mxu1 }
 0x1e1   :  { %19431 = vst [vmem:[#allocation57_spill] sm:$0xff] %v15522_v45 }
 0x1e2   :  { %v604_v21 = vpop.f32.mrf.mxu0  ;;  %v1060_v27 = vpop.f32.mrf.mxu1 }
 0x1e3   :  { %v15524_v6 = vadd.f32 %v1060_v27, %v604_v21 }
 0x1e4   :  { %v12817_v41 = vpop.f32.mrf.mxu0  ;;  %v13021_v30 = vpop.f32.mrf.mxu1 }
 0x1e6   :  { %v609_v33 = vpop.f32.mrf.mxu0  ;;  %13135 = vmatmul.mubr.bf16.gmra.mxu0 %v14865_v53  ;;  %v1065_v37 = vpop.f32.mrf.mxu1  ;;  %v13933_v53 = vld [vmem:[%s19259_s3 + $0x68] sm:$0xff]  }
 0x1e7   :  { %13138 = vmatprep.mubr.msk.bf16.mxu0 %vm14605_vm0, %v19282_v0  ;;  %v15529_v49 = vadd.f32 %v1065_v37, %v609_v33  ;;  %13302 = vmatprep.subr.bf16.mxu1 %v13933_v53 }
 0x1e8   :  { %v12820_v26 = vpop.f32.mrf.mxu0  ;;  %v13024_v42 = vpop.f32.mrf.mxu1  ;;  %13303 = vmatpush3.bf16.msra.mxu1 %v13933_v53 }
 0x1ea   :  { %v612_v8 = vpop.f32.mrf.mxu0  ;;  %v1068_v28 = vpop.f32.mrf.mxu1 }
 0x1eb   :  { %v15531_v57 = vadd.f32 %v1068_v28, %v612_v8 }
 0x1ec   :  { %v12821_v45 = vpop.f32.mrf.mxu0  ;;  %v13025_v21 = vpop.f32.mrf.mxu1 }
 0x1ed   :  { %19432 = vst [vmem:[#allocation58_spill] sm:$0xff] %v15531_v57 }
 0x1ee   :  { %v617_v27 = vpop.f32.mrf.mxu0  ;;  %13139 = vmatmul.mubr.bf16.gmra.mxu0 %v14882_v58  ;;  %v1073_v41 = vpop.f32.mrf.mxu1 }
 0x1ef   :  { %13142 = vmatprep.mubr.msk.bf16.mxu0 %vm14605_vm0, %v19282_v0  ;;  %v15539_v30 = vadd.f32 %v1073_v41, %v617_v27 }
 0x1f0   :  { %v12824_v33 = vpop.f32.mrf.mxu0  ;;  %v13028_v37 = vpop.f32.mrf.mxu1 }
 0x1f1   :  { %19433 = vst [vmem:[#allocation59_spill] sm:$0xff] %v15539_v30 }
 0x1f2   :  { %v620_v26 = vpop.f32.mrf.mxu0  ;;  %v1076_v45 = vpop.f32.mrf.mxu1 }
 0x1f3   :  { %v15541_v42 = vadd.f32 %v1076_v45, %v620_v26 }
 0x1f4   :  { %v12825_v8 = vpop.f32.mrf.mxu0  ;;  %v13029_v58 = vpop.f32.mrf.mxu1 }
 0x1f6   :  { %v625_v28 = vpop.f32.mrf.mxu0  ;;  %13143 = vmatmul.mubr.bf16.gmra.mxu0 %v14895_v62  ;;  %v1081_v21 = vpop.f32.mrf.mxu1 }
 0x1f7   :  { %13146 = vmatprep.mubr.msk.bf16.mxu0 %vm14605_vm0, %v19282_v0  ;;  %v15546_v57 = vadd.f32 %v1081_v21, %v625_v28 }
 0x1f8   :  { %v12828_v27 = vpop.f32.mrf.mxu0  ;;  %v13032_v41 = vpop.f32.mrf.mxu1 }
 0x1f9   :  { %v13934_v41 = vld [vmem:[%s19259_s3 + $0x60] sm:$0xff]  }
 0x1fa   :  { %v628_v33 = vpop.f32.mrf.mxu0  ;;  %v1084_v37 = vpop.f32.mrf.mxu1  ;;  %13304 = vmatprep.subr.bf16.mxu1 %v13934_v41 }
 0x1fb   :  { %v15548_v53 = vadd.f32 %v1084_v37, %v628_v33  ;;  %13305 = vmatpush3.bf16.msra.mxu1 %v13934_v41 }
 0x1fc   :  { %v12829_v30 = vpop.f32.mrf.mxu0  ;;  %v13033_v26 = vpop.f32.mrf.mxu1 }
 0x1fe   :  { %v633_v45 = vpop.f32.mrf.mxu0  ;;  %13147 = vmatmul.mubr.bf16.gmra.mxu0 %v14908_v3  ;;  %v1089_v8 = vpop.f32.mrf.mxu1 }
 0x1ff   :  { %13150 = vmatprep.mubr.msk.bf16.mxu0 %vm14605_vm0, %v19282_v0  ;;  %v15553_v62 = vadd.f32 %v1089_v8, %v633_v45  ;;  %v13935_v45 = vld [vmem:[%s19259_s3 + $0x58] sm:$0xff]  }
 0x200   :  { %v12832_v58 = vpop.f32.mrf.mxu0  ;;  %v13036_v28 = vpop.f32.mrf.mxu1  ;;  %13306 = vmatprep.subr.bf16.mxu1 %v13935_v45 }
 0x201   :  { %13307 = vmatpush3.bf16.msra.mxu1 %v13935_v45  ;;  %v13937_v45 = vld [vmem:[%s19259_s3 + $0x48] sm:$0xff]  }
 0x202   :  { %v636_v21 = vpop.f32.mrf.mxu0  ;;  %v1092_v27 = vpop.f32.mrf.mxu1 }
 0x203   :  { %v15558_v33 = vadd.f32 %v1092_v27, %v636_v21 }
 0x204   :  { %v12833_v30 = vpop.f32.mrf.mxu0  ;;  %v13037_v37 = vpop.f32.mrf.mxu1 }
 0x205   :  { %19434 = vst [vmem:[#allocation60_spill] sm:$0xff] %v15558_v33 }
 0x206   :  { %v641_v3 = vpop.f32.mrf.mxu0  ;;  %13151 = vmatmul.mubr.bf16.gmra.mxu0 %v14921_v7  ;;  %v1097_v26 = vpop.f32.mrf.mxu1  ;;  %v13936_v7 = vld [vmem:[%s19259_s3 + $0x50] sm:$0xff]  }
 0x207   :  { %13154 = vmatprep.mubr.msk.bf16.mxu0 %vm14605_vm0, %v19282_v0  ;;  %v15566_v8 = vadd.f32 %v1097_v26, %v641_v3  ;;  %13308 = vmatprep.subr.bf16.mxu1 %v13936_v7  ;;  %v19437_v26 = vmov 0.0  }
 0x208   :  { %v12836_v58 = vpop.f32.mrf.mxu0  ;;  %v13040_v28 = vpop.f32.mrf.mxu1  ;;  %13309 = vmatpush3.bf16.msra.mxu1 %v13936_v7 }
 0x209   :  { %19435 = vst [vmem:[#allocation61_spill] sm:$0xff] %v15566_v8  ;;  %13310 = vmatprep.subr.bf16.mxu1 %v13937_v45 }
 0x20a   :  { %v644_v21 = vpop.f32.mrf.mxu0  ;;  %v1100_v27 = vpop.f32.mrf.mxu1 }
 0x20b   :  { %v15571_v41 = vadd.f32 %v1100_v27, %v644_v21 }
 0x20c   :  { %v12837_v30 = vpop.f32.mrf.mxu0  ;;  %v13041_v37 = vpop.f32.mrf.mxu1  ;;  %13311 = vmatpush3.bf16.msra.mxu1 %v13937_v45 }
 0x20d   :  { %19436 = vst [vmem:[#allocation62_spill] sm:$0xff] %v15571_v41 }
 0x20e   :  { %v649_v0 = vpop.f32.mrf.mxu0  ;;  %13155 = vmatmul.mubr.bf16.gmra.mxu0 %v14934_v11  ;;  %v1105_v3 = vpop.f32.mrf.mxu1  ;;  %v13938_v11 = vld [vmem:[%s19259_s3 + $0x40] sm:$0xff]  }
 0x20f   :  { %13158 = vmatprep.mubr.msk.bf16.mxu0 %vm14605_vm0, %v19437_v26  ;;  %v15579_v58 = vadd.f32 %v1105_v3, %v649_v0  ;;  %13312 = vmatprep.subr.bf16.mxu1 %v13938_v11 }
 0x210   :  { %v12840_v28 = vpop.f32.mrf.mxu0  ;;  %v13044_v21 = vpop.f32.mrf.mxu1  ;;  %13313 = vmatpush3.bf16.msra.mxu1 %v13938_v11 }
 0x211   :  { %19438 = vst [vmem:[#allocation63_spill] sm:$0xff] %v15579_v58 }
 0x212   :  { %v652_v27 = vpop.f32.mrf.mxu0  ;;  %v1108_v30 = vpop.f32.mrf.mxu1 }
 0x213   :  { %v15584_v7 = vadd.f32 %v1108_v30, %v652_v27 }
 0x214   :  { %v12841_v37 = vpop.f32.mrf.mxu0  ;;  %v13045_v41 = vpop.f32.mrf.mxu1 }
 0x216   :  { %v657_v8 = vpop.f32.mrf.mxu0  ;;  %13159 = vmatmul.mubr.bf16.gmra.mxu0 %v14947_v15  ;;  %v1113_v0 = vpop.f32.mrf.mxu1 }
 0x217   :  { %13162 = vmatprep.mubr.msk.bf16.mxu0 %vm14605_vm0, %v19437_v26  ;;  %v15589_v3 = vadd.f32 %v1113_v0, %v657_v8 }
 0x218   :  { %v12844_v45 = vpop.f32.mrf.mxu0  ;;  %v13048_v28 = vpop.f32.mrf.mxu1 }
 0x219   :  { %19439 = vst [vmem:[#allocation64_spill] sm:$0xff] %v15589_v3 }
 0x21a   :  { %v660_v21 = vpop.f32.mrf.mxu0  ;;  %v1116_v58 = vpop.f32.mrf.mxu1 }
 0x21b   :  { %v15591_v33 = vadd.f32 %v1116_v58, %v660_v21 }
 0x21c   :  { %v12845_v27 = vpop.f32.mrf.mxu0  ;;  %v13049_v30 = vpop.f32.mrf.mxu1 }
 0x21e   :  { %v665_v41 = vpop.f32.mrf.mxu0  ;;  %13163 = vmatmul.mubr.bf16.gmra.mxu0 %v14960_v19  ;;  %v1121_v37 = vpop.f32.mrf.mxu1 }
 0x21f   :  { %13166 = vmatprep.mubr.msk.bf16.mxu0 %vm14605_vm0, %v19437_v26  ;;  %v15596_v15 = vadd.f32 %v1121_v37, %v665_v41 }
 0x220   :  { %v12848_v11 = vpop.f32.mrf.mxu0  ;;  %v13052_v8 = vpop.f32.mrf.mxu1 }
 0x221   :  { %19440 = vst [vmem:[#allocation65_spill] sm:$0xff] %v15596_v15 }
 0x222   :  { %v668_v0 = vpop.f32.mrf.mxu0  ;;  %v1124_v45 = vpop.f32.mrf.mxu1 }
 0x223   :  { %v15598_v28 = vadd.f32 %v1124_v45, %v668_v0 }
 0x224   :  { %v12849_v3 = vpop.f32.mrf.mxu0  ;;  %v13053_v58 = vpop.f32.mrf.mxu1 }
 0x226   :  { %v673_v21 = vpop.f32.mrf.mxu0  ;;  %13167 = vmatmul.mubr.bf16.gmra.mxu0 %v14977_v24  ;;  %v1129_v27 = vpop.f32.mrf.mxu1 }
 0x227   :  { %13170 = vmatprep.mubr.msk.bf16.mxu0 %vm14605_vm0, %v19437_v26  ;;  %v15603_v19 = vadd.f32 %v1129_v27, %v673_v21 }
 0x228   :  { %v12852_v30 = vpop.f32.mrf.mxu0  ;;  %v13056_v41 = vpop.f32.mrf.mxu1 }
 0x229   :  { %19441 = vst [vmem:[#allocation66_spill] sm:$0xff] %v15603_v19 }
 0x22a   :  { %v676_v37 = vpop.f32.mrf.mxu0  ;;  %v1132_v11 = vpop.f32.mrf.mxu1 }
 0x22b   :  { %v15605_v8 = vadd.f32 %v1132_v11, %v676_v37 }
 0x22c   :  { %v12853_v15 = vpop.f32.mrf.mxu0  ;;  %v13057_v0 = vpop.f32.mrf.mxu1 }
 0x22e   :  { %v681_v45 = vpop.f32.mrf.mxu0  ;;  %13171 = vmatmul.mubr.bf16.gmra.mxu0 %v14990_v29  ;;  %v1137_v3 = vpop.f32.mrf.mxu1 }
 0x22f   :  { %13174 = vmatprep.mubr.msk.bf16.mxu0 %vm14605_vm0, %v19437_v26  ;;  %v15610_v24 = vadd.f32 %v1137_v3, %v681_v45 }
 0x230   :  { %v12856_v58 = vpop.f32.mrf.mxu0  ;;  %v13060_v21 = vpop.f32.mrf.mxu1 }
 0x231   :  { %19442 = vst [vmem:[#allocation67_spill] sm:$0xff] %v15610_v24 }
 0x232   :  { %v684_v27 = vpop.f32.mrf.mxu0  ;;  %v1140_v30 = vpop.f32.mrf.mxu1 }
 0x233   :  { %v15612_v41 = vadd.f32 %v1140_v30, %v684_v27 }
 0x234   :  { %v12857_v19 = vpop.f32.mrf.mxu0  ;;  %v13061_v37 = vpop.f32.mrf.mxu1 }
 0x236   :  { %v689_v11 = vpop.f32.mrf.mxu0  ;;  %13175 = vmatmul.mubr.bf16.gmra.mxu0 %v15003_v34  ;;  %v1145_v15 = vpop.f32.mrf.mxu1 }
 0x237   :  { %13178 = vmatprep.mubr.msk.bf16.mxu0 %vm14605_vm0, %v19437_v26  ;;  %v15617_v29 = vadd.f32 %v1145_v15, %v689_v11 }
 0x238   :  { %v12860_v0 = vpop.f32.mrf.mxu0  ;;  %v13064_v45 = vpop.f32.mrf.mxu1 }
 0x239   :  { %19443 = vst [vmem:[#allocation68_spill] sm:$0xff] %v15617_v29 }
 0x23a   :  { %v692_v3 = vpop.f32.mrf.mxu0  ;;  %v1148_v58 = vpop.f32.mrf.mxu1 }
 0x23b   :  { %v15619_v21 = vadd.f32 %v1148_v58, %v692_v3 }
 0x23c   :  { %v12861_v24 = vpop.f32.mrf.mxu0  ;;  %v13065_v27 = vpop.f32.mrf.mxu1 }
 0x23e   :  { %v697_v30 = vpop.f32.mrf.mxu0  ;;  %13179 = vmatmul.mubr.bf16.gmra.mxu0 %v15016_v39  ;;  %v1153_v19 = vpop.f32.mrf.mxu1 }
 0x23f   :  { %13182 = vmatprep.mubr.msk.bf16.mxu0 %vm14605_vm0, %v19437_v26  ;;  %v15624_v34 = vadd.f32 %v1153_v19, %v697_v30 }
 0x240   :  { %v12864_v37 = vpop.f32.mrf.mxu0  ;;  %v13068_v11 = vpop.f32.mrf.mxu1 }
 0x241   :  { %19444 = vst [vmem:[#allocation69_spill] sm:$0xff] %v15624_v34 }
 0x242   :  { %v700_v15 = vpop.f32.mrf.mxu0  ;;  %v1156_v0 = vpop.f32.mrf.mxu1 }
 0x243   :  { %v15626_v45 = vadd.f32 %v1156_v0, %v700_v15 }
 0x244   :  { %v12865_v29 = vpop.f32.mrf.mxu0  ;;  %v13069_v3 = vpop.f32.mrf.mxu1 }
 0x246   :  { %v705_v58 = vpop.f32.mrf.mxu0  ;;  %13183 = vmatmul.mubr.bf16.gmra.mxu0 %v15029_v44  ;;  %v1161_v24 = vpop.f32.mrf.mxu1 }
 0x247   :  { %13186 = vmatprep.mubr.msk.bf16.mxu0 %vm14605_vm0, %v19437_v26  ;;  %v15631_v39 = vadd.f32 %v1161_v24, %v705_v58 }
 0x248   :  { %v12868_v27 = vpop.f32.mrf.mxu0  ;;  %v13072_v30 = vpop.f32.mrf.mxu1 }
 0x249   :  { %19445 = vst [vmem:[#allocation70_spill] sm:$0xff] %v15631_v39 }
 0x24a   :  { %v708_v19 = vpop.f32.mrf.mxu0  ;;  %v1164_v37 = vpop.f32.mrf.mxu1 }
 0x24b   :  { %v15633_v11 = vadd.f32 %v1164_v37, %v708_v19 }
 0x24c   :  { %v12869_v34 = vpop.f32.mrf.mxu0  ;;  %v13073_v15 = vpop.f32.mrf.mxu1 }
 0x24e   :  { %v713_v0 = vpop.f32.mrf.mxu0  ;;  %13187 = vmatmul.mubr.bf16.gmra.mxu0 %v15045_v51  ;;  %v1169_v29 = vpop.f32.mrf.mxu1 }
 0x24f   :  { %13190 = vmatprep.mubr.msk.bf16.mxu0 %vm14605_vm0, %v19437_v26  ;;  %v15638_v44 = vadd.f32 %v1169_v29, %v713_v0 }
 0x250   :  { %v12872_v3 = vpop.f32.mrf.mxu0  ;;  %v13076_v58 = vpop.f32.mrf.mxu1 }
 0x251   :  { %19446 = vst [vmem:[#allocation71_spill] sm:$0xff] %v15638_v44 }
 0x252   :  { %v716_v24 = vpop.f32.mrf.mxu0  ;;  %v1172_v27 = vpop.f32.mrf.mxu1 }
 0x253   :  { %v15640_v30 = vadd.f32 %v1172_v27, %v716_v24 }
 0x254   :  { %v12873_v39 = vpop.f32.mrf.mxu0  ;;  %v13077_v19 = vpop.f32.mrf.mxu1 }
 0x256   :  { %v721_v37 = vpop.f32.mrf.mxu0  ;;  %13191 = vmatmul.mubr.bf16.gmra.mxu0 %v15059_v56  ;;  %v1177_v34 = vpop.f32.mrf.mxu1 }
 0x257   :  { %13194 = vmatprep.mubr.msk.bf16.mxu0 %vm14605_vm0, %v19437_v26  ;;  %v15645_v51 = vadd.f32 %v1177_v34, %v721_v37 }
 0x258   :  { %v12876_v15 = vpop.f32.mrf.mxu0  ;;  %v13080_v0 = vpop.f32.mrf.mxu1 }
 0x259   :  { %19447 = vst [vmem:[#allocation72_spill] sm:$0xff] %v15645_v51 }
 0x25a   :  { %v724_v29 = vpop.f32.mrf.mxu0  ;;  %v1180_v3 = vpop.f32.mrf.mxu1 }
 0x25b   :  { %v15647_v58 = vadd.f32 %v1180_v3, %v724_v29 }
 0x25c   :  { %v12877_v44 = vpop.f32.mrf.mxu0  ;;  %v13081_v24 = vpop.f32.mrf.mxu1 }
 0x25e   :  { %v729_v27 = vpop.f32.mrf.mxu0  ;;  %13195 = vmatmul.mubr.bf16.gmra.mxu0 %v15072_v61  ;;  %v1185_v39 = vpop.f32.mrf.mxu1 }
 0x25f   :  { %13198 = vmatprep.mubr.msk.bf16.mxu0 %vm14605_vm0, %v19437_v26  ;;  %v15652_v56 = vadd.f32 %v1185_v39, %v729_v27 }
 0x260   :  { %v12880_v19 = vpop.f32.mrf.mxu0  ;;  %v13084_v37 = vpop.f32.mrf.mxu1 }
 0x261   :  { %19448 = vst [vmem:[#allocation73_spill] sm:$0xff] %v15652_v56 }
 0x262   :  { %v732_v34 = vpop.f32.mrf.mxu0  ;;  %v1188_v15 = vpop.f32.mrf.mxu1 }
 0x263   :  { %v15654_v0 = vadd.f32 %v1188_v15, %v732_v34 }
 0x264   :  { %v12881_v51 = vpop.f32.mrf.mxu0  ;;  %v13085_v29 = vpop.f32.mrf.mxu1 }
 0x265   :  { %19449 = vst [vmem:[#allocation74_spill] sm:$0xff] %v15654_v0 }
 0x266   :  { %v737_v3 = vpop.f32.mrf.mxu0  ;;  %13199 = vmatmul.mubr.bf16.gmra.mxu0 %v15085_v4  ;;  %v1193_v44 = vpop.f32.mrf.mxu1 }
 0x267   :  { %13202 = vmatprep.mubr.msk.bf16.mxu0 %vm14605_vm0, %v19437_v26  ;;  %v15659_v61 = vadd.f32 %v1193_v44, %v737_v3 }
 0x268   :  { %v12884_v24 = vpop.f32.mrf.mxu0  ;;  %v13088_v27 = vpop.f32.mrf.mxu1 }
 0x269   :  { %19450 = vst [vmem:[#allocation75_spill] sm:$0xff] %v15659_v61 }
 0x26a   :  { %v740_v39 = vpop.f32.mrf.mxu0  ;;  %v1196_v19 = vpop.f32.mrf.mxu1 }
 0x26b   :  { %v15661_v37 = vadd.f32 %v1196_v19, %v740_v39  ;;  %v15675_v39 = vld [vmem:[%s19258_s2] ss:$0 sm:$0xff] }
 0x26c   :  { %v12885_v56 = vpop.f32.mrf.mxu0  ;;  %v13089_v34 = vpop.f32.mrf.mxu1 }
 0x26e   :  { %v745_v15 = vpop.f32.mrf.mxu0  ;;  %13203 = vmatmul.mubr.bf16.gmra.mxu0 %v15098_v9  ;;  %v1201_v51 = vpop.f32.mrf.mxu1 }
 0x26f   :  { %13206 = vmatprep.mubr.msk.bf16.mxu0 %vm14605_vm0, %v19437_v26  ;;  %v15666_v4 = vadd.f32 %v1201_v51, %v745_v15 }
 0x270   :  { %v12888_v29 = vpop.f32.mrf.mxu0  ;;  %v13092_v3 = vpop.f32.mrf.mxu1 }
 0x272   :  { %v748_v44 = vpop.f32.mrf.mxu0  ;;  %v1204_v24 = vpop.f32.mrf.mxu1 }
 0x274   :  { %v12889_v27 = vpop.f32.mrf.mxu0  ;;  %v13093_v61 = vpop.f32.mrf.mxu1 }
 0x276   :  { %v1308_v0 = vpop.f32.mrf.mxu0  ;;  %13207 = vmatmul.mubr.bf16.gmra.mxu0 %v15113_v23 }
 0x277   :  { %13210 = vmatprep.mubr.msk.bf16.mxu0 %vm14605_vm0, %v19437_v26  ;;  %v1682_v9 = vadd.f32 %v1308_v0, %v15109_v16 }
 0x278   :  { %v13112_v56 = vpop.f32.mrf.mxu0 }
 0x279   :  { %v1782_v61 = vadd.f32 %v15675_v39, %v1682_v9 }
 0x27a   :  { %v1311_v19 = vpop.f32.mrf.mxu0 }
 0x27b   :  { %v1683_v34 = vadd.f32 %v1311_v19, %v15115_v25  ;;  %v1968_v0 = vmul.f32 0.1, %v1782_v61  ;;  %vm1875_vm1 = vcmp.ge.f32.partialorder %v1782_v61, 0.0 }
 0x27c   :  { %v13113_v15 = vpop.f32.mrf.mxu0 }
 0x27d   :  { %v1783_v29 = vadd.f32 %v15675_v39, %v1683_v34 }
 0x27e   :  { %v1316_v51 = vpop.f32.mrf.mxu0  ;;  %13211 = vmatmul.mubr.bf16.gmra.mxu0 %v15133_v48 }
 0x27f   :  { %v1684_v23 = vadd.f32 %v1316_v51, %v15126_v36  ;;  %13214 = vmatprep.mubr.msk.bf16.mxu0 %vm14605_vm0, %v19437_v26  ;;  %v1969_v56 = vmul.f32 0.1, %v1783_v29  ;;  %v2061_v36 = vsel %vm1875_vm1, %v1782_v61, %v1968_v0  ;;  %vm1876_vm3 = vcmp.ge.f32.partialorder %v1783_v29, 0.0 }
 0x280   :  { %v13116_v16 = vpop.f32.mrf.mxu0 }
 0x281   :  { %v1784_v3 = vadd.f32 %v15675_v39, %v1684_v23  ;;  %v15697_v16 = vsel %vm1876_vm3, %v1783_v29, %v1969_v56 }
 0x282   :  { %v1319_v44 = vpop.f32.mrf.mxu0 }
 0x283   :  { %vm1877_vm2 = vcmp.ge.f32.partialorder %v1784_v3, 0.0  ;;  %v1970_v25 = vmul.f32 0.1, %v1784_v3  ;;  %v1685_v24 = vadd.f32 %v1319_v44, %v15135_v50 }
 0x284   :  { %v13117_v27 = vpop.f32.mrf.mxu0 }
 0x285   :  { %v1785_v48 = vadd.f32 %v15675_v39, %v1685_v24  ;;  %v15687_v9 = vsel %vm1877_vm2, %v1784_v3, %v1970_v25  ;;  %v13939_v27 = vld [vmem:[%s19259_s3 + $0x178] sm:$0xff]  }
 0x286   :  { %19451 = vst [vmem:[#allocation76_spill] sm:$0xff] %v15687_v9  ;;  %v1324_v19 = vpop.f32.mrf.mxu0  ;;  %13215 = vmatmul.mubr.bf16.gmra.mxu0 %v15150_v10  ;;  %v2476_v34 = vpack.c.bf16 %v15687_v9, %v2061_v36  ;;  %13598 = vmatprep.subr.bf16.mxu0 %v13939_v27 }
 0x287   :  { %vm1878_vm4 = vcmp.ge.f32.partialorder %v1785_v48, 0.0  ;;  %v1971_v15 = vmul.f32 0.1, %v1785_v48  ;;  %v1686_v51 = vadd.f32 %v1324_v19, %v15146_v63  ;;  %13218 = vmatprep.mubr.msk.bf16.mxu0 %vm14605_vm0, %v19437_v26  ;;  %13599 = vmatpush3.bf16.msra.mxu0 %v13939_v27 }
 0x288   :  { %v13120_v50 = vpop.f32.mrf.mxu0  ;;  %13314 = vmatprep.mubr.bf16.mxu1 %v2476_v34 }
 0x289   :  { %v15694_v23 = vsel %vm1878_vm4, %v1785_v48, %v1971_v15  ;;  %v1786_v61 = vadd.f32 %v15675_v39, %v1686_v51 }
 0x28a   :  { %19452 = vst [vmem:[#allocation77_spill] sm:$0xff] %v15694_v23  ;;  %v1327_v0 = vpop.f32.mrf.mxu0 }
 0x28b   :  { %vm1879_vm5 = vcmp.ge.f32.partialorder %v1786_v61, 0.0  ;;  %v1972_v3 = vmul.f32 0.1, %v1786_v61  ;;  %v1687_v44 = vadd.f32 %v1327_v0, %v15152_v12 }
 0x28c   :  { %v13121_v63 = vpop.f32.mrf.mxu0 }
 0x28d   :  { %v15702_v25 = vsel %vm1879_vm5, %v1786_v61, %v1972_v3  ;;  %v1787_v24 = vadd.f32 %v15675_v39, %v1687_v44  ;;  %v13941_v44 = vld [vmem:[%s19259_s3 + $0x168] sm:$0xff]  }
 0x28e   :  { %19453 = vst [vmem:[#allocation78_spill] sm:$0xff] %v15702_v25  ;;  %v1332_v48 = vpop.f32.mrf.mxu0  ;;  %13219 = vmatmul.mubr.bf16.gmra.mxu0 %v15167_v32  ;;  %v13940_v32 = vld [vmem:[%s19259_s3 + $0x170] sm:$0xff]  }
 0x28f   :  { %vm1880_vm6 = vcmp.ge.f32.partialorder %v1787_v24, 0.0  ;;  %v1973_v56 = vmul.f32 0.1, %v1787_v24  ;;  %v1688_v36 = vadd.f32 %v1332_v48, %v15163_v22  ;;  %13222 = vmatprep.mubr.msk.bf16.mxu0 %vm14605_vm0, %v19437_v26  ;;  %13600 = vmatprep.subr.bf16.mxu0 %v13940_v32 }
 0x290   :  { %v13124_v12 = vpop.f32.mrf.mxu0  ;;  %13601 = vmatpush3.bf16.msra.mxu0 %v13940_v32 }
 0x291   :  { %v2066_v19 = vsel %vm1880_vm6, %v1787_v24, %v1973_v56  ;;  %v1788_v34 = vadd.f32 %v15675_v39, %v1688_v36  ;;  %13602 = vmatprep.subr.bf16.mxu0 %v13941_v44  ;;  %v13942_v36 = vld [vmem:[%s19259_s3 + $0x160] sm:$0xff]  }
 0x292   :  { %v15719_v15 = vpack.c.bf16 %v2066_v19, %v15694_v23  ;;  %v1335_v51 = vpop.f32.mrf.mxu0 }
 0x293   :  { %vm1881_vm7 = vcmp.ge.f32.partialorder %v1788_v34, 0.0  ;;  %v1974_v50 = vmul.f32 0.1, %v1788_v34  ;;  %v1689_v22 = vadd.f32 %v1335_v51, %v15169_v38 }
 0x294   :  { %v13125_v61 = vpop.f32.mrf.mxu0  ;;  %13603 = vmatpush3.bf16.msra.mxu0 %v13941_v44 }
 0x295   :  { %v2067_v0 = vsel %vm1881_vm7, %v1788_v34, %v1974_v50  ;;  %v1789_v3 = vadd.f32 %v15675_v39, %v1689_v22  ;;  %13604 = vmatprep.subr.bf16.mxu0 %v13942_v36  ;;  %v13943_v61 = vld [vmem:[%s19259_s3 + $0x158] sm:$0xff]  }
 0x296   :  { %v15727_v63 = vpack.c.bf16 %v2067_v0, %v15702_v25  ;;  %v1340_v24 = vpop.f32.mrf.mxu0  ;;  %13223 = vmatmul.mubr.bf16.gmra.mxu0 %v15184_v2 }
 0x297   :  { %vm1882_vm8 = vcmp.ge.f32.partialorder %v1789_v3, 0.0  ;;  %v1975_v27 = vmul.f32 0.1, %v1789_v3  ;;  %v1690_v38 = vadd.f32 %v1340_v24, %v15180_v54  ;;  %13226 = vmatprep.mubr.msk.bf16.mxu0 %vm14605_vm0, %v19437_v26 }
 0x298   :  { %v13128_v48 = vpop.f32.mrf.mxu0  ;;  %13315 = vmatmul.mubr.bf16.vlgmr.msra.gmra.mxu1 %v15727_v63  ;;  %13605 = vmatpush3.bf16.msra.mxu0 %v13942_v36 }
 0x299   :  { %v1790_v56 = vadd.f32 %v15675_v39, %v1690_v38  ;;  %v2068_v12 = vsel %vm1882_vm8, %v1789_v3, %v1975_v27  ;;  %13606 = vmatprep.subr.bf16.mxu0 %v13943_v61  ;;  %v13944_v38 = vld [vmem:[%s19259_s3 + $0x150] sm:$0xff]  }
 0x29a   :  { %v1343_v2 = vpop.f32.mrf.mxu0  ;;  %v15738_v34 = vpack.c.bf16 %v2068_v12, %v2066_v19 }
 0x29b   :  { %vm1883_vm9 = vcmp.ge.f32.partialorder %v1790_v56, 0.0  ;;  %v1976_v54 = vmul.f32 0.1, %v1790_v56  ;;  %v1691_v32 = vadd.f32 %v1343_v2, %v15186_v5 }
 0x29c   :  { %19454 = vst [vmem:[#allocation79_spill] sm:$0xff] %v15738_v34  ;;  %v13129_v51 = vpop.f32.mrf.mxu0  ;;  %13607 = vmatpush3.bf16.msra.mxu0 %v13943_v61 }
 0x29d   :  { %v1791_v50 = vadd.f32 %v15675_v39, %v1691_v32  ;;  %v2069_v22 = vsel %vm1883_vm9, %v1790_v56, %v1976_v54  ;;  %13608 = vmatprep.subr.bf16.mxu0 %v13944_v38  ;;  %v13945_v32 = vld [vmem:[%s19259_s3 + $0x148] sm:$0xff]  }
 0x29e   :  { %v1348_v44 = vpop.f32.mrf.mxu0  ;;  %13227 = vmatmul.mubr.bf16.gmra.mxu0 %v15201_v35  ;;  %v15746_v3 = vpack.c.bf16 %v2069_v22, %v2067_v0 }
 0x29f   :  { %vm1884_vm10 = vcmp.ge.f32.partialorder %v1791_v50, 0.0  ;;  %v1977_v19 = vmul.f32 0.1, %v1791_v50  ;;  %v1692_v24 = vadd.f32 %v1348_v44, %v15197_v18  ;;  %13230 = vmatprep.mubr.msk.bf16.mxu0 %vm14605_vm0, %v19437_v26 }
 0x2a0   :  { %v13132_v5 = vpop.f32.mrf.mxu0  ;;  %13609 = vmatpush3.bf16.msra.mxu0 %v13944_v38 }
 0x2a1   :  { %v1792_v27 = vadd.f32 %v15675_v39, %v1692_v24  ;;  %v2070_v48 = vsel %vm1884_vm10, %v1791_v50, %v1977_v19  ;;  %13610 = vmatprep.subr.bf16.mxu0 %v13945_v32 }
 0x2a2   :  { %v1351_v35 = vpop.f32.mrf.mxu0  ;;  %v15755_v0 = vpack.c.bf16 %v2070_v48, %v2068_v12 }
 0x2a3   :  { %vm1885_vm11 = vcmp.ge.f32.partialorder %v1792_v27, 0.0  ;;  %v1978_v56 = vmul.f32 0.1, %v1792_v27  ;;  %v1693_v18 = vadd.f32 %v1351_v35, %v15203_v40 }
 0x2a4   :  { %19455 = vst [vmem:[#allocation80_spill] sm:$0xff] %v15755_v0  ;;  %v13133_v36 = vpop.f32.mrf.mxu0  ;;  %13611 = vmatpush3.bf16.msra.mxu0 %v13945_v32 }
 0x2a5   :  { %v1793_v2 = vadd.f32 %v15675_v39, %v1693_v18  ;;  %v2071_v54 = vsel %vm1885_vm11, %v1792_v27, %v1978_v56 }
 0x2a6   :  { %v1356_v51 = vpop.f32.mrf.mxu0  ;;  %13231 = vmatmul.mubr.bf16.gmra.mxu0 %v15218_v13  ;;  %v15763_v50 = vpack.c.bf16 %v2071_v54, %v2069_v22  ;;  %v13946_v13 = vld [vmem:[%s19259_s3 + $0x140] sm:$0xff]  }
 0x2a7   :  { %vm1886_vm12 = vcmp.ge.f32.partialorder %v1793_v2, 0.0  ;;  %v1979_v12 = vmul.f32 0.1, %v1793_v2  ;;  %v1694_v61 = vadd.f32 %v1356_v51, %v15214_v46  ;;  %13234 = vmatprep.mubr.msk.bf16.mxu0 %vm14605_vm0, %v19437_v26  ;;  %13612 = vmatprep.subr.bf16.mxu0 %v13946_v13 }
 0x2a8   :  { %v13136_v40 = vpop.f32.mrf.mxu0  ;;  %13318 = vmatprep.mubr.bf16.mxu1 %v15763_v50  ;;  %13613 = vmatpush3.bf16.msra.mxu0 %v13946_v13 }
 0x2a9   :  { %v2072_v44 = vsel %vm1886_vm12, %v1793_v2, %v1979_v12  ;;  %v1794_v19 = vadd.f32 %v15675_v39, %v1694_v61  ;;  %v19458_v2 = vld [vmem:[#allocation11_spill] sm:$0xff]  ;;  %v19460_v40 = vld [vmem:[#allocation12_spill] sm:$0xff] }
 0x2aa   :  { %v1359_v22 = vpop.f32.mrf.mxu0  ;;  %v15773_v24 = vpack.c.bf16 %v2072_v44, %v2070_v48 }
 0x2ab   :  { %vm1887_vm13 = vcmp.ge.f32.partialorder %v1794_v19, 0.0  ;;  %v1980_v46 = vmul.f32 0.1, %v1794_v19  ;;  %v1695_v5 = vadd.f32 %v1359_v22, %v15220_v17 }
 0x2ac   :  { %19456 = vst [vmem:[#allocation81_spill] sm:$0xff] %v15773_v24  ;;  %v13137_v27 = vpop.f32.mrf.mxu0  ;;  %v19483_v24 = vld [vmem:[#allocation29_spill] sm:$0xff] }
 0x2ad   :  { %v2073_v38 = vsel %vm1887_vm13, %v1794_v19, %v1980_v46  ;;  %v1795_v35 = vadd.f32 %v15675_v39, %v1695_v5  ;;  %v19461_v5 = vld [vmem:[#allocation14_spill] sm:$0xff] }
 0x2ae   :  { %v15777_v56 = vpack.c.bf16 %v2073_v38, %v2071_v54  ;;  %v1364_v18 = vpop.f32.mrf.mxu0  ;;  %13235 = vmatmul.mubr.bf16.gmra.mxu0 %v15235_v59 }
 0x2af   :  { %vm1888_vm14 = vcmp.ge.f32.partialorder %v1795_v35, 0.0  ;;  %v1981_v36 = vmul.f32 0.1, %v1795_v35  ;;  %v1696_v48 = vadd.f32 %v1364_v18, %v19458_v2  ;;  %13238 = vmatprep.mubr.msk.bf16.mxu0 %vm14605_vm0, %v19437_v26  ;;  %v19462_v18 = vld [vmem:[#allocation13_spill] sm:$0xff] }
 0x2b0   :  { %19457 = vst [vmem:[#allocation82_spill] sm:$0xff] %v15777_v56  ;;  %v13140_v32 = vpop.f32.mrf.mxu0  ;;  %v19518_v56 = vld [vmem:[#allocation51_spill] sm:$0xff] }
 0x2b1   :  { %v2074_v17 = vsel %vm1888_vm14, %v1795_v35, %v1981_v36  ;;  %v1796_v51 = vadd.f32 %v15675_v39, %v1696_v48 }
 0x2b2   :  { %v1367_v12 = vpop.f32.mrf.mxu0  ;;  %v15784_v61 = vpack.c.bf16 %v2074_v17, %v2072_v44 }
 0x2b3   :  { %vm1889_vm15 = vcmp.ge.f32.partialorder %v1796_v51, 0.0  ;;  %v1982_v54 = vmul.f32 0.1, %v1796_v51  ;;  %v1697_v19 = vadd.f32 %v1367_v12, %v19460_v40 }
 0x2b4   :  { %19459 = vst [vmem:[#allocation11_spill] sm:$0xff] %v15784_v61  ;;  %v13141_v13 = vpop.f32.mrf.mxu0 }
 0x2b5   :  { %v2075_v59 = vsel %vm1889_vm15, %v1796_v51, %v1982_v54  ;;  %v1797_v22 = vadd.f32 %v15675_v39, %v1697_v19 }
 0x2b6   :  { %v1372_v46 = vpop.f32.mrf.mxu0  ;;  %13239 = vmatmul.mubr.bf16.gmra.mxu0 %v19461_v5  ;;  %v15789_v27 = vpack.c.bf16 %v2075_v59, %v2073_v38  ;;  %v19464_v38 = vld [vmem:[#allocation15_spill] sm:$0xff]  ;;  %v19465_v5 = vld [vmem:[#allocation17_spill] sm:$0xff] }
 0x2b7   :  { %vm1890_vm1 = vcmp.ge.f32.partialorder %v1797_v22, 0.0  ;;  %v1983_v35 = vmul.f32 0.1, %v1797_v22  ;;  %v1698_v36 = vadd.f32 %v1372_v46, %v19462_v18  ;;  %13242 = vmatprep.mubr.msk.bf16.mxu0 %vm14605_vm0, %v19437_v26 }
 0x2b8   :  { %v13144_v44 = vpop.f32.mrf.mxu0  ;;  %13319 = vmatmul.mubr.bf16.gmra.mxu1 %v15789_v27 }
 0x2b9   :  { %v1798_v2 = vadd.f32 %v15675_v39, %v1698_v36  ;;  %v2076_v48 = vsel %vm1890_vm1, %v1797_v22, %v1983_v35  ;;  %v19467_v36 = vld [vmem:[#allocation16_spill] sm:$0xff] }
 0x2ba   :  { %v1375_v32 = vpop.f32.mrf.mxu0  ;;  %v15796_v51 = vpack.c.bf16 %v2076_v48, %v2074_v17 }
 0x2bb   :  { %vm1891_vm2 = vcmp.ge.f32.partialorder %v1798_v2, 0.0  ;;  %v1984_v12 = vmul.f32 0.1, %v1798_v2  ;;  %v1699_v54 = vadd.f32 %v1375_v32, %v19464_v38 }
 0x2bc   :  { %19463 = vst [vmem:[#allocation12_spill] sm:$0xff] %v15796_v51  ;;  %v13145_v40 = vpop.f32.mrf.mxu0 }
 0x2bd   :  { %v1799_v19 = vadd.f32 %v15675_v39, %v1699_v54  ;;  %v2077_v13 = vsel %vm1891_vm2, %v1798_v2, %v1984_v12  ;;  %v19469_v12 = vld [vmem:[#allocation18_spill] sm:$0xff] }
 0x2be   :  { %v1380_v46 = vpop.f32.mrf.mxu0  ;;  %13243 = vmatmul.mubr.bf16.gmra.mxu0 %v19465_v5  ;;  %v15801_v18 = vpack.c.bf16 %v2077_v13, %v2075_v59 }
 0x2bf   :  { %vm1892_vm3 = vcmp.ge.f32.partialorder %v1799_v19, 0.0  ;;  %v1985_v44 = vmul.f32 0.1, %v1799_v19  ;;  %v1700_v22 = vadd.f32 %v1380_v46, %v19467_v36  ;;  %13246 = vmatprep.mubr.msk.bf16.mxu0 %vm14605_vm0, %v19437_v26  ;;  %v19470_v46 = vld [vmem:[#allocation20_spill] sm:$0xff] }
 0x2c0   :  { %19466 = vst [vmem:[#allocation14_spill] sm:$0xff] %v15801_v18  ;;  %v13148_v17 = vpop.f32.mrf.mxu0 }
 0x2c1   :  { %v1800_v35 = vadd.f32 %v15675_v39, %v1700_v22  ;;  %v2078_v32 = vsel %vm1892_vm3, %v1799_v19, %v1985_v44  ;;  %v19471_v22 = vld [vmem:[#allocation19_spill] sm:$0xff] }
 0x2c2   :  { %v1383_v38 = vpop.f32.mrf.mxu0  ;;  %v15807_v40 = vpack.c.bf16 %v2078_v32, %v2076_v48 }
 0x2c3   :  { %vm1893_vm4 = vcmp.ge.f32.partialorder %v1800_v35, 0.0  ;;  %v1986_v2 = vmul.f32 0.1, %v1800_v35  ;;  %v1701_v54 = vadd.f32 %v1383_v38, %v19469_v12 }
 0x2c4   :  { %19468 = vst [vmem:[#allocation13_spill] sm:$0xff] %v15807_v40  ;;  %v13149_v59 = vpop.f32.mrf.mxu0 }
 0x2c5   :  { %v1801_v5 = vadd.f32 %v15675_v39, %v1701_v54  ;;  %v2079_v29 = vsel %vm1893_vm4, %v1800_v35, %v1986_v2 }
 0x2c6   :  { %v1388_v10 = vpop.f32.mrf.mxu0  ;;  %13247 = vmatmul.mubr.bf16.gmra.mxu0 %v19470_v46  ;;  %v15812_v36 = vpack.c.bf16 %v2079_v29, %v2077_v13  ;;  %v19473_v13 = vld [vmem:[#allocation21_spill] sm:$0xff] }
 0x2c7   :  { %vm1894_vm5 = vcmp.ge.f32.partialorder %v1801_v5, 0.0  ;;  %v1987_v17 = vmul.f32 0.1, %v1801_v5  ;;  %v1702_v19 = vadd.f32 %v1388_v10, %v19471_v22  ;;  %13250 = vmatprep.mubr.msk.bf16.mxu0 %vm14605_vm0, %v19437_v26 }
 0x2c8   :  { %v13152_v48 = vpop.f32.mrf.mxu0  ;;  %13322 = vmatprep.mubr.bf16.mxu1 %v15812_v36 }
 0x2c9   :  { %v2080_v44 = vsel %vm1894_vm5, %v1801_v5, %v1987_v17  ;;  %v1802_v38 = vadd.f32 %v15675_v39, %v1702_v19  ;;  %v19475_v48 = vld [vmem:[#allocation23_spill] sm:$0xff]  ;;  %v19476_v17 = vld [vmem:[#allocation22_spill] sm:$0xff] }
 0x2ca   :  { %v1391_v12 = vpop.f32.mrf.mxu0  ;;  %v15819_v35 = vpack.c.bf16 %v2080_v44, %v2078_v32 }
 0x2cb   :  { %vm1895_vm6 = vcmp.ge.f32.partialorder %v1802_v38, 0.0  ;;  %v1988_v2 = vmul.f32 0.1, %v1802_v38  ;;  %v1703_v54 = vadd.f32 %v1391_v12, %v19473_v13 }
 0x2cc   :  { %19472 = vst [vmem:[#allocation15_spill] sm:$0xff] %v15819_v35  ;;  %v13153_v59 = vpop.f32.mrf.mxu0 }
 0x2cd   :  { %v2081_v46 = vsel %vm1895_vm6, %v1802_v38, %v1988_v2  ;;  %v1803_v10 = vadd.f32 %v15675_v39, %v1703_v54  ;;  %v19478_v2 = vld [vmem:[#allocation24_spill] sm:$0xff] }
 0x2ce   :  { %v15823_v22 = vpack.c.bf16 %v2081_v46, %v2079_v29  ;;  %v1396_v9 = vpop.f32.mrf.mxu0  ;;  %13251 = vmatmul.mubr.bf16.gmra.mxu0 %v19475_v48 }
 0x2cf   :  { %vm1896_vm7 = vcmp.ge.f32.partialorder %v1803_v10, 0.0  ;;  %v1989_v5 = vmul.f32 0.1, %v1803_v10  ;;  %v1704_v19 = vadd.f32 %v1396_v9, %v19476_v17  ;;  %13254 = vmatprep.mubr.msk.bf16.mxu0 %vm14605_vm0, %v19437_v26  ;;  %v19479_v9 = vld [vmem:[#allocation26_spill] sm:$0xff] }
 0x2d0   :  { %19474 = vst [vmem:[#allocation17_spill] sm:$0xff] %v15823_v22  ;;  %v13156_v32 = vpop.f32.mrf.mxu0 }
 0x2d1   :  { %v2082_v25 = vsel %vm1896_vm7, %v1803_v10, %v1989_v5  ;;  %v1804_v12 = vadd.f32 %v15675_v39, %v1704_v19  ;;  %v19480_v5 = vld [vmem:[#allocation25_spill] sm:$0xff] }
 0x2d2   :  { %v1399_v13 = vpop.f32.mrf.mxu0  ;;  %v15830_v38 = vpack.c.bf16 %v2082_v25, %v2080_v44 }
 0x2d3   :  { %vm1897_vm8 = vcmp.ge.f32.partialorder %v1804_v12, 0.0  ;;  %v1990_v29 = vmul.f32 0.1, %v1804_v12  ;;  %v1705_v54 = vadd.f32 %v1399_v13, %v19478_v2 }
 0x2d4   :  { %19477 = vst [vmem:[#allocation16_spill] sm:$0xff] %v15830_v38  ;;  %v13157_v59 = vpop.f32.mrf.mxu0 }
 0x2d5   :  { %v2083_v48 = vsel %vm1897_vm8, %v1804_v12, %v1990_v29  ;;  %v1805_v35 = vadd.f32 %v15675_v39, %v1705_v54 }
 0x2d6   :  { %v1404_v51 = vpop.f32.mrf.mxu0  ;;  %13255 = vmatmul.mubr.bf16.gmra.mxu0 %v19479_v9  ;;  %v15835_v17 = vpack.c.bf16 %v2083_v48, %v2081_v46  ;;  %v19482_v46 = vld [vmem:[#allocation27_spill] sm:$0xff] }
 0x2d7   :  { %vm1898_vm9 = vcmp.ge.f32.partialorder %v1805_v35, 0.0  ;;  %v1991_v10 = vmul.f32 0.1, %v1805_v35  ;;  %v1706_v19 = vadd.f32 %v1404_v51, %v19480_v5  ;;  %13258 = vmatprep.mubr.msk.bf16.mxu0 %vm14605_vm0, %v19437_v26 }
 0x2d8   :  { %v13160_v44 = vpop.f32.mrf.mxu0  ;;  %13323 = vmatmul.mubr.bf16.gmra.mxu1 %v15835_v17 }
 0x2d9   :  { %v1806_v32 = vadd.f32 %v15675_v39, %v1706_v19  ;;  %v2084_v12 = vsel %vm1898_vm9, %v1805_v35, %v1991_v10  ;;  %v19485_v19 = vld [vmem:[#allocation28_spill] sm:$0xff] }
 0x2da   :  { %v1407_v13 = vpop.f32.mrf.mxu0  ;;  %v15842_v29 = vpack.c.bf16 %v2084_v12, %v2082_v25 }
 0x2db   :  { %vm1899_vm10 = vcmp.ge.f32.partialorder %v1806_v32, 0.0  ;;  %v1992_v2 = vmul.f32 0.1, %v1806_v32  ;;  %v1707_v54 = vadd.f32 %v1407_v13, %v19482_v46 }
 0x2dc   :  { %19481 = vst [vmem:[#allocation18_spill] sm:$0xff] %v15842_v29  ;;  %v13161_v59 = vpop.f32.mrf.mxu0 }
 0x2dd   :  { %v1807_v9 = vadd.f32 %v15675_v39, %v1707_v54  ;;  %v2085_v51 = vsel %vm1899_vm10, %v1806_v32, %v1992_v2  ;;  %v19487_v2 = vld [vmem:[#allocation30_spill] sm:$0xff] }
 0x2de   :  { %v1412_v5 = vpop.f32.mrf.mxu0  ;;  %13259 = vmatmul.mubr.bf16.gmra.mxu0 %v19483_v24  ;;  %v15847_v44 = vpack.c.bf16 %v2085_v51, %v2083_v48 }
 0x2df   :  { %vm1900_vm11 = vcmp.ge.f32.partialorder %v1807_v9, 0.0  ;;  %v1993_v34 = vmul.f32 0.1, %v1807_v9  ;;  %v1708_v35 = vadd.f32 %v1412_v5, %v19485_v19  ;;  %13262 = vmatprep.mubr.msk.bf16.mxu0 %vm14605_vm0, %v19437_v26  ;;  %v19488_v5 = vld [vmem:[#allocation32_spill] sm:$0xff] }
 0x2e0   :  { %19484 = vst [vmem:[#allocation20_spill] sm:$0xff] %v15847_v44  ;;  %v13164_v25 = vpop.f32.mrf.mxu0 }
 0x2e1   :  { %v1808_v10 = vadd.f32 %v15675_v39, %v1708_v35  ;;  %v2086_v13 = vsel %vm1900_vm11, %v1807_v9, %v1993_v34  ;;  %v19489_v35 = vld [vmem:[#allocation31_spill] sm:$0xff] }
 0x2e2   :  { %v1415_v46 = vpop.f32.mrf.mxu0  ;;  %v15853_v59 = vpack.c.bf16 %v2086_v13, %v2084_v12 }
 0x2e3   :  { %vm1901_vm12 = vcmp.ge.f32.partialorder %v1808_v10, 0.0  ;;  %v1994_v32 = vmul.f32 0.1, %v1808_v10  ;;  %v1709_v24 = vadd.f32 %v1415_v46, %v19487_v2 }
 0x2e4   :  { %19486 = vst [vmem:[#allocation19_spill] sm:$0xff] %v15853_v59  ;;  %v13165_v48 = vpop.f32.mrf.mxu0 }
 0x2e5   :  { %v1809_v54 = vadd.f32 %v15675_v39, %v1709_v24  ;;  %v2087_v29 = vsel %vm1901_vm12, %v1808_v10, %v1994_v32 }
 0x2e6   :  { %v1420_v23 = vpop.f32.mrf.mxu0  ;;  %13263 = vmatmul.mubr.bf16.gmra.mxu0 %v19488_v5  ;;  %v15858_v19 = vpack.c.bf16 %v2087_v29, %v2085_v51  ;;  %v19491_v51 = vld [vmem:[#allocation33_spill] sm:$0xff] }
 0x2e7   :  { %vm1902_vm13 = vcmp.ge.f32.partialorder %v1809_v54, 0.0  ;;  %v1995_v25 = vmul.f32 0.1, %v1809_v54  ;;  %v1710_v34 = vadd.f32 %v1420_v23, %v19489_v35  ;;  %13266 = vmatprep.mubr.msk.bf16.mxu0 %vm14605_vm0, %v19437_v26 }
 0x2e8   :  { %v13168_v12 = vpop.f32.mrf.mxu0  ;;  %13326 = vmatprep.mubr.bf16.mxu1 %v15858_v19 }
 0x2e9   :  { %v2088_v9 = vsel %vm1902_vm13, %v1809_v54, %v1995_v25  ;;  %v1810_v46 = vadd.f32 %v15675_v39, %v1710_v34  ;;  %v19493_v12 = vld [vmem:[#allocation35_spill] sm:$0xff]  ;;  %v19494_v25 = vld [vmem:[#allocation34_spill] sm:$0xff] }
 0x2ea   :  { %v1423_v2 = vpop.f32.mrf.mxu0  ;;  %v15865_v10 = vpack.c.bf16 %v2088_v9, %v2086_v13 }
 0x2eb   :  { %vm1903_vm14 = vcmp.ge.f32.partialorder %v1810_v46, 0.0  ;;  %v1996_v32 = vmul.f32 0.1, %v1810_v46  ;;  %v1711_v24 = vadd.f32 %v1423_v2, %v19491_v51 }
 0x2ec   :  { %19490 = vst [vmem:[#allocation21_spill] sm:$0xff] %v15865_v10  ;;  %v13169_v48 = vpop.f32.mrf.mxu0 }
 0x2ed   :  { %v2089_v5 = vsel %vm1903_vm14, %v1810_v46, %v1996_v32  ;;  %v1811_v23 = vadd.f32 %v15675_v39, %v1711_v24  ;;  %v19496_v32 = vld [vmem:[#allocation36_spill] sm:$0xff] }
 0x2ee   :  { %v15869_v35 = vpack.c.bf16 %v2089_v5, %v2087_v29  ;;  %v1428_v44 = vpop.f32.mrf.mxu0  ;;  %13267 = vmatmul.mubr.bf16.gmra.mxu0 %v19493_v12 }
 0x2ef   :  { %vm1904_vm15 = vcmp.ge.f32.partialorder %v1811_v23, 0.0  ;;  %v1997_v54 = vmul.f32 0.1, %v1811_v23  ;;  %v1712_v34 = vadd.f32 %v1428_v44, %v19494_v25  ;;  %13270 = vmatprep.mubr.msk.bf16.mxu0 %vm14605_vm0, %v19437_v26  ;;  %v19497_v44 = vld [vmem:[#allocation38_spill] sm:$0xff] }
 0x2f0   :  { %19492 = vst [vmem:[#allocation23_spill] sm:$0xff] %v15869_v35  ;;  %v13172_v13 = vpop.f32.mrf.mxu0 }
 0x2f1   :  { %v2090_v10 = vsel %vm1904_vm15, %v1811_v23, %v1997_v54  ;;  %v1812_v2 = vadd.f32 %v15675_v39, %v1712_v34  ;;  %v19498_v54 = vld [vmem:[#allocation37_spill] sm:$0xff] }
 0x2f2   :  { %v1431_v51 = vpop.f32.mrf.mxu0  ;;  %v15876_v46 = vpack.c.bf16 %v2090_v10, %v2088_v9 }
 0x2f3   :  { %vm1905_vm1 = vcmp.ge.f32.partialorder %v1812_v2, 0.0  ;;  %v1998_v29 = vmul.f32 0.1, %v1812_v2  ;;  %v1713_v24 = vadd.f32 %v1431_v51, %v19496_v32 }
 0x2f4   :  { %19495 = vst [vmem:[#allocation22_spill] sm:$0xff] %v15876_v46  ;;  %v13173_v48 = vpop.f32.mrf.mxu0  ;;  %v19501_v46 = vld [vmem:[#allocation41_spill] sm:$0xff] }
 0x2f5   :  { %v2091_v12 = vsel %vm1905_vm1, %v1812_v2, %v1998_v29  ;;  %v1813_v35 = vadd.f32 %v15675_v39, %v1713_v24 }
 0x2f6   :  { %v1436_v22 = vpop.f32.mrf.mxu0  ;;  %13271 = vmatmul.mubr.bf16.gmra.mxu0 %v19497_v44  ;;  %v15881_v25 = vpack.c.bf16 %v2091_v12, %v2089_v5  ;;  %v19500_v5 = vld [vmem:[#allocation39_spill] sm:$0xff] }
 0x2f7   :  { %vm1906_vm2 = vcmp.ge.f32.partialorder %v1813_v35, 0.0  ;;  %v1999_v23 = vmul.f32 0.1, %v1813_v35  ;;  %v1714_v34 = vadd.f32 %v1436_v22, %v19498_v54  ;;  %13274 = vmatprep.mubr.msk.bf16.mxu0 %vm14605_vm0, %v19437_v26 }
 0x2f8   :  { %v13176_v9 = vpop.f32.mrf.mxu0  ;;  %13327 = vmatmul.mubr.bf16.gmra.mxu1 %v15881_v25 }
 0x2f9   :  { %v1814_v13 = vadd.f32 %v15675_v39, %v1714_v34  ;;  %v2092_v2 = vsel %vm1906_vm2, %v1813_v35, %v1999_v23  ;;  %v19503_v34 = vld [vmem:[#allocation40_spill] sm:$0xff] }
 0x2fa   :  { %v1439_v51 = vpop.f32.mrf.mxu0  ;;  %v15888_v29 = vpack.c.bf16 %v2092_v2, %v2090_v10 }
 0x2fb   :  { %vm1907_vm3 = vcmp.ge.f32.partialorder %v1814_v13, 0.0  ;;  %v2000_v32 = vmul.f32 0.1, %v1814_v13  ;;  %v1715_v24 = vadd.f32 %v1439_v51, %v19500_v5 }
 0x2fc   :  { %19499 = vst [vmem:[#allocation24_spill] sm:$0xff] %v15888_v29  ;;  %v13177_v48 = vpop.f32.mrf.mxu0 }
 0x2fd   :  { %v1815_v44 = vadd.f32 %v15675_v39, %v1715_v24  ;;  %v2093_v22 = vsel %vm1907_vm3, %v1814_v13, %v2000_v32  ;;  %v19505_v32 = vld [vmem:[#allocation42_spill] sm:$0xff] }
 0x2fe   :  { %v1444_v54 = vpop.f32.mrf.mxu0  ;;  %13275 = vmatmul.mubr.bf16.gmra.mxu0 %v19501_v46  ;;  %v15893_v9 = vpack.c.bf16 %v2093_v22, %v2091_v12 }
 0x2ff   :  { %vm1908_vm4 = vcmp.ge.f32.partialorder %v1815_v44, 0.0  ;;  %v2001_v18 = vmul.f32 0.1, %v1815_v44  ;;  %v1716_v35 = vadd.f32 %v1444_v54, %v19503_v34  ;;  %13278 = vmatprep.mubr.msk.bf16.mxu0 %vm14605_vm0, %v19437_v26  ;;  %v19506_v54 = vld [vmem:[#allocation44_spill] sm:$0xff] }
 0x300   :  { %19502 = vst [vmem:[#allocation26_spill] sm:$0xff] %v15893_v9  ;;  %v13180_v10 = vpop.f32.mrf.mxu0 }
 0x301   :  { %v1816_v23 = vadd.f32 %v15675_v39, %v1716_v35  ;;  %v2094_v51 = vsel %vm1908_vm4, %v1815_v44, %v2001_v18  ;;  %v19507_v35 = vld [vmem:[#allocation43_spill] sm:$0xff] }
 0x302   :  { %v1447_v5 = vpop.f32.mrf.mxu0  ;;  %v15899_v48 = vpack.c.bf16 %v2094_v51, %v2092_v2 }
 0x303   :  { %vm1909_vm5 = vcmp.ge.f32.partialorder %v1816_v23, 0.0  ;;  %v2002_v13 = vmul.f32 0.1, %v1816_v23  ;;  %v1717_v46 = vadd.f32 %v1447_v5, %v19505_v32 }
 0x304   :  { %19504 = vst [vmem:[#allocation25_spill] sm:$0xff] %v15899_v48  ;;  %v13181_v12 = vpop.f32.mrf.mxu0 }
 0x305   :  { %v1817_v24 = vadd.f32 %v15675_v39, %v1717_v46  ;;  %v2095_v29 = vsel %vm1909_vm5, %v1816_v23, %v2002_v13 }
 0x306   :  { %v1452_v9 = vpop.f32.mrf.mxu0  ;;  %13279 = vmatmul.mubr.bf16.gmra.mxu0 %v19506_v54  ;;  %v15904_v34 = vpack.c.bf16 %v2095_v29, %v2093_v22  ;;  %v19509_v22 = vld [vmem:[#allocation45_spill] sm:$0xff] }
 0x307   :  { %vm1910_vm6 = vcmp.ge.f32.partialorder %v1817_v24, 0.0  ;;  %v2003_v10 = vmul.f32 0.1, %v1817_v24  ;;  %v1718_v18 = vadd.f32 %v1452_v9, %v19507_v35  ;;  %13282 = vmatprep.mubr.msk.bf16.mxu0 %vm14605_vm0, %v19437_v26 }
 0x308   :  { %v13184_v2 = vpop.f32.mrf.mxu0  ;;  %13330 = vmatprep.mubr.bf16.mxu1 %v15904_v34 }
 0x309   :  { %v2096_v44 = vsel %vm1910_vm6, %v1817_v24, %v2003_v10  ;;  %v1818_v5 = vadd.f32 %v15675_v39, %v1718_v18  ;;  %v19511_v2 = vld [vmem:[#allocation47_spill] sm:$0xff]  ;;  %v13947_v24 = vld [vmem:[%s19259_s3 + $0x38] sm:$0xff]  }
 0x30a   :  { %v1455_v32 = vpop.f32.mrf.mxu0  ;;  %v15911_v23 = vpack.c.bf16 %v2096_v44, %v2094_v51  ;;  %v19512_v10 = vld [vmem:[#allocation46_spill] sm:$0xff]  ;;  %13358 = vmatprep.subr.bf16.mxu1 %v13947_v24 }
 0x30b   :  { %vm1911_vm7 = vcmp.ge.f32.partialorder %v1818_v5, 0.0  ;;  %v2004_v13 = vmul.f32 0.1, %v1818_v5  ;;  %v1719_v46 = vadd.f32 %v1455_v32, %v19509_v22  ;;  %13359 = vmatpush3.bf16.msra.mxu1 %v13947_v24 }
 0x30c   :  { %19508 = vst [vmem:[#allocation27_spill] sm:$0xff] %v15911_v23  ;;  %v13185_v12 = vpop.f32.mrf.mxu0 }
 0x30d   :  { %v2097_v54 = vsel %vm1911_vm7, %v1818_v5, %v2004_v13  ;;  %v1819_v9 = vadd.f32 %v15675_v39, %v1719_v46  ;;  %v19514_v12 = vld [vmem:[#allocation48_spill] sm:$0xff] }
 0x30e   :  { %v15915_v35 = vpack.c.bf16 %v2097_v54, %v2095_v29  ;;  %v1460_v48 = vpop.f32.mrf.mxu0  ;;  %13283 = vmatmul.mubr.bf16.gmra.mxu0 %v19511_v2 }
 0x30f   :  { %vm1912_vm8 = vcmp.ge.f32.partialorder %v1819_v9, 0.0  ;;  %v2005_v51 = vmul.f32 0.1, %v1819_v9  ;;  %v1720_v18 = vadd.f32 %v1460_v48, %v19512_v10  ;;  %13286 = vmatprep.mubr.msk.bf16.mxu0 %vm14605_vm0, %v19437_v26 }
 0x310   :  { %19510 = vst [vmem:[#allocation29_spill] sm:$0xff] %v15915_v35  ;;  %v13188_v32 = vpop.f32.mrf.mxu0 }
 0x311   :  { %v2098_v5 = vsel %vm1912_vm8, %v1819_v9, %v2005_v51  ;;  %v1820_v29 = vadd.f32 %v15675_v39, %v1720_v18  ;;  %v19515_v51 = vld [vmem:[#allocation49_spill] sm:$0xff] }
 0x312   :  { %v1463_v13 = vpop.f32.mrf.mxu0  ;;  %v15925_v22 = vpack.c.bf16 %v2098_v5, %v2096_v44  ;;  %v13948_v44 = vld [vmem:[%s19259_s3 + $0x30] sm:$0xff]  }
 0x313   :  { %vm1913_vm9 = vcmp.ge.f32.partialorder %v1820_v29, 0.0  ;;  %v2006_v46 = vmul.f32 0.1, %v1820_v29  ;;  %v1721_v2 = vadd.f32 %v1463_v13, %v19514_v12  ;;  %13360 = vmatprep.subr.bf16.mxu1 %v13948_v44  ;;  %v14552_v13 = vld [vmem:[%s19256_s0 + $0x2e8] sm:$0xff] }
 0x314   :  { %19513 = vst [vmem:[#allocation28_spill] sm:$0xff] %v15925_v22  ;;  %v13189_v23 = vpop.f32.mrf.mxu0  ;;  %13361 = vmatpush3.bf16.msra.mxu1 %v13948_v44 }
 0x315   :  { %v2099_v35 = vsel %vm1913_vm9, %v1820_v29, %v2006_v46  ;;  %v1821_v48 = vadd.f32 %v15675_v39, %v1721_v2  ;;  %v14551_v29 = vld [vmem:[%s19256_s0 + $0x2e0] sm:$0xff] }
 0x316   :  { %v1468_v10 = vpop.f32.mrf.mxu0  ;;  %13287 = vmatmul.mubr.bf16.gmra.mxu0 %v15459_v14  ;;  %v15930_v32 = vpack.c.bf16 %v2099_v35, %v2097_v54  ;;  %v1207_v46 = vpack.c.bf16 %v14552_v13, %v14551_v29 }
 0x317   :  { %vm1914_vm10 = vcmp.ge.f32.partialorder %v1821_v48, 0.0  ;;  %v2007_v9 = vmul.f32 0.1, %v1821_v48  ;;  %v1722_v24 = vadd.f32 %v1468_v10, %v19515_v51  ;;  %13290 = vmatprep.mubr.msk.bf16.mxu0 %vm14605_vm0, %v19437_v26  ;;  %v19517_v10 = vld [vmem:[#allocation50_spill] sm:$0xff] }
 0x318   :  { %v13192_v23 = vpop.f32.mrf.mxu0  ;;  %13331 = vmatmul.mubr.bf16.gmra.mxu1 %v15930_v32 }
 0x319   :  { %v1822_v18 = vadd.f32 %v15675_v39, %v1722_v24  ;;  %v2100_v14 = vsel %vm1914_vm10, %v1821_v48, %v2007_v9 }
 0x31a   :  { %v1471_v54 = vpop.f32.mrf.mxu0  ;;  %v15946_v12 = vpack.c.bf16 %v2100_v14, %v2098_v5  ;;  %v167_v5 = vld [vmem:[%s19256_s0 + $0x2f0] sm:$0xff] }
 0x31b   :  { %vm1915_vm11 = vcmp.ge.f32.partialorder %v1822_v18, 0.0  ;;  %v2008_v2 = vmul.f32 0.1, %v1822_v18  ;;  %v1723_v51 = vadd.f32 %v1471_v54, %v19517_v10  ;;  %v1208_v13 = vpack.c.bf16 %v167_v5, %v167_v5 }
 0x31c   :  { %19516 = vst [vmem:[#allocation30_spill] sm:$0xff] %v15946_v12  ;;  %v13193_v24 = vpop.f32.mrf.mxu0 }
 0x31d   :  { %v1823_v48 = vadd.f32 %v15675_v39, %v1723_v51  ;;  %v2101_v9 = vsel %vm1915_vm11, %v1822_v18, %v2008_v2 }
 0x31e   :  { %v1476_v23 = vpop.f32.mrf.mxu0  ;;  %13291 = vmatmul.mubr.bf16.gmra.mxu0 %v1207_v46  ;;  %v15950_v22 = vpack.c.bf16 %v2101_v9, %v2099_v35 }
 0x31f   :  { %vm1916_vm12 = vcmp.ge.f32.partialorder %v1823_v48, 0.0  ;;  %v2009_v59 = vmul.f32 0.1, %v1823_v48  ;;  %v1724_v38 = vadd.f32 %v1476_v23, %v19518_v56  ;;  %13294 = vmatprep.mubr.msk.bf16.mxu0 %vm14605_vm0, %v19437_v26  ;;  %v13949_v56 = vld [vmem:[%s19259_s3 + $0x28] sm:$0xff]  }
 0x320   :  { %v13196_v44 = vpop.f32.mrf.mxu0  ;;  %13362 = vmatprep.subr.bf16.mxu1 %v13949_v56 }
 0x321   :  { %v1824_v54 = vadd.f32 %v15675_v39, %v1724_v38  ;;  %v2102_v29 = vsel %vm1916_vm12, %v1823_v48, %v2009_v59  ;;  %13363 = vmatpush3.bf16.msra.mxu1 %v13949_v56  ;;  %v13950_v56 = vld [vmem:[%s19259_s3 + $0x20] sm:$0xff]  }
 0x322   :  { %v1479_v18 = vpop.f32.mrf.mxu0  ;;  %v15959_v46 = vpack.c.bf16 %v2102_v29, %v2100_v14  ;;  %13364 = vmatprep.subr.bf16.mxu1 %v13950_v56 }
 0x323   :  { %vm1917_vm13 = vcmp.ge.f32.partialorder %v1824_v54, 0.0  ;;  %v2010_v35 = vmul.f32 0.1, %v1824_v54  ;;  %v1725_v2 = vadd.f32 %v1479_v18, %v15473_v20 }
 0x324   :  { %v13197_v10 = vpop.f32.mrf.mxu0 }
 0x325   :  { %v1825_v51 = vadd.f32 %v15675_v39, %v1725_v2  ;;  %v2103_v24 = vsel %vm1917_vm13, %v1824_v54, %v2010_v35  ;;  %13365 = vmatpush3.bf16.msra.mxu1 %v13950_v56 }
 0x326   :  { %v1484_v23 = vpop.f32.mrf.mxu0  ;;  %13295 = vmatmul.mubr.bf16.gmra.mxu0 %v1208_v13  ;;  %v15966_v38 = vpack.c.bf16 %v2103_v24, %v2101_v9 }
 0x327   :  { %vm1918_vm14 = vcmp.ge.f32.partialorder %v1825_v51, 0.0  ;;  %v2011_v59 = vmul.f32 0.1, %v1825_v51  ;;  %v1726_v14 = vadd.f32 %v1484_v23, %v15477_v47  ;;  %13614 = vmatprep.mubr.bf16.mxu0 %v15727_v63 }
 0x328   :  { %v13200_v20 = vpop.f32.mrf.mxu0  ;;  %13334 = vmatprep.mubr.bf16.mxu1 %v15966_v38 }
 0x329   :  { %v2104_v48 = vsel %vm1918_vm14, %v1825_v51, %v2011_v59  ;;  %v1826_v5 = vadd.f32 %v15675_v39, %v1726_v14  ;;  %v19520_v14 = vld [vmem:[#allocation52_spill] sm:$0xff] }
 0x32a   :  { %v1487_v44 = vpop.f32.mrf.mxu0  ;;  %v15972_v54 = vpack.c.bf16 %v2104_v48, %v2102_v29 }
 0x32b   :  { %vm1919_vm15 = vcmp.ge.f32.partialorder %v1826_v5, 0.0  ;;  %v2012_v18 = vmul.f32 0.1, %v1826_v5  ;;  %v1727_v9 = vadd.f32 %v1487_v44, %v15479_v52 }
 0x32c   :  { %19519 = vst [vmem:[#allocation32_spill] sm:$0xff] %v15972_v54  ;;  %v13201_v13 = vpop.f32.mrf.mxu0 }
 0x32d   :  { %v2105_v35 = vsel %vm1919_vm15, %v1826_v5, %v2012_v18  ;;  %v1827_v2 = vadd.f32 %v15675_v39, %v1727_v9  ;;  %v19521_v13 = vld [vmem:[#allocation53_spill] sm:$0xff] }
 0x32e   :  { %v15976_v47 = vpack.c.bf16 %v2105_v35, %v2103_v24  ;;  %v1492_v63 = vpop.f32.mrf.mxu0  ;;  %13615 = vmatmul.mubr.bf16.vlgmr.msra.gmra.mxu0 %v15763_v50 }
 0x32f   :  { %vm1920_vm1 = vcmp.ge.f32.partialorder %v1827_v2, 0.0  ;;  %v2013_v29 = vmul.f32 0.1, %v1827_v2  ;;  %v1728_v10 = vadd.f32 %v1492_v63, %v15484_v1  ;;  %13618 = vmatprep.mubr.bf16.mxu0 %v15789_v27 }
 0x330   :  { %v13204_v52 = vpop.f32.mrf.mxu0 }
 0x331   :  { %v2106_v51 = vsel %vm1920_vm1, %v1827_v2, %v2013_v29  ;;  %v1828_v23 = vadd.f32 %v15675_v39, %v1728_v10 }
 0x332   :  { %v1495_v24 = vpop.f32.mrf.mxu0  ;;  %v15985_v59 = vpack.c.bf16 %v2106_v51, %v2104_v48  ;;  %v13951_v48 = vld [vmem:[%s19259_s3 + $0x18] sm:$0xff]  }
 0x333   :  { %vm1921_vm2 = vcmp.ge.f32.partialorder %v1828_v23, 0.0  ;;  %v2014_v50 = vmul.f32 0.1, %v1828_v23  ;;  %v1729_v20 = vadd.f32 %v1495_v24, %v19520_v14  ;;  %13366 = vmatprep.subr.bf16.mxu1 %v13951_v48 }
 0x334   :  { %v13205_v5 = vpop.f32.mrf.mxu0  ;;  %13367 = vmatpush3.bf16.msra.mxu1 %v13951_v48 }
 0x335   :  { %v2107_v44 = vsel %vm1921_vm2, %v1828_v23, %v2014_v50  ;;  %v1829_v18 = vadd.f32 %v15675_v39, %v1729_v20  ;;  %v19523_v5 = vld [vmem:[#allocation54_spill] sm:$0xff] }
 0x336   :  { %v1500_v1 = vpop.f32.mrf.mxu0  ;;  %13619 = vmatmul.mubr.bf16.gmra.mxu0 %v15812_v36  ;;  %v15990_v27 = vpack.c.bf16 %v2107_v44, %v2105_v35 }
 0x337   :  { %vm1922_vm3 = vcmp.ge.f32.partialorder %v1829_v18, 0.0  ;;  %v2015_v9 = vmul.f32 0.1, %v1829_v18  ;;  %v1730_v2 = vadd.f32 %v1500_v1, %v19521_v13  ;;  %13622 = vmatprep.mubr.bf16.mxu0 %v15835_v17 }
 0x338   :  { %v13208_v63 = vpop.f32.mrf.mxu0  ;;  %13335 = vmatmul.mubr.bf16.gmra.mxu1 %v15990_v27 }
 0x339   :  { %v1830_v56 = vadd.f32 %v15675_v39, %v1730_v2  ;;  %v2108_v29 = vsel %vm1922_vm3, %v1829_v18, %v2015_v9 }
 0x33a   :  { %v1503_v36 = vpop.f32.mrf.mxu0  ;;  %v15999_v35 = vpack.c.bf16 %v2108_v29, %v2106_v51 }
 0x33b   :  { %vm1923_vm4 = vcmp.ge.f32.partialorder %v1830_v56, 0.0  ;;  %v2016_v10 = vmul.f32 0.1, %v1830_v56  ;;  %v1731_v52 = vadd.f32 %v1503_v36, %v15496_v60 }
 0x33c   :  { %19522 = vst [vmem:[#allocation31_spill] sm:$0xff] %v15999_v35  ;;  %v13209_v17 = vpop.f32.mrf.mxu0 }
 0x33d   :  { %v1831_v23 = vadd.f32 %v15675_v39, %v1731_v52  ;;  %v2109_v24 = vsel %vm1923_vm4, %v1830_v56, %v2016_v10  ;;  %v19525_v10 = vld [vmem:[#allocation55_spill] sm:$0xff] }
 0x33e   :  { %v1508_v50 = vpop.f32.mrf.mxu0  ;;  %13623 = vmatmul.mubr.bf16.gmra.mxu0 %v15858_v19  ;;  %v16004_v14 = vpack.c.bf16 %v2109_v24, %v2107_v44  ;;  %v13952_v19 = vld [vmem:[%s19259_s3 + $0x10] sm:$0xff]  }
 0x33f   :  { %vm1924_vm5 = vcmp.ge.f32.partialorder %v1831_v23, 0.0  ;;  %v2017_v20 = vmul.f32 0.1, %v1831_v23  ;;  %v1732_v18 = vadd.f32 %v1508_v50, %v19523_v5  ;;  %13626 = vmatprep.mubr.bf16.mxu0 %v15881_v25  ;;  %13368 = vmatprep.subr.bf16.mxu1 %v13952_v19 }
 0x340   :  { %v13212_v51 = vpop.f32.mrf.mxu0  ;;  %13369 = vmatpush3.bf16.msra.mxu1 %v13952_v19 }
 0x341   :  { %v1832_v1 = vadd.f32 %v15675_v39, %v1732_v18  ;;  %v2110_v9 = vsel %vm1924_vm5, %v1831_v23, %v2017_v20 }
 0x342   :  { %v1511_v60 = vpop.f32.mrf.mxu0  ;;  %v16009_v13 = vpack.c.bf16 %v2110_v9, %v2108_v29 }
 0x343   :  { %vm1925_vm6 = vcmp.ge.f32.partialorder %v1832_v1, 0.0  ;;  %v2018_v2 = vmul.f32 0.1, %v1832_v1  ;;  %v1733_v48 = vadd.f32 %v1511_v60, %v15503_v31 }
 0x344   :  { %19524 = vst [vmem:[#allocation33_spill] sm:$0xff] %v16009_v13  ;;  %v13213_v44 = vpop.f32.mrf.mxu0 }
 0x345   :  { %v1833_v63 = vadd.f32 %v15675_v39, %v1733_v48  ;;  %v2111_v56 = vsel %vm1925_vm6, %v1832_v1, %v2018_v2  ;;  %v16022_v39 = vld [vmem:[%s19258_s2] ss:$0 sm:$0xff]  ;;  %v19527_v2 = vld [vmem:[#allocation56_spill] sm:$0xff] }
 0x346   :  { %v1516_v25 = vpop.f32.mrf.mxu0  ;;  %13627 = vmatmul.mubr.bf16.gmra.mxu0 %v15904_v34  ;;  %v2488_v36 = vpack.c.bf16 %v2111_v56, %v2109_v24 }
 0x347   :  { %vm1926_vm7 = vcmp.ge.f32.partialorder %v1833_v63, 0.0  ;;  %v2019_v29 = vmul.f32 0.1, %v1833_v63  ;;  %v1734_v52 = vadd.f32 %v1516_v25, %v19525_v10  ;;  %13630 = vmatprep.mubr.bf16.mxu0 %v15930_v32 }
 0x348   :  { %v13216_v31 = vpop.f32.mrf.mxu0  ;;  %13338 = vmatprep.mubr.bf16.mxu1 %v2488_v36 }
 0x349   :  { %v2112_v17 = vsel %vm1926_vm7, %v1833_v63, %v2019_v29  ;;  %v1834_v23 = vadd.f32 %v16022_v39, %v1734_v52  ;;  %v13953_v63 = vld [vmem:[%s19259_s3 + $0x8] sm:$0xff]   ;;  %v13955_v29 = vld [vmem:[%s19259_s3 + $0x1f0] sm:$0xff]  }
 0x34a   :  { %v1519_v50 = vpop.f32.mrf.mxu0  ;;  %v16025_v34 = vpack.c.bf16 %v2112_v17, %v2110_v9  ;;  %v13954_v9 = vld [vmem:[%s19259_s3 + $0x1f8] sm:$0xff]   ;;  %13370 = vmatprep.subr.bf16.mxu1 %v13953_v63 }
 0x34b   :  { %vm1927_vm8 = vcmp.ge.f32.partialorder %v1834_v23, 0.0  ;;  %v2020_v24 = vmul.f32 0.1, %v1834_v23  ;;  %v1735_v20 = vadd.f32 %v1519_v50, %v15510_v43  ;;  %13718 = vmatprep.subr.bf16.mxu0 %v13954_v9  ;;  %13371 = vmatpush3.bf16.msra.mxu1 %v13953_v63 }
 0x34c   :  { %19526 = vst [vmem:[#allocation35_spill] sm:$0xff] %v16025_v34  ;;  %v13217_v5 = vpop.f32.mrf.mxu0  ;;  %13719 = vmatpush3.bf16.msra.mxu0 %v13954_v9  ;;  %v13958_v9 = vld [vmem:[%s19259_s3 + $0x1e0] sm:$0xff]  }
 0x34d   :  { %v2113_v18 = vsel %vm1927_vm8, %v1834_v23, %v2020_v24  ;;  %v1835_v32 = vadd.f32 %v16022_v39, %v1735_v20  ;;  %13720 = vmatprep.subr.bf16.mxu0 %v13955_v29  ;;  %v19529_v24 = vld [vmem:[#allocation57_spill] sm:$0xff] }
 0x34e   :  { %v16029_v51 = vpack.c.bf16 %v2113_v18, %v2111_v56  ;;  %v1524_v1 = vpop.f32.mrf.mxu0  ;;  %13631 = vmatmul.mubr.bf16.gmra.mxu0 %v15966_v38 }
 0x34f   :  { %vm1928_vm9 = vcmp.ge.f32.partialorder %v1835_v32, 0.0  ;;  %v2021_v60 = vmul.f32 0.1, %v1835_v32  ;;  %v1736_v48 = vadd.f32 %v1524_v1, %v19527_v2  ;;  %13634 = vmatprep.mubr.bf16.mxu0 %v15990_v27  ;;  %v13956_v1 = vld [vmem:[%s19259_s3] sm:$0xff]  }
 0x350   :  { %v13220_v43 = vpop.f32.mrf.mxu0  ;;  %13721 = vmatpush3.bf16.msra.mxu0 %v13955_v29  ;;  %13372 = vmatprep.subr.bf16.mxu1 %v13956_v1 }
 0x351   :  { %v2114_v19 = vsel %vm1928_vm9, %v1835_v32, %v2021_v60  ;;  %v1836_v44 = vadd.f32 %v16022_v39, %v1736_v48  ;;  %13373 = vmatpush3.bf16.msra.mxu1 %v13956_v1 }
 0x352   :  { %v1527_v38 = vpop.f32.mrf.mxu0  ;;  %v16041_v56 = vpack.c.bf16 %v2114_v19, %v2112_v17 }
 0x353   :  { %vm1929_vm10 = vcmp.ge.f32.partialorder %v1836_v44, 0.0  ;;  %v2022_v25 = vmul.f32 0.1, %v1836_v44  ;;  %v1737_v27 = vadd.f32 %v1527_v38, %v15517_v55  ;;  %v13957_v55 = vld [vmem:[%s19259_s3 + $0x1e8] sm:$0xff]  }
 0x354   :  { %19528 = vst [vmem:[#allocation34_spill] sm:$0xff] %v16041_v56  ;;  %v13221_v10 = vpop.f32.mrf.mxu0  ;;  %13722 = vmatprep.subr.bf16.mxu0 %v13957_v55 }
 0x355   :  { %v2115_v52 = vsel %vm1929_vm10, %v1836_v44, %v2022_v25  ;;  %v1837_v31 = vadd.f32 %v16022_v39, %v1737_v27  ;;  %13723 = vmatpush3.bf16.msra.mxu0 %v13957_v55 }
 0x356   :  { %v1532_v23 = vpop.f32.mrf.mxu0  ;;  %13635 = vmatmul.mubr.bf16.gmra.mxu0 %v2488_v36  ;;  %v2489_v50 = vpack.c.bf16 %v2115_v52, %v2113_v18  ;;  %13724 = vmatprep.subr.bf16.mxu0 %v13958_v9 }
 0x357   :  { %vm1930_vm11 = vcmp.ge.f32.partialorder %v1837_v31, 0.0  ;;  %v2023_v17 = vmul.f32 0.1, %v1837_v31  ;;  %v1738_v20 = vadd.f32 %v1532_v23, %v19529_v24 }
 0x358   :  { %v13224_v5 = vpop.f32.mrf.mxu0  ;;  %13339 = vmatmul.mubr.bf16.gmra.mxu1 %v2489_v50  ;;  %13638 = vmatprep.mubr.bf16.mxu0 %v2489_v50 }
 0x359   :  { %v1838_v32 = vadd.f32 %v16022_v39, %v1738_v20  ;;  %v2116_v36 = vsel %vm1930_vm11, %v1837_v31, %v2023_v17  ;;  %13725 = vmatpush3.bf16.msra.mxu0 %v13958_v9  ;;  %v19532_v17 = vld [vmem:[#allocation58_spill] sm:$0xff]  ;;  %v13962_v9 = vld [vmem:[%s19259_s3 + $0x1c8] sm:$0xff]  }
 0x35a   :  { %v1535_v18 = vpop.f32.mrf.mxu0  ;;  %v16056_v60 = vpack.c.bf16 %v2116_v36, %v2114_v19 }
 0x35b   :  { %vm1931_vm12 = vcmp.ge.f32.partialorder %v1838_v32, 0.0  ;;  %v2024_v2 = vmul.f32 0.1, %v1838_v32  ;;  %v1739_v48 = vadd.f32 %v1535_v18, %v15524_v6  ;;  %v13960_v6 = vld [vmem:[%s19259_s3 + $0x1d8] sm:$0xff]  }
 0x35c   :  { %19530 = vst [vmem:[#allocation36_spill] sm:$0xff] %v16056_v60  ;;  %v13225_v43 = vpop.f32.mrf.mxu0  ;;  %13726 = vmatprep.subr.bf16.mxu0 %v13960_v6 }
 0x35d   :  { %v1839_v44 = vadd.f32 %v16022_v39, %v1739_v48  ;;  %v2117_v63 = vsel %vm1931_vm12, %v1838_v32, %v2024_v2  ;;  %13727 = vmatpush3.bf16.msra.mxu0 %v13960_v6  ;;  %v16080_v32 = vld [vmem:[%s19259_s3 + $0xb8] sm:$0xff]   ;;  %v19533_v2 = vld [vmem:[#allocation59_spill] sm:$0xff] }
 0x35e   :  { %v1540_v38 = vpop.f32.mrf.mxu0  ;;  %v16063_v25 = vpack.c.bf16 %v2117_v63, %v2115_v52  ;;  %13418 = vmatprep.subr.bf16.mxu1 %v16080_v32 }
 0x35f   :  { %vm1932_vm13 = vcmp.ge.f32.partialorder %v1839_v44, 0.0  ;;  %v2025_v19 = vmul.f32 0.1, %v1839_v44  ;;  %v1740_v27 = vadd.f32 %v1540_v38, %v15529_v49  ;;  %v13961_v49 = vld [vmem:[%s19259_s3 + $0x1d0] sm:$0xff]  }
 0x360   :  { %v13228_v29 = vpop.f32.mrf.mxu0  ;;  %13728 = vmatprep.subr.bf16.mxu0 %v13961_v49 }
 0x361   :  { %v1840_v10 = vadd.f32 %v16022_v39, %v1740_v27  ;;  %v2118_v31 = vsel %vm1932_vm13, %v1839_v44, %v2025_v19  ;;  %13729 = vmatpush3.bf16.msra.mxu0 %v13961_v49  ;;  %v13964_v29 = vld [vmem:[%s19259_s3 + $0x1c0] sm:$0xff]  }
 0x362   :  { %v1543_v23 = vpop.f32.mrf.mxu0  ;;  %v16070_v50 = vpack.c.bf16 %v2118_v31, %v2116_v36  ;;  %13730 = vmatprep.subr.bf16.mxu0 %v13962_v9 }
 0x363   :  { %vm1933_vm14 = vcmp.ge.f32.partialorder %v1840_v10, 0.0  ;;  %v2026_v52 = vmul.f32 0.1, %v1840_v10  ;;  %v1741_v24 = vadd.f32 %v1543_v23, %v19532_v17 }
 0x364   :  { %19531 = vst [vmem:[#allocation38_spill] sm:$0xff] %v16070_v50  ;;  %v13229_v20 = vpop.f32.mrf.mxu0 }
 0x365   :  { %v1841_v55 = vadd.f32 %v16022_v39, %v1741_v24  ;;  %v2119_v5 = vsel %vm1933_vm14, %v1840_v10, %v2026_v52  ;;  %13731 = vmatpush3.bf16.msra.mxu0 %v13962_v9 }
 0x366   :  { %v1548_v1 = vpop.f32.mrf.mxu0  ;;  %v2490_v36 = vpack.c.bf16 %v2119_v5, %v2117_v63  ;;  %13732 = vmatprep.subr.bf16.mxu0 %v13964_v29 }
 0x367   :  { %vm1934_vm15 = vcmp.ge.f32.partialorder %v1841_v55, 0.0  ;;  %v2027_v18 = vmul.f32 0.1, %v1841_v55  ;;  %v1742_v48 = vadd.f32 %v1548_v1, %v19533_v2 }
 0x368   :  { %v13232_v43 = vpop.f32.mrf.mxu0  ;;  %13342 = vmatprep.mubr.bf16.mxu1 %v2490_v36  ;;  %13639 = vmatmul.mubr.bf16.gmra.mxu0 %v2490_v36 }
 0x369   :  { %v2120_v44 = vsel %vm1934_vm15, %v1841_v55, %v2027_v18  ;;  %v1842_v38 = vadd.f32 %v16022_v39, %v1742_v48  ;;  %13733 = vmatpush3.bf16.msra.mxu0 %v13964_v29 }
 0x36a   :  { %v1551_v19 = vpop.f32.mrf.mxu0  ;;  %v16088_v63 = vpack.c.bf16 %v2120_v44, %v2118_v31 }
 0x36b   :  { %vm1935_vm1 = vcmp.ge.f32.partialorder %v1842_v38, 0.0  ;;  %v2028_v27 = vmul.f32 0.1, %v1842_v38  ;;  %v1743_v6 = vadd.f32 %v1551_v19, %v15541_v42 }
 0x36c   :  { %19534 = vst [vmem:[#allocation37_spill] sm:$0xff] %v16088_v63  ;;  %v13233_v10 = vpop.f32.mrf.mxu0 }
 0x36d   :  { %v2121_v23 = vsel %vm1935_vm1, %v1842_v38, %v2028_v27  ;;  %v1843_v52 = vadd.f32 %v16022_v39, %v1743_v6 }
 0x36e   :  { %v16095_v17 = vpack.c.bf16 %v2121_v23, %v2119_v5  ;;  %v1556_v24 = vpop.f32.mrf.mxu0 }
 0x36f   :  { %vm1936_vm2 = vcmp.ge.f32.partialorder %v1843_v52, 0.0  ;;  %v2029_v31 = vmul.f32 0.1, %v1843_v52  ;;  %v1744_v49 = vadd.f32 %v1556_v24, %v15546_v57 }
 0x370   :  { %v13236_v20 = vpop.f32.mrf.mxu0 }
 0x371   :  { %v2122_v42 = vsel %vm1936_vm2, %v1843_v52, %v2029_v31  ;;  %v1844_v55 = vadd.f32 %v16022_v39, %v1744_v49  ;;  %v19537_v52 = vld [vmem:[#allocation60_spill] sm:$0xff] }
 0x372   :  { %v1559_v1 = vpop.f32.mrf.mxu0  ;;  %v16099_v36 = vpack.c.bf16 %v2122_v42, %v2120_v44 }
 0x373   :  { %vm1937_vm3 = vcmp.ge.f32.partialorder %v1844_v55, 0.0  ;;  %v2030_v18 = vmul.f32 0.1, %v1844_v55  ;;  %v1745_v2 = vadd.f32 %v1559_v1, %v15548_v53  ;;  %v19538_v1 = vld [vmem:[#allocation61_spill] sm:$0xff] }
 0x374   :  { %19535 = vst [vmem:[#allocation39_spill] sm:$0xff] %v16099_v36  ;;  %v13237_v48 = vpop.f32.mrf.mxu0 }
 0x375   :  { %v2123_v5 = vsel %vm1937_vm3, %v1844_v55, %v2030_v18  ;;  %v1845_v9 = vadd.f32 %v16022_v39, %v1745_v2 }
 0x376   :  { %v1564_v43 = vpop.f32.mrf.mxu0  ;;  %v2491_v38 = vpack.c.bf16 %v2123_v5, %v2121_v23 }
 0x377   :  { %vm1938_vm4 = vcmp.ge.f32.partialorder %v1845_v9, 0.0  ;;  %v2031_v57 = vmul.f32 0.1, %v1845_v9  ;;  %v1746_v19 = vadd.f32 %v1564_v43, %v15553_v62 }
 0x378   :  { %v13240_v27 = vpop.f32.mrf.mxu0  ;;  %13343 = vmatmul.mubr.bf16.gmra.mxu1 %v2491_v38  ;;  %13642 = vmatprep.mubr.bf16.mxu0 %v2491_v38 }
 0x379   :  { %v1846_v44 = vadd.f32 %v16022_v39, %v1746_v19  ;;  %v2124_v6 = vsel %vm1938_vm4, %v1845_v9, %v2031_v57  ;;  %v19540_v57 = vld [vmem:[#allocation62_spill] sm:$0xff] }
 0x37a   :  { %v1567_v29 = vpop.f32.mrf.mxu0  ;;  %v16105_v10 = vpack.c.bf16 %v2124_v6, %v2122_v42 }
 0x37b   :  { %vm1939_vm5 = vcmp.ge.f32.partialorder %v1846_v44, 0.0  ;;  %v2032_v53 = vmul.f32 0.1, %v1846_v44  ;;  %v1747_v24 = vadd.f32 %v1567_v29, %v19537_v52 }
 0x37c   :  { %19536 = vst [vmem:[#allocation41_spill] sm:$0xff] %v16105_v10  ;;  %v13241_v31 = vpop.f32.mrf.mxu0 }
 0x37d   :  { %v1847_v23 = vadd.f32 %v16022_v39, %v1747_v24  ;;  %v2125_v49 = vsel %vm1939_vm5, %v1846_v44, %v2032_v53  ;;  %v19541_v24 = vld [vmem:[#allocation63_spill] sm:$0xff] }
 0x37e   :  { %v1572_v20 = vpop.f32.mrf.mxu0  ;;  %v16109_v55 = vpack.c.bf16 %v2125_v49, %v2123_v5 }
 0x37f   :  { %vm1940_vm6 = vcmp.ge.f32.partialorder %v1847_v23, 0.0  ;;  %v2033_v62 = vmul.f32 0.1, %v1847_v23  ;;  %v1748_v18 = vadd.f32 %v1572_v20, %v19538_v1 }
 0x380   :  { %v13244_v2 = vpop.f32.mrf.mxu0 }
 0x381   :  { %v1848_v48 = vadd.f32 %v16022_v39, %v1748_v18  ;;  %v2126_v42 = vsel %vm1940_vm6, %v1847_v23, %v2033_v62 }
 0x382   :  { %v1575_v9 = vpop.f32.mrf.mxu0  ;;  %v16113_v43 = vpack.c.bf16 %v2126_v42, %v2124_v6 }
 0x383   :  { %vm1941_vm7 = vcmp.ge.f32.partialorder %v1848_v48, 0.0  ;;  %v2034_v38 = vmul.f32 0.1, %v1848_v48  ;;  %v1749_v19 = vadd.f32 %v1575_v9, %v19540_v57 }
 0x384   :  { %19539 = vst [vmem:[#allocation40_spill] sm:$0xff] %v16113_v43  ;;  %v13245_v27 = vpop.f32.mrf.mxu0 }
 0x385   :  { %v1849_v44 = vadd.f32 %v16022_v39, %v1749_v19  ;;  %v2127_v5 = vsel %vm1941_vm7, %v1848_v48, %v2034_v38  ;;  %v19543_v27 = vld [vmem:[#allocation64_spill] sm:$0xff] }
 0x386   :  { %v1580_v29 = vpop.f32.mrf.mxu0  ;;  %v2492_v53 = vpack.c.bf16 %v2127_v5, %v2125_v49 }
 0x387   :  { %vm1942_vm8 = vcmp.ge.f32.partialorder %v1849_v44, 0.0  ;;  %v2035_v52 = vmul.f32 0.1, %v1849_v44  ;;  %v1750_v31 = vadd.f32 %v1580_v29, %v19541_v24 }
 0x388   :  { %v13248_v20 = vpop.f32.mrf.mxu0  ;;  %13346 = vmatprep.mubr.bf16.mxu1 %v2492_v53  ;;  %13643 = vmatmul.mubr.bf16.gmra.mxu0 %v2492_v53 }
 0x389   :  { %v2128_v23 = vsel %vm1942_vm8, %v1849_v44, %v2035_v52  ;;  %v1850_v6 = vadd.f32 %v16022_v39, %v1750_v31 }
 0x38a   :  { %v1583_v62 = vpop.f32.mrf.mxu0  ;;  %v16119_v1 = vpack.c.bf16 %v2128_v23, %v2126_v42 }
 0x38b   :  { %vm1943_vm9 = vcmp.ge.f32.partialorder %v1850_v6, 0.0  ;;  %v2036_v18 = vmul.f32 0.1, %v1850_v6  ;;  %v1751_v2 = vadd.f32 %v1583_v62, %v15584_v7 }
 0x38c   :  { %19542 = vst [vmem:[#allocation42_spill] sm:$0xff] %v16119_v1  ;;  %v13249_v48 = vpop.f32.mrf.mxu0 }
 0x38d   :  { %v2129_v9 = vsel %vm1943_vm9, %v1850_v6, %v2036_v18  ;;  %v1851_v49 = vadd.f32 %v16022_v39, %v1751_v2  ;;  %v19545_v48 = vld [vmem:[#allocation65_spill] sm:$0xff] }
 0x38e   :  { %v16123_v38 = vpack.c.bf16 %v2129_v9, %v2127_v5  ;;  %v1588_v57 = vpop.f32.mrf.mxu0 }
 0x38f   :  { %vm1944_vm10 = vcmp.ge.f32.partialorder %v1851_v49, 0.0  ;;  %v2037_v19 = vmul.f32 0.1, %v1851_v49  ;;  %v1752_v44 = vadd.f32 %v1588_v57, %v19543_v27 }
 0x390   :  { %v13252_v29 = vpop.f32.mrf.mxu0 }
 0x391   :  { %v2130_v53 = vsel %vm1944_vm10, %v1851_v49, %v2037_v19  ;;  %v1852_v42 = vadd.f32 %v16022_v39, %v1752_v44 }
 0x392   :  { %v1591_v52 = vpop.f32.mrf.mxu0  ;;  %v16127_v24 = vpack.c.bf16 %v2130_v53, %v2128_v23 }
 0x393   :  { %vm1945_vm11 = vcmp.ge.f32.partialorder %v1852_v42, 0.0  ;;  %v2038_v7 = vmul.f32 0.1, %v1852_v42  ;;  %v1753_v31 = vadd.f32 %v1591_v52, %v15591_v33 }
 0x394   :  { %19544 = vst [vmem:[#allocation44_spill] sm:$0xff] %v16127_v24  ;;  %v13253_v20 = vpop.f32.mrf.mxu0 }
 0x395   :  { %v2131_v6 = vsel %vm1945_vm11, %v1852_v42, %v2038_v7  ;;  %v1853_v5 = vadd.f32 %v16022_v39, %v1753_v31 }
 0x396   :  { %v1596_v62 = vpop.f32.mrf.mxu0  ;;  %v2493_v18 = vpack.c.bf16 %v2131_v6, %v2129_v9 }
 0x397   :  { %vm1946_vm12 = vcmp.ge.f32.partialorder %v1853_v5, 0.0  ;;  %v2039_v2 = vmul.f32 0.1, %v1853_v5  ;;  %v1754_v57 = vadd.f32 %v1596_v62, %v19545_v48  ;;  %v19547_v62 = vld [vmem:[#allocation66_spill] sm:$0xff] }
 0x398   :  { %v13256_v49 = vpop.f32.mrf.mxu0  ;;  %13347 = vmatmul.mubr.bf16.gmra.mxu1 %v2493_v18  ;;  %13646 = vmatprep.mubr.bf16.mxu0 %v2493_v18 }
 0x399   :  { %v1854_v23 = vadd.f32 %v16022_v39, %v1754_v57  ;;  %v2132_v19 = vsel %vm1946_vm12, %v1853_v5, %v2039_v2 }
 0x39a   :  { %v1599_v27 = vpop.f32.mrf.mxu0  ;;  %v16133_v44 = vpack.c.bf16 %v2132_v19, %v2130_v53 }
 0x39b   :  { %vm1947_vm13 = vcmp.ge.f32.partialorder %v1854_v23, 0.0  ;;  %v2040_v33 = vmul.f32 0.1, %v1854_v23  ;;  %v1755_v29 = vadd.f32 %v1599_v27, %v15598_v28 }
 0x39c   :  { %19546 = vst [vmem:[#allocation43_spill] sm:$0xff] %v16133_v44  ;;  %v13257_v42 = vpop.f32.mrf.mxu0 }
 0x39d   :  { %v1855_v9 = vadd.f32 %v16022_v39, %v1755_v29  ;;  %v2133_v52 = vsel %vm1947_vm13, %v1854_v23, %v2040_v33 }
 0x39e   :  { %v1604_v7 = vpop.f32.mrf.mxu0  ;;  %v16137_v31 = vpack.c.bf16 %v2133_v52, %v2131_v6 }
 0x39f   :  { %vm1948_vm14 = vcmp.ge.f32.partialorder %v1855_v9, 0.0  ;;  %v2041_v20 = vmul.f32 0.1, %v1855_v9  ;;  %v1756_v18 = vadd.f32 %v1604_v7, %v19547_v62  ;;  %v19549_v7 = vld [vmem:[#allocation67_spill] sm:$0xff] }
 0x3a0   :  { %v13260_v48 = vpop.f32.mrf.mxu0 }
 0x3a1   :  { %v1856_v5 = vadd.f32 %v16022_v39, %v1756_v18  ;;  %v2134_v53 = vsel %vm1948_vm14, %v1855_v9, %v2041_v20 }
 0x3a2   :  { %v1607_v2 = vpop.f32.mrf.mxu0  ;;  %v16141_v57 = vpack.c.bf16 %v2134_v53, %v2132_v19 }
 0x3a3   :  { %vm1949_vm15 = vcmp.ge.f32.partialorder %v1856_v5, 0.0  ;;  %v2042_v28 = vmul.f32 0.1, %v1856_v5  ;;  %v1757_v49 = vadd.f32 %v1607_v2, %v15605_v8 }
 0x3a4   :  { %19548 = vst [vmem:[#allocation45_spill] sm:$0xff] %v16141_v57  ;;  %v13261_v27 = vpop.f32.mrf.mxu0 }
 0x3a5   :  { %v1857_v23 = vadd.f32 %v16022_v39, %v1757_v49  ;;  %v2135_v6 = vsel %vm1949_vm15, %v1856_v5, %v2042_v28 }
 0x3a6   :  { %v1612_v33 = vpop.f32.mrf.mxu0  ;;  %v2494_v29 = vpack.c.bf16 %v2135_v6, %v2133_v52 }
 0x3a7   :  { %vm1950_vm1 = vcmp.ge.f32.partialorder %v1857_v23, 0.0  ;;  %v2043_v42 = vmul.f32 0.1, %v1857_v23  ;;  %v1758_v62 = vadd.f32 %v1612_v33, %v19549_v7 }
 0x3a8   :  { %v13264_v48 = vpop.f32.mrf.mxu0  ;;  %13350 = vmatprep.mubr.bf16.mxu1 %v2494_v29  ;;  %13647 = vmatmul.mubr.bf16.gmra.mxu0 %v2494_v29  ;;  %v19551_v29 = vld [vmem:[#allocation68_spill] sm:$0xff] }
 0x3a9   :  { %v2136_v9 = vsel %vm1950_vm1, %v1857_v23, %v2043_v42  ;;  %v1858_v19 = vadd.f32 %v16022_v39, %v1758_v62 }
 0x3aa   :  { %v1615_v20 = vpop.f32.mrf.mxu0  ;;  %v16147_v18 = vpack.c.bf16 %v2136_v9, %v2134_v53 }
 0x3ab   :  { %vm1951_vm2 = vcmp.ge.f32.partialorder %v1858_v19, 0.0  ;;  %v2044_v8 = vmul.f32 0.1, %v1858_v19  ;;  %v1759_v2 = vadd.f32 %v1615_v20, %v15612_v41 }
 0x3ac   :  { %19550 = vst [vmem:[#allocation47_spill] sm:$0xff] %v16147_v18  ;;  %v13265_v5 = vpop.f32.mrf.mxu0 }
 0x3ad   :  { %v2137_v28 = vsel %vm1951_vm2, %v1858_v19, %v2044_v8  ;;  %v1859_v52 = vadd.f32 %v16022_v39, %v1759_v2 }
 0x3ae   :  { %v16151_v49 = vpack.c.bf16 %v2137_v28, %v2135_v6  ;;  %v1620_v27 = vpop.f32.mrf.mxu0 }
 0x3af   :  { %vm1952_vm3 = vcmp.ge.f32.partialorder %v1859_v52, 0.0  ;;  %v2045_v33 = vmul.f32 0.1, %v1859_v52  ;;  %v1760_v23 = vadd.f32 %v1620_v27, %v19551_v29  ;;  %v19553_v27 = vld [vmem:[#allocation69_spill] sm:$0xff] }
 0x3b0   :  { %v13268_v42 = vpop.f32.mrf.mxu0 }
 0x3b1   :  { %v2138_v7 = vsel %vm1952_vm3, %v1859_v52, %v2045_v33  ;;  %v1860_v53 = vadd.f32 %v16022_v39, %v1760_v23 }
 0x3b2   :  { %v1623_v62 = vpop.f32.mrf.mxu0  ;;  %v16155_v48 = vpack.c.bf16 %v2138_v7, %v2136_v9 }
 0x3b3   :  { %vm1953_vm4 = vcmp.ge.f32.partialorder %v1860_v53, 0.0  ;;  %v2046_v41 = vmul.f32 0.1, %v1860_v53  ;;  %v1761_v19 = vadd.f32 %v1623_v62, %v15619_v21 }
 0x3b4   :  { %19552 = vst [vmem:[#allocation46_spill] sm:$0xff] %v16155_v48  ;;  %v13269_v20 = vpop.f32.mrf.mxu0 }
 0x3b5   :  { %v2139_v8 = vsel %vm1953_vm4, %v1860_v53, %v2046_v41  ;;  %v1861_v6 = vadd.f32 %v16022_v39, %v1761_v19 }
 0x3b6   :  { %v1628_v2 = vpop.f32.mrf.mxu0  ;;  %v2495_v5 = vpack.c.bf16 %v2139_v8, %v2137_v28 }
 0x3b7   :  { %vm1954_vm5 = vcmp.ge.f32.partialorder %v1861_v6, 0.0  ;;  %v2047_v18 = vmul.f32 0.1, %v1861_v6  ;;  %v1762_v29 = vadd.f32 %v1628_v2, %v19553_v27 }
 0x3b8   :  { %v13272_v52 = vpop.f32.mrf.mxu0  ;;  %13351 = vmatmul.mubr.bf16.gmra.mxu1 %v2495_v5  ;;  %13650 = vmatprep.mubr.bf16.mxu0 %v2495_v5  ;;  %v19555_v5 = vld [vmem:[#allocation70_spill] sm:$0xff] }
 0x3b9   :  { %v1862_v9 = vadd.f32 %v16022_v39, %v1762_v29  ;;  %v2140_v33 = vsel %vm1954_vm5, %v1861_v6, %v2047_v18 }
 0x3ba   :  { %v1631_v23 = vpop.f32.mrf.mxu0  ;;  %v16161_v42 = vpack.c.bf16 %v2140_v33, %v2138_v7 }
 0x3bb   :  { %vm1955_vm6 = vcmp.ge.f32.partialorder %v1862_v9, 0.0  ;;  %v2048_v21 = vmul.f32 0.1, %v1862_v9  ;;  %v1763_v53 = vadd.f32 %v1631_v23, %v15626_v45 }
 0x3bc   :  { %19554 = vst [vmem:[#allocation48_spill] sm:$0xff] %v16161_v42  ;;  %v13273_v62 = vpop.f32.mrf.mxu0 }
 0x3bd   :  { %v1863_v28 = vadd.f32 %v16022_v39, %v1763_v53  ;;  %v2141_v41 = vsel %vm1955_vm6, %v1862_v9, %v2048_v21 }
 0x3be   :  { %v1636_v19 = vpop.f32.mrf.mxu0  ;;  %v16165_v20 = vpack.c.bf16 %v2141_v41, %v2139_v8 }
 0x3bf   :  { %vm1956_vm7 = vcmp.ge.f32.partialorder %v1863_v28, 0.0  ;;  %v2049_v2 = vmul.f32 0.1, %v1863_v28  ;;  %v1764_v27 = vadd.f32 %v1636_v19, %v19555_v5  ;;  %v19557_v19 = vld [vmem:[#allocation71_spill] sm:$0xff] }
 0x3c0   :  { %v13276_v29 = vpop.f32.mrf.mxu0 }
 0x3c1   :  { %v1864_v18 = vadd.f32 %v16022_v39, %v1764_v27  ;;  %v2142_v7 = vsel %vm1956_vm7, %v1863_v28, %v2049_v2 }
 0x3c2   :  { %v1639_v6 = vpop.f32.mrf.mxu0  ;;  %v16169_v52 = vpack.c.bf16 %v2142_v7, %v2140_v33 }
 0x3c3   :  { %vm1957_vm8 = vcmp.ge.f32.partialorder %v1864_v18, 0.0  ;;  %v2050_v45 = vmul.f32 0.1, %v1864_v18  ;;  %v1765_v23 = vadd.f32 %v1639_v6, %v15633_v11 }
 0x3c4   :  { %19556 = vst [vmem:[#allocation49_spill] sm:$0xff] %v16169_v52  ;;  %v13277_v53 = vpop.f32.mrf.mxu0 }
 0x3c5   :  { %v1865_v9 = vadd.f32 %v16022_v39, %v1765_v23  ;;  %v2143_v8 = vsel %vm1957_vm8, %v1864_v18, %v2050_v45 }
 0x3c6   :  { %v1644_v21 = vpop.f32.mrf.mxu0  ;;  %v2496_v62 = vpack.c.bf16 %v2143_v8, %v2141_v41 }
 0x3c7   :  { %vm1958_vm9 = vcmp.ge.f32.partialorder %v1865_v9, 0.0  ;;  %v2051_v42 = vmul.f32 0.1, %v1865_v9  ;;  %v1766_v5 = vadd.f32 %v1644_v21, %v19557_v19 }
 0x3c8   :  { %v13280_v29 = vpop.f32.mrf.mxu0  ;;  %13354 = vmatprep.mubr.bf16.mxu1 %v2496_v62  ;;  %13651 = vmatmul.mubr.bf16.gmra.mxu0 %v2496_v62  ;;  %v19559_v62 = vld [vmem:[#allocation72_spill] sm:$0xff] }
 0x3c9   :  { %v2144_v28 = vsel %vm1958_vm9, %v1865_v9, %v2051_v42  ;;  %v1866_v33 = vadd.f32 %v16022_v39, %v1766_v5 }
 0x3ca   :  { %v1647_v2 = vpop.f32.mrf.mxu0  ;;  %v16175_v27 = vpack.c.bf16 %v2144_v28, %v2142_v7 }
 0x3cb   :  { %vm1959_vm10 = vcmp.ge.f32.partialorder %v1866_v33, 0.0  ;;  %v2052_v11 = vmul.f32 0.1, %v1866_v33  ;;  %v1767_v6 = vadd.f32 %v1647_v2, %v15640_v30 }
 0x3cc   :  { %19558 = vst [vmem:[#allocation50_spill] sm:$0xff] %v16175_v27  ;;  %v13281_v18 = vpop.f32.mrf.mxu0 }
 0x3cd   :  { %v2145_v45 = vsel %vm1959_vm10, %v1866_v33, %v2052_v11  ;;  %v1867_v41 = vadd.f32 %v16022_v39, %v1767_v6 }
 0x3ce   :  { %v16179_v23 = vpack.c.bf16 %v2145_v45, %v2143_v8  ;;  %v1652_v53 = vpop.f32.mrf.mxu0 }
 0x3cf   :  { %vm1960_vm11 = vcmp.ge.f32.partialorder %v1867_v41, 0.0  ;;  %v2053_v21 = vmul.f32 0.1, %v1867_v41  ;;  %v1768_v42 = vadd.f32 %v1652_v53, %v19559_v62  ;;  %v19561_v53 = vld [vmem:[#allocation73_spill] sm:$0xff] }
 0x3d0   :  { %v13284_v9 = vpop.f32.mrf.mxu0 }
 0x3d1   :  { %v2146_v19 = vsel %vm1960_vm11, %v1867_v41, %v2053_v21  ;;  %v1868_v7 = vadd.f32 %v16022_v39, %v1768_v42  ;;  %v2438_v41 = vpack.c.bf16 %v15697_v16, %v19437_v26 }
 0x3d2   :  { %v1655_v5 = vpop.f32.mrf.mxu0  ;;  %v16183_v29 = vpack.c.bf16 %v2146_v19, %v2144_v28 }
 0x3d3   :  { %vm1961_vm12 = vcmp.ge.f32.partialorder %v1868_v7, 0.0  ;;  %v2054_v30 = vmul.f32 0.1, %v1868_v7  ;;  %v1769_v33 = vadd.f32 %v1655_v5, %v15647_v58 }
 0x3d4   :  { %19560 = vst [vmem:[#allocation51_spill] sm:$0xff] %v16183_v29  ;;  %v13285_v2 = vpop.f32.mrf.mxu0 }
 0x3d5   :  { %v2147_v11 = vsel %vm1961_vm12, %v1868_v7, %v2054_v30  ;;  %v1869_v8 = vadd.f32 %v16022_v39, %v1769_v33 }
 0x3d6   :  { %v1660_v6 = vpop.f32.mrf.mxu0  ;;  %v2497_v18 = vpack.c.bf16 %v2147_v11, %v2145_v45  ;;  %v19563_v45 = vld [vmem:[#allocation74_spill] sm:$0xff] }
 0x3d7   :  { %vm1962_vm13 = vcmp.ge.f32.partialorder %v1869_v8, 0.0  ;;  %v2055_v27 = vmul.f32 0.1, %v1869_v8  ;;  %v1770_v62 = vadd.f32 %v1660_v6, %v19561_v53  ;;  %v19564_v53 = vld [vmem:[#allocation75_spill] sm:$0xff] }
 0x3d8   :  { %v13288_v21 = vpop.f32.mrf.mxu0  ;;  %13355 = vmatmul.mubr.bf16.gmra.mxu1 %v2497_v18  ;;  %13654 = vmatprep.mubr.bf16.mxu0 %v2497_v18  ;;  %v13963_v18 = vld [vmem:[%s19259_s3 + $0xb0] sm:$0xff]  }
 0x3d9   :  { %v2148_v28 = vsel %vm1962_vm13, %v1869_v8, %v2055_v27  ;;  %v1870_v42 = vadd.f32 %v16022_v39, %v1770_v62  ;;  %13374 = vmatprep.mubr.bf16.mxu1 %v2438_v41 }
 0x3da   :  { %v1663_v58 = vpop.f32.mrf.mxu0  ;;  %v16191_v9 = vpack.c.bf16 %v2148_v28, %v2146_v19 }
 0x3db   :  { %vm1963_vm14 = vcmp.ge.f32.partialorder %v1870_v42, 0.0  ;;  %v2056_v7 = vmul.f32 0.1, %v1870_v42  ;;  %v1771_v5 = vadd.f32 %v1663_v58, %v19563_v45 }
 0x3dc   :  { %19562 = vst [vmem:[#allocation52_spill] sm:$0xff] %v16191_v9  ;;  %v13289_v30 = vpop.f32.mrf.mxu0 }
 0x3dd   :  { %v2149_v33 = vsel %vm1963_vm14, %v1870_v42, %v2056_v7  ;;  %v1871_v2 = vadd.f32 %v16022_v39, %v1771_v5 }
 0x3de   :  { %v1668_v6 = vpop.f32.mrf.mxu0  ;;  %v16198_v27 = vpack.c.bf16 %v2149_v33, %v2147_v11  ;;  %v13965_v11 = vld [vmem:[%s19259_s3 + $0xa8] sm:$0xff]  }
 0x3df   :  { %vm1964_vm15 = vcmp.ge.f32.partialorder %v1871_v2, 0.0  ;;  %v2057_v8 = vmul.f32 0.1, %v1871_v2  ;;  %v1772_v19 = vadd.f32 %v1668_v6, %v19564_v53 }
 0x3e0   :  { %v13292_v62 = vpop.f32.mrf.mxu0  ;;  %13375 = vmatmul.mubr.bf16.vlgmr.msra.gmra.mxu1 %v15719_v15 }
 0x3e1   :  { %v16202_v41 = vsel %vm1964_vm15, %v1871_v2, %v2057_v8  ;;  %v1872_v21 = vadd.f32 %v16022_v39, %v1772_v19  ;;  %13378 = vmatprep.mubr.bf16.mxu1 %v15755_v0  ;;  %13419 = vmatpush3.bf16.msra.mxu1 %v16080_v32 }
 0x3e2   :  { %19565 = vst [vmem:[#allocation53_spill] sm:$0xff] %v16202_v41  ;;  %v1671_v42 = vpop.f32.mrf.mxu0  ;;  %13420 = vmatprep.subr.bf16.mxu1 %v13963_v18  ;;  %v16211_v58 = vpack.c.bf16 %v16202_v41, %v2148_v28  ;;  %v13966_v28 = vld [vmem:[%s19259_s3 + $0xa0] sm:$0xff]  }
 0x3e3   :  { %vm1965_vm1 = vcmp.ge.f32.partialorder %v1872_v21, 0.0  ;;  %v2058_v7 = vmul.f32 0.1, %v1872_v21  ;;  %v1773_v45 = vadd.f32 %v1671_v42, %v15661_v37 }
 0x3e4   :  { %19566 = vst [vmem:[#allocation54_spill] sm:$0xff] %v16211_v58  ;;  %v13293_v5 = vpop.f32.mrf.mxu0 }
 0x3e5   :  { %v16214_v30 = vsel %vm1965_vm1, %v1872_v21, %v2058_v7  ;;  %v1873_v2 = vadd.f32 %v16022_v39, %v1773_v45  ;;  %13421 = vmatpush3.bf16.msra.mxu1 %v13963_v18  ;;  %v13967_v21 = vld [vmem:[%s19259_s3 + $0x98] sm:$0xff]   ;;  %v19568_v45 = vld [vmem:[#allocation16_spill] sm:$0xff] }
 0x3e6   :  { %v1676_v32 = vpop.f32.mrf.mxu0  ;;  %v4028_v6 = vpack.c.bf16 %v16214_v30, %v2149_v33  ;;  %13422 = vmatprep.subr.bf16.mxu1 %v13965_v11  ;;  %v19569_v5 = vld [vmem:[#allocation82_spill] sm:$0xff] }
 0x3e7   :  { %vm1966_vm2 = vcmp.ge.f32.partialorder %v1873_v2, 0.0  ;;  %v2059_v8 = vmul.f32 0.1, %v1873_v2  ;;  %v1774_v53 = vadd.f32 %v1676_v32, %v15666_v4  ;;  %v19571_v32 = vld [vmem:[#allocation14_spill] sm:$0xff] }
 0x3e8   :  { %v13296_v19 = vpop.f32.mrf.mxu0  ;;  %13379 = vmatmul.mubr.bf16.gmra.mxu1 %v15784_v61  ;;  %13655 = vmatmul.mubr.bf16.gmra.mxu0 %v4028_v6  ;;  %v13969_v6 = vld [vmem:[%s19259_s3 + $0x88] sm:$0xff]  }
 0x3e9   :  { %v16223_v37 = vsel %vm1966_vm2, %v1873_v2, %v2059_v8  ;;  %v1874_v18 = vadd.f32 %v16022_v39, %v1774_v53  ;;  %13382 = vmatprep.mubr.bf16.mxu1 %v15807_v40  ;;  %13734 = vmatprep.mubr.bf16.mxu0 %v15746_v3  ;;  %v19570_v2 = vld [vmem:[#allocation19_spill] sm:$0xff]  ;;  %v19572_v53 = vld [vmem:[#allocation22_spill] sm:$0xff]  ;;  %v19574_v19 = vld [vmem:[#allocation25_spill] sm:$0xff] }
 0x3ea   :  { %19567 = vst [vmem:[#allocation55_spill] sm:$0xff] %v16223_v37  ;;  %v1679_v33 = vpop.f32.mrf.mxu0  ;;  %13423 = vmatpush3.bf16.msra.mxu1 %v13965_v11  ;;  %v13968_v11 = vld [vmem:[%s19259_s3 + $0x90] sm:$0xff]   ;;  %v13970_v8 = vld [vmem:[%s19259_s3 + $0x80] sm:$0xff]  }
 0x3eb   :  { %vm1967_vm3 = vcmp.ge.f32.partialorder %v1874_v18, 0.0  ;;  %v2060_v62 = vmul.f32 0.1, %v1874_v18  ;;  %13424 = vmatprep.subr.bf16.mxu1 %v13966_v28  ;;  %v13971_v33 = vld [vmem:[%s19259_s3 + $0xf8] sm:$0xff]  }
 0x3ec   :  { %v13297_v42 = vpop.f32.mrf.mxu0 }
 0x3ed   :  { %v16233_v7 = vsel %vm1967_vm3, %v1874_v18, %v2060_v62  ;;  %v19575_v18 = vld [vmem:[#allocation20_spill] sm:$0xff]  ;;  %v19578_v42 = vld [vmem:[#allocation26_spill] sm:$0xff] }
 0x3ee   :  { %13425 = vmatpush3.bf16.msra.mxu1 %v13966_v28  ;;  %v19573_v28 = vld [vmem:[#allocation17_spill] sm:$0xff]  ;;  %v19576_v62 = vld [vmem:[#allocation28_spill] sm:$0xff] }
 0x3ef   :  { %13426 = vmatprep.subr.bf16.mxu1 %v13967_v21 }
 0x3f0   :  { %13383 = vmatmul.mubr.bf16.gmra.mxu1 %v19568_v45  ;;  %13735 = vmatmul.mubr.bf16.vlgmr.msra.gmra.mxu0 %v19569_v5 }
 0x3f1   :  { %13386 = vmatprep.mubr.bf16.mxu1 %v19570_v2  ;;  %13738 = vmatprep.mubr.bf16.mxu0 %v19571_v32 }
 0x3f2   :  { %13427 = vmatpush3.bf16.msra.mxu1 %v13967_v21  ;;  %v19577_v21 = vld [vmem:[#allocation23_spill] sm:$0xff] }
 0x3f3   :  { %13428 = vmatprep.subr.bf16.mxu1 %v13968_v11 }
 0x3f6   :  { %13429 = vmatpush3.bf16.msra.mxu1 %v13968_v11  ;;  %v19579_v11 = vld [vmem:[#allocation29_spill] sm:$0xff] }
 0x3f7   :  { %13430 = vmatprep.subr.bf16.mxu1 %v13969_v6 }
 0x3f8   :  { %13387 = vmatmul.mubr.bf16.gmra.mxu1 %v19572_v53  ;;  %13739 = vmatmul.mubr.bf16.gmra.mxu0 %v19573_v28 }
 0x3f9   :  { %13390 = vmatprep.mubr.bf16.mxu1 %v19574_v19  ;;  %13742 = vmatprep.mubr.bf16.mxu0 %v19575_v18 }
 0x3fa   :  { %13431 = vmatpush3.bf16.msra.mxu1 %v13969_v6  ;;  %v16265_v6 = vpop.f32.mrf.mxu1 }
 0x3fb   :  { %13432 = vmatprep.subr.bf16.mxu1 %v13970_v8 }
 0x3fe   :  { %13433 = vmatpush3.bf16.msra.mxu1 %v13970_v8  ;;  %v16267_v8 = vpop.f32.mrf.mxu1 }
 0x3ff   :  { %13478 = vmatprep.subr.bf16.mxu1 %v13971_v33 }
 0x400   :  { %13391 = vmatmul.mubr.bf16.gmra.mxu1 %v19576_v62  ;;  %13743 = vmatmul.mubr.bf16.gmra.mxu0 %v19577_v21  ;;  %v16273_v4 = vpop.f32.mrf.mxu1 }
 0x401   :  { %13394 = vmatprep.mubr.bf16.mxu1 %v15959_v46  ;;  %13746 = vmatprep.mubr.bf16.mxu0 %v19578_v42 }
 0x402   :  { %v16275_v39 = vpop.f32.mrf.mxu1 }
 0x404   :  { %v16281_v26 = vpop.f32.mrf.mxu1 }
 0x406   :  { %v16283_v41 = vpop.f32.mrf.mxu1 }
 0x408   :  { %13395 = vmatmul.mubr.bf16.gmra.mxu1 %v15985_v59  ;;  %13747 = vmatmul.mubr.bf16.gmra.mxu0 %v19579_v11  ;;  %v16289_v37 = vpop.f32.mrf.mxu1 }
 0x409   :  { %13398 = vmatprep.mubr.bf16.mxu1 %v16009_v13  ;;  %13750 = vmatprep.mubr.bf16.mxu0 %v15950_v22  ;;  %v19583_v13 = vld [vmem:[#allocation79_spill] sm:$0xff] }
 0x40a   :  { %v16291_v58 = vpop.f32.mrf.mxu1 }
 0x410   :  { %13399 = vmatmul.mubr.bf16.gmra.mxu1 %v16041_v56  ;;  %13751 = vmatmul.mubr.bf16.gmra.mxu0 %v15976_v47 }
 0x411   :  { %13402 = vmatprep.mubr.bf16.mxu1 %v16070_v50  ;;  %13754 = vmatprep.mubr.bf16.mxu0 %v16004_v14 }
 0x418   :  { %13403 = vmatmul.mubr.bf16.gmra.mxu1 %v16099_v36  ;;  %13755 = vmatmul.mubr.bf16.gmra.mxu0 %v16029_v51  ;;  %v16293_v36 = vpop.f32.mrf.mxu1 }
 0x419   :  { %13406 = vmatprep.mubr.bf16.mxu1 %v16113_v43  ;;  %13758 = vmatprep.mubr.bf16.mxu0 %v16063_v25 }
 0x420   :  { %13407 = vmatmul.mubr.bf16.gmra.mxu1 %v16127_v24  ;;  %13759 = vmatmul.mubr.bf16.gmra.mxu0 %v16095_v17  ;;  %v16299_v24 = vpop.f32.mrf.mxu1 }
 0x421   :  { %13410 = vmatprep.mubr.bf16.mxu1 %v16141_v57  ;;  %13762 = vmatprep.mubr.bf16.mxu0 %v16109_v55  ;;  %v19581_v57 = vld [vmem:[#allocation77_spill] sm:$0xff] }
 0x422   :  { %v16301_v43 = vpop.f32.mrf.mxu1  ;;  %v19582_v50 = vpack.c.bf16 %v19581_v57, %v15697_v16  ;;  %v13973_v16 = vld [vmem:[%s19259_s3 + $0xe8] sm:$0xff]   ;;  %v13974_v57 = vld [vmem:[%s19259_s3 + $0xe0] sm:$0xff]  }
 0x423   :  { %19580 = vst [vmem:[#allocation56_spill] sm:$0xff] %v16301_v43 }
 0x428   :  { %13411 = vmatmul.mubr.bf16.gmra.mxu1 %v16155_v48  ;;  %13763 = vmatmul.mubr.bf16.gmra.mxu0 %v16123_v38  ;;  %v16309_v48 = vpop.f32.mrf.mxu1 }
 0x429   :  { %13414 = vmatprep.mubr.bf16.mxu1 %v16169_v52  ;;  %13766 = vmatprep.mubr.bf16.mxu0 %v16137_v31  ;;  %v13972_v52 = vld [vmem:[%s19259_s3 + $0xf0] sm:$0xff]  }
 0x42a   :  { %v16311_v56 = vpop.f32.mrf.mxu1 }
 0x42c   :  { %v16319_v43 = vpop.f32.mrf.mxu1 }
 0x42d   :  { %19585 = vst [vmem:[#allocation57_spill] sm:$0xff] %v16319_v43 }
 0x430   :  { %13415 = vmatmul.mubr.bf16.gmra.mxu1 %v16183_v29  ;;  %13767 = vmatmul.mubr.bf16.gmra.mxu0 %v16151_v49  ;;  %v19584_v29 = vld [vmem:[#allocation81_spill] sm:$0xff] }
 0x431   :  { %13434 = vmatprep.mubr.bf16.mxu1 %v19582_v50  ;;  %13770 = vmatprep.mubr.bf16.mxu0 %v16165_v20  ;;  %v16325_v50 = vpop.f32.mrf.mxu1 }
 0x432   :  { %19586 = vst [vmem:[#allocation58_spill] sm:$0xff] %v16325_v50 }
 0x433   :  { %v16335_v43 = vpop.f32.mrf.mxu1 }
 0x435   :  { %v16340_v50 = vpop.f32.mrf.mxu1 }
 0x436   :  { %19590 = vst [vmem:[#allocation59_spill] sm:$0xff] %v16340_v50 }
 0x438   :  { %13435 = vmatmul.mubr.bf16.vlgmr.msra.gmra.mxu1 %v19583_v13  ;;  %13771 = vmatmul.mubr.bf16.gmra.mxu0 %v16179_v23  ;;  %v19587_v13 = vld [vmem:[#allocation12_spill] sm:$0xff] }
 0x439   :  { %13438 = vmatprep.mubr.bf16.mxu1 %v19584_v29  ;;  %13479 = vmatpush3.bf16.msra.mxu1 %v13971_v33  ;;  %v19588_v33 = vpack.c.bf16 %v16233_v7, %v16214_v30  ;;  %v19589_v29 = vld [vmem:[#allocation15_spill] sm:$0xff]  ;;  %v16345_v30 = vpop.f32.mrf.mxu1  ;;  %v19592_v7 = vld [vmem:[#allocation18_spill] sm:$0xff] }
 0x43a   :  { %13774 = vmatprep.mubr.bf16.mxu0 %v16198_v27  ;;  %13480 = vmatprep.subr.bf16.mxu1 %v13972_v52  ;;  %19591 = vst [vmem:[#allocation60_spill] sm:$0xff] %v16345_v30  ;;  %v19595_v30 = vld [vmem:[#allocation24_spill] sm:$0xff] }
 0x43d   :  { %13481 = vmatpush3.bf16.msra.mxu1 %v13972_v52  ;;  %v13975_v52 = vld [vmem:[%s19259_s3 + $0xd8] sm:$0xff]  }
 0x43e   :  { %13482 = vmatprep.subr.bf16.mxu1 %v13973_v16 }
 0x440   :  { %13439 = vmatmul.mubr.bf16.gmra.mxu1 %v19587_v13  ;;  %13775 = vmatmul.mubr.bf16.gmra.mxu0 %v19588_v33  ;;  %v13976_v13 = vld [vmem:[%s19259_s3 + $0xd0] sm:$0xff]   ;;  %v13977_v33 = vld [vmem:[%s19259_s3 + $0xc8] sm:$0xff]  }
 0x441   :  { %13442 = vmatprep.mubr.bf16.mxu1 %v19589_v29  ;;  %13483 = vmatpush3.bf16.msra.mxu1 %v13973_v16  ;;  %v19593_v16 = vld [vmem:[#allocation21_spill] sm:$0xff]  ;;  %v16352_v29 = vpop.f32.mrf.mxu1 }
 0x442   :  { %13484 = vmatprep.subr.bf16.mxu1 %v13974_v57 }
 0x443   :  { %v16357_v50 = vpop.f32.mrf.mxu1 }
 0x444   :  { %19594 = vst [vmem:[#allocation61_spill] sm:$0xff] %v16357_v50 }
 0x445   :  { %13485 = vmatpush3.bf16.msra.mxu1 %v13974_v57  ;;  %v13978_v57 = vld [vmem:[%s19259_s3 + $0xc0] sm:$0xff]  }
 0x446   :  { %13486 = vmatprep.subr.bf16.mxu1 %v13975_v52 }
 0x448   :  { %13443 = vmatmul.mubr.bf16.gmra.mxu1 %v19592_v7  ;;  %v19596_v7 = vld [vmem:[#allocation27_spill] sm:$0xff] }
 0x449   :  { %13446 = vmatprep.mubr.bf16.mxu1 %v19593_v16  ;;  %13487 = vmatpush3.bf16.msra.mxu1 %v13975_v52  ;;  %v16361_v52 = vpop.f32.mrf.mxu1  ;;  %v13979_v16 = vld [vmem:[%s19259_s3 + $0x138] sm:$0xff]  }
 0x44a   :  { %13488 = vmatprep.subr.bf16.mxu1 %v13976_v13 }
 0x44d   :  { %13489 = vmatpush3.bf16.msra.mxu1 %v13976_v13  ;;  %v16366_v13 = vpop.f32.mrf.mxu1 }
 0x44e   :  { %13490 = vmatprep.subr.bf16.mxu1 %v13977_v33 }
 0x44f   :  { %v16370_v50 = vpop.f32.mrf.mxu1 }
 0x450   :  { %13447 = vmatmul.mubr.bf16.gmra.mxu1 %v19595_v30 }
 0x451   :  { %13450 = vmatprep.mubr.bf16.mxu1 %v19596_v7  ;;  %13491 = vmatpush3.bf16.msra.mxu1 %v13977_v33  ;;  %v16372_v30 = vpop.f32.mrf.mxu1 }
 0x452   :  { %13492 = vmatprep.subr.bf16.mxu1 %v13978_v57  ;;  %19597 = vst [vmem:[#allocation62_spill] sm:$0xff] %v16372_v30 }
 0x453   :  { %v16374_v33 = vpop.f32.mrf.mxu1 }
 0x454   :  { %19598 = vst [vmem:[#allocation63_spill] sm:$0xff] %v16374_v33 }
 0x455   :  { %13493 = vmatpush3.bf16.msra.mxu1 %v13978_v57  ;;  %v16378_v7 = vpop.f32.mrf.mxu1 }
 0x456   :  { %13538 = vmatprep.subr.bf16.mxu1 %v13979_v16  ;;  %19599 = vst [vmem:[#allocation64_spill] sm:$0xff] %v16378_v7 }
 0x457   :  { %v16380_v57 = vpop.f32.mrf.mxu1 }
 0x458   :  { %13451 = vmatmul.mubr.bf16.gmra.mxu1 %v15946_v12  ;;  %19600 = vst [vmem:[#allocation65_spill] sm:$0xff] %v16380_v57 }
 0x459   :  { %13454 = vmatprep.mubr.bf16.mxu1 %v15972_v54  ;;  %v16384_v12 = vpop.f32.mrf.mxu1 }
 0x45a   :  { %19601 = vst [vmem:[#allocation66_spill] sm:$0xff] %v16384_v12  ;;  %v19609_v12 = vld [vmem:[#allocation48_spill] sm:$0xff] }
 0x45b   :  { %v16386_v54 = vpop.f32.mrf.mxu1 }
 0x45c   :  { %19602 = vst [vmem:[#allocation67_spill] sm:$0xff] %v16386_v54  ;;  %v19610_v54 = vld [vmem:[#allocation50_spill] sm:$0xff] }
 0x45d   :  { %v16390_v33 = vpop.f32.mrf.mxu1 }
 0x45e   :  { %19603 = vst [vmem:[#allocation68_spill] sm:$0xff] %v16390_v33 }
 0x460   :  { %13455 = vmatmul.mubr.bf16.gmra.mxu1 %v15999_v35  ;;  %v16392_v35 = vpop.f32.mrf.mxu1 }
 0x461   :  { %13458 = vmatprep.mubr.bf16.mxu1 %v16025_v34  ;;  %19604 = vst [vmem:[#allocation69_spill] sm:$0xff] %v16392_v35  ;;  %v19605_v34 = vld [vmem:[#allocation47_spill] sm:$0xff]  ;;  %v19613_v35 = vld [vmem:[#allocation78_spill] sm:$0xff] }
 0x462   :  { %v16396_v57 = vpop.f32.mrf.mxu1 }
 0x463   :  { %19606 = vst [vmem:[#allocation70_spill] sm:$0xff] %v16396_v57 }
 0x468   :  { %13459 = vmatmul.mubr.bf16.gmra.mxu1 %v16056_v60  ;;  %v16398_v60 = vpop.f32.mrf.mxu1 }
 0x469   :  { %13462 = vmatprep.mubr.bf16.mxu1 %v16088_v63  ;;  %19607 = vst [vmem:[#allocation71_spill] sm:$0xff] %v16398_v60 }
 0x46a   :  { %v16400_v63 = vpop.f32.mrf.mxu1 }
 0x46b   :  { %19608 = vst [vmem:[#allocation72_spill] sm:$0xff] %v16400_v63 }
 0x470   :  { %13463 = vmatmul.mubr.bf16.gmra.mxu1 %v16105_v10  ;;  %v16404_v10 = vpop.f32.mrf.mxu1 }
 0x471   :  { %13466 = vmatprep.mubr.bf16.mxu1 %v16119_v1  ;;  %19611 = vst [vmem:[#allocation73_spill] sm:$0xff] %v16404_v10 }
 0x472   :  { %v16406_v1 = vpop.f32.mrf.mxu1 }
 0x473   :  { %19612 = vst [vmem:[#allocation74_spill] sm:$0xff] %v16406_v1 }
 0x478   :  { %13467 = vmatmul.mubr.bf16.gmra.mxu1 %v16133_v44  ;;  %v19614_v44 = vld [vmem:[#allocation76_spill] sm:$0xff] }
 0x479   :  { %13470 = vmatprep.mubr.bf16.mxu1 %v19605_v34  ;;  %v19615_v33 = vpack.c.bf16 %v19613_v35, %v19614_v44  ;;  %v16412_v34 = vpop.f32.mrf.mxu1  ;;  %v13981_v35 = vld [vmem:[%s19259_s3 + $0x128] sm:$0xff]  }
 0x47a   :  { %19616 = vst [vmem:[#allocation75_spill] sm:$0xff] %v16412_v34 }
 0x47b   :  { %v16414_v57 = vpop.f32.mrf.mxu1 }
 0x47c   :  { %19617 = vst [vmem:[#allocation82_spill] sm:$0xff] %v16414_v57 }
 0x480   :  { %13471 = vmatmul.mubr.bf16.gmra.mxu1 %v19609_v12  ;;  %v13980_v12 = vld [vmem:[%s19259_s3 + $0x130] sm:$0xff]  }
 0x481   :  { %13474 = vmatprep.mubr.bf16.mxu1 %v19610_v54  ;;  %v16421_v54 = vpop.f32.mrf.mxu1 }
 0x482   :  { %19618 = vst [vmem:[#allocation14_spill] sm:$0xff] %v16421_v54 }
 0x483   :  { %v16426_v44 = vpop.f32.mrf.mxu1 }
 0x484   :  { %19619 = vst [vmem:[#allocation17_spill] sm:$0xff] %v16426_v44 }
 0x488   :  { %13475 = vmatmul.mubr.bf16.gmra.mxu1 %v16191_v9 }
 0x489   :  { %13494 = vmatprep.mubr.bf16.mxu1 %v19615_v33  ;;  %v13982_v33 = vld [vmem:[%s19259_s3 + $0x120] sm:$0xff]  }
 0x490   :  { %13495 = vmatmul.mubr.bf16.vlgmr.msra.gmra.mxu1 %v15746_v3 }
 0x491   :  { %13498 = vmatprep.mubr.bf16.mxu1 %v19569_v5  ;;  %13539 = vmatpush3.bf16.msra.mxu1 %v13979_v16 }
 0x492   :  { %13540 = vmatprep.subr.bf16.mxu1 %v13980_v12 }
 0x495   :  { %13541 = vmatpush3.bf16.msra.mxu1 %v13980_v12  ;;  %v13983_v12 = vld [vmem:[%s19259_s3 + $0x118] sm:$0xff]  }
 0x496   :  { %13542 = vmatprep.subr.bf16.mxu1 %v13981_v35 }
 0x498   :  { %v16431_v9 = vpop.f32.mrf.mxu1  ;;  %13499 = vmatmul.mubr.bf16.gmra.mxu1 %v19571_v32  ;;  %v13984_v32 = vld [vmem:[%s19259_s3 + $0x110] sm:$0xff]  }
 0x499   :  { %19620 = vst [vmem:[#allocation25_spill] sm:$0xff] %v16431_v9  ;;  %13502 = vmatprep.mubr.bf16.mxu1 %v19573_v28  ;;  %13543 = vmatpush3.bf16.msra.mxu1 %v13981_v35  ;;  %v13985_v35 = vld [vmem:[%s19259_s3 + $0x108] sm:$0xff]  }
 0x49a   :  { %v16435_v3 = vpop.f32.mrf.mxu1  ;;  %13544 = vmatprep.subr.bf16.mxu1 %v13982_v33 }
 0x49b   :  { %19621 = vst [vmem:[#allocation20_spill] sm:$0xff] %v16435_v3 }
 0x49c   :  { %v16440_v5 = vpop.f32.mrf.mxu1 }
 0x49d   :  { %19622 = vst [vmem:[#allocation28_spill] sm:$0xff] %v16440_v5  ;;  %13545 = vmatpush3.bf16.msra.mxu1 %v13982_v33 }
 0x49e   :  { %v16442_v16 = vpop.f32.mrf.mxu1  ;;  %13546 = vmatprep.subr.bf16.mxu1 %v13983_v12 }
 0x49f   :  { %19623 = vst [vmem:[#allocation23_spill] sm:$0xff] %v16442_v16 }
 0x4a0   :  { %v16447_v9 = vpop.f32.mrf.mxu1  ;;  %13503 = vmatmul.mubr.bf16.gmra.mxu1 %v19575_v18  ;;  %v13986_v18 = vld [vmem:[%s19259_s3 + $0x100] sm:$0xff]  }
 0x4a1   :  { %13506 = vmatprep.mubr.bf16.mxu1 %v19577_v21  ;;  %13547 = vmatpush3.bf16.msra.mxu1 %v13983_v12  ;;  %v13987_v12 = vld [vmem:[%s19259_s3 + $0x1b8] sm:$0xff]  }
 0x4a2   :  { %v16451_v28 = vpop.f32.mrf.mxu1  ;;  %13548 = vmatprep.subr.bf16.mxu1 %v13984_v32 }
 0x4a4   :  { %v16456_v33 = vpop.f32.mrf.mxu1 }
 0x4a5   :  { %13549 = vmatpush3.bf16.msra.mxu1 %v13984_v32 }
 0x4a6   :  { %v16458_v16 = vpop.f32.mrf.mxu1  ;;  %13550 = vmatprep.subr.bf16.mxu1 %v13985_v35 }
 0x4a8   :  { %v16463_v5 = vpop.f32.mrf.mxu1  ;;  %13507 = vmatmul.mubr.bf16.gmra.mxu1 %v19578_v42 }
 0x4a9   :  { %13510 = vmatprep.mubr.bf16.mxu1 %v19579_v11  ;;  %13551 = vmatpush3.bf16.msra.mxu1 %v13985_v35 }
 0x4aa   :  { %v16467_v21 = vpop.f32.mrf.mxu1  ;;  %13552 = vmatprep.subr.bf16.mxu1 %v13986_v18 }
 0x4ac   :  { %v16472_v32 = vpop.f32.mrf.mxu1 }
 0x4ad   :  { %13553 = vmatpush3.bf16.msra.mxu1 %v13986_v18 }
 0x4ae   :  { %v16474_v3 = vpop.f32.mrf.mxu1  ;;  %13658 = vmatprep.subr.bf16.mxu1 %v13987_v12 }
 0x4b0   :  { %v16476_v44 = vpop.f32.mrf.mxu1  ;;  %13511 = vmatmul.mubr.bf16.gmra.mxu1 %v15950_v22 }
 0x4b1   :  { %13514 = vmatprep.mubr.bf16.mxu1 %v15976_v47 }
 0x4b2   :  { %v16480_v42 = vpop.f32.mrf.mxu1 }
 0x4b4   :  { %v16482_v11 = vpop.f32.mrf.mxu1 }
 0x4b6   :  { %v16484_v35 = vpop.f32.mrf.mxu1 }
 0x4b8   :  { %v16486_v54 = vpop.f32.mrf.mxu1  ;;  %13515 = vmatmul.mubr.bf16.gmra.mxu1 %v16004_v14 }
 0x4b9   :  { %13518 = vmatprep.mubr.bf16.mxu1 %v16029_v51 }
 0x4ba   :  { %v16490_v18 = vpop.f32.mrf.mxu1 }
 0x4bc   :  { %v16492_v57 = vpop.f32.mrf.mxu1 }
 0x4be   :  { %v16494_v34 = vpop.f32.mrf.mxu1 }
 0x4c0   :  { %v16496_v22 = vpop.f32.mrf.mxu1  ;;  %13519 = vmatmul.mubr.bf16.gmra.mxu1 %v16063_v25 }
 0x4c1   :  { %13522 = vmatprep.mubr.bf16.mxu1 %v16095_v17 }
 0x4c2   :  { %v16500_v47 = vpop.f32.mrf.mxu1 }
 0x4c4   :  { %v16502_v1 = vpop.f32.mrf.mxu1 }
 0x4c6   :  { %v16504_v10 = vpop.f32.mrf.mxu1 }
 0x4c8   :  { %v16506_v14 = vpop.f32.mrf.mxu1  ;;  %13523 = vmatmul.mubr.bf16.gmra.mxu1 %v16109_v55 }
 0x4c9   :  { %13526 = vmatprep.mubr.bf16.mxu1 %v16123_v38 }
 0x4ca   :  { %v16510_v51 = vpop.f32.mrf.mxu1 }
 0x4cc   :  { %v16512_v63 = vpop.f32.mrf.mxu1 }
 0x4ce   :  { %v16514_v60 = vpop.f32.mrf.mxu1 }
 0x4cf   :  { %19624 = vst [vmem:[#allocation26_spill] sm:$0xff] %v16514_v60 }
 0x4d0   :  { %v16516_v25 = vpop.f32.mrf.mxu1  ;;  %13527 = vmatmul.mubr.bf16.gmra.mxu1 %v16137_v31 }
 0x4d1   :  { %19625 = vst [vmem:[#allocation29_spill] sm:$0xff] %v16516_v25  ;;  %13530 = vmatprep.mubr.bf16.mxu1 %v16151_v49 }
 0x4d2   :  { %v16520_v17 = vpop.f32.mrf.mxu1 }
 0x4d4   :  { %v16522_v7 = vpop.f32.mrf.mxu1 }
 0x4d6   :  { %v16524_v30 = vpop.f32.mrf.mxu1 }
 0x4d7   :  { %19626 = vst [vmem:[#allocation77_spill] sm:$0xff] %v16524_v30 }
 0x4d8   :  { %v16526_v55 = vpop.f32.mrf.mxu1  ;;  %13531 = vmatmul.mubr.bf16.gmra.mxu1 %v16165_v20  ;;  %v13988_v20 = vld [vmem:[%s19259_s3 + $0x1b0] sm:$0xff]  }
 0x4d9   :  { %19627 = vst [vmem:[#allocation78_spill] sm:$0xff] %v16526_v55  ;;  %13534 = vmatprep.mubr.bf16.mxu1 %v16179_v23 }
 0x4da   :  { %v16530_v38 = vpop.f32.mrf.mxu1 }
 0x4dc   :  { %v16532_v60 = vpop.f32.mrf.mxu1 }
 0x4de   :  { %v16534_v25 = vpop.f32.mrf.mxu1 }
 0x4e0   :  { %v16536_v31 = vpop.f32.mrf.mxu1  ;;  %13535 = vmatmul.mubr.bf16.gmra.mxu1 %v16198_v27 }
 0x4e1   :  { %13554 = vmatprep.mubr.bf16.mxu1 %v15719_v15  ;;  %v13989_v15 = vld [vmem:[%s19259_s3 + $0x1a8] sm:$0xff]  }
 0x4e2   :  { %v16540_v49 = vpop.f32.mrf.mxu1 }
 0x4e4   :  { %v16542_v30 = vpop.f32.mrf.mxu1 }
 0x4e5   :  { %19628 = vst [vmem:[#allocation76_spill] sm:$0xff] %v16542_v30 }
 0x4e6   :  { %v16544_v55 = vpop.f32.mrf.mxu1 }
 0x4e7   :  { %19629 = vst [vmem:[#allocation83_spill] sm:$0xff] %v16544_v55 }
 0x4e8   :  { %v16549_v23 = vpop.f32.mrf.mxu1  ;;  %13555 = vmatmul.mubr.bf16.vlgmr.msra.gmra.mxu1 %v15755_v0  ;;  %v13990_v0 = vld [vmem:[%s19259_s3 + $0x1a0] sm:$0xff]  }
 0x4e9   :  { %19630 = vst [vmem:[#allocation84_spill] sm:$0xff] %v16549_v23  ;;  %13558 = vmatprep.mubr.bf16.mxu1 %v15784_v61  ;;  %13659 = vmatpush3.bf16.msra.mxu1 %v13987_v12 }
 0x4ea   :  { %v16553_v27 = vpop.f32.mrf.mxu1  ;;  %13660 = vmatprep.subr.bf16.mxu1 %v13988_v20 }
 0x4ec   :  { %v16558_v30 = vpop.f32.mrf.mxu1 }
 0x4ed   :  { %13661 = vmatpush3.bf16.msra.mxu1 %v13988_v20  ;;  %v13991_v20 = vld [vmem:[%s19259_s3 + $0x198] sm:$0xff]  }
 0x4ee   :  { %v16560_v55 = vpop.f32.mrf.mxu1  ;;  %13662 = vmatprep.subr.bf16.mxu1 %v13989_v15 }
 0x4ef   :  { %19631 = vst [vmem:[#allocation85_spill] sm:$0xff] %v16560_v55 }
 0x4f0   :  { %v16565_v23 = vpop.f32.mrf.mxu1  ;;  %13559 = vmatmul.mubr.bf16.gmra.mxu1 %v15807_v40  ;;  %v13992_v40 = vld [vmem:[%s19259_s3 + $0x190] sm:$0xff]  }
 0x4f1   :  { %19632 = vst [vmem:[#allocation86_spill] sm:$0xff] %v16565_v23  ;;  %13562 = vmatprep.mubr.bf16.mxu1 %v19568_v45  ;;  %13663 = vmatpush3.bf16.msra.mxu1 %v13989_v15  ;;  %v2863_v15 = vadd.f32 %v16447_v9, %v16265_v6  ;;  %v2866_v9 = vadd.f32 %v16456_v33, %v16273_v4 }
 0x4f2   :  { %v16569_v12 = vpop.f32.mrf.mxu1  ;;  %13664 = vmatprep.subr.bf16.mxu1 %v13990_v0 }
 0x4f3   :  { %19633 = vst [vmem:[#allocation87_spill] sm:$0xff] %v16569_v12  ;;  %v2855_v12 = vadd.f32 %v16451_v28, %v16267_v8  ;;  %v2858_v8 = vadd.f32 %v16458_v16, %v16275_v39  ;;  %v2871_v39 = vadd.f32 %v16467_v21, %v16283_v41  ;;  %v16616_v16 = vld [vmem:[%s19259_s3 + $0x238] sm:$0xff]   ;;  %v2874_v41 = vadd.f32 %v16474_v3, %v16291_v58  ;;  %v19635_v3 = vld [vmem:[#allocation56_spill] sm:$0xff] }
 0x4f4   :  { %v16574_v61 = vpop.f32.mrf.mxu1 }
 0x4f5   :  { %13665 = vmatpush3.bf16.msra.mxu1 %v13990_v0 }
 0x4f6   :  { %v16576_v55 = vpop.f32.mrf.mxu1  ;;  %13666 = vmatprep.subr.bf16.mxu1 %v13991_v20 }
 0x4f7   :  { %19634 = vst [vmem:[#allocation88_spill] sm:$0xff] %v16576_v55  ;;  %v13993_v55 = vld [vmem:[%s19259_s3 + $0x188] sm:$0xff]  }
 0x4f8   :  { %v13436_v45 = vpop.f32.mrf.mxu1  ;;  %13563 = vmatmul.mubr.bf16.gmra.mxu1 %v19570_v2 }
 0x4f9   :  { %v16586_v23 = vadd.f32 %v13436_v45, %v2863_v15  ;;  %13566 = vmatprep.mubr.bf16.mxu1 %v19572_v53  ;;  %13667 = vmatpush3.bf16.msra.mxu1 %v13991_v20  ;;  %v13994_v20 = vld [vmem:[%s19259_s3 + $0x180] sm:$0xff]   ;;  %v2879_v15 = vadd.f32 %v16463_v5, %v16281_v26  ;;  %v2882_v26 = vadd.f32 %v16472_v32, %v16289_v37 }
 0x4fa   :  { %v3150_v0 = vpop.f32.mrf.mxu1  ;;  %13668 = vmatprep.subr.bf16.mxu1 %v13992_v40  ;;  %v2887_v37 = vadd.f32 %v16480_v42, %v16299_v24  ;;  %v2911_v24 = vadd.f32 %v16486_v54, %v16311_v56  ;;  %v2906_v54 = vadd.f32 %v16494_v34, %v16335_v43  ;;  %v2930_v34 = vadd.f32 %v16502_v1, %v16352_v29 }
 0x4fb   :  { %v16594_v6 = vadd.f32 %v3150_v0, %v2855_v12  ;;  %v2895_v12 = vadd.f32 %v16476_v44, %v16293_v36  ;;  %v2890_v36 = vadd.f32 %v16484_v35, %v16309_v48  ;;  %v19639_v48 = vld [vmem:[#allocation58_spill] sm:$0xff]  ;;  %v2935_v1 = vadd.f32 %v16510_v51, %v16366_v13 }
 0x4fc   :  { %v13437_v2 = vpop.f32.mrf.mxu1  ;;  %v2914_v35 = vadd.f32 %v16492_v57, %v19639_v48 }
 0x4fd   :  { %v16598_v45 = vadd.f32 %v13437_v2, %v2866_v9  ;;  %13669 = vmatpush3.bf16.msra.mxu1 %v13992_v40 }
 0x4fe   :  { %v3153_v28 = vpop.f32.mrf.mxu1  ;;  %13670 = vmatprep.subr.bf16.mxu1 %v13993_v55 }
 0x4ff   :  { %v16605_v53 = vadd.f32 %v3153_v28, %v2858_v8  ;;  %v2898_v8 = vadd.f32 %v16482_v11, %v19635_v3 }
 0x500   :  { %v13440_v4 = vpop.f32.mrf.mxu1  ;;  %13567 = vmatmul.mubr.bf16.gmra.mxu1 %v19574_v19 }
 0x501   :  { %v16610_v2 = vadd.f32 %v13440_v4, %v2879_v15  ;;  %13570 = vmatprep.mubr.bf16.mxu1 %v19576_v62  ;;  %13671 = vmatpush3.bf16.msra.mxu1 %v13993_v55 }
 0x502   :  { %v3166_v40 = vpop.f32.mrf.mxu1  ;;  %13672 = vmatprep.subr.bf16.mxu1 %v13994_v20 }
 0x503   :  { %v16620_v5 = vadd.f32 %v3166_v40, %v2871_v39  ;;  %v19636_v39 = vld [vmem:[#allocation33_spill] sm:$0xff] }
 0x504   :  { %v13441_v33 = vpop.f32.mrf.mxu1  ;;  %v19637_v40 = vld [vmem:[#allocation57_spill] sm:$0xff] }
 0x505   :  { %v16624_v21 = vadd.f32 %v13441_v33, %v2882_v26  ;;  %13673 = vmatpush3.bf16.msra.mxu1 %v13994_v20  ;;  %v2903_v11 = vadd.f32 %v16490_v18, %v19637_v40  ;;  %v19638_v33 = vld [vmem:[#allocation34_spill] sm:$0xff] }
 0x506   :  { %v3169_v55 = vpop.f32.mrf.mxu1  ;;  %13778 = vmatprep.subr.bf16.mxu1 %v16616_v16 }
 0x507   :  { %v16629_v0 = vadd.f32 %v3169_v55, %v2874_v41 }
 0x508   :  { %v13444_v9 = vpop.f32.mrf.mxu1  ;;  %13571 = vmatmul.mubr.bf16.gmra.mxu1 %v15959_v46 }
 0x509   :  { %v16634_v32 = vadd.f32 %v13444_v9, %v2895_v12  ;;  %13574 = vmatprep.mubr.bf16.mxu1 %v15985_v59 }
 0x50a   :  { %v3182_v58 = vpop.f32.mrf.mxu1 }
 0x50b   :  { %v16639_v28 = vadd.f32 %v3182_v58, %v2887_v37  ;;  %v19640_v37 = vld [vmem:[#allocation59_spill] sm:$0xff] }
 0x50c   :  { %v13445_v20 = vpop.f32.mrf.mxu1  ;;  %v2927_v18 = vadd.f32 %v16496_v22, %v19640_v37  ;;  %v19644_v22 = vld [vmem:[#allocation61_spill] sm:$0xff] }
 0x50d   :  { %v16643_v44 = vadd.f32 %v13445_v20, %v2898_v8  ;;  %v19641_v8 = vld [vmem:[#allocation38_spill] sm:$0xff]  ;;  %v19642_v20 = vld [vmem:[#allocation60_spill] sm:$0xff]  ;;  %v2922_v40 = vadd.f32 %v16504_v10, %v19644_v22  ;;  %v2946_v10 = vadd.f32 %v16512_v63, %v16370_v50  ;;  %v19651_v22 = vld [vmem:[#allocation45_spill] sm:$0xff] }
 0x50e   :  { %v3185_v15 = vpop.f32.mrf.mxu1  ;;  %v2919_v57 = vadd.f32 %v16500_v47, %v19642_v20  ;;  %v2943_v47 = vadd.f32 %v16506_v14, %v16361_v52  ;;  %v19647_v52 = vld [vmem:[#allocation62_spill] sm:$0xff] }
 0x50f   :  { %v16647_v42 = vadd.f32 %v3185_v15, %v2890_v36  ;;  %v19643_v15 = vld [vmem:[#allocation39_spill] sm:$0xff]  ;;  %v19648_v14 = vld [vmem:[#allocation26_spill] sm:$0xff] }
 0x510   :  { %v13448_v4 = vpop.f32.mrf.mxu1  ;;  %13575 = vmatmul.mubr.bf16.gmra.mxu1 %v19636_v39 }
 0x511   :  { %v16652_v26 = vadd.f32 %v13448_v4, %v2911_v24  ;;  %13578 = vmatprep.mubr.bf16.mxu1 %v19638_v33 }
 0x512   :  { %v3198_v41 = vpop.f32.mrf.mxu1 }
 0x513   :  { %v16657_v55 = vadd.f32 %v3198_v41, %v2903_v11 }
 0x514   :  { %v13449_v12 = vpop.f32.mrf.mxu1 }
 0x515   :  { %v16661_v56 = vadd.f32 %v13449_v12, %v2914_v35  ;;  %v19645_v12 = vld [vmem:[#allocation40_spill] sm:$0xff] }
 0x516   :  { %v3201_v9 = vpop.f32.mrf.mxu1 }
 0x517   :  { %v16665_v58 = vadd.f32 %v3201_v9, %v2906_v54  ;;  %v19646_v54 = vld [vmem:[#allocation44_spill] sm:$0xff] }
 0x518   :  { %v13452_v3 = vpop.f32.mrf.mxu1  ;;  %13579 = vmatmul.mubr.bf16.gmra.mxu1 %v19641_v8 }
 0x519   :  { %v16670_v36 = vadd.f32 %v13452_v3, %v2927_v18  ;;  %13582 = vmatprep.mubr.bf16.mxu1 %v19643_v15  ;;  %v2938_v3 = vadd.f32 %v19648_v14, %v19647_v52  ;;  %v19656_v52 = vld [vmem:[#allocation77_spill] sm:$0xff] }
 0x51a   :  { %v3214_v24 = vpop.f32.mrf.mxu1 }
 0x51b   :  { %v16675_v43 = vadd.f32 %v3214_v24, %v2919_v57  ;;  %v19649_v24 = vld [vmem:[#allocation63_spill] sm:$0xff] }
 0x51c   :  { %v13453_v4 = vpop.f32.mrf.mxu1 }
 0x51d   :  { %v16679_v11 = vadd.f32 %v13453_v4, %v2930_v34  ;;  %v19650_v34 = vld [vmem:[#allocation29_spill] sm:$0xff] }
 0x51e   :  { %v3217_v41 = vpop.f32.mrf.mxu1  ;;  %v2959_v13 = vadd.f32 %v19650_v34, %v19649_v24  ;;  %v19657_v24 = vld [vmem:[#allocation67_spill] sm:$0xff]  ;;  %v19658_v34 = vld [vmem:[#allocation78_spill] sm:$0xff] }
 0x51f   :  { %v16683_v48 = vadd.f32 %v3217_v41, %v2922_v40  ;;  %v19652_v40 = vld [vmem:[#allocation64_spill] sm:$0xff]  ;;  %v19653_v41 = vld [vmem:[#allocation46_spill] sm:$0xff] }
 0x520   :  { %v13456_v35 = vpop.f32.mrf.mxu1  ;;  %13583 = vmatmul.mubr.bf16.gmra.mxu1 %v19645_v12  ;;  %v2951_v63 = vadd.f32 %v16520_v17, %v19652_v40  ;;  %v2975_v17 = vadd.f32 %v19658_v34, %v19657_v24  ;;  %v19659_v40 = vld [vmem:[#allocation49_spill] sm:$0xff]  ;;  %v19663_v24 = vld [vmem:[#allocation70_spill] sm:$0xff] }
 0x521   :  { %v16688_v29 = vadd.f32 %v13456_v35, %v2943_v47  ;;  %13586 = vmatprep.mubr.bf16.mxu1 %v19646_v54  ;;  %v19654_v35 = vld [vmem:[#allocation65_spill] sm:$0xff]  ;;  %v19685_v12 = vld [vmem:[#allocation86_spill] sm:$0xff] }
 0x522   :  { %v3230_v9 = vpop.f32.mrf.mxu1 }
 0x523   :  { %v16693_v37 = vadd.f32 %v3230_v9, %v2935_v1  ;;  %v2962_v1 = vadd.f32 %v16522_v7, %v19654_v35 }
 0x524   :  { %v13457_v18 = vpop.f32.mrf.mxu1 }
 0x525   :  { %v16697_v20 = vadd.f32 %v13457_v18, %v2946_v10  ;;  %v19655_v18 = vld [vmem:[#allocation66_spill] sm:$0xff] }
 0x526   :  { %v3233_v57 = vpop.f32.mrf.mxu1  ;;  %v2954_v14 = vadd.f32 %v19656_v52, %v19655_v18  ;;  %v19662_v18 = vld [vmem:[#allocation69_spill] sm:$0xff] }
 0x527   :  { %v16701_v51 = vadd.f32 %v3233_v57, %v2938_v3 }
 0x528   :  { %v13460_v4 = vpop.f32.mrf.mxu1  ;;  %13587 = vmatmul.mubr.bf16.gmra.mxu1 %v19651_v22 }
 0x529   :  { %v16706_v50 = vadd.f32 %v13460_v4, %v2959_v13  ;;  %13590 = vmatprep.mubr.bf16.mxu1 %v19653_v41  ;;  %v19660_v41 = vld [vmem:[#allocation68_spill] sm:$0xff] }
 0x52a   :  { %v3246_v47 = vpop.f32.mrf.mxu1  ;;  %v2967_v7 = vadd.f32 %v16530_v38, %v19660_v41 }
 0x52b   :  { %v16711_v9 = vadd.f32 %v3246_v47, %v2951_v63  ;;  %v19661_v47 = vld [vmem:[#allocation51_spill] sm:$0xff] }
 0x52c   :  { %v13461_v10 = vpop.f32.mrf.mxu1 }
 0x52d   :  { %v16715_v3 = vadd.f32 %v13461_v10, %v2962_v1  ;;  %v2978_v1 = vadd.f32 %v16532_v60, %v19662_v18  ;;  %v16745_v18 = vpop.f32.mrf.mxu0 }
 0x52e   :  { %v3249_v57 = vpop.f32.mrf.mxu1  ;;  %19668 = vst [vmem:[#allocation56_spill] sm:$0xff] %v16745_v18 }
 0x52f   :  { %v16719_v13 = vadd.f32 %v3249_v57, %v2954_v14  ;;  %v2970_v14 = vadd.f32 %v16534_v25, %v19663_v24  ;;  %v16755_v54 = vpop.f32.mrf.mxu0 }
 0x530   :  { %v13464_v4 = vpop.f32.mrf.mxu1  ;;  %13591 = vmatmul.mubr.bf16.gmra.mxu1 %v19659_v40  ;;  %v19664_v40 = vld [vmem:[#allocation71_spill] sm:$0xff]  ;;  %19673 = vst [vmem:[#allocation33_spill] sm:$0xff] %v16755_v54  ;;  %v19684_v54 = vld [vmem:[#allocation25_spill] sm:$0xff] }
 0x531   :  { %v16724_v63 = vadd.f32 %v13464_v4, %v2975_v17  ;;  %13594 = vmatprep.mubr.bf16.mxu1 %v19661_v47  ;;  %v2991_v38 = vadd.f32 %v16536_v31, %v19664_v40  ;;  %v19665_v4 = vld [vmem:[#allocation54_spill] sm:$0xff]  ;;  %v19666_v47 = vld [vmem:[#allocation72_spill] sm:$0xff] }
 0x532   :  { %v3262_v35 = vpop.f32.mrf.mxu1  ;;  %v2983_v60 = vadd.f32 %v16540_v49, %v19666_v47  ;;  %v19671_v40 = vld [vmem:[#allocation74_spill] sm:$0xff]  ;;  %v13996_v47 = vld [vmem:[%s19259_s3 + $0x230] sm:$0xff]  }
 0x533   :  { %v16729_v10 = vadd.f32 %v3262_v35, %v2967_v7  ;;  %v19667_v35 = vld [vmem:[#allocation79_spill] sm:$0xff] }
 0x534   :  { %v13465_v52 = vpop.f32.mrf.mxu1 }
 0x535   :  { %v16733_v57 = vadd.f32 %v13465_v52, %v2978_v1  ;;  %v19669_v1 = vld [vmem:[#allocation73_spill] sm:$0xff]  ;;  %v19670_v52 = vld [vmem:[#allocation76_spill] sm:$0xff] }
 0x536   :  { %v3265_v34 = vpop.f32.mrf.mxu1  ;;  %v2994_v24 = vadd.f32 %v19670_v52, %v19669_v1  ;;  %v19677_v1 = vld [vmem:[#allocation82_spill] sm:$0xff] }
 0x537   :  { %v16737_v41 = vadd.f32 %v3265_v34, %v2970_v14  ;;  %v19672_v14 = vld [vmem:[#allocation83_spill] sm:$0xff]  ;;  %v2999_v52 = vadd.f32 %v16553_v27, %v19677_v1 }
 0x538   :  { %v13468_v17 = vpop.f32.mrf.mxu1  ;;  %13595 = vmatmul.mubr.bf16.gmra.mxu1 %v19665_v4  ;;  %v2986_v34 = vadd.f32 %v19672_v14, %v19671_v40  ;;  %v16771_v40 = vpop.f32.mrf.mxu0 }
 0x539   :  { %v16742_v7 = vadd.f32 %v13468_v17, %v2991_v38  ;;  %13674 = vmatprep.mubr.bf16.mxu1 %v19667_v35  ;;  %v19674_v38 = vld [vmem:[#allocation75_spill] sm:$0xff]  ;;  %v19675_v17 = vld [vmem:[#allocation84_spill] sm:$0xff]  ;;  %19679 = vst [vmem:[#allocation57_spill] sm:$0xff] %v16771_v40 }
 0x53a   :  { %v3278_v25 = vpop.f32.mrf.mxu1  ;;  %v3007_v35 = vadd.f32 %v19675_v17, %v19674_v38  ;;  %v13998_v40 = vld [vmem:[%s19259_s3 + $0x220] sm:$0xff]  }
 0x53b   :  { %v16749_v22 = vadd.f32 %v3278_v25, %v2983_v60  ;;  %v19676_v25 = vld [vmem:[#allocation81_spill] sm:$0xff] }
 0x53c   :  { %v13469_v31 = vpop.f32.mrf.mxu1 }
 0x53d   :  { %v16753_v4 = vadd.f32 %v13469_v31, %v2994_v24  ;;  %v19678_v31 = vld [vmem:[#allocation12_spill] sm:$0xff] }
 0x53e   :  { %v3281_v49 = vpop.f32.mrf.mxu1 }
 0x53f   :  { %v16762_v18 = vadd.f32 %v3281_v49, %v2986_v34  ;;  %v13997_v34 = vld [vmem:[%s19259_s3 + $0x228] sm:$0xff]   ;;  %v19680_v49 = vld [vmem:[#allocation14_spill] sm:$0xff] }
 0x540   :  { %v13472_v60 = vpop.f32.mrf.mxu1  ;;  %13675 = vmatmul.mubr.bf16.vlgmr.msra.gmra.mxu1 %v19676_v25  ;;  %v3010_v38 = vadd.f32 %v16558_v30, %v19680_v49  ;;  %v3023_v30 = vadd.f32 %v19685_v12, %v19684_v54  ;;  %v19686_v49 = vld [vmem:[#allocation15_spill] sm:$0xff]  ;;  %v13999_v12 = vld [vmem:[%s19259_s3 + $0x218] sm:$0xff]   ;;  %v19691_v54 = vld [vmem:[#allocation28_spill] sm:$0xff] }
 0x541   :  { %v16767_v24 = vadd.f32 %v13472_v60, %v3007_v35  ;;  %13678 = vmatprep.mubr.bf16.mxu1 %v19678_v31  ;;  %13779 = vmatpush3.bf16.msra.mxu1 %v16616_v16  ;;  %v19681_v35 = vld [vmem:[#allocation17_spill] sm:$0xff]  ;;  %v16784_v16 = vpop.f32.mrf.mxu0 }
 0x542   :  { %v3294_v14 = vpop.f32.mrf.mxu1  ;;  %13780 = vmatprep.subr.bf16.mxu1 %v13996_v47  ;;  %v19682_v60 = vld [vmem:[#allocation85_spill] sm:$0xff]  ;;  %19683 = vst [vmem:[#allocation34_spill] sm:$0xff] %v16784_v16 }
 0x543   :  { %v16778_v17 = vadd.f32 %v3294_v14, %v2999_v52  ;;  %v3002_v25 = vadd.f32 %v19682_v60, %v19681_v35  ;;  %v19687_v35 = vld [vmem:[#allocation20_spill] sm:$0xff]  ;;  %v19689_v60 = vld [vmem:[#allocation18_spill] sm:$0xff]  ;;  %v16799_v16 = vpop.f32.mrf.mxu0 }
 0x544   :  { %v13473_v27 = vpop.f32.mrf.mxu1  ;;  %19690 = vst [vmem:[#allocation58_spill] sm:$0xff] %v16799_v16  ;;  %v14000_v16 = vld [vmem:[%s19259_s3 + $0x210] sm:$0xff]  }
 0x545   :  { %v16782_v1 = vadd.f32 %v13473_v27, %v3010_v38  ;;  %13781 = vmatpush3.bf16.msra.mxu1 %v13996_v47  ;;  %v19688_v38 = vld [vmem:[#allocation87_spill] sm:$0xff] }
 0x546   :  { %v3297_v31 = vpop.f32.mrf.mxu1  ;;  %13782 = vmatprep.subr.bf16.mxu1 %v13997_v34  ;;  %v3015_v27 = vadd.f32 %v19688_v38, %v19687_v35  ;;  %v19692_v35 = vld [vmem:[#allocation23_spill] sm:$0xff] }
 0x547   :  { %v16791_v52 = vadd.f32 %v3297_v31, %v3002_v25  ;;  %v3026_v25 = vadd.f32 %v16574_v61, %v19691_v54  ;;  %v19695_v54 = vld [vmem:[#allocation24_spill] sm:$0xff] }
 0x548   :  { %v13476_v14 = vpop.f32.mrf.mxu1  ;;  %13679 = vmatmul.mubr.bf16.gmra.mxu1 %v19686_v49 }
 0x549   :  { %v16796_v47 = vadd.f32 %v13476_v14, %v3023_v30  ;;  %13682 = vmatprep.mubr.bf16.mxu1 %v19689_v60  ;;  %13783 = vmatpush3.bf16.msra.mxu1 %v13997_v34  ;;  %v19693_v30 = vld [vmem:[#allocation88_spill] sm:$0xff]  ;;  %v16812_v34 = vpop.f32.mrf.mxu0 }
 0x54a   :  { %v3310_v15 = vpop.f32.mrf.mxu1  ;;  %13784 = vmatprep.subr.bf16.mxu1 %v13998_v40  ;;  %v3018_v14 = vadd.f32 %v19693_v30, %v19692_v35 }
 0x54b   :  { %v16806_v31 = vadd.f32 %v3310_v15, %v3015_v27  ;;  %v19694_v15 = vld [vmem:[#allocation21_spill] sm:$0xff] }
 0x54c   :  { %v13477_v49 = vpop.f32.mrf.mxu1 }
 0x54d   :  { %v16810_v38 = vadd.f32 %v13477_v49, %v3026_v25  ;;  %13785 = vmatpush3.bf16.msra.mxu1 %v13998_v40  ;;  %v16824_v40 = vpop.f32.mrf.mxu0  ;;  %v14001_v49 = vld [vmem:[%s19259_s3 + $0x208] sm:$0xff]  }
 0x54e   :  { %v3313_v60 = vpop.f32.mrf.mxu1  ;;  %13786 = vmatprep.subr.bf16.mxu1 %v13999_v12 }
 0x54f   :  { %v16817_v8 = vadd.f32 %v3313_v60, %v3018_v14 }
 0x550   :  { %v13496_v61 = vpop.f32.mrf.mxu1  ;;  %13683 = vmatmul.mubr.bf16.gmra.mxu1 %v19694_v15 }
 0x551   :  { %v16821_v27 = vadd.f32 %v13496_v61, %v16586_v23  ;;  %13686 = vmatprep.mubr.bf16.mxu1 %v19695_v54  ;;  %13787 = vmatpush3.bf16.msra.mxu1 %v13999_v12  ;;  %v16835_v23 = vpop.f32.mrf.mxu0  ;;  %v14002_v12 = vld [vmem:[%s19259_s3 + $0x200] sm:$0xff]  }
 0x552   :  { %v3490_v25 = vpop.f32.mrf.mxu1  ;;  %13788 = vmatprep.subr.bf16.mxu1 %v14000_v16  ;;  %19696 = vst [vmem:[#allocation59_spill] sm:$0xff] %v16835_v23  ;;  %v19697_v54 = vld [vmem:[#allocation27_spill] sm:$0xff] }
 0x553   :  { %v16830_v35 = vadd.f32 %v3490_v25, %v16594_v6 }
 0x554   :  { %v13497_v30 = vpop.f32.mrf.mxu1 }
 0x555   :  { %v16833_v14 = vadd.f32 %v13497_v30, %v16598_v45  ;;  %13789 = vmatpush3.bf16.msra.mxu1 %v14000_v16  ;;  %v19698_v45 = vld [vmem:[#allocation30_spill] sm:$0xff]  ;;  %v16848_v16 = vpop.f32.mrf.mxu0 }
 0x556   :  { %v3493_v60 = vpop.f32.mrf.mxu1  ;;  %13790 = vmatprep.subr.bf16.mxu1 %v14001_v49  ;;  %19699 = vst [vmem:[#allocation60_spill] sm:$0xff] %v16848_v16  ;;  %v19701_v16 = vld [vmem:[#allocation31_spill] sm:$0xff] }
 0x557   :  { %v16841_v61 = vadd.f32 %v3493_v60, %v16605_v53  ;;  %v16856_v60 = vpop.f32.mrf.mxu0 }
 0x558   :  { %v13500_v15 = vpop.f32.mrf.mxu1  ;;  %13687 = vmatmul.mubr.bf16.gmra.mxu1 %v19697_v54 }
 0x559   :  { %v16845_v6 = vadd.f32 %v13500_v15, %v16610_v2  ;;  %13690 = vmatprep.mubr.bf16.mxu1 %v19698_v45  ;;  %13791 = vmatpush3.bf16.msra.mxu1 %v14001_v49  ;;  %v19700_v49 = vld [vmem:[#allocation32_spill] sm:$0xff] }
 0x55a   :  { %v3506_v25 = vpop.f32.mrf.mxu1  ;;  %13792 = vmatprep.subr.bf16.mxu1 %v14002_v12 }
 0x55b   :  { %v16851_v30 = vadd.f32 %v3506_v25, %v16620_v5  ;;  %v16866_v5 = vpop.f32.mrf.mxu0 }
 0x55c   :  { %v13501_v23 = vpop.f32.mrf.mxu1  ;;  %19702 = vst [vmem:[#allocation61_spill] sm:$0xff] %v16866_v5  ;;  %v19705_v5 = vld [vmem:[#allocation36_spill] sm:$0xff] }
 0x55d   :  { %v16854_v53 = vadd.f32 %v13501_v23, %v16624_v21  ;;  %13793 = vmatpush3.bf16.msra.mxu1 %v14002_v12 }
 0x55e   :  { %v3509_v54 = vpop.f32.mrf.mxu1 }
 0x55f   :  { %v16859_v2 = vadd.f32 %v3509_v54, %v16629_v0  ;;  %v16874_v0 = vpop.f32.mrf.mxu0 }
 0x560   :  { %v13504_v15 = vpop.f32.mrf.mxu1  ;;  %13691 = vmatmul.mubr.bf16.gmra.mxu1 %v19700_v49  ;;  %19703 = vst [vmem:[#allocation62_spill] sm:$0xff] %v16874_v0 }
 0x561   :  { %v16863_v45 = vadd.f32 %v13504_v15, %v16634_v32  ;;  %13694 = vmatprep.mubr.bf16.mxu1 %v19701_v16  ;;  %v19704_v15 = vld [vmem:[#allocation35_spill] sm:$0xff] }
 0x562   :  { %v3522_v25 = vpop.f32.mrf.mxu1 }
 0x563   :  { %v16869_v21 = vadd.f32 %v3522_v25, %v16639_v28  ;;  %v16884_v28 = vpop.f32.mrf.mxu0 }
 0x564   :  { %v13505_v23 = vpop.f32.mrf.mxu1  ;;  %19706 = vst [vmem:[#allocation26_spill] sm:$0xff] %v16884_v28  ;;  %v19709_v28 = vld [vmem:[#allocation41_spill] sm:$0xff] }
 0x565   :  { %v16872_v12 = vadd.f32 %v13505_v23, %v16643_v44 }
 0x566   :  { %v3525_v54 = vpop.f32.mrf.mxu1 }
 0x567   :  { %v16877_v49 = vadd.f32 %v3525_v54, %v16647_v42  ;;  %v16892_v42 = vpop.f32.mrf.mxu0 }
 0x568   :  { %v13508_v32 = vpop.f32.mrf.mxu1  ;;  %13695 = vmatmul.mubr.bf16.gmra.mxu1 %v19704_v15  ;;  %19707 = vst [vmem:[#allocation63_spill] sm:$0xff] %v16892_v42 }
 0x569   :  { %v16881_v16 = vadd.f32 %v13508_v32, %v16652_v26  ;;  %13698 = vmatprep.mubr.bf16.mxu1 %v19705_v5  ;;  %v19708_v32 = vld [vmem:[#allocation37_spill] sm:$0xff] }
 0x56a   :  { %v3538_v25 = vpop.f32.mrf.mxu1 }
 0x56b   :  { %v16887_v44 = vadd.f32 %v3538_v25, %v16657_v55  ;;  %v16902_v55 = vpop.f32.mrf.mxu0 }
 0x56c   :  { %v13509_v23 = vpop.f32.mrf.mxu1  ;;  %19710 = vst [vmem:[#allocation29_spill] sm:$0xff] %v16902_v55  ;;  %v19713_v55 = vld [vmem:[#allocation43_spill] sm:$0xff] }
 0x56d   :  { %v16890_v0 = vadd.f32 %v13509_v23, %v16661_v56 }
 0x56e   :  { %v3541_v54 = vpop.f32.mrf.mxu1 }
 0x56f   :  { %v16895_v15 = vadd.f32 %v3541_v54, %v16665_v58  ;;  %v16910_v58 = vpop.f32.mrf.mxu0 }
 0x570   :  { %v13512_v26 = vpop.f32.mrf.mxu1  ;;  %13699 = vmatmul.mubr.bf16.gmra.mxu1 %v19708_v32  ;;  %19711 = vst [vmem:[#allocation64_spill] sm:$0xff] %v16910_v58 }
 0x571   :  { %v16899_v5 = vadd.f32 %v13512_v26, %v16670_v36  ;;  %13702 = vmatprep.mubr.bf16.mxu1 %v19709_v28  ;;  %v19712_v26 = vld [vmem:[#allocation42_spill] sm:$0xff] }
 0x572   :  { %v3554_v25 = vpop.f32.mrf.mxu1 }
 0x573   :  { %v16905_v56 = vadd.f32 %v3554_v25, %v16675_v43  ;;  %v16920_v43 = vpop.f32.mrf.mxu0 }
 0x574   :  { %v13513_v23 = vpop.f32.mrf.mxu1  ;;  %19714 = vst [vmem:[#allocation65_spill] sm:$0xff] %v16920_v43  ;;  %v19718_v43 = vld [vmem:[#allocation48_spill] sm:$0xff] }
 0x575   :  { %v16908_v42 = vadd.f32 %v13513_v23, %v16679_v11 }
 0x576   :  { %v3557_v54 = vpop.f32.mrf.mxu1 }
 0x577   :  { %v16913_v32 = vadd.f32 %v3557_v54, %v16683_v48  ;;  %v16928_v48 = vpop.f32.mrf.mxu0 }
 0x578   :  { %v13516_v36 = vpop.f32.mrf.mxu1  ;;  %13703 = vmatmul.mubr.bf16.gmra.mxu1 %v19712_v26  ;;  %19715 = vst [vmem:[#allocation66_spill] sm:$0xff] %v16928_v48 }
 0x579   :  { %v16917_v28 = vadd.f32 %v13516_v36, %v16688_v29  ;;  %13706 = vmatprep.mubr.bf16.mxu1 %v19713_v55  ;;  %v19717_v36 = vld [vmem:[#allocation47_spill] sm:$0xff] }
 0x57a   :  { %v3570_v25 = vpop.f32.mrf.mxu1 }
 0x57b   :  { %v16923_v11 = vadd.f32 %v3570_v25, %v16693_v37  ;;  %v16938_v37 = vpop.f32.mrf.mxu0 }
 0x57c   :  { %v13517_v23 = vpop.f32.mrf.mxu1 }
 0x57d   :  { %v16926_v58 = vadd.f32 %v13517_v23, %v16697_v20 }
 0x57e   :  { %v3573_v54 = vpop.f32.mrf.mxu1 }
 0x57f   :  { %v16931_v26 = vadd.f32 %v3573_v54, %v16701_v51  ;;  %v16946_v51 = vpop.f32.mrf.mxu0 }
 0x580   :  { %v13520_v29 = vpop.f32.mrf.mxu1  ;;  %13707 = vmatmul.mubr.bf16.gmra.mxu1 %v19717_v36  ;;  %19719 = vst [vmem:[#allocation67_spill] sm:$0xff] %v16946_v51 }
 0x581   :  { %19716 = vst [vmem:[#allocation77_spill] sm:$0xff] %v16931_v26  ;;  %v16935_v55 = vadd.f32 %v13520_v29, %v16706_v50  ;;  %13710 = vmatprep.mubr.bf16.mxu1 %v19718_v43  ;;  %v19721_v29 = vld [vmem:[#allocation50_spill] sm:$0xff]  ;;  %v19722_v26 = vld [vmem:[#allocation52_spill] sm:$0xff] }
 0x582   :  { %v3586_v25 = vpop.f32.mrf.mxu1 }
 0x583   :  { %v16941_v20 = vadd.f32 %v3586_v25, %v16711_v9  ;;  %v16956_v9 = vpop.f32.mrf.mxu0 }
 0x584   :  { %v13521_v23 = vpop.f32.mrf.mxu1  ;;  %19723 = vst [vmem:[#allocation68_spill] sm:$0xff] %v16956_v9 }
 0x585   :  { %v16944_v48 = vadd.f32 %v13521_v23, %v16715_v3 }
 0x586   :  { %v3589_v54 = vpop.f32.mrf.mxu1 }
 0x587   :  { %v16949_v36 = vadd.f32 %v3589_v54, %v16719_v13  ;;  %v16964_v13 = vpop.f32.mrf.mxu0 }
 0x588   :  { %v13524_v50 = vpop.f32.mrf.mxu1  ;;  %13711 = vmatmul.mubr.bf16.gmra.mxu1 %v19721_v29  ;;  %19724 = vst [vmem:[#allocation69_spill] sm:$0xff] %v16964_v13 }
 0x589   :  { %19720 = vst [vmem:[#allocation78_spill] sm:$0xff] %v16949_v36  ;;  %v16953_v43 = vadd.f32 %v13524_v50, %v16724_v63  ;;  %13714 = vmatprep.mubr.bf16.mxu1 %v19722_v26  ;;  %v19726_v50 = vld [vmem:[#allocation55_spill] sm:$0xff]  ;;  %v19727_v36 = vld [vmem:[#allocation53_spill] sm:$0xff] }
 0x58a   :  { %v3602_v25 = vpop.f32.mrf.mxu1  ;;  %v19728_v26 = vpack.c.bf16 %v19726_v50, %v19727_v36 }
 0x58b   :  { %v16959_v3 = vadd.f32 %v3602_v25, %v16729_v10  ;;  %v19729_v10 = vld [vmem:[#allocation80_spill] sm:$0xff]  ;;  %v16976_v25 = vpop.f32.mrf.mxu0 }
 0x58c   :  { %v13525_v23 = vpop.f32.mrf.mxu1 }
 0x58d   :  { %v16962_v51 = vadd.f32 %v13525_v23, %v16733_v57 }
 0x58e   :  { %v3605_v54 = vpop.f32.mrf.mxu1 }
 0x58f   :  { %v16967_v29 = vadd.f32 %v3605_v54, %v16737_v41  ;;  %v16984_v54 = vpop.f32.mrf.mxu0 }
 0x590   :  { %v13528_v63 = vpop.f32.mrf.mxu1  ;;  %13715 = vmatmul.mubr.bf16.gmra.mxu1 %v19728_v26  ;;  %19730 = vst [vmem:[#allocation71_spill] sm:$0xff] %v16984_v54  ;;  %v19732_v26 = vld [vmem:[#allocation11_spill] sm:$0xff] }
 0x591   :  { %19725 = vst [vmem:[#allocation70_spill] sm:$0xff] %v16967_v29  ;;  %v16973_v9 = vadd.f32 %v13528_v63, %v16742_v7  ;;  %13794 = vmatprep.mubr.bf16.mxu1 %v19729_v10  ;;  %v16989_v7 = vpop.f32.mrf.mxu0 }
 0x592   :  { %v3618_v57 = vpop.f32.mrf.mxu1 }
 0x593   :  { %v16979_v23 = vadd.f32 %v3618_v57, %v16749_v22  ;;  %v19733_v22 = vld [vmem:[#allocation13_spill] sm:$0xff] }
 0x594   :  { %v13529_v13 = vpop.f32.mrf.mxu1 }
 0x595   :  { %v16982_v41 = vadd.f32 %v13529_v13, %v16753_v4  ;;  %v16999_v13 = vpop.f32.mrf.mxu0 }
 0x596   :  { %v3621_v29 = vpop.f32.mrf.mxu1  ;;  %19734 = vst [vmem:[#allocation79_spill] sm:$0xff] %v16999_v13 }
 0x597   :  { %v16987_v36 = vadd.f32 %v3621_v29, %v16762_v18 }
 0x598   :  { %v13532_v63 = vpop.f32.mrf.mxu1  ;;  %13795 = vmatmul.mubr.bf16.vlgmr.msra.gmra.mxu1 %v19732_v26  ;;  %v17007_v26 = vpop.f32.mrf.mxu0 }
 0x599   :  { %19731 = vst [vmem:[#allocation72_spill] sm:$0xff] %v16987_v36  ;;  %v16993_v10 = vadd.f32 %v13532_v63, %v16767_v24  ;;  %13798 = vmatprep.mubr.bf16.mxu1 %v19733_v22  ;;  %19736 = vst [vmem:[#allocation76_spill] sm:$0xff] %v17007_v26  ;;  %v19737_v63 = vld [vmem:[#allocation16_spill] sm:$0xff] }
 0x59a   :  { %v3634_v57 = vpop.f32.mrf.mxu1 }
 0x59b   :  { %v16997_v4 = vadd.f32 %v3634_v57, %v16778_v17  ;;  %v19738_v17 = vld [vmem:[#allocation19_spill] sm:$0xff] }
 0x59c   :  { %v13533_v54 = vpop.f32.mrf.mxu1 }
 0x59d   :  { %v17002_v18 = vadd.f32 %v13533_v54, %v16782_v1  ;;  %v17017_v1 = vpop.f32.mrf.mxu0 }
 0x59e   :  { %v3637_v29 = vpop.f32.mrf.mxu1  ;;  %19739 = vst [vmem:[#allocation74_spill] sm:$0xff] %v17017_v1 }
 0x59f   :  { %v17005_v36 = vadd.f32 %v3637_v29, %v16791_v52  ;;  %v14003_v29 = vld [vmem:[#allocation5 + $0xf0] ss:$8 sps:$4 sm:$0xff]   ;;  %v17022_v26 = vpop.f32.mrf.mxu0 }
 0x5a0   :  { %v13536_v24 = vpop.f32.mrf.mxu1  ;;  %13799 = vmatmul.mubr.bf16.gmra.mxu1 %v19737_v63 }
 0x5a1   :  { %19735 = vst [vmem:[#allocation73_spill] sm:$0xff] %v17005_v36  ;;  %v17011_v22 = vadd.f32 %v13536_v24, %v16796_v47  ;;  %13802 = vmatprep.mubr.bf16.mxu1 %v19738_v17  ;;  %v14005_v36 = vld [vmem:[#allocation5 + $0xf4] ss:$8 sps:$4 sm:$0xff]  }
 0x5a2   :  { %v3650_v57 = vpop.f32.mrf.mxu1  ;;  %5752 = vmatprep.subr.bf16.mxu0 %v14005_v36  ;;  %v19741_v17 = vld [vmem:[#allocation22_spill] sm:$0xff] }
 0x5a3   :  { %v17015_v13 = vadd.f32 %v3650_v57, %v16806_v31  ;;  %5753 = vmatpush1.bf16.msra.mxu0 %v14003_v29 }
 0x5a4   :  { %v13537_v54 = vpop.f32.mrf.mxu1 }
 0x5a5   :  { %v17020_v52 = vadd.f32 %v13537_v54, %v16810_v38  ;;  %v17032_v38 = vpop.f32.mrf.mxu0 }
 0x5a6   :  { %v3653_v63 = vpop.f32.mrf.mxu1 }
 0x5a7   :  { %v17025_v47 = vadd.f32 %v3653_v63, %v16817_v8  ;;  %v17040_v36 = vpop.f32.mrf.mxu0 }
 0x5a8   :  { %v13556_v24 = vpop.f32.mrf.mxu1  ;;  %13803 = vmatmul.mubr.bf16.gmra.mxu1 %v19741_v17 }
 0x5a9   :  { %19740 = vst [vmem:[#allocation83_spill] sm:$0xff] %v17025_v47  ;;  %v17029_v31 = vadd.f32 %v13556_v24, %v16821_v27  ;;  %13806 = vmatprep.mubr.bf16.mxu1 %v19574_v19  ;;  %v14006_v27 = vld [vmem:[#allocation5 + $0xe0] ss:$8 sps:$4 sm:$0xff]   ;;  %v14008_v24 = vld [vmem:[#allocation5 + $0xe4] ss:$8 sps:$4 sm:$0xff]  }
 0x5aa   :  { %v3809_v57 = vpop.f32.mrf.mxu1  ;;  %5754 = vmatprep.subr.bf16.mxu0 %v14008_v24 }
 0x5ab   :  { %v17035_v54 = vadd.f32 %v3809_v57, %v16830_v35  ;;  %v17050_v35 = vpop.f32.mrf.mxu0  ;;  %5755 = vmatpush1.bf16.msra.mxu0 %v14006_v27 }
 0x5ac   :  { %v13557_v1 = vpop.f32.mrf.mxu1  ;;  %19743 = vst [vmem:[#allocation84_spill] sm:$0xff] %v17050_v35 }
 0x5ad   :  { %v17038_v8 = vadd.f32 %v13557_v1, %v16833_v14 }
 0x5ae   :  { %v3812_v63 = vpop.f32.mrf.mxu1 }
 0x5af   :  { %v17043_v29 = vadd.f32 %v3812_v63, %v16841_v61  ;;  %v17055_v61 = vpop.f32.mrf.mxu0 }
 0x5b0   :  { %v13560_v17 = vpop.f32.mrf.mxu1  ;;  %13807 = vmatmul.mubr.bf16.gmra.mxu1 %v19576_v62 }
 0x5b1   :  { %19742 = vst [vmem:[#allocation75_spill] sm:$0xff] %v17043_v29  ;;  %v17047_v19 = vadd.f32 %v13560_v17, %v16845_v6  ;;  %13810 = vmatprep.mubr.bf16.mxu1 %v15959_v46  ;;  %v17063_v17 = vpop.f32.mrf.mxu0  ;;  %v14018_v29 = vld [vmem:[#allocation5 + $0x160] ss:$8 sps:$4 sm:$0xff]  }
 0x5b2   :  { %v3825_v14 = vpop.f32.mrf.mxu1 }
 0x5b3   :  { %v17053_v1 = vadd.f32 %v3825_v14, %v16851_v30  ;;  %v14011_v14 = vld [vmem:[#allocation5 + $0xd4] ss:$8 sps:$4 sm:$0xff]  }
 0x5b4   :  { %v13561_v57 = vpop.f32.mrf.mxu1  ;;  %5756 = vmatprep.subr.bf16.mxu0 %v14011_v14 }
 0x5b5   :  { %v17058_v63 = vadd.f32 %v13561_v57, %v16854_v53  ;;  %v14009_v53 = vld [vmem:[#allocation5 + $0xd0] ss:$8 sps:$4 sm:$0xff]   ;;  %v17073_v57 = vpop.f32.mrf.mxu0 }
 0x5b6   :  { %v3828_v62 = vpop.f32.mrf.mxu1  ;;  %5757 = vmatpush1.bf16.msra.mxu0 %v14009_v53 }
 0x5b7   :  { %v17061_v6 = vadd.f32 %v3828_v62, %v16859_v2 }
 0x5b8   :  { %v13564_v46 = vpop.f32.mrf.mxu1  ;;  %13811 = vmatmul.mubr.bf16.gmra.mxu1 %v15985_v59 }
 0x5b9   :  { %19744 = vst [vmem:[#allocation81_spill] sm:$0xff] %v17061_v6  ;;  %v17067_v27 = vadd.f32 %v13564_v46, %v16863_v45  ;;  %13814 = vmatprep.mubr.bf16.mxu1 %v19636_v39  ;;  %v17081_v45 = vpop.f32.mrf.mxu0  ;;  %v19747_v46 = vld [vmem:[#allocation38_spill] sm:$0xff] }
 0x5ba   :  { %v3841_v30 = vpop.f32.mrf.mxu1  ;;  %19746 = vst [vmem:[#allocation12_spill] sm:$0xff] %v17081_v45  ;;  %v14017_v45 = vld [vmem:[#allocation5 + $0x174] ss:$8 sps:$4 sm:$0xff]  }
 0x5bb   :  { %v17071_v24 = vadd.f32 %v3841_v30, %v16869_v21  ;;  %v17088_v30 = vpop.f32.mrf.mxu0  ;;  %6121 = vmatprep.subr.bf16.mxu1 %v14017_v45 }
 0x5bc   :  { %v13565_v2 = vpop.f32.mrf.mxu1 }
 0x5bd   :  { %v17076_v62 = vadd.f32 %v13565_v2, %v16872_v12  ;;  %v14014_v2 = vld [vmem:[#allocation5 + $0xc4] ss:$8 sps:$4 sm:$0xff]   ;;  %v17096_v35 = vpop.f32.mrf.mxu0 }
 0x5be   :  { %v3844_v47 = vpop.f32.mrf.mxu1  ;;  %5758 = vmatprep.subr.bf16.mxu0 %v14014_v2 }
 0x5bf   :  { %v17079_v59 = vadd.f32 %v3844_v47, %v16877_v49  ;;  %v14012_v47 = vld [vmem:[#allocation5 + $0xc0] ss:$8 sps:$4 sm:$0xff]  }
 0x5c0   :  { %v13568_v39 = vpop.f32.mrf.mxu1  ;;  %13815 = vmatmul.mubr.bf16.gmra.mxu1 %v19638_v33  ;;  %5759 = vmatpush1.bf16.msra.mxu0 %v14012_v47 }
 0x5c1   :  { %19745 = vst [vmem:[#allocation82_spill] sm:$0xff] %v17079_v59  ;;  %v17085_v21 = vadd.f32 %v13568_v39, %v16881_v16  ;;  %13818 = vmatprep.mubr.bf16.mxu1 %v19747_v46  ;;  %v14015_v16 = vld [vmem:[#allocation5 + $0x170] ss:$8 sps:$4 sm:$0xff]   ;;  %v19749_v59 = vld [vmem:[#allocation39_spill] sm:$0xff] }
 0x5c2   :  { %v3857_v12 = vpop.f32.mrf.mxu1  ;;  %6122 = vmatpush1.bf16.msra.mxu1 %v14015_v16 }
 0x5c3   :  { %v17091_v14 = vadd.f32 %v3857_v12, %v16887_v44  ;;  %v14020_v12 = vld [vmem:[#allocation5 + $0x164] ss:$8 sps:$4 sm:$0xff]  }
 0x5c4   :  { %v13569_v53 = vpop.f32.mrf.mxu1  ;;  %6123 = vmatprep.subr.bf16.mxu1 %v14020_v12  ;;  %v14026_v12 = vld [vmem:[#allocation5 + $0xb4] ss:$8 sps:$4 sm:$0xff]  }
 0x5c5   :  { %v17094_v49 = vadd.f32 %v13569_v53, %v16890_v0  ;;  %v19750_v0 = vld [vmem:[#allocation40_spill] sm:$0xff]  ;;  %v17106_v53 = vpop.f32.mrf.mxu0  ;;  %5760 = vmatprep.subr.bf16.mxu0 %v14026_v12  ;;  %v19758_v12 = vld [vmem:[#allocation46_spill] sm:$0xff] }
 0x5c6   :  { %v3860_v33 = vpop.f32.mrf.mxu1  ;;  %6124 = vmatpush1.bf16.msra.mxu1 %v14018_v29  ;;  %v14024_v29 = vld [vmem:[#allocation5 + $0xb0] ss:$8 sps:$4 sm:$0xff]  }
 0x5c7   :  { %v17099_v39 = vadd.f32 %v3860_v33, %v16895_v15  ;;  %v14021_v33 = vld [vmem:[#allocation5 + $0x150] ss:$8 sps:$4 sm:$0xff]   ;;  %5761 = vmatpush1.bf16.msra.mxu0 %v14024_v29 }
 0x5c8   :  { %v13572_v46 = vpop.f32.mrf.mxu1  ;;  %13819 = vmatmul.mubr.bf16.gmra.mxu1 %v19749_v59  ;;  %v14023_v59 = vld [vmem:[#allocation5 + $0x154] ss:$8 sps:$4 sm:$0xff]  }
 0x5c9   :  { %19748 = vst [vmem:[#allocation14_spill] sm:$0xff] %v17099_v39  ;;  %v17103_v44 = vadd.f32 %v13572_v46, %v16899_v5  ;;  %13822 = vmatprep.mubr.bf16.mxu1 %v19750_v0  ;;  %v17114_v5 = vpop.f32.mrf.mxu0  ;;  %6125 = vmatprep.subr.bf16.mxu1 %v14023_v59  ;;  %v14027_v39 = vld [vmem:[#allocation5 + $0x140] ss:$8 sps:$4 sm:$0xff]  }
 0x5ca   :  { %v3873_v6 = vpop.f32.mrf.mxu1  ;;  %19751 = vst [vmem:[#allocation17_spill] sm:$0xff] %v17114_v5  ;;  %6126 = vmatpush1.bf16.msra.mxu1 %v14021_v33  ;;  %v14035_v33 = vld [vmem:[#allocation5 + $0x134] ss:$8 sps:$4 sm:$0xff]  }
 0x5cb   :  { %v17109_v15 = vadd.f32 %v3873_v6, %v16905_v56  ;;  %v17119_v46 = vpop.f32.mrf.mxu0  ;;  %v19753_v56 = vld [vmem:[#allocation44_spill] sm:$0xff] }
 0x5cc   :  { %v13573_v45 = vpop.f32.mrf.mxu1 }
 0x5cd   :  { %v17112_v2 = vadd.f32 %v13573_v45, %v16908_v42  ;;  %v19754_v42 = vld [vmem:[#allocation45_spill] sm:$0xff]  ;;  %v14029_v45 = vld [vmem:[#allocation5 + $0x144] ss:$8 sps:$4 sm:$0xff]   ;;  %v17129_v59 = vpop.f32.mrf.mxu0 }
 0x5ce   :  { %v3876_v47 = vpop.f32.mrf.mxu1  ;;  %6127 = vmatprep.subr.bf16.mxu1 %v14029_v45  ;;  %19755 = vst [vmem:[#allocation25_spill] sm:$0xff] %v17129_v59  ;;  %v14041_v45 = vld [vmem:[#allocation5 + $0x124] ss:$8 sps:$4 sm:$0xff]   ;;  %v14039_v59 = vld [vmem:[#allocation5 + $0x120] ss:$8 sps:$4 sm:$0xff]  }
 0x5cf   :  { %v17117_v16 = vadd.f32 %v3876_v47, %v16913_v32  ;;  %6128 = vmatpush1.bf16.msra.mxu1 %v14027_v39  ;;  %v14038_v39 = vld [vmem:[#allocation5 + $0x94] ss:$8 sps:$4 sm:$0xff]  }
 0x5d0   :  { %v13576_v0 = vpop.f32.mrf.mxu1  ;;  %13823 = vmatmul.mubr.bf16.gmra.mxu1 %v19753_v56  ;;  %6129 = vmatprep.subr.bf16.mxu1 %v14035_v33 }
 0x5d1   :  { %19752 = vst [vmem:[#allocation85_spill] sm:$0xff] %v17117_v16  ;;  %v17123_v6 = vadd.f32 %v13576_v0, %v16917_v28  ;;  %13826 = vmatprep.mubr.bf16.mxu1 %v19754_v42  ;;  %v14032_v0 = vld [vmem:[#allocation5 + $0xa4] ss:$8 sps:$4 sm:$0xff]   ;;  %v14030_v42 = vld [vmem:[#allocation5 + $0xa0] ss:$8 sps:$4 sm:$0xff]  }
 0x5d2   :  { %v3889_v5 = vpop.f32.mrf.mxu1  ;;  %v14033_v16 = vld [vmem:[#allocation5 + $0x130] ss:$8 sps:$4 sm:$0xff]   ;;  %5762 = vmatprep.subr.bf16.mxu0 %v14032_v0 }
 0x5d3   :  { %v17127_v32 = vadd.f32 %v3889_v5, %v16923_v11  ;;  %v17136_v11 = vpop.f32.mrf.mxu0  ;;  %5763 = vmatpush1.bf16.msra.mxu0 %v14030_v42  ;;  %6130 = vmatpush1.bf16.msra.mxu1 %v14033_v16  ;;  %v14044_v42 = vld [vmem:[#allocation5 + $0x84] ss:$8 sps:$4 sm:$0xff]   ;;  %v14047_v16 = vld [vmem:[#allocation5 + $0x114] ss:$8 sps:$4 sm:$0xff]  }
 0x5d4   :  { %v13577_v47 = vpop.f32.mrf.mxu1  ;;  %19757 = vst [vmem:[#allocation15_spill] sm:$0xff] %v17136_v11  ;;  %5764 = vmatprep.subr.bf16.mxu0 %v14038_v39  ;;  %6131 = vmatprep.subr.bf16.mxu1 %v14041_v45  ;;  %v14045_v11 = vld [vmem:[#allocation5 + $0x110] ss:$8 sps:$4 sm:$0xff]   ;;  %v19763_v45 = vld [vmem:[#allocation51_spill] sm:$0xff] }
 0x5d5   :  { %v17132_v28 = vadd.f32 %v13577_v47, %v16926_v58  ;;  %v19759_v58 = vld [vmem:[#allocation49_spill] sm:$0xff]  ;;  %v17146_v33 = vpop.f32.mrf.mxu0 }
 0x5d6   :  { %v17134_v56 = vpop.f32.mrf.mxu1  ;;  %19760 = vst [vmem:[#allocation20_spill] sm:$0xff] %v17146_v33  ;;  %v14048_v33 = vld [vmem:[#allocation5 + $0x100] ss:$8 sps:$4 sm:$0xff]  }
 0x5d7   :  { %19756 = vst [vmem:[#allocation86_spill] sm:$0xff] %v17134_v56  ;;  %v14036_v56 = vld [vmem:[#allocation5 + $0x90] ss:$8 sps:$4 sm:$0xff]   ;;  %6132 = vmatpush1.bf16.msra.mxu1 %v14039_v59  ;;  %v14050_v59 = vld [vmem:[#allocation5 + $0x104] ss:$8 sps:$4 sm:$0xff]  }
 0x5d8   :  { %v13580_v5 = vpop.f32.mrf.mxu1  ;;  %13827 = vmatmul.mubr.bf16.gmra.mxu1 %v19758_v12  ;;  %5765 = vmatpush1.bf16.msra.mxu0 %v14036_v56 }
 0x5d9   :  { %v17140_v29 = vadd.f32 %v13580_v5, %v16935_v55  ;;  %13830 = vmatprep.mubr.bf16.mxu1 %v19759_v58  ;;  %v14042_v58 = vld [vmem:[#allocation5 + $0x80] ss:$8 sps:$4 sm:$0xff]   ;;  %5766 = vmatprep.subr.bf16.mxu0 %v14044_v42 }
 0x5da   :  { %v3905_v47 = vpop.f32.mrf.mxu1  ;;  %6133 = vmatprep.subr.bf16.mxu1 %v14047_v16 }
 0x5db   :  { %v17144_v0 = vadd.f32 %v3905_v47, %v16941_v20  ;;  %v17153_v20 = vpop.f32.mrf.mxu0  ;;  %6134 = vmatpush1.bf16.msra.mxu1 %v14045_v11  ;;  %v19767_v11 = vmov 0.0  }
 0x5dc   :  { %v13581_v12 = vpop.f32.mrf.mxu1  ;;  %19762 = vst [vmem:[#allocation18_spill] sm:$0xff] %v17153_v20  ;;  %5767 = vmatpush1.bf16.msra.mxu0 %v14042_v58  ;;  %6135 = vmatprep.subr.bf16.mxu1 %v14050_v59  ;;  %v19769_v59 = vmov 0  }
 0x5dd   :  { %v17149_v55 = vadd.f32 %v13581_v12, %v16944_v48  ;;  %v19764_v48 = vld [vmem:[#allocation54_spill] sm:$0xff]  ;;  %v19351_v12 = vmov 0   ;;  %v17164_v16 = vpop.f32.mrf.mxu0 }
 0x5de   :  { %v17151_v5 = vpop.f32.mrf.mxu1  ;;  %5784 = vmatprep.mubr.bf16.mxu0 %v19351_v12  ;;  %19765 = vst [vmem:[#allocation28_spill] sm:$0xff] %v17164_v16 }
 0x5df   :  { %19761 = vst [vmem:[#allocation87_spill] sm:$0xff] %v17151_v5  ;;  %6136 = vmatpush1.bf16.msra.mxu1 %v14048_v33 }
 0x5e0   :  { %v13584_v39 = vpop.f32.mrf.mxu1  ;;  %13831 = vmatmul.mubr.bf16.gmra.mxu1 %v19763_v45 }
 0x5e1   :  { %v17157_v56 = vadd.f32 %v13584_v39, %v16953_v43  ;;  %13834 = vmatprep.mubr.bf16.mxu1 %v19764_v48  ;;  %v4985_v39 = vpack.c.bf16 %v19767_v11, %v19726_v50  ;;  %v17173_v48 = vpop.f32.mrf.mxu0 }
 0x5e2   :  { %v3921_v47 = vpop.f32.mrf.mxu1  ;;  %19768 = vst [vmem:[#allocation88_spill] sm:$0xff] %v17173_v48 }
 0x5e3   :  { %v17162_v42 = vadd.f32 %v3921_v47, %v16959_v3 }
 0x5e4   :  { %v13585_v45 = vpop.f32.mrf.mxu1 }
 0x5e5   :  { %v17167_v58 = vadd.f32 %v13585_v45, %v16962_v51  ;;  %v17182_v51 = vpop.f32.mrf.mxu0 }
 0x5e6   :  { %v17169_v43 = vpop.f32.mrf.mxu1  ;;  %19770 = vst [vmem:[#allocation21_spill] sm:$0xff] %v17182_v51 }
 0x5e7   :  { %19766 = vst [vmem:[#allocation23_spill] sm:$0xff] %v17169_v43  ;;  %v17189_v43 = vpop.f32.mrf.mxu0 }
 0x5e8   :  { %v13588_v12 = vpop.f32.mrf.mxu1  ;;  %13835 = vmatmul.mubr.bf16.gmra.mxu1 %v4985_v39  ;;  %19772 = vst [vmem:[#allocation27_spill] sm:$0xff] %v17189_v43 }
 0x5e9   :  { %v17176_v3 = vadd.f32 %v13588_v12, %v16973_v9  ;;  %6153 = vmatprep.mubr.bf16.mxu1 %v19769_v59 }
 0x5ea   :  { %v3937_v47 = vpop.f32.mrf.mxu1 }
 0x5eb   :  { %v17180_v5 = vadd.f32 %v3937_v47, %v16979_v23  ;;  %v17197_v23 = vpop.f32.mrf.mxu0 }
 0x5ec   :  { %v13589_v33 = vpop.f32.mrf.mxu1  ;;  %19773 = vst [vmem:[#allocation30_spill] sm:$0xff] %v17197_v23 }
 0x5ed   :  { %v17185_v45 = vadd.f32 %v13589_v33, %v16982_v41  ;;  %v17204_v33 = vpop.f32.mrf.mxu0 }
 0x5ee   :  { %v17187_v50 = vpop.f32.mrf.mxu1  ;;  %19775 = vst [vmem:[#allocation31_spill] sm:$0xff] %v17204_v33 }
 0x5ef   :  { %19771 = vst [vmem:[#allocation24_spill] sm:$0xff] %v17187_v50 }
 0x5f0   :  { %v13592_v39 = vpop.f32.mrf.mxu1 }
 0x5f1   :  { %v17192_v9 = vadd.f32 %v13592_v39, %v16993_v10 }
 0x5f2   :  { %v3953_v12 = vpop.f32.mrf.mxu1 }
 0x5f3   :  { %v17195_v59 = vadd.f32 %v3953_v12, %v16997_v4  ;;  %v17212_v4 = vpop.f32.mrf.mxu0 }
 0x5f4   :  { %v13593_v47 = vpop.f32.mrf.mxu1  ;;  %19776 = vst [vmem:[#allocation35_spill] sm:$0xff] %v17212_v4  ;;  %v19780_v4 = vld [vmem:[#allocation57_spill] sm:$0xff] }
 0x5f5   :  { %v17200_v11 = vadd.f32 %v13593_v47, %v17002_v18  ;;  %v19778_v47 = vld [vmem:[#allocation56_spill] sm:$0xff]  ;;  %v17221_v33 = vpop.f32.mrf.mxu0 }
 0x5f6   :  { %v17202_v41 = vpop.f32.mrf.mxu1 }
 0x5f7   :  { %19774 = vst [vmem:[#allocation32_spill] sm:$0xff] %v17202_v41  ;;  %v4305_v41 = vadd.f32 %v19778_v47, %v17029_v31  ;;  %v17231_v16 = vpop.f32.mrf.mxu0 }
 0x5f8   :  { %v13596_v50 = vpop.f32.mrf.mxu1 }
 0x5f9   :  { %v17207_v43 = vadd.f32 %v13596_v50, %v17011_v22  ;;  %v19779_v50 = vld [vmem:[#allocation33_spill] sm:$0xff]  ;;  %v17239_v47 = vpop.f32.mrf.mxu0 }
 0x5fa   :  { %v3969_v10 = vpop.f32.mrf.mxu1  ;;  %19782 = vst [vmem:[#allocation37_spill] sm:$0xff] %v17239_v47 }
 0x5fb   :  { %v17210_v39 = vadd.f32 %v3969_v10, %v17015_v13  ;;  %v4303_v13 = vadd.f32 %v19779_v50, %v17035_v54 }
 0x5fc   :  { %v13597_v12 = vpop.f32.mrf.mxu1 }
 0x5fd   :  { %v17215_v23 = vadd.f32 %v13597_v12, %v17020_v52  ;;  %v4306_v52 = vadd.f32 %v19780_v4, %v17038_v8  ;;  %v14053_v12 = vld [vmem:[#allocation5 + $0x74] ss:$8 sps:$4 sm:$0xff]   ;;  %v4307_v8 = vadd.f32 %v16812_v34, %v17053_v1 }
 0x5fe   :  { %v17217_v18 = vpop.f32.mrf.mxu1  ;;  %5925 = vmatprep.subr.bf16.mxu0 %v14053_v12  ;;  %v14065_v34 = vld [vmem:[#allocation5 + $0x274] ss:$8 sps:$4 sm:$0xff]  }
 0x5ff   :  { %19777 = vst [vmem:[#allocation36_spill] sm:$0xff] %v17217_v18  ;;  %6561 = vmatprep.subr.bf16.mxu1 %v14065_v34  ;;  %v19791_v34 = vld [vmem:[#allocation63_spill] sm:$0xff] }
 0x600   :  { %v13676_v51 = vpop.f32.mrf.mxu1 }
 0x601   :  { %v17223_v22 = vadd.f32 %v13676_v51, %v4305_v41  ;;  %v19781_v51 = vld [vmem:[#allocation58_spill] sm:$0xff] }
 0x602   :  { %v4447_v10 = vpop.f32.mrf.mxu1  ;;  %v4309_v41 = vadd.f32 %v19781_v51, %v17047_v19  ;;  %v19784_v51 = vld [vmem:[#allocation60_spill] sm:$0xff] }
 0x603   :  { %v17227_v48 = vadd.f32 %v4447_v10, %v4303_v13  ;;  %v17249_v10 = vpop.f32.mrf.mxu0 }
 0x604   :  { %v13677_v18 = vpop.f32.mrf.mxu1  ;;  %19783 = vst [vmem:[#allocation41_spill] sm:$0xff] %v17249_v10 }
 0x605   :  { %v17233_v20 = vadd.f32 %v13677_v18, %v4306_v52  ;;  %v4310_v18 = vadd.f32 %v16824_v40, %v17058_v63 }
 0x606   :  { %v17235_v31 = vpop.f32.mrf.mxu1 }
 0x608   :  { %v13680_v54 = vpop.f32.mrf.mxu1 }
 0x609   :  { %v17241_v50 = vadd.f32 %v13680_v54, %v4309_v41  ;;  %v4313_v41 = vadd.f32 %v19784_v51, %v17067_v27  ;;  %v17257_v54 = vpop.f32.mrf.mxu0 }
 0x60a   :  { %v4463_v4 = vpop.f32.mrf.mxu1  ;;  %19785 = vst [vmem:[#allocation42_spill] sm:$0xff] %v17257_v54 }
 0x60b   :  { %v17245_v13 = vadd.f32 %v4463_v4, %v4307_v8  ;;  %v4311_v8 = vadd.f32 %v16856_v60, %v17071_v24  ;;  %v19786_v4 = vld [vmem:[#allocation61_spill] sm:$0xff] }
 0x60c   :  { %v13681_v52 = vpop.f32.mrf.mxu1 }
 0x60d   :  { %v17251_v12 = vadd.f32 %v13681_v52, %v4310_v18  ;;  %v4314_v18 = vadd.f32 %v19786_v4, %v17076_v62  ;;  %v17267_v52 = vpop.f32.mrf.mxu0  ;;  %v19792_v4 = vld [vmem:[#allocation29_spill] sm:$0xff] }
 0x60e   :  { %v17253_v19 = vpop.f32.mrf.mxu1  ;;  %19787 = vst [vmem:[#allocation43_spill] sm:$0xff] %v17267_v52 }
 0x60f   :  { %v17275_v54 = vpop.f32.mrf.mxu0 }
 0x610   :  { %v13684_v47 = vpop.f32.mrf.mxu1  ;;  %19790 = vst [vmem:[#allocation48_spill] sm:$0xff] %v17275_v54 }
 0x611   :  { %v17259_v1 = vadd.f32 %v13684_v47, %v4313_v41  ;;  %v19789_v47 = vld [vmem:[#allocation26_spill] sm:$0xff] }
 0x612   :  { %v4479_v40 = vpop.f32.mrf.mxu1  ;;  %v4317_v41 = vadd.f32 %v19789_v47, %v17085_v21  ;;  %v19795_v47 = vld [vmem:[#allocation65_spill] sm:$0xff] }
 0x613   :  { %v17263_v63 = vadd.f32 %v4479_v40, %v4311_v8  ;;  %v4315_v8 = vadd.f32 %v19791_v34, %v17091_v14  ;;  %v19797_v34 = vld [vmem:[#allocation66_spill] sm:$0xff] }
 0x614   :  { %v13685_v10 = vpop.f32.mrf.mxu1 }
 0x615   :  { %v17269_v27 = vadd.f32 %v13685_v10, %v4314_v18  ;;  %v4318_v10 = vadd.f32 %v19792_v4, %v17094_v49  ;;  %v17285_v18 = vpop.f32.mrf.mxu0  ;;  %v4322_v4 = vadd.f32 %v16938_v37, %v17112_v2  ;;  %v4326_v37 = vadd.f32 %v16976_v25, %v17132_v28 }
 0x616   :  { %v17271_v51 = vpop.f32.mrf.mxu1  ;;  %19793 = vst [vmem:[#allocation50_spill] sm:$0xff] %v17285_v18 }
 0x617   :  { %19788 = vst [vmem:[#allocation47_spill] sm:$0xff] %v17269_v27 }
 0x618   :  { %v13688_v60 = vpop.f32.mrf.mxu1 }
 0x619   :  { %v17277_v24 = vadd.f32 %v13688_v60, %v4317_v41  ;;  %v4321_v41 = vadd.f32 %v19795_v47, %v17103_v44  ;;  %v17293_v60 = vpop.f32.mrf.mxu0  ;;  %v19798_v47 = vld [vmem:[#allocation68_spill] sm:$0xff] }
 0x61a   :  { %v4495_v40 = vpop.f32.mrf.mxu1  ;;  %19796 = vst [vmem:[#allocation55_spill] sm:$0xff] %v17293_v60 }
 0x61b   :  { %v17281_v62 = vadd.f32 %v4495_v40, %v4315_v8  ;;  %v4319_v8 = vadd.f32 %v19797_v34, %v17109_v15  ;;  %v19799_v15 = vld [vmem:[#allocation69_spill] sm:$0xff] }
 0x61c   :  { %v13689_v52 = vpop.f32.mrf.mxu1  ;;  %v4323_v34 = vadd.f32 %v19799_v15, %v17127_v32  ;;  %v19801_v15 = vld [vmem:[#allocation76_spill] sm:$0xff] }
 0x61d   :  { %v17287_v27 = vadd.f32 %v13689_v52, %v4318_v10  ;;  %v4830_v52 = vpop.f32.mrf.mxu0  ;;  %v4330_v25 = vadd.f32 %v19801_v15, %v17149_v55  ;;  %v4334_v55 = vadd.f32 %v17040_v36, %v17167_v58  ;;  %v4338_v36 = vadd.f32 %v17073_v57, %v17185_v45 }
 0x61e   :  { %v17289_v21 = vpop.f32.mrf.mxu1  ;;  %v4342_v57 = vadd.f32 %v17106_v53, %v17200_v11  ;;  %v19809_v11 = vld [vmem:[#allocation15_spill] sm:$0xff] }
 0x61f   :  { %19794 = vst [vmem:[#allocation52_spill] sm:$0xff] %v17287_v27 }
 0x620   :  { %v13692_v54 = vpop.f32.mrf.mxu1 }
 0x621   :  { %v17295_v14 = vadd.f32 %v13692_v54, %v4321_v41  ;;  %v4325_v54 = vadd.f32 %v19798_v47, %v17123_v6  ;;  %v4329_v6 = vadd.f32 %v16989_v7, %v17140_v29  ;;  %v19800_v47 = vld [vmem:[#allocation79_spill] sm:$0xff]  ;;  %v4333_v7 = vadd.f32 %v17022_v26, %v17157_v56 }
 0x622   :  { %v4511_v40 = vpop.f32.mrf.mxu1  ;;  %v4327_v32 = vadd.f32 %v19800_v47, %v17144_v0  ;;  %v4331_v0 = vadd.f32 %v17032_v38, %v17162_v42  ;;  %v4337_v26 = vadd.f32 %v17055_v61, %v17176_v3  ;;  %v4335_v38 = vadd.f32 %v17063_v17, %v17180_v5 }
 0x623   :  { %v4638_v49 = vadd.f32 %v4511_v40, %v4319_v8  ;;  %v4341_v61 = vadd.f32 %v17088_v30, %v17192_v9  ;;  %v4339_v17 = vadd.f32 %v17096_v35, %v17195_v59  ;;  %v4345_v9 = vadd.f32 %v17119_v46, %v17207_v43  ;;  %v19807_v59 = vld [vmem:[#allocation25_spill] sm:$0xff]  ;;  %v19812_v43 = vld [vmem:[#allocation18_spill] sm:$0xff] }
 0x624   :  { %v13693_v10 = vpop.f32.mrf.mxu1 }
 0x625   :  { %v17301_v18 = vadd.f32 %v13693_v10, %v4322_v4  ;;  %v17303_v27 = vadd.f32 %v4830_v52, %v4638_v49 }
 0x626   :  { %v17305_v44 = vpop.f32.mrf.mxu1 }
 0x628   :  { %v13696_v41 = vpop.f32.mrf.mxu1 }
 0x629   :  { %v17309_v60 = vadd.f32 %v13696_v41, %v4325_v54 }
 0x62a   :  { %v4527_v8 = vpop.f32.mrf.mxu1 }
 0x62b   :  { %v17313_v40 = vadd.f32 %v4527_v8, %v4323_v34 }
 0x62c   :  { %v13697_v2 = vpop.f32.mrf.mxu1 }
 0x62d   :  { %v17317_v49 = vadd.f32 %v13697_v2, %v4326_v37 }
 0x62e   :  { %v17319_v4 = vpop.f32.mrf.mxu1 }
 0x630   :  { %v13700_v52 = vpop.f32.mrf.mxu1 }
 0x631   :  { %v17323_v10 = vadd.f32 %v13700_v52, %v4329_v6 }
 0x632   :  { %v4543_v54 = vpop.f32.mrf.mxu1 }
 0x633   :  { %v17327_v41 = vadd.f32 %v4543_v54, %v4327_v32 }
 0x634   :  { %v13701_v28 = vpop.f32.mrf.mxu1 }
 0x635   :  { %v17331_v34 = vadd.f32 %v13701_v28, %v4330_v25 }
 0x636   :  { %v17333_v8 = vpop.f32.mrf.mxu1 }
 0x638   :  { %v13704_v29 = vpop.f32.mrf.mxu1 }
 0x639   :  { %v17337_v37 = vadd.f32 %v13704_v29, %v4333_v7  ;;  %v17365_v7 = vpop.f32.mrf.mxu0 }
 0x63a   :  { %v4559_v2 = vpop.f32.mrf.mxu1 }
 0x63b   :  { %v17341_v6 = vadd.f32 %v4559_v2, %v4331_v0  ;;  %v17375_v2 = vpop.f32.mrf.mxu0 }
 0x63c   :  { %v13705_v52 = vpop.f32.mrf.mxu1 }
 0x63d   :  { %v17345_v47 = vadd.f32 %v13705_v52, %v4334_v55 }
 0x63e   :  { %v17347_v32 = vpop.f32.mrf.mxu1 }
 0x640   :  { %v13708_v56 = vpop.f32.mrf.mxu1 }
 0x641   :  { %v17351_v54 = vadd.f32 %v13708_v56, %v4337_v26  ;;  %v17383_v26 = vpop.f32.mrf.mxu0  ;;  %v4343_v56 = vadd.f32 %v19807_v59, %v17210_v39 }
 0x642   :  { %v4575_v42 = vpop.f32.mrf.mxu1 }
 0x643   :  { %v17355_v15 = vadd.f32 %v4575_v42, %v4335_v38  ;;  %v4346_v42 = vadd.f32 %v19809_v11, %v17215_v23 }
 0x644   :  { %v13709_v58 = vpop.f32.mrf.mxu1 }
 0x645   :  { %v17359_v25 = vadd.f32 %v13709_v58, %v4338_v36  ;;  %v17393_v58 = vpop.f32.mrf.mxu0 }
 0x646   :  { %v17361_v28 = vpop.f32.mrf.mxu1 }
 0x647   :  { %v17408_v23 = vpop.f32.mrf.mxu0 }
 0x648   :  { %v13712_v3 = vpop.f32.mrf.mxu1 }
 0x649   :  { %v17367_v29 = vadd.f32 %v13712_v3, %v4341_v61  ;;  %v4943_v3 = vadd.f32 %v19812_v43, %v17223_v22 }
 0x64a   :  { %v4591_v5 = vpop.f32.mrf.mxu1 }
 0x64b   :  { %19802 = vst [vmem:[#allocation53_spill] sm:$0xff] %v17367_v29  ;;  %v17371_v0 = vadd.f32 %v4591_v5, %v4339_v17  ;;  %v19813_v17 = vld [vmem:[#allocation75_spill] sm:$0xff]  ;;  %v19814_v5 = vld [vmem:[#allocation34_spill] sm:$0xff]  ;;  %v19826_v29 = vmov 0  }
 0x64c   :  { %v13713_v45 = vpop.f32.mrf.mxu1 }
 0x64d   :  { %19803 = vst [vmem:[#allocation80_spill] sm:$0xff] %v17371_v0  ;;  %v17377_v55 = vadd.f32 %v13713_v45, %v4342_v57  ;;  %v4304_v57 = vadd.f32 %v19814_v5, %v19813_v17  ;;  %v17406_v45 = vld [vmem:[%s19260_s4] ss:$0 sm:$0xff]  ;;  %v17416_v17 = vpop.f32.mrf.mxu0 }
 0x64e   :  { %v17379_v30 = vpop.f32.mrf.mxu1 }
 0x64f   :  { %19804 = vst [vmem:[#allocation11_spill] sm:$0xff] %v17377_v55  ;;  %19805 = vst [vmem:[#allocation13_spill] sm:$0xff] %v17379_v30 }
 0x650   :  { %v13716_v52 = vpop.f32.mrf.mxu1 }
 0x651   :  { %v17385_v35 = vadd.f32 %v13716_v52, %v4345_v9  ;;  %v19815_v52 = vld [vmem:[#allocation28_spill] sm:$0xff] }
 0x652   :  { %v4607_v38 = vpop.f32.mrf.mxu1  ;;  %v4941_v59 = vadd.f32 %v19815_v52, %v17227_v48 }
 0x653   :  { %19806 = vst [vmem:[#allocation16_spill] sm:$0xff] %v17385_v35  ;;  %v17389_v53 = vadd.f32 %v4607_v38, %v4343_v56  ;;  %v4623_v56 = vadd.f32 %v17235_v31, %v4304_v57  ;;  %v19818_v31 = vld [vmem:[#allocation27_spill] sm:$0xff]  ;;  %v19822_v35 = vmov 0.0  }
 0x654   :  { %v13717_v36 = vpop.f32.mrf.mxu1  ;;  %v4947_v57 = vadd.f32 %v19818_v31, %v17241_v50 }
 0x655   :  { %19808 = vst [vmem:[#allocation19_spill] sm:$0xff] %v17389_v53  ;;  %v17395_v61 = vadd.f32 %v13717_v36, %v4346_v42  ;;  %v19816_v42 = vld [vmem:[#allocation88_spill] sm:$0xff] }
 0x656   :  { %v17397_v46 = vpop.f32.mrf.mxu1  ;;  %v4944_v36 = vadd.f32 %v19816_v42, %v17233_v20  ;;  %v19821_v42 = vld [vmem:[#allocation59_spill] sm:$0xff] }
 0x657   :  { %19810 = vst [vmem:[#allocation22_spill] sm:$0xff] %v17395_v61  ;;  %19811 = vst [vmem:[#allocation38_spill] sm:$0xff] %v17397_v46 }
 0x658   :  { %v13796_v39 = vpop.f32.mrf.mxu1 }
 0x659   :  { %v5262_v9 = vadd.f32 %v13796_v39, %v4943_v3  ;;  %v19817_v39 = vld [vmem:[#allocation21_spill] sm:$0xff] }
 0x65a   :  { %v5085_v38 = vpop.f32.mrf.mxu1  ;;  %v4942_v46 = vadd.f32 %v19817_v39, %v4623_v56  ;;  %v14056_v56 = vld [vmem:[#allocation5 + $0x64] ss:$8 sps:$4 sm:$0xff]   ;;  %v17429_v39 = vpop.f32.mrf.mxu0 }
 0x65b   :  { %v5313_v22 = vadd.f32 %v17406_v45, %v5262_v9  ;;  %v5260_v11 = vadd.f32 %v5085_v38, %v4941_v59  ;;  %v14051_v59 = vld [vmem:[#allocation5 + $0x70] ss:$8 sps:$4 sm:$0xff]  }
 0x65c   :  { %v13797_v43 = vpop.f32.mrf.mxu1  ;;  %v19820_v38 = vld [vmem:[#allocation81_spill] sm:$0xff] }
 0x65d   :  { %vm5357_vm4 = vcmp.ge.f32.partialorder %v5313_v22, 0.0  ;;  %v5401_v5 = vmul.f32 0.1, %v5313_v22  ;;  %v5311_v61 = vadd.f32 %v17406_v45, %v5260_v11  ;;  %v5263_v3 = vadd.f32 %v13797_v43, %v4944_v36 }
 0x65e   :  { %v5088_v48 = vpop.f32.mrf.mxu1  ;;  %v4308_v53 = vadd.f32 %v19821_v42, %v19820_v38  ;;  %v19824_v42 = vld [vmem:[#allocation31_spill] sm:$0xff] }
 0x65f   :  { %v17422_v52 = vsel %vm5357_vm4, %v5313_v22, %v5401_v5  ;;  %vm5355_vm5 = vcmp.ge.f32.partialorder %v5311_v61, 0.0  ;;  %v5399_v9 = vmul.f32 0.1, %v5311_v61  ;;  %v5314_v20 = vadd.f32 %v17406_v45, %v5263_v3  ;;  %v19823_v5 = vld [vmem:[#allocation30_spill] sm:$0xff] }
 0x660   :  { %19819 = vst [vmem:[#allocation39_spill] sm:$0xff] %v17422_v52  ;;  %v5649_v11 = vpack.c.bf16 %v17422_v52, %v19822_v35  ;;  %v5261_v36 = vadd.f32 %v5088_v48, %v4942_v46  ;;  %v13800_v43 = vpop.f32.mrf.mxu1  ;;  %v4945_v31 = vadd.f32 %v19823_v5, %v17245_v13  ;;  %v4627_v3 = vadd.f32 %v17253_v19, %v4308_v53 }
 0x661   :  { %vm5358_vm6 = vcmp.ge.f32.partialorder %v5314_v20, 0.0  ;;  %v5402_v50 = vmul.f32 0.1, %v5314_v20  ;;  %v5266_v22 = vadd.f32 %v13800_v43, %v4947_v57  ;;  %v5443_v55 = vsel %vm5355_vm5, %v5311_v61, %v5399_v9  ;;  %v14054_v57 = vld [vmem:[#allocation5 + $0x60] ss:$8 sps:$4 sm:$0xff]  }
 0x662   :  { %v5312_v30 = vadd.f32 %v17406_v45, %v5261_v36  ;;  %v5101_v38 = vpop.f32.mrf.mxu1  ;;  %5785 = vmatmul.mubr.bf16.vlgmr.msra.gmra.mxu0 %v5649_v11  ;;  %v4948_v46 = vadd.f32 %v19824_v42, %v17251_v12  ;;  %v14059_v61 = vld [vmem:[#allocation5 + $0x54] ss:$8 sps:$4 sm:$0xff]   ;;  %v14063_v9 = vld [vmem:[#allocation5 + $0x270] ss:$8 sps:$4 sm:$0xff]   ;;  %v17442_v11 = vpop.f32.mrf.mxu0  ;;  %v14071_v43 = vld [vmem:[#allocation5 + $0x264] ss:$8 sps:$4 sm:$0xff]  }
 0x663   :  { %v17437_v48 = vsel %vm5358_vm6, %v5314_v20, %v5402_v50  ;;  %v5317_v35 = vadd.f32 %v17406_v45, %v5266_v22  ;;  %v5264_v0 = vadd.f32 %v5101_v38, %v4945_v31  ;;  %5794 = vmatprep.mubr.bf16.mxu0 %v19826_v29  ;;  %5926 = vmatpush1.bf16.msra.mxu0 %v14051_v59  ;;  %v19827_v50 = vld [vmem:[#allocation82_spill] sm:$0xff]  ;;  %v19829_v59 = vld [vmem:[#allocation35_spill] sm:$0xff] }
 0x664   :  { %19825 = vst [vmem:[#allocation40_spill] sm:$0xff] %v17437_v48  ;;  %v6018_v13 = vpack.c.bf16 %v17437_v48, %v5443_v55  ;;  %v5400_v19 = vmul.f32 0.1, %v5312_v30  ;;  %v13801_v53 = vpop.f32.mrf.mxu1  ;;  %5927 = vmatprep.subr.bf16.mxu0 %v14056_v56  ;;  %v19828_v22 = vld [vmem:[#allocation62_spill] sm:$0xff]  ;;  %vm5356_vm8 = vcmp.ge.f32.partialorder %v5312_v30, 0.0  ;;  %v4946_v31 = vadd.f32 %v19829_v59, %v4627_v3 }
 0x665   :  { %vm5361_vm7 = vcmp.ge.f32.partialorder %v5317_v35, 0.0  ;;  %v5405_v12 = vmul.f32 0.1, %v5317_v35  ;;  %v5315_v20 = vadd.f32 %v17406_v45, %v5264_v0  ;;  %v5267_v36 = vadd.f32 %v13801_v53, %v4948_v46  ;;  %v14057_v46 = vld [vmem:[#allocation5 + $0x50] ss:$8 sps:$4 sm:$0xff]  }
 0x666   :  { %v4312_v5 = vadd.f32 %v19828_v22, %v19827_v50  ;;  %v5104_v55 = vpop.f32.mrf.mxu1  ;;  %6154 = vmatmul.mubr.bf16.vlgmr.msra.gmra.mxu1 %v6018_v13  ;;  %v4951_v56 = vadd.f32 %v17221_v33, %v17259_v1  ;;  %v4949_v0 = vadd.f32 %v17231_v16, %v17263_v63  ;;  %v14062_v33 = vld [vmem:[#allocation5 + $0x44] ss:$8 sps:$4 sm:$0xff]   ;;  %v14069_v1 = vld [vmem:[#allocation5 + $0x260] ss:$8 sps:$4 sm:$0xff]   ;;  %v17462_v16 = vsel %vm5356_vm8, %v5312_v30, %v5400_v19  ;;  %v14074_v22 = vld [vmem:[#allocation5 + $0x254] ss:$8 sps:$4 sm:$0xff]  }
 0x667   :  { %v17450_v38 = vsel %vm5361_vm7, %v5317_v35, %v5405_v12  ;;  %vm5359_vm9 = vcmp.ge.f32.partialorder %v5315_v20, 0.0  ;;  %v5403_v42 = vmul.f32 0.1, %v5315_v20  ;;  %6163 = vmatprep.mubr.bf16.mxu1 %v19826_v29  ;;  %5928 = vmatpush1.bf16.msra.mxu0 %v14054_v57  ;;  %v5318_v3 = vadd.f32 %v17406_v45, %v5267_v36  ;;  %v17458_v35 = vpop.f32.mrf.mxu0  ;;  %19830 = vst [vmem:[#allocation44_spill] sm:$0xff] %v17462_v16  ;;  %v19833_v30 = vld [vmem:[#allocation37_spill] sm:$0xff] }
 0x668   :  { %v5265_v13 = vadd.f32 %v5104_v55, %v4946_v31  ;;  %v13804_v50 = vpop.f32.mrf.mxu1  ;;  %5929 = vmatprep.subr.bf16.mxu0 %v14059_v61  ;;  %6562 = vmatpush1.bf16.msra.mxu1 %v14063_v9  ;;  %v4631_v12 = vadd.f32 %v17271_v51, %v4312_v5  ;;  %v19832_v5 = vld [vmem:[#allocation47_spill] sm:$0xff]  ;;  %v14072_v55 = vld [vmem:[#allocation5 + $0x250] ss:$8 sps:$4 sm:$0xff]   ;;  %v14068_v48 = vld [vmem:[#allocation5 + $0x34] ss:$8 sps:$4 sm:$0xff]  }
 0x669   :  { %v17465_v63 = vsel %vm5359_vm9, %v5315_v20, %v5403_v42  ;;  %v5270_v57 = vadd.f32 %v13804_v50, %v4951_v56  ;;  %6563 = vmatprep.subr.bf16.mxu1 %v14071_v43  ;;  %vm5362_vm10 = vcmp.ge.f32.partialorder %v5318_v3, 0.0  ;;  %v5406_v61 = vmul.f32 0.1, %v5318_v3  ;;  %v14060_v20 = vld [vmem:[#allocation5 + $0x40] ss:$8 sps:$4 sm:$0xff]   ;;  %v19834_v56 = vld [vmem:[#allocation14_spill] sm:$0xff] }
 0x66a   :  { %19831 = vst [vmem:[#allocation45_spill] sm:$0xff] %v17465_v63  ;;  %v5316_v9 = vadd.f32 %v17406_v45, %v5265_v13  ;;  %v5117_v59 = vpop.f32.mrf.mxu1  ;;  %v4952_v19 = vadd.f32 %v19833_v30, %v19832_v5  ;;  %v19835_v43 = vld [vmem:[#allocation64_spill] sm:$0xff]  ;;  %v17475_v13 = vpop.f32.mrf.mxu0  ;;  %v19837_v30 = vld [vmem:[#allocation41_spill] sm:$0xff] }
 0x66b   :  { %v5321_v31 = vadd.f32 %v17406_v45, %v5270_v57  ;;  %v5268_v51 = vadd.f32 %v5117_v59, %v4949_v0  ;;  %5930 = vmatpush1.bf16.msra.mxu0 %v14057_v46  ;;  %v4316_v42 = vadd.f32 %v19835_v43, %v19834_v56  ;;  %v5450_v50 = vsel %vm5362_vm10, %v5318_v3, %v5406_v61  ;;  %v14080_v46 = vld [vmem:[#allocation5 + $0x244] ss:$8 sps:$4 sm:$0xff]   ;;  %v19838_v61 = vld [vmem:[#allocation42_spill] sm:$0xff] }
 0x66c   :  { %vm5360_vm11 = vcmp.ge.f32.partialorder %v5316_v9, 0.0  ;;  %v5404_v53 = vmul.f32 0.1, %v5316_v9  ;;  %v13805_v36 = vpop.f32.mrf.mxu1  ;;  %5931 = vmatprep.subr.bf16.mxu0 %v14062_v33  ;;  %6564 = vmatpush1.bf16.msra.mxu1 %v14069_v1  ;;  %v4950_v56 = vadd.f32 %v19837_v30, %v4631_v12  ;;  %v4955_v43 = vadd.f32 %v19838_v61, %v17277_v24  ;;  %v19841_v61 = vld [vmem:[#allocation43_spill] sm:$0xff] }
 0x66d   :  { %vm5365_vm12 = vcmp.ge.f32.partialorder %v5321_v31, 0.0  ;;  %v5409_v0 = vmul.f32 0.1, %v5321_v31  ;;  %v5319_v57 = vadd.f32 %v17406_v45, %v5268_v51  ;;  %v5271_v59 = vadd.f32 %v13805_v36, %v4952_v19  ;;  %6565 = vmatprep.subr.bf16.mxu1 %v14074_v22  ;;  %v14066_v22 = vld [vmem:[#allocation5 + $0x30] ss:$8 sps:$4 sm:$0xff]   ;;  %v17494_v19 = vpop.f32.mrf.mxu0 }
 0x66e   :  { %v17478_v5 = vsel %vm5360_vm11, %v5316_v9, %v5404_v53  ;;  %v5120_v3 = vpop.f32.mrf.mxu1  ;;  %v17484_v33 = vpack.c.bf16 %v5450_v50, %v17465_v63  ;;  %v14077_v51 = vld [vmem:[#allocation5 + $0x24] ss:$8 sps:$4 sm:$0xff]   ;;  %v4635_v30 = vadd.f32 %v17289_v21, %v4316_v42  ;;  %v14078_v1 = vld [vmem:[#allocation5 + $0x240] ss:$8 sps:$4 sm:$0xff]  }
 0x66f   :  { %19836 = vst [vmem:[#allocation46_spill] sm:$0xff] %v17478_v5  ;;  %v17488_v16 = vsel %vm5365_vm12, %v5321_v31, %v5409_v0  ;;  %vm5363_vm13 = vcmp.ge.f32.partialorder %v5319_v57, 0.0  ;;  %v5407_v36 = vmul.f32 0.1, %v5319_v57  ;;  %5932 = vmatpush1.bf16.msra.mxu0 %v14060_v20  ;;  %v5322_v53 = vadd.f32 %v17406_v45, %v5271_v59 }
 0x670   :  { %19839 = vst [vmem:[#allocation49_spill] sm:$0xff] %v17484_v33  ;;  %v5269_v9 = vadd.f32 %v5120_v3, %v4950_v56  ;;  %v13808_v12 = vpop.f32.mrf.mxu1  ;;  %5933 = vmatprep.subr.bf16.mxu0 %v14068_v48  ;;  %6566 = vmatpush1.bf16.msra.mxu1 %v14072_v55  ;;  %v17492_v24 = vpack.c.bf16 %v17488_v16, %v5450_v50  ;;  %v14086_v50 = vld [vmem:[#allocation5 + $0x234] ss:$8 sps:$4 sm:$0xff]  }
 0x671   :  { %v5451_v31 = vsel %vm5363_vm13, %v5319_v57, %v5407_v36  ;;  %v5274_v0 = vadd.f32 %v13808_v12, %v4955_v43  ;;  %v4953_v20 = vadd.f32 %v19841_v61, %v17281_v62  ;;  %6567 = vmatprep.subr.bf16.mxu1 %v14080_v46  ;;  %vm5366_vm14 = vcmp.ge.f32.partialorder %v5322_v53, 0.0  ;;  %v19843_v3 = vld [vmem:[#allocation85_spill] sm:$0xff]  ;;  %v19845_v57 = vld [vmem:[#allocation52_spill] sm:$0xff]  ;;  %v19848_v12 = vld [vmem:[#allocation86_spill] sm:$0xff] }
 0x672   :  { %19840 = vst [vmem:[#allocation51_spill] sm:$0xff] %v17492_v24  ;;  %v5410_v59 = vmul.f32 0.1, %v5322_v53  ;;  %v5320_v48 = vadd.f32 %v17406_v45, %v5269_v9  ;;  %v5133_v55 = vpop.f32.mrf.mxu1  ;;  %v17501_v56 = vpack.c.bf16 %v5451_v31, %v17478_v5  ;;  %v19844_v24 = vld [vmem:[#allocation67_spill] sm:$0xff]  ;;  %v19846_v43 = vld [vmem:[#allocation48_spill] sm:$0xff]  ;;  %v19847_v36 = vld [vmem:[#allocation77_spill] sm:$0xff] }
 0x673   :  { %v4320_v63 = vadd.f32 %v19844_v24, %v19843_v3  ;;  %v5325_v21 = vadd.f32 %v17406_v45, %v5274_v0  ;;  %v5272_v42 = vadd.f32 %v5133_v55, %v4953_v20  ;;  %v4956_v62 = vadd.f32 %v19846_v43, %v19845_v57  ;;  %5934 = vmatpush1.bf16.msra.mxu0 %v14066_v22  ;;  %v14075_v46 = vld [vmem:[#allocation5 + $0x20] ss:$8 sps:$4 sm:$0xff]   ;;  %v14083_v5 = vld [vmem:[#allocation5 + $0x14] ss:$8 sps:$4 sm:$0xff]   ;;  %v17511_v24 = vpop.f32.mrf.mxu0  ;;  %v14084_v22 = vld [vmem:[#allocation5 + $0x230] ss:$8 sps:$4 sm:$0xff]  }
 0x674   :  { %19842 = vst [vmem:[#allocation54_spill] sm:$0xff] %v17501_v56  ;;  %v4005_v61 = vadd.f32 %v19848_v12, %v19847_v36  ;;  %v5454_v9 = vsel %vm5366_vm14, %v5322_v53, %v5410_v59  ;;  %vm5364_vm15 = vcmp.ge.f32.partialorder %v5320_v48, 0.0  ;;  %v5408_v33 = vmul.f32 0.1, %v5320_v48  ;;  %v13809_v52 = vpop.f32.mrf.mxu1  ;;  %5795 = vmatmul.mubr.bf16.gmra.mxu0 %v17501_v56  ;;  %5935 = vmatprep.subr.bf16.mxu0 %v14077_v51  ;;  %v19849_v53 = vld [vmem:[#allocation50_spill] sm:$0xff]  ;;  %v19850_v43 = vld [vmem:[#allocation55_spill] sm:$0xff] }
 0x675   :  { %vm5369_vm1 = vcmp.ge.f32.partialorder %v5325_v21, 0.0  ;;  %v5413_v0 = vmul.f32 0.1, %v5325_v21  ;;  %v5323_v20 = vadd.f32 %v17406_v45, %v5272_v42  ;;  %v5275_v55 = vadd.f32 %v13809_v52, %v4956_v62  ;;  %5804 = vmatprep.mubr.bf16.mxu0 %v19826_v29  ;;  %6568 = vmatpush1.bf16.msra.mxu1 %v14078_v1  ;;  %v14089_v51 = vld [vmem:[#allocation5 + $0x224] ss:$8 sps:$4 sm:$0xff]  }
 0x676   :  { %v5452_v3 = vsel %vm5364_vm15, %v5320_v48, %v5408_v33  ;;  %v4954_v59 = vadd.f32 %v19849_v53, %v4635_v30  ;;  %v5136_v57 = vpop.f32.mrf.mxu1  ;;  %v4959_v36 = vadd.f32 %v19850_v43, %v17295_v14  ;;  %6569 = vmatprep.subr.bf16.mxu1 %v14086_v50  ;;  %v17518_v12 = vpack.c.bf16 %v5454_v9, %v5451_v31  ;;  %v14081_v1 = vld [vmem:[#allocation5 + $0x10] ss:$8 sps:$4 sm:$0xff]   ;;  %v14092_v31 = vld [vmem:[#allocation5 + $0x4] ss:$8 sps:$4 sm:$0xff]   ;;  %v17530_v50 = vpop.f32.mrf.mxu0 }
 0x677   :  { %v17520_v56 = vsel %vm5369_vm1, %v5325_v21, %v5413_v0  ;;  %vm5367_vm2 = vcmp.ge.f32.partialorder %v5323_v20, 0.0  ;;  %v5411_v42 = vmul.f32 0.1, %v5323_v20  ;;  %v5326_v52 = vadd.f32 %v17406_v45, %v5275_v55  ;;  %5936 = vmatpush1.bf16.msra.mxu0 %v14075_v46  ;;  %v14087_v46 = vld [vmem:[#allocation5 + $0x220] ss:$8 sps:$4 sm:$0xff]  }
 0x678   :  { %v4639_v33 = vadd.f32 %v17305_v44, %v4320_v63  ;;  %v5273_v48 = vadd.f32 %v5136_v57, %v4954_v59  ;;  %v13812_v30 = vpop.f32.mrf.mxu1  ;;  %v17525_v62 = vpack.c.bf16 %v5452_v3, %v17450_v38  ;;  %v17528_v14 = vpack.c.bf16 %v17520_v56, %v5454_v9  ;;  %5937 = vmatprep.subr.bf16.mxu0 %v14083_v5  ;;  %v14095_v9 = vld [vmem:[#allocation5 + $0x214] ss:$8 sps:$4 sm:$0xff]   ;;  %v19853_v43 = vld [vmem:[#allocation71_spill] sm:$0xff] }
 0x679   :  { %v5455_v21 = vsel %vm5367_vm2, %v5323_v20, %v5411_v42  ;;  %vm5370_vm3 = vcmp.ge.f32.partialorder %v5326_v52, 0.0  ;;  %v5414_v0 = vmul.f32 0.1, %v5326_v52  ;;  %v5278_v55 = vadd.f32 %v13812_v30, %v4959_v36  ;;  %6570 = vmatpush1.bf16.msra.mxu1 %v14084_v22  ;;  %v14090_v22 = vld [vmem:[#allocation5] ss:$8 sps:$4 sm:$0xff]  }
 0x67a   :  { %19851 = vst [vmem:[#allocation56_spill] sm:$0xff] %v17528_v14  ;;  %v5324_v44 = vadd.f32 %v17406_v45, %v5273_v48  ;;  %6164 = vmatmul.mubr.bf16.gmra.mxu1 %v17525_v62  ;;  %v5149_v63 = vpop.f32.mrf.mxu1  ;;  %v4960_v53 = vadd.f32 %v17365_v7, %v17301_v18  ;;  %6571 = vmatprep.subr.bf16.mxu1 %v14089_v51  ;;  %v14098_v7 = vld [vmem:[#allocation5 + $0x1f4] ss:$8 sps:$4 sm:$0xff]   ;;  %v19856_v30 = vld [vmem:[#allocation87_spill] sm:$0xff] }
 0x67b   :  { %v17536_v5 = vpack.c.bf16 %v5455_v21, %v5452_v3  ;;  %v5458_v59 = vsel %vm5370_vm3, %v5326_v52, %v5414_v0  ;;  %v5329_v20 = vadd.f32 %v17406_v45, %v5278_v55  ;;  %v5276_v57 = vadd.f32 %v5149_v63, %v17303_v27  ;;  %6173 = vmatprep.mubr.bf16.mxu1 %v19826_v29  ;;  %v17545_v3 = vpop.f32.mrf.mxu0 }
 0x67c   :  { %5938 = vmatpush1.bf16.msra.mxu0 %v14081_v1  ;;  %v4324_v36 = vadd.f32 %v19853_v43, %v4005_v61  ;;  %vm5368_vm4 = vcmp.ge.f32.partialorder %v5324_v44, 0.0  ;;  %v5412_v42 = vmul.f32 0.1, %v5324_v44  ;;  %v13813_v48 = vpop.f32.mrf.mxu1  ;;  %v17543_v18 = vpack.c.bf16 %v5458_v59, %v5455_v21  ;;  %v14093_v61 = vld [vmem:[#allocation5 + $0x210] ss:$8 sps:$4 sm:$0xff]  }
 0x67d   :  { %19852 = vst [vmem:[#allocation33_spill] sm:$0xff] %v17536_v5  ;;  %5805 = vmatmul.mubr.bf16.gmra.mxu0 %v17528_v14  ;;  %5939 = vmatprep.subr.bf16.mxu0 %v14092_v31  ;;  %vm5373_vm5 = vcmp.ge.f32.partialorder %v5329_v20, 0.0  ;;  %v5417_v51 = vmul.f32 0.1, %v5329_v20  ;;  %v5327_v27 = vadd.f32 %v17406_v45, %v5276_v57  ;;  %v5279_v52 = vadd.f32 %v13813_v48, %v4960_v53  ;;  %v19855_v1 = vld [vmem:[#allocation78_spill] sm:$0xff] }
 0x67e   :  { %19854 = vst [vmem:[#allocation57_spill] sm:$0xff] %v17543_v18  ;;  %5814 = vmatprep.mubr.bf16.mxu0 %v19826_v29  ;;  %6572 = vmatpush1.bf16.msra.mxu1 %v14087_v46  ;;  %v4009_v0 = vadd.f32 %v19856_v30, %v19855_v1  ;;  %v5456_v55 = vsel %vm5368_vm4, %v5324_v44, %v5412_v42  ;;  %v5152_v31 = vpop.f32.mrf.mxu1  ;;  %v14101_v43 = vld [vmem:[#allocation5 + $0x204] ss:$8 sps:$4 sm:$0xff]  }
 0x67f   :  { %v4958_v21 = vadd.f32 %v17375_v2, %v4639_v33  ;;  %v4963_v63 = vadd.f32 %v17383_v26, %v17309_v60  ;;  %6573 = vmatprep.subr.bf16.mxu1 %v14095_v9  ;;  %v17555_v14 = vsel %vm5373_vm5, %v5329_v20, %v5417_v51  ;;  %vm5371_vm6 = vcmp.ge.f32.partialorder %v5327_v27, 0.0  ;;  %v17566_v26 = vpop.f32.mrf.mxu0 }
 0x680   :  { %v5415_v53 = vmul.f32 0.1, %v5327_v27  ;;  %v5330_v46 = vadd.f32 %v17406_v45, %v5279_v52  ;;  %5940 = vmatpush1.bf16.msra.mxu0 %v14090_v22  ;;  %v13816_v48 = vpop.f32.mrf.mxu1  ;;  %v4961_v44 = vadd.f32 %v17393_v58, %v17313_v40  ;;  %v17561_v2 = vpack.c.bf16 %v5456_v55, %v17488_v16  ;;  %v14099_v22 = vld [vmem:[#allocation5 + $0x200] ss:$8 sps:$4 sm:$0xff]   ;;  %v14113_v58 = vld [vmem:[#allocation5 + $0x374] ss:$8 sps:$4 sm:$0xff]  }
 0x681   :  { %v5277_v57 = vadd.f32 %v5152_v31, %v4958_v21  ;;  %6341 = vmatprep.subr.bf16.mxu0 %v14098_v7  ;;  %v17564_v60 = vpack.c.bf16 %v17555_v14, %v5458_v59  ;;  %v5282_v20 = vadd.f32 %v13816_v48, %v4963_v63  ;;  %v4643_v42 = vadd.f32 %v17319_v4, %v4324_v36  ;;  %v17579_v1 = vpop.f32.mrf.mxu0  ;;  %v19858_v31 = vld [vmem:[#allocation74_spill] sm:$0xff] }
 0x682   :  { %v5459_v33 = vsel %vm5371_vm6, %v5327_v27, %v5415_v53  ;;  %vm5374_vm7 = vcmp.ge.f32.partialorder %v5330_v46, 0.0  ;;  %v5418_v9 = vmul.f32 0.1, %v5330_v46  ;;  %6574 = vmatpush1.bf16.msra.mxu1 %v14093_v61  ;;  %v5165_v40 = vpop.f32.mrf.mxu1  ;;  %v4964_v52 = vadd.f32 %v17408_v23, %v17317_v49 }
 0x683   :  { %19857 = vst [vmem:[#allocation58_spill] sm:$0xff] %v17564_v60  ;;  %v5328_v51 = vadd.f32 %v17406_v45, %v5277_v57  ;;  %6174 = vmatmul.mubr.bf16.gmra.mxu1 %v17543_v18  ;;  %6575 = vmatprep.subr.bf16.mxu1 %v14101_v43  ;;  %v17571_v16 = vpack.c.bf16 %v5459_v33, %v5456_v55 }
 0x684   :  { %v5462_v59 = vsel %vm5374_vm7, %v5330_v46, %v5418_v9  ;;  %v5333_v7 = vadd.f32 %v17406_v45, %v5282_v20  ;;  %v5280_v27 = vadd.f32 %v5165_v40, %v4961_v44  ;;  %6183 = vmatprep.mubr.bf16.mxu1 %v19826_v29  ;;  %v13817_v36 = vpop.f32.mrf.mxu1  ;;  %v4328_v63 = vadd.f32 %v19858_v31, %v4009_v0  ;;  %v17597_v20 = vpop.f32.mrf.mxu0 }
 0x685   :  { %vm5372_vm8 = vcmp.ge.f32.partialorder %v5328_v51, 0.0  ;;  %v5416_v4 = vmul.f32 0.1, %v5328_v51  ;;  %v17577_v61 = vpack.c.bf16 %v5462_v59, %v5459_v33  ;;  %v5283_v21 = vadd.f32 %v13817_v36, %v4964_v52 }
 0x686   :  { %vm5377_vm9 = vcmp.ge.f32.partialorder %v5333_v7, 0.0  ;;  %v5421_v30 = vmul.f32 0.1, %v5333_v7  ;;  %v5331_v55 = vadd.f32 %v17406_v45, %v5280_v27  ;;  %6576 = vmatpush1.bf16.msra.mxu1 %v14099_v22  ;;  %v4962_v49 = vadd.f32 %v17416_v17, %v4643_v42  ;;  %v5168_v23 = vpop.f32.mrf.mxu1  ;;  %v19859_v42 = vld [vmem:[#allocation70_spill] sm:$0xff] }
 0x687   :  { %v5460_v43 = vsel %vm5372_vm8, %v5328_v51, %v5416_v4  ;;  %v4967_v53 = vadd.f32 %v17429_v39, %v17323_v10  ;;  %6996 = vmatprep.subr.bf16.mxu1 %v14113_v58  ;;  %v5334_v48 = vadd.f32 %v17406_v45, %v5283_v21  ;;  %v4965_v9 = vadd.f32 %v17442_v11, %v17327_v41  ;;  %v19860_v51 = vld [vmem:[#allocation23_spill] sm:$0xff] }
 0x688   :  { %v17586_v46 = vsel %vm5377_vm9, %v5333_v7, %v5421_v30  ;;  %vm5375_vm10 = vcmp.ge.f32.partialorder %v5331_v55, 0.0  ;;  %v5419_v57 = vmul.f32 0.1, %v5331_v55  ;;  %v5281_v44 = vadd.f32 %v5168_v23, %v4962_v49  ;;  %v13820_v33 = vpop.f32.mrf.mxu1 }
 0x689   :  { %v17592_v0 = vpack.c.bf16 %v5460_v43, %v17520_v56  ;;  %v17595_v17 = vpack.c.bf16 %v17586_v46, %v5462_v59  ;;  %vm5378_vm11 = vcmp.ge.f32.partialorder %v5334_v48, 0.0  ;;  %v5422_v39 = vmul.f32 0.1, %v5334_v48 }
 0x68a   :  { %v5463_v10 = vsel %vm5375_vm10, %v5331_v55, %v5419_v57  ;;  %v5286_v22 = vadd.f32 %v13820_v33, %v4967_v53  ;;  %v4013_v40 = vadd.f32 %v19860_v51, %v19859_v42  ;;  %v4647_v58 = vadd.f32 %v17333_v8, %v4328_v63  ;;  %v5181_v41 = vpop.f32.mrf.mxu1  ;;  %v17611_v8 = vpop.f32.mrf.mxu0  ;;  %v19862_v63 = vld [vmem:[#allocation84_spill] sm:$0xff] }
 0x68b   :  { %v5332_v7 = vadd.f32 %v17406_v45, %v5281_v44  ;;  %v17603_v11 = vpack.c.bf16 %v5463_v10, %v5460_v43  ;;  %v5466_v56 = vsel %vm5378_vm11, %v5334_v48, %v5422_v39  ;;  %v5284_v27 = vadd.f32 %v5181_v41, %v4965_v9  ;;  %v19865_v42 = vld [vmem:[#allocation72_spill] sm:$0xff] }
 0x68c   :  { %v5337_v59 = vadd.f32 %v17406_v45, %v5286_v22  ;;  %v4968_v52 = vadd.f32 %v17458_v35, %v17331_v34  ;;  %v13821_v36 = vpop.f32.mrf.mxu1  ;;  %v17609_v30 = vpack.c.bf16 %v5466_v56, %v5463_v10  ;;  %v4332_v43 = vadd.f32 %v19862_v63, %v4013_v40  ;;  %v17630_v39 = vpop.f32.mrf.mxu0  ;;  %v19866_v51 = vld [vmem:[#allocation24_spill] sm:$0xff] }
 0x68d   :  { %19861 = vst [vmem:[#allocation60_spill] sm:$0xff] %v17603_v11  ;;  %vm5376_vm12 = vcmp.ge.f32.partialorder %v5332_v7, 0.0  ;;  %v5420_v4 = vmul.f32 0.1, %v5332_v7  ;;  %5815 = vmatmul.mubr.bf16.gmra.mxu0 %v17603_v11  ;;  %v5335_v21 = vadd.f32 %v17406_v45, %v5284_v27  ;;  %v4966_v34 = vadd.f32 %v17475_v13, %v4647_v58 }
 0x68e   :  { %vm5381_vm13 = vcmp.ge.f32.partialorder %v5337_v59, 0.0  ;;  %v5425_v55 = vmul.f32 0.1, %v5337_v59  ;;  %v5287_v31 = vadd.f32 %v13821_v36, %v4968_v52  ;;  %5824 = vmatprep.mubr.bf16.mxu0 %v19826_v29  ;;  %v5184_v35 = vpop.f32.mrf.mxu1  ;;  %v4971_v23 = vadd.f32 %v17494_v19, %v17337_v37 }
 0x68f   :  { %v5464_v49 = vsel %vm5376_vm12, %v5332_v7, %v5420_v4  ;;  %vm5379_vm14 = vcmp.ge.f32.partialorder %v5335_v21, 0.0  ;;  %v5423_v57 = vmul.f32 0.1, %v5335_v21  ;;  %v5285_v44 = vadd.f32 %v5184_v35, %v4966_v34  ;;  %v4910_v4 = vpop.f32.mrf.mxu0 }
 0x690   :  { %v17619_v53 = vsel %vm5381_vm13, %v5337_v59, %v5425_v55  ;;  %v5338_v48 = vadd.f32 %v17406_v45, %v5287_v31  ;;  %v13824_v33 = vpop.f32.mrf.mxu1  ;;  %v17623_v9 = vpack.c.bf16 %v5464_v49, %v17555_v14  ;;  %v4969_v10 = vadd.f32 %v17511_v24, %v17341_v6  ;;  %v19869_v31 = vld [vmem:[#allocation12_spill] sm:$0xff] }
 0x691   :  { %v17628_v13 = vpack.c.bf16 %v17619_v53, %v5466_v56  ;;  %v5467_v37 = vsel %vm5379_vm14, %v5335_v21, %v5423_v57  ;;  %v5290_v22 = vadd.f32 %v13824_v33, %v4971_v23  ;;  %v4017_v40 = vadd.f32 %v19866_v51, %v19865_v42 }
 0x692   :  { %19863 = vst [vmem:[#allocation61_spill] sm:$0xff] %v17623_v9  ;;  %vm5382_vm15 = vcmp.ge.f32.partialorder %v5338_v48, 0.0  ;;  %v5426_v19 = vmul.f32 0.1, %v5338_v48  ;;  %v4651_v58 = vadd.f32 %v17347_v32, %v4332_v43  ;;  %v5336_v14 = vadd.f32 %v17406_v45, %v5285_v44  ;;  %6184 = vmatmul.mubr.bf16.gmra.mxu1 %v17623_v9  ;;  %v5197_v7 = vpop.f32.mrf.mxu1 }
 0x693   :  { %19864 = vst [vmem:[#allocation26_spill] sm:$0xff] %v17628_v13  ;;  %v17637_v6 = vpack.c.bf16 %v5467_v37, %v5464_v49  ;;  %v5341_v41 = vadd.f32 %v17406_v45, %v5290_v22  ;;  %v5288_v56 = vadd.f32 %v5197_v7, %v4969_v10  ;;  %v4972_v59 = vadd.f32 %v17530_v50, %v17345_v47  ;;  %v13773_v10 = vpop.f32.mrf.mxu0  ;;  %v19872_v22 = vld [vmem:[#allocation32_spill] sm:$0xff] }
 0x694   :  { %v5470_v24 = vsel %vm5382_vm15, %v5338_v48, %v5426_v19  ;;  %6193 = vmatprep.mubr.bf16.mxu1 %v19826_v29  ;;  %vm5380_vm1 = vcmp.ge.f32.partialorder %v5336_v14, 0.0  ;;  %v5424_v27 = vmul.f32 0.1, %v5336_v14  ;;  %v13825_v52 = vpop.f32.mrf.mxu1  ;;  %v4336_v63 = vadd.f32 %v19869_v31, %v4017_v40  ;;  %v19871_v19 = vld [vmem:[#allocation73_spill] sm:$0xff] }
 0x695   :  { %19867 = vst [vmem:[#allocation63_spill] sm:$0xff] %v17637_v6  ;;  %5825 = vmatmul.mubr.bf16.gmra.mxu0 %v17628_v13  ;;  %v17644_v32 = vpack.c.bf16 %v5470_v24, %v5467_v37  ;;  %vm5385_vm2 = vcmp.ge.f32.partialorder %v5341_v41, 0.0  ;;  %v5429_v36 = vmul.f32 0.1, %v5341_v41  ;;  %v5339_v55 = vadd.f32 %v17406_v45, %v5288_v56  ;;  %v4913_v56 = vpop.f32.mrf.mxu0 }
 0x696   :  { %v5291_v21 = vadd.f32 %v13825_v52, %v4972_v59  ;;  %5834 = vmatprep.mubr.bf16.mxu0 %v19826_v29  ;;  %v5468_v47 = vsel %vm5380_vm1, %v5336_v14, %v5424_v27  ;;  %v4970_v50 = vadd.f32 %v17545_v3, %v4651_v58  ;;  %v5200_v43 = vpop.f32.mrf.mxu1  ;;  %v4975_v49 = vadd.f32 %v17566_v26, %v17351_v54 }
 0x697   :  { %19868 = vst [vmem:[#allocation29_spill] sm:$0xff] %v17644_v32  ;;  %v17652_v34 = vsel %vm5385_vm2, %v5341_v41, %v5429_v36  ;;  %vm5383_vm3 = vcmp.ge.f32.partialorder %v5339_v55, 0.0  ;;  %v5427_v35 = vmul.f32 0.1, %v5339_v55  ;;  %v4973_v44 = vadd.f32 %v17579_v1, %v17355_v15  ;;  %v19873_v36 = vld [vmem:[#allocation17_spill] sm:$0xff] }
 0x698   :  { %v5342_v23 = vadd.f32 %v17406_v45, %v5291_v21  ;;  %v5289_v57 = vadd.f32 %v5200_v43, %v4970_v50  ;;  %v13828_v48 = vpop.f32.mrf.mxu1  ;;  %v17658_v33 = vpack.c.bf16 %v5468_v47, %v17586_v46  ;;  %v17661_v3 = vpack.c.bf16 %v17652_v34, %v5470_v24 }
 0x699   :  { %v5471_v37 = vsel %vm5383_vm3, %v5339_v55, %v5427_v35  ;;  %v5294_v26 = vadd.f32 %v13828_v48, %v4975_v49  ;;  %v4021_v42 = vadd.f32 %v19872_v22, %v19871_v19  ;;  %v4655_v51 = vadd.f32 %v17361_v28, %v4336_v63  ;;  %v19877_v19 = vld [vmem:[#allocation36_spill] sm:$0xff] }
 0x69a   :  { %19870 = vst [vmem:[#allocation65_spill] sm:$0xff] %v17661_v3  ;;  %vm5386_vm4 = vcmp.ge.f32.partialorder %v5342_v23, 0.0  ;;  %v5430_v54 = vmul.f32 0.1, %v5342_v23  ;;  %v5340_v40 = vadd.f32 %v17406_v45, %v5289_v57  ;;  %6194 = vmatmul.mubr.bf16.gmra.mxu1 %v17644_v32  ;;  %v5213_v15 = vpop.f32.mrf.mxu1  ;;  %v17668_v1 = vpack.c.bf16 %v5471_v37, %v5468_v47 }
 0x69b   :  { %v5345_v58 = vadd.f32 %v17406_v45, %v5294_v26  ;;  %v5292_v14 = vadd.f32 %v5213_v15, %v4973_v44  ;;  %v4976_v7 = vadd.f32 %v17597_v20, %v17359_v25  ;;  %6203 = vmatprep.mubr.bf16.mxu1 %v19826_v29  ;;  %v4340_v55 = vadd.f32 %v19873_v36, %v4021_v42  ;;  %v19874_v25 = vld [vmem:[#allocation53_spill] sm:$0xff]  ;;  %v19876_v26 = vld [vmem:[#allocation83_spill] sm:$0xff] }
 0x69c   :  { %v5474_v46 = vsel %vm5386_vm4, %v5342_v23, %v5430_v54  ;;  %vm5384_vm5 = vcmp.ge.f32.partialorder %v5340_v40, 0.0  ;;  %v5428_v24 = vmul.f32 0.1, %v5340_v40  ;;  %v13829_v41 = vpop.f32.mrf.mxu1  ;;  %v4974_v31 = vadd.f32 %v17611_v8, %v4655_v51  ;;  %v19875_v23 = vld [vmem:[#allocation80_spill] sm:$0xff]  ;;  %v13776_v8 = vpop.f32.mrf.mxu0  ;;  %v19878_v42 = vld [vmem:[#allocation13_spill] sm:$0xff] }
 0x69d   :  { %v17674_v28 = vpack.c.bf16 %v5474_v46, %v5471_v37  ;;  %vm5389_vm6 = vcmp.ge.f32.partialorder %v5345_v58, 0.0  ;;  %v5433_v59 = vmul.f32 0.1, %v5345_v58  ;;  %v5343_v27 = vadd.f32 %v17406_v45, %v5292_v14  ;;  %v19880_v14 = vld [vmem:[#allocation11_spill] sm:$0xff] }
 0x69e   :  { %v5295_v52 = vadd.f32 %v13829_v41, %v4976_v7  ;;  %v5472_v21 = vsel %vm5384_vm5, %v5340_v40, %v5428_v24  ;;  %v5216_v63 = vpop.f32.mrf.mxu1  ;;  %v4979_v20 = vadd.f32 %v17630_v39, %v19874_v25  ;;  %v4977_v57 = vadd.f32 %v4910_v4, %v19875_v23 }
 0x69f   :  { %v17681_v47 = vsel %vm5389_vm6, %v5345_v58, %v5433_v59  ;;  %vm5387_vm7 = vcmp.ge.f32.partialorder %v5343_v27, 0.0  ;;  %v5431_v50 = vmul.f32 0.1, %v5343_v27  ;;  %v5293_v49 = vadd.f32 %v5216_v63, %v4974_v31 }
 0x6a0   :  { %v5346_v43 = vadd.f32 %v17406_v45, %v5295_v52  ;;  %v13832_v35 = vpop.f32.mrf.mxu1  ;;  %v17686_v48 = vpack.c.bf16 %v5472_v21, %v17619_v53  ;;  %v17689_v44 = vpack.c.bf16 %v17681_v47, %v5474_v46  ;;  %v4025_v22 = vadd.f32 %v19877_v19, %v19876_v26 }
 0x6a1   :  { %v5475_v37 = vsel %vm5387_vm7, %v5343_v27, %v5431_v50  ;;  %v5298_v54 = vadd.f32 %v13832_v35, %v4979_v20  ;;  %v4659_v51 = vadd.f32 %v19878_v42, %v4340_v55  ;;  %v5344_v40 = vadd.f32 %v17406_v45, %v5293_v49  ;;  %v4926_v27 = vpop.f32.mrf.mxu0  ;;  %v19882_v20 = vld [vmem:[#allocation16_spill] sm:$0xff]  ;;  %v14096_v42 = vld [vmem:[#allocation5 + $0x1f0] ss:$8 sps:$4 sm:$0xff]  }
 0x6a2   :  { %vm5390_vm8 = vcmp.ge.f32.partialorder %v5346_v43, 0.0  ;;  %v5434_v39 = vmul.f32 0.1, %v5346_v43  ;;  %v5229_v15 = vpop.f32.mrf.mxu1  ;;  %v17695_v4 = vpack.c.bf16 %v5475_v37, %v5472_v21  ;;  %v4980_v7 = vadd.f32 %v13773_v10, %v19880_v14  ;;  %v19881_v21 = vld [vmem:[#allocation20_spill] sm:$0xff] }
 0x6a3   :  { %v5349_v58 = vadd.f32 %v17406_v45, %v5298_v54  ;;  %v5296_v46 = vadd.f32 %v5229_v15, %v4977_v57  ;;  %vm5388_vm9 = vcmp.ge.f32.partialorder %v5344_v40, 0.0  ;;  %v5432_v24 = vmul.f32 0.1, %v5344_v40 }
 0x6a4   :  { %19879 = vst [vmem:[#allocation66_spill] sm:$0xff] %v17695_v4  ;;  %v5478_v53 = vsel %vm5390_vm8, %v5346_v43, %v5434_v39  ;;  %v13833_v41 = vpop.f32.mrf.mxu1  ;;  %5835 = vmatmul.mubr.bf16.gmra.mxu0 %v17695_v4  ;;  %v4344_v31 = vadd.f32 %v19881_v21, %v4025_v22  ;;  %v4978_v25 = vadd.f32 %v4913_v56, %v4659_v51  ;;  %v19884_v39 = vld [vmem:[#allocation19_spill] sm:$0xff]  ;;  %v13777_v56 = vpop.f32.mrf.mxu0  ;;  %v19886_v51 = vld [vmem:[#allocation38_spill] sm:$0xff]  ;;  %v19887_v15 = vmov 0.0  }
 0x6a5   :  { %v17700_v59 = vpack.c.bf16 %v5478_v53, %v5475_v37  ;;  %vm5393_vm10 = vcmp.ge.f32.partialorder %v5349_v58, 0.0  ;;  %v5437_v52 = vmul.f32 0.1, %v5349_v58  ;;  %v5347_v36 = vadd.f32 %v17406_v45, %v5296_v46  ;;  %5957 = vmatprep.mubr.bf16.mxu0 %v19826_v29 }
 0x6a6   :  { %v5299_v55 = vadd.f32 %v13833_v41, %v4980_v7  ;;  %v5476_v63 = vsel %vm5388_vm9, %v5344_v40, %v5432_v24  ;;  %v5232_v10 = vpop.f32.mrf.mxu1  ;;  %v4983_v50 = vadd.f32 %v13776_v8, %v19882_v20  ;;  %v4981_v54 = vadd.f32 %v4926_v27, %v19884_v39  ;;  %v14104_v7 = vld [vmem:[#allocation5 + $0x1e4] ss:$8 sps:$4 sm:$0xff]  }
 0x6a7   :  { %v17706_v43 = vsel %vm5393_vm10, %v5349_v58, %v5437_v52  ;;  %vm5391_vm11 = vcmp.ge.f32.partialorder %v5347_v36, 0.0  ;;  %v5435_v49 = vmul.f32 0.1, %v5347_v36  ;;  %v5297_v23 = vadd.f32 %v5232_v10, %v4978_v25  ;;  %v19888_v58 = vld [vmem:[#allocation44_spill] sm:$0xff]  ;;  %v19891_v52 = vld [vmem:[#allocation22_spill] sm:$0xff]  ;;  %v4929_v25 = vpop.f32.mrf.mxu0 }
 0x6a8   :  { %v5350_v35 = vadd.f32 %v17406_v45, %v5299_v55  ;;  %v13836_v57 = vpop.f32.mrf.mxu1  ;;  %v17710_v37 = vpack.c.bf16 %v5476_v63, %v17652_v34  ;;  %v17714_v26 = vpack.c.bf16 %v17706_v43, %v5478_v53  ;;  %v4663_v40 = vadd.f32 %v19886_v51, %v4344_v31 }
 0x6a9   :  { %v5479_v19 = vsel %vm5391_vm11, %v5347_v36, %v5435_v49  ;;  %v5302_v22 = vadd.f32 %v13836_v57, %v4983_v50  ;;  %v5627_v46 = vpack.c.bf16 %v19888_v58, %v19887_v15  ;;  %v5348_v14 = vadd.f32 %v17406_v45, %v5297_v23  ;;  %v14102_v50 = vld [vmem:[#allocation5 + $0x1e0] ss:$8 sps:$4 sm:$0xff]   ;;  %v14107_v57 = vld [vmem:[#allocation5 + $0x1d4] ss:$8 sps:$4 sm:$0xff]  }
 0x6aa   :  { %19883 = vst [vmem:[#allocation68_spill] sm:$0xff] %v17710_v37  ;;  %19885 = vst [vmem:[#allocation69_spill] sm:$0xff] %v17714_v26  ;;  %vm5394_vm12 = vcmp.ge.f32.partialorder %v5350_v35, 0.0  ;;  %v5438_v8 = vmul.f32 0.1, %v5350_v35  ;;  %6204 = vmatmul.mubr.bf16.gmra.mxu1 %v17710_v37  ;;  %v5245_v34 = vpop.f32.mrf.mxu1  ;;  %v17721_v24 = vpack.c.bf16 %v5479_v19, %v5476_v63  ;;  %v4984_v36 = vadd.f32 %v13777_v56, %v19891_v52 }
 0x6ab   :  { %v5353_v41 = vadd.f32 %v17406_v45, %v5302_v22  ;;  %v5300_v27 = vadd.f32 %v5245_v34, %v4981_v54  ;;  %6593 = vmatprep.mubr.bf16.mxu1 %v19826_v29  ;;  %vm5392_vm13 = vcmp.ge.f32.partialorder %v5348_v14, 0.0  ;;  %v5436_v55 = vmul.f32 0.1, %v5348_v14  ;;  %v14119_v22 = vld [vmem:[#allocation5 + $0x364] ss:$8 sps:$4 sm:$0xff]  }
 0x6ac   :  { %19889 = vst [vmem:[#allocation79_spill] sm:$0xff] %v17721_v24  ;;  %v17723_v53 = vsel %vm5394_vm12, %v5350_v35, %v5438_v8  ;;  %v13837_v21 = vpop.f32.mrf.mxu1  ;;  %5958 = vmatmul.mubr.bf16.vlgmr.msra.gmra.mxu0 %v5627_v46  ;;  %v4982_v35 = vadd.f32 %v4929_v25, %v4663_v40  ;;  %v14110_v52 = vld [vmem:[#allocation5 + $0x1c4] ss:$8 sps:$4 sm:$0xff]   ;;  %v19898_v25 = vld [vmem:[#allocation49_spill] sm:$0xff] }
 0x6ad   :  { %19890 = vst [vmem:[#allocation76_spill] sm:$0xff] %v17723_v53  ;;  %v17729_v31 = vpack.c.bf16 %v17723_v53, %v5479_v19  ;;  %vm5397_vm14 = vcmp.ge.f32.partialorder %v5353_v41, 0.0  ;;  %v5441_v63 = vmul.f32 0.1, %v5353_v41  ;;  %v5351_v10 = vadd.f32 %v17406_v45, %v5300_v27  ;;  %6342 = vmatpush1.bf16.msra.mxu0 %v14096_v42  ;;  %5967 = vmatprep.mubr.bf16.mxu0 %v19826_v29  ;;  %v14111_v19 = vld [vmem:[#allocation5 + $0x370] ss:$8 sps:$4 sm:$0xff]  }
 0x6ae   :  { %v5303_v20 = vadd.f32 %v13837_v21, %v4984_v36  ;;  %v17733_v49 = vsel %vm5392_vm13, %v5348_v14, %v5436_v55  ;;  %v5248_v23 = vpop.f32.mrf.mxu1  ;;  %6343 = vmatprep.subr.bf16.mxu0 %v14104_v7  ;;  %v14105_v14 = vld [vmem:[#allocation5 + $0x1d0] ss:$8 sps:$4 sm:$0xff]   ;;  %v14117_v55 = vld [vmem:[#allocation5 + $0x360] ss:$8 sps:$4 sm:$0xff]   ;;  %v14266_v53 = vld [vmem:[#allocation5 + $0x654] ss:$8 sps:$4 sm:$0xff]  }
 0x6af   :  { %19892 = vst [vmem:[#allocation25_spill] sm:$0xff] %v17729_v31  ;;  %v17735_v39 = vsel %vm5397_vm14, %v5353_v41, %v5441_v63  ;;  %vm5395_vm15 = vcmp.ge.f32.partialorder %v5351_v10, 0.0  ;;  %v5439_v54 = vmul.f32 0.1, %v5351_v10  ;;  %v5301_v8 = vadd.f32 %v5248_v23, %v4982_v35  ;;  %v19894_v7 = vld [vmem:[#allocation46_spill] sm:$0xff]  ;;  %v19895_v41 = vld [vmem:[#allocation39_spill] sm:$0xff] }
 0x6b0   :  { %19893 = vst [vmem:[#allocation15_spill] sm:$0xff] %v17735_v39  ;;  %v5354_v56 = vadd.f32 %v17406_v45, %v5303_v20  ;;  %v17740_v42 = vpack.c.bf16 %v17733_v49, %v17681_v47  ;;  %v19896_v27 = vpack.c.bf16 %v19894_v7, %v19895_v41  ;;  %v14120_v35 = vld [vmem:[#allocation5 + $0x350] ss:$8 sps:$4 sm:$0xff]   ;;  %v14140_v41 = vld [vmem:[#allocation5 + $0x184] ss:$8 sps:$4 sm:$0xff]  }
 0x6b1   :  { %v17744_v40 = vsel %vm5395_vm15, %v5351_v10, %v5439_v54  ;;  %6344 = vmatpush1.bf16.msra.mxu0 %v14102_v50  ;;  %v5352_v34 = vadd.f32 %v17406_v45, %v5301_v8  ;;  %v14122_v45 = vld [vmem:[#allocation5 + $0x354] ss:$8 sps:$4 sm:$0xff]   ;;  %v14108_v10 = vld [vmem:[#allocation5 + $0x1c0] ss:$8 sps:$4 sm:$0xff]   ;;  %v14114_v54 = vld [vmem:[#allocation5 + $0x1b0] ss:$8 sps:$4 sm:$0xff]  }
 0x6b2   :  { %vm5398_vm1 = vcmp.ge.f32.partialorder %v5354_v56, 0.0  ;;  %v5442_v46 = vmul.f32 0.1, %v5354_v56  ;;  %6594 = vmatmul.mubr.bf16.vlgmr.msra.gmra.mxu1 %v19896_v27  ;;  %6345 = vmatprep.subr.bf16.mxu0 %v14107_v57  ;;  %v14116_v50 = vld [vmem:[#allocation5 + $0x1b4] ss:$8 sps:$4 sm:$0xff]  }
 0x6b3   :  { %6603 = vmatprep.mubr.bf16.mxu1 %v19826_v29  ;;  %6997 = vmatpush1.bf16.msra.mxu1 %v14111_v19  ;;  %vm5396_vm2 = vcmp.ge.f32.partialorder %v5352_v34, 0.0  ;;  %v5440_v21 = vmul.f32 0.1, %v5352_v34  ;;  %v14128_v57 = vld [vmem:[#allocation5 + $0x344] ss:$8 sps:$4 sm:$0xff]  }
 0x6b4   :  { %v17752_v36 = vsel %vm5398_vm1, %v5354_v56, %v5442_v46  ;;  %5968 = vmatmul.mubr.bf16.gmra.mxu0 %v19898_v25  ;;  %6998 = vmatprep.subr.bf16.mxu1 %v14119_v22  ;;  %v14125_v56 = vld [vmem:[#allocation5 + $0x1a4] ss:$8 sps:$4 sm:$0xff]   ;;  %v14126_v19 = vld [vmem:[#allocation5 + $0x340] ss:$8 sps:$4 sm:$0xff]   ;;  %v14134_v8 = vld [vmem:[#allocation5 + $0x334] ss:$8 sps:$4 sm:$0xff]  }
 0x6b5   :  { %19897 = vst [vmem:[#allocation18_spill] sm:$0xff] %v17752_v36  ;;  %6346 = vmatpush1.bf16.msra.mxu0 %v14105_v14  ;;  %5977 = vmatprep.mubr.bf16.mxu0 %v19826_v29  ;;  %v17759_v20 = vsel %vm5396_vm2, %v5352_v34, %v5440_v21  ;;  %v14123_v22 = vld [vmem:[#allocation5 + $0x1a0] ss:$8 sps:$4 sm:$0xff]   ;;  %v14131_v46 = vld [vmem:[#allocation5 + $0x194] ss:$8 sps:$4 sm:$0xff]  }
 0x6b6   :  { %19899 = vst [vmem:[#allocation75_spill] sm:$0xff] %v17759_v20  ;;  %6347 = vmatprep.subr.bf16.mxu0 %v14110_v52  ;;  %v14132_v14 = vld [vmem:[#allocation5 + $0x330] ss:$8 sps:$4 sm:$0xff]   ;;  %v14137_v34 = vld [vmem:[#allocation5 + $0x324] ss:$8 sps:$4 sm:$0xff]  }
 0x6b7   :  { %6999 = vmatpush1.bf16.msra.mxu1 %v14117_v55  ;;  %v14129_v7 = vld [vmem:[#allocation5 + $0x190] ss:$8 sps:$4 sm:$0xff]   ;;  %v14135_v27 = vld [vmem:[#allocation5 + $0x320] ss:$8 sps:$4 sm:$0xff]   ;;  %v14143_v52 = vld [vmem:[#allocation5 + $0x314] ss:$8 sps:$4 sm:$0xff]  }
 0x6b8   :  { %7000 = vmatprep.subr.bf16.mxu1 %v14122_v45  ;;  %v14138_v55 = vld [vmem:[#allocation5 + $0x180] ss:$8 sps:$4 sm:$0xff]   ;;  %v14146_v21 = vld [vmem:[#allocation5 + $0x2f4] ss:$8 sps:$4 sm:$0xff]   ;;  %v14141_v45 = vld [vmem:[#allocation5 + $0x310] ss:$8 sps:$4 sm:$0xff]  }
 0x6b9   :  { %6348 = vmatpush1.bf16.msra.mxu0 %v14108_v10  ;;  %v14149_v10 = vld [vmem:[#allocation5 + $0x304] ss:$8 sps:$4 sm:$0xff]   ;;  %v14249_v47 = vld [vmem:[#allocation5 + $0x4d0] ss:$8 sps:$4 sm:$0xff]  }
 0x6ba   :  { %6604 = vmatmul.mubr.bf16.gmra.mxu1 %v17518_v12  ;;  %6349 = vmatprep.subr.bf16.mxu0 %v14116_v50  ;;  %v14147_v50 = vld [vmem:[#allocation5 + $0x300] ss:$8 sps:$4 sm:$0xff]   ;;  %v14263_v63 = vld [vmem:[#allocation5 + $0x664] ss:$8 sps:$4 sm:$0xff]  }
 0x6bb   :  { %6613 = vmatprep.mubr.bf16.mxu1 %v19826_v29  ;;  %7001 = vmatpush1.bf16.msra.mxu1 %v14120_v35  ;;  %v14161_v35 = vld [vmem:[#allocation5 + $0x474] ss:$8 sps:$4 sm:$0xff]  }
 0x6bc   :  { %5978 = vmatmul.mubr.bf16.gmra.mxu0 %v17561_v2  ;;  %7002 = vmatprep.subr.bf16.mxu1 %v14128_v57  ;;  %v14144_v57 = vld [vmem:[#allocation5 + $0x2f0] ss:$8 sps:$4 sm:$0xff]  }
 0x6bd   :  { %5987 = vmatprep.mubr.bf16.mxu0 %v19826_v29  ;;  %6350 = vmatpush1.bf16.msra.mxu0 %v14114_v54  ;;  %v14152_v54 = vld [vmem:[#allocation5 + $0x2e4] ss:$8 sps:$4 sm:$0xff]  }
 0x6be   :  { %6351 = vmatprep.subr.bf16.mxu0 %v14125_v56  ;;  %v19900_v56 = vld [vmem:[#allocation45_spill] sm:$0xff] }
 0x6bf   :  { %7003 = vmatpush1.bf16.msra.mxu1 %v14126_v19  ;;  %v19901_v19 = vpack.c.bf16 %v19900_v56, %v19888_v58  ;;  %v19902_v58 = vld [vmem:[#allocation51_spill] sm:$0xff]  ;;  %v14180_v56 = vld [vmem:[#allocation5 + $0x430] ss:$8 sps:$4 sm:$0xff]  }
 0x6c0   :  { %7004 = vmatprep.subr.bf16.mxu1 %v14134_v8  ;;  %v14150_v8 = vld [vmem:[#allocation5 + $0x2e0] ss:$8 sps:$4 sm:$0xff]  }
 0x6c1   :  { %6352 = vmatpush1.bf16.msra.mxu0 %v14123_v22  ;;  %v14155_v22 = vld [vmem:[#allocation5 + $0x2d4] ss:$8 sps:$4 sm:$0xff]  }
 0x6c2   :  { %6614 = vmatmul.mubr.bf16.gmra.mxu1 %v17592_v0  ;;  %6353 = vmatprep.subr.bf16.mxu0 %v14131_v46  ;;  %v14159_v46 = vld [vmem:[#allocation5 + $0x470] ss:$8 sps:$4 sm:$0xff]  }
 0x6c3   :  { %6623 = vmatprep.mubr.bf16.mxu1 %v19826_v29  ;;  %7005 = vmatpush1.bf16.msra.mxu1 %v14132_v14  ;;  %v14167_v14 = vld [vmem:[#allocation5 + $0x464] ss:$8 sps:$4 sm:$0xff]  }
 0x6c4   :  { %5988 = vmatmul.mubr.bf16.gmra.mxu0 %v17577_v61  ;;  %7006 = vmatprep.subr.bf16.mxu1 %v14137_v34  ;;  %v14153_v34 = vld [vmem:[#allocation5 + $0x2d0] ss:$8 sps:$4 sm:$0xff]  }
 0x6c5   :  { %5997 = vmatprep.mubr.bf16.mxu0 %v19826_v29  ;;  %6354 = vmatpush1.bf16.msra.mxu0 %v14129_v7  ;;  %v14158_v7 = vld [vmem:[#allocation5 + $0x2c4] ss:$8 sps:$4 sm:$0xff]  }
 0x6c6   :  { %6355 = vmatprep.subr.bf16.mxu0 %v14140_v41  ;;  %v14165_v41 = vld [vmem:[#allocation5 + $0x460] ss:$8 sps:$4 sm:$0xff]  }
 0x6c7   :  { %7007 = vmatpush1.bf16.msra.mxu1 %v14135_v27  ;;  %v14170_v27 = vld [vmem:[#allocation5 + $0x454] ss:$8 sps:$4 sm:$0xff]  }
 0x6c8   :  { %7008 = vmatprep.subr.bf16.mxu1 %v14143_v52  ;;  %v14156_v52 = vld [vmem:[#allocation5 + $0x2c0] ss:$8 sps:$4 sm:$0xff]  }
 0x6c9   :  { %6356 = vmatpush1.bf16.msra.mxu0 %v14138_v55  ;;  %v14164_v55 = vld [vmem:[#allocation5 + $0x2b4] ss:$8 sps:$4 sm:$0xff]  }
 0x6ca   :  { %6624 = vmatmul.mubr.bf16.gmra.mxu1 %v17609_v30  ;;  %6781 = vmatprep.subr.bf16.mxu0 %v14146_v21  ;;  %v14168_v21 = vld [vmem:[#allocation5 + $0x450] ss:$8 sps:$4 sm:$0xff]  }
 0x6cb   :  { %6633 = vmatprep.mubr.bf16.mxu1 %v19826_v29  ;;  %7009 = vmatpush1.bf16.msra.mxu1 %v14141_v45  ;;  %v14162_v45 = vld [vmem:[#allocation5 + $0x2b0] ss:$8 sps:$4 sm:$0xff]  }
 0x6cc   :  { %5998 = vmatmul.mubr.bf16.gmra.mxu0 %v17658_v33  ;;  %7010 = vmatprep.subr.bf16.mxu1 %v14149_v10  ;;  %v14173_v10 = vld [vmem:[#allocation5 + $0x2a4] ss:$8 sps:$4 sm:$0xff]  }
 0x6cd   :  { %6007 = vmatprep.mubr.bf16.mxu0 %v19826_v29 }
 0x6cf   :  { %7011 = vmatpush1.bf16.msra.mxu1 %v14147_v50  ;;  %v14174_v50 = vld [vmem:[#allocation5 + $0x440] ss:$8 sps:$4 sm:$0xff]  }
 0x6d0   :  { %7426 = vmatprep.subr.bf16.mxu1 %v14161_v35  ;;  %v14182_v35 = vld [vmem:[#allocation5 + $0x434] ss:$8 sps:$4 sm:$0xff]  }
 0x6d2   :  { %6634 = vmatmul.mubr.bf16.gmra.mxu1 %v17686_v48 }
 0x6d3   :  { %6643 = vmatprep.mubr.bf16.mxu1 %v19826_v29 }
 0x6d4   :  { %6008 = vmatmul.mubr.bf16.gmra.mxu0 %v17674_v28 }
 0x6d5   :  { %6373 = vmatprep.mubr.bf16.mxu0 %v19826_v29 }
 0x6da   :  { %6644 = vmatmul.mubr.bf16.gmra.mxu1 %v17700_v59 }
 0x6db   :  { %7028 = vmatprep.mubr.bf16.mxu1 %v19826_v29 }
 0x6dc   :  { %6374 = vmatmul.mubr.bf16.vlgmr.msra.gmra.mxu0 %v19901_v19  ;;  %v14185_v19 = vld [vmem:[#allocation5 + $0x424] ss:$8 sps:$4 sm:$0xff]  }
 0x6dd   :  { %6782 = vmatpush1.bf16.msra.mxu0 %v14144_v57  ;;  %6383 = vmatprep.mubr.bf16.mxu0 %v19826_v29  ;;  %v14171_v57 = vld [vmem:[#allocation5 + $0x2a0] ss:$8 sps:$4 sm:$0xff]  }
 0x6de   :  { %6783 = vmatprep.subr.bf16.mxu0 %v14152_v54  ;;  %v14179_v54 = vld [vmem:[#allocation5 + $0x294] ss:$8 sps:$4 sm:$0xff]  }
 0x6e1   :  { %6784 = vmatpush1.bf16.msra.mxu0 %v14150_v8  ;;  %v14177_v8 = vld [vmem:[#allocation5 + $0x290] ss:$8 sps:$4 sm:$0xff]  }
 0x6e2   :  { %7029 = vmatmul.mubr.bf16.vlgmr.msra.gmra.mxu1 %v19898_v25  ;;  %6785 = vmatprep.subr.bf16.mxu0 %v14155_v22  ;;  %v14176_v25 = vld [vmem:[#allocation5 + $0x444] ss:$8 sps:$4 sm:$0xff]  }
 0x6e3   :  { %7038 = vmatprep.mubr.bf16.mxu1 %v19826_v29  ;;  %7427 = vmatpush1.bf16.msra.mxu1 %v14159_v46  ;;  %v14188_v22 = vld [vmem:[#allocation5 + $0x284] ss:$8 sps:$4 sm:$0xff]   ;;  %v14183_v46 = vld [vmem:[#allocation5 + $0x420] ss:$8 sps:$4 sm:$0xff]  }
 0x6e4   :  { %6384 = vmatmul.mubr.bf16.gmra.mxu0 %v19902_v58  ;;  %7428 = vmatprep.subr.bf16.mxu1 %v14167_v14  ;;  %v14191_v14 = vld [vmem:[#allocation5 + $0x414] ss:$8 sps:$4 sm:$0xff]  }
 0x6e5   :  { %6786 = vmatpush1.bf16.msra.mxu0 %v14153_v34  ;;  %6393 = vmatprep.mubr.bf16.mxu0 %v19826_v29  ;;  %v14186_v34 = vld [vmem:[#allocation5 + $0x280] ss:$8 sps:$4 sm:$0xff]  }
 0x6e6   :  { %6787 = vmatprep.subr.bf16.mxu0 %v14158_v7  ;;  %v14194_v7 = vld [vmem:[#allocation5 + $0x3f4] ss:$8 sps:$4 sm:$0xff]  }
 0x6e7   :  { %7429 = vmatpush1.bf16.msra.mxu1 %v14165_v41  ;;  %v14189_v41 = vld [vmem:[#allocation5 + $0x410] ss:$8 sps:$4 sm:$0xff]  }
 0x6e8   :  { %7430 = vmatprep.subr.bf16.mxu1 %v14170_v27  ;;  %v14197_v27 = vld [vmem:[#allocation5 + $0x404] ss:$8 sps:$4 sm:$0xff]  }
 0x6e9   :  { %6788 = vmatpush1.bf16.msra.mxu0 %v14156_v52  ;;  %v14195_v52 = vld [vmem:[#allocation5 + $0x400] ss:$8 sps:$4 sm:$0xff]  }
 0x6ea   :  { %7039 = vmatmul.mubr.bf16.gmra.mxu1 %v17561_v2  ;;  %6789 = vmatprep.subr.bf16.mxu0 %v14164_v55  ;;  %v14209_v55 = vld [vmem:[#allocation5 + $0x574] ss:$8 sps:$4 sm:$0xff]  }
 0x6eb   :  { %7048 = vmatprep.mubr.bf16.mxu1 %v19826_v29  ;;  %7431 = vmatpush1.bf16.msra.mxu1 %v14168_v21  ;;  %v14192_v21 = vld [vmem:[#allocation5 + $0x3f0] ss:$8 sps:$4 sm:$0xff]  }
 0x6ec   :  { %6394 = vmatmul.mubr.bf16.gmra.mxu0 %v17571_v16  ;;  %7432 = vmatprep.subr.bf16.mxu1 %v14176_v25  ;;  %v14200_v25 = vld [vmem:[#allocation5 + $0x3e4] ss:$8 sps:$4 sm:$0xff]  }
 0x6ed   :  { %6403 = vmatprep.mubr.bf16.mxu0 %v19826_v29  ;;  %6790 = vmatpush1.bf16.msra.mxu0 %v14162_v45  ;;  %v19903_v45 = vld [vmem:[#allocation40_spill] sm:$0xff] }
 0x6ee   :  { %6791 = vmatprep.subr.bf16.mxu0 %v14173_v10  ;;  %v19904_v10 = vpack.c.bf16 %v17450_v38, %v19903_v45  ;;  %v14218_v38 = vld [vmem:[#allocation5 + $0x554] ss:$8 sps:$4 sm:$0xff]   ;;  %v14225_v45 = vld [vmem:[#allocation5 + $0x390] ss:$8 sps:$4 sm:$0xff]  }
 0x6ef   :  { %7433 = vmatpush1.bf16.msra.mxu1 %v14174_v50  ;;  %v14198_v50 = vld [vmem:[#allocation5 + $0x3e0] ss:$8 sps:$4 sm:$0xff]  }
 0x6f0   :  { %7434 = vmatprep.subr.bf16.mxu1 %v14182_v35  ;;  %v14203_v35 = vld [vmem:[#allocation5 + $0x3d4] ss:$8 sps:$4 sm:$0xff]  }
 0x6f1   :  { %6792 = vmatpush1.bf16.msra.mxu0 %v14171_v57  ;;  %v14207_v57 = vld [vmem:[#allocation5 + $0x570] ss:$8 sps:$4 sm:$0xff]  }
 0x6f2   :  { %7049 = vmatmul.mubr.bf16.gmra.mxu1 %v17577_v61  ;;  %6793 = vmatprep.subr.bf16.mxu0 %v14179_v54  ;;  %v14215_v54 = vld [vmem:[#allocation5 + $0x564] ss:$8 sps:$4 sm:$0xff]  }
 0x6f3   :  { %7058 = vmatprep.mubr.bf16.mxu1 %v19826_v29  ;;  %7435 = vmatpush1.bf16.msra.mxu1 %v14180_v56  ;;  %v14201_v56 = vld [vmem:[#allocation5 + $0x3d0] ss:$8 sps:$4 sm:$0xff]  }
 0x6f4   :  { %6404 = vmatmul.mubr.bf16.gmra.mxu0 %v17595_v17  ;;  %7436 = vmatprep.subr.bf16.mxu1 %v14185_v19  ;;  %v14206_v19 = vld [vmem:[#allocation5 + $0x3c4] ss:$8 sps:$4 sm:$0xff]  }
 0x6f5   :  { %6413 = vmatprep.mubr.bf16.mxu0 %v19826_v29  ;;  %6794 = vmatpush1.bf16.msra.mxu0 %v14177_v8  ;;  %v14213_v8 = vld [vmem:[#allocation5 + $0x560] ss:$8 sps:$4 sm:$0xff]  }
 0x6f6   :  { %6795 = vmatprep.subr.bf16.mxu0 %v14188_v22  ;;  %v14204_v22 = vld [vmem:[#allocation5 + $0x3c0] ss:$8 sps:$4 sm:$0xff]  }
 0x6f7   :  { %7437 = vmatpush1.bf16.msra.mxu1 %v14183_v46  ;;  %v14212_v46 = vld [vmem:[#allocation5 + $0x3b4] ss:$8 sps:$4 sm:$0xff]  }
 0x6f8   :  { %7438 = vmatprep.subr.bf16.mxu1 %v14191_v14  ;;  %v14216_v14 = vld [vmem:[#allocation5 + $0x550] ss:$8 sps:$4 sm:$0xff]  }
 0x6f9   :  { %6796 = vmatpush1.bf16.msra.mxu0 %v14186_v34  ;;  %v14210_v34 = vld [vmem:[#allocation5 + $0x3b0] ss:$8 sps:$4 sm:$0xff]  }
 0x6fa   :  { %7059 = vmatmul.mubr.bf16.gmra.mxu1 %v17658_v33  ;;  %7211 = vmatprep.subr.bf16.mxu0 %v14194_v7  ;;  %v14221_v7 = vld [vmem:[#allocation5 + $0x3a4] ss:$8 sps:$4 sm:$0xff]  }
 0x6fb   :  { %7068 = vmatprep.mubr.bf16.mxu1 %v19826_v29  ;;  %7439 = vmatpush1.bf16.msra.mxu1 %v14189_v41  ;;  %v14222_v41 = vld [vmem:[#allocation5 + $0x540] ss:$8 sps:$4 sm:$0xff]  }
 0x6fc   :  { %6414 = vmatmul.mubr.bf16.gmra.mxu0 %v17668_v1  ;;  %7440 = vmatprep.subr.bf16.mxu1 %v14197_v27  ;;  %v14230_v27 = vld [vmem:[#allocation5 + $0x534] ss:$8 sps:$4 sm:$0xff]  }
 0x6fd   :  { %6423 = vmatprep.mubr.bf16.mxu0 %v19826_v29 }
 0x6ff   :  { %7441 = vmatpush1.bf16.msra.mxu1 %v14195_v52  ;;  %v14219_v52 = vld [vmem:[#allocation5 + $0x3a0] ss:$8 sps:$4 sm:$0xff]  }
 0x700   :  { %7856 = vmatprep.subr.bf16.mxu1 %v14209_v55  ;;  %v14227_v55 = vld [vmem:[#allocation5 + $0x394] ss:$8 sps:$4 sm:$0xff]  }
 0x702   :  { %7069 = vmatmul.mubr.bf16.gmra.mxu1 %v17674_v28 }
 0x703   :  { %7078 = vmatprep.mubr.bf16.mxu1 %v19826_v29 }
 0x704   :  { %6424 = vmatmul.mubr.bf16.gmra.mxu0 %v17689_v44 }
 0x705   :  { %6813 = vmatprep.mubr.bf16.mxu0 %v19826_v29 }
 0x70a   :  { %7079 = vmatmul.mubr.bf16.gmra.mxu1 %v17740_v42 }
 0x70b   :  { %7458 = vmatprep.mubr.bf16.mxu1 %v19826_v29 }
 0x70c   :  { %6814 = vmatmul.mubr.bf16.vlgmr.msra.gmra.mxu0 %v19904_v10  ;;  %v14236_v10 = vld [vmem:[#allocation5 + $0x384] ss:$8 sps:$4 sm:$0xff]  }
 0x70d   :  { %7212 = vmatpush1.bf16.msra.mxu0 %v14192_v21  ;;  %6823 = vmatprep.mubr.bf16.mxu0 %v19826_v29  ;;  %v14228_v21 = vld [vmem:[#allocation5 + $0x530] ss:$8 sps:$4 sm:$0xff]  }
 0x70e   :  { %7213 = vmatprep.subr.bf16.mxu0 %v14200_v25  ;;  %v14233_v25 = vld [vmem:[#allocation5 + $0x524] ss:$8 sps:$4 sm:$0xff]  }
 0x711   :  { %7214 = vmatpush1.bf16.msra.mxu0 %v14198_v50  ;;  %v14231_v50 = vld [vmem:[#allocation5 + $0x520] ss:$8 sps:$4 sm:$0xff]  }
 0x712   :  { %7459 = vmatmul.mubr.bf16.vlgmr.msra.gmra.mxu1 %v17525_v62  ;;  %7215 = vmatprep.subr.bf16.mxu0 %v14203_v35  ;;  %v14224_v62 = vld [vmem:[#allocation5 + $0x544] ss:$8 sps:$4 sm:$0xff]   ;;  %v14239_v35 = vld [vmem:[#allocation5 + $0x514] ss:$8 sps:$4 sm:$0xff]  }
 0x713   :  { %7468 = vmatprep.mubr.bf16.mxu1 %v19826_v29  ;;  %7857 = vmatpush1.bf16.msra.mxu1 %v14207_v57  ;;  %v14234_v57 = vld [vmem:[#allocation5 + $0x380] ss:$8 sps:$4 sm:$0xff]  }
 0x714   :  { %6824 = vmatmul.mubr.bf16.gmra.mxu0 %v17536_v5  ;;  %7858 = vmatprep.subr.bf16.mxu1 %v14215_v54 }
 0x715   :  { %7216 = vmatpush1.bf16.msra.mxu0 %v14201_v56  ;;  %6833 = vmatprep.mubr.bf16.mxu0 %v19826_v29  ;;  %v14242_v56 = vld [vmem:[#allocation5 + $0x4f4] ss:$8 sps:$4 sm:$0xff]  }
 0x716   :  { %7217 = vmatprep.subr.bf16.mxu0 %v14206_v19  ;;  %v14237_v19 = vld [vmem:[#allocation5 + $0x510] ss:$8 sps:$4 sm:$0xff]  }
 0x717   :  { %7859 = vmatpush1.bf16.msra.mxu1 %v14213_v8  ;;  %v14245_v8 = vld [vmem:[#allocation5 + $0x504] ss:$8 sps:$4 sm:$0xff]  }
 0x718   :  { %7860 = vmatprep.subr.bf16.mxu1 %v14218_v38 }
 0x719   :  { %7218 = vmatpush1.bf16.msra.mxu0 %v14204_v22  ;;  %v14243_v22 = vld [vmem:[#allocation5 + $0x500] ss:$8 sps:$4 sm:$0xff]  }
 0x71a   :  { %7469 = vmatmul.mubr.bf16.gmra.mxu1 %v17543_v18  ;;  %7219 = vmatprep.subr.bf16.mxu0 %v14212_v46  ;;  %v14293_v18 = vld [vmem:[#allocation5 + $0x604] ss:$8 sps:$4 sm:$0xff]  }
 0x71b   :  { %7478 = vmatprep.mubr.bf16.mxu1 %v19826_v29  ;;  %7861 = vmatpush1.bf16.msra.mxu1 %v14216_v14  ;;  %v14257_v14 = vld [vmem:[#allocation5 + $0x674] ss:$8 sps:$4 sm:$0xff]  }
 0x71c   :  { %6834 = vmatmul.mubr.bf16.gmra.mxu0 %v17564_v60  ;;  %7862 = vmatprep.subr.bf16.mxu1 %v14224_v62  ;;  %v14285_v60 = vld [vmem:[#allocation5 + $0x610] ss:$8 sps:$4 sm:$0xff]  }
 0x71d   :  { %6843 = vmatprep.mubr.bf16.mxu0 %v19826_v29  ;;  %7220 = vmatpush1.bf16.msra.mxu0 %v14210_v34 }
 0x71e   :  { %7221 = vmatprep.subr.bf16.mxu0 %v14221_v7 }
 0x71f   :  { %7863 = vmatpush1.bf16.msra.mxu1 %v14222_v41 }
 0x720   :  { %7864 = vmatprep.subr.bf16.mxu1 %v14230_v27 }
 0x721   :  { %7222 = vmatpush1.bf16.msra.mxu0 %v14219_v52 }
 0x722   :  { %7479 = vmatmul.mubr.bf16.gmra.mxu1 %v17623_v9  ;;  %7223 = vmatprep.subr.bf16.mxu0 %v14227_v55  ;;  %v17823_v54 = vpop.f32.mrf.mxu0 }
 0x723   :  { %7488 = vmatprep.mubr.bf16.mxu1 %v19826_v29  ;;  %7865 = vmatpush1.bf16.msra.mxu1 %v14228_v21 }
 0x724   :  { %6844 = vmatmul.mubr.bf16.gmra.mxu0 %v17637_v6  ;;  %7866 = vmatprep.subr.bf16.mxu1 %v14233_v25  ;;  %v17825_v38 = vpop.f32.mrf.mxu0  ;;  %v14240_v25 = vld [vmem:[#allocation5 + $0x4f0] ss:$8 sps:$4 sm:$0xff]   ;;  %v14284_v6 = vld [vmem:[#allocation5 + $0x484] ss:$8 sps:$4 sm:$0xff]  }
 0x725   :  { %6853 = vmatprep.mubr.bf16.mxu0 %v19826_v29  ;;  %7224 = vmatpush1.bf16.msra.mxu0 %v14225_v45  ;;  %19905 = vst [vmem:[#allocation34_spill] sm:$0xff] %v17825_v38 }
 0x726   :  { %7225 = vmatprep.subr.bf16.mxu0 %v14236_v10  ;;  %v17829_v46 = vpop.f32.mrf.mxu1  ;;  %v17833_v62 = vpop.f32.mrf.mxu0 }
 0x727   :  { %7867 = vmatpush1.bf16.msra.mxu1 %v14231_v50  ;;  %19906 = vst [vmem:[#allocation28_spill] sm:$0xff] %v17829_v46  ;;  %19907 = vst [vmem:[#allocation88_spill] sm:$0xff] %v17833_v62  ;;  %v14248_v50 = vld [vmem:[#allocation5 + $0x4e4] ss:$8 sps:$4 sm:$0xff]   ;;  %v14294_v46 = vld [vmem:[#allocation5 + $0x5e0] ss:$8 sps:$4 sm:$0xff]  }
 0x728   :  { %7868 = vmatprep.subr.bf16.mxu1 %v14239_v35  ;;  %v17835_v34 = vpop.f32.mrf.mxu1  ;;  %v17837_v7 = vpop.f32.mrf.mxu0 }
 0x729   :  { %7226 = vmatpush1.bf16.msra.mxu0 %v14234_v57  ;;  %19908 = vst [vmem:[#allocation21_spill] sm:$0xff] %v17835_v34  ;;  %v19910_v57 = vld [vmem:[#allocation54_spill] sm:$0xff]  ;;  %v14296_v34 = vld [vmem:[#allocation5 + $0x5e4] ss:$8 sps:$4 sm:$0xff]  }
 0x72a   :  { %7489 = vmatmul.mubr.bf16.gmra.mxu1 %v17644_v32  ;;  %7641 = vmatprep.subr.bf16.mxu0 %v14242_v56  ;;  %v17841_v41 = vpop.f32.mrf.mxu1  ;;  %v14246_v56 = vld [vmem:[#allocation5 + $0x4e0] ss:$8 sps:$4 sm:$0xff]   ;;  %v14281_v32 = vld [vmem:[#allocation5 + $0x624] ss:$8 sps:$4 sm:$0xff]  }
 0x72b   :  { %7498 = vmatprep.mubr.bf16.mxu1 %v19826_v29  ;;  %7869 = vmatpush1.bf16.msra.mxu1 %v14237_v19  ;;  %19909 = vst [vmem:[#allocation27_spill] sm:$0xff] %v17841_v41 }
 0x72c   :  { %6854 = vmatmul.mubr.bf16.gmra.mxu0 %v17661_v3  ;;  %7870 = vmatprep.subr.bf16.mxu1 %v14245_v8  ;;  %v17849_v55 = vpop.f32.mrf.mxu1 }
 0x72d   :  { %6863 = vmatprep.mubr.bf16.mxu0 %v19826_v29 }
 0x72f   :  { %7871 = vmatpush1.bf16.msra.mxu1 %v14243_v22  ;;  %v14251_v22 = vld [vmem:[#allocation5 + $0x4d4] ss:$8 sps:$4 sm:$0xff]  }
 0x730   :  { %8286 = vmatprep.subr.bf16.mxu1 %v14257_v14  ;;  %v14255_v14 = vld [vmem:[#allocation5 + $0x670] ss:$8 sps:$4 sm:$0xff]  }
 0x732   :  { %7499 = vmatmul.mubr.bf16.gmra.mxu1 %v17710_v37 }
 0x733   :  { %7508 = vmatprep.mubr.bf16.mxu1 %v19826_v29 }
 0x734   :  { %v17843_v27 = vpop.f32.mrf.mxu0  ;;  %6864 = vmatmul.mubr.bf16.gmra.mxu0 %v17721_v24  ;;  %v14258_v24 = vld [vmem:[#allocation5 + $0x4b0] ss:$8 sps:$4 sm:$0xff]  }
 0x735   :  { %7243 = vmatprep.mubr.bf16.mxu0 %v19826_v29 }
 0x736   :  { %v17847_v52 = vpop.f32.mrf.mxu0 }
 0x738   :  { %v17851_v21 = vpop.f32.mrf.mxu0 }
 0x73a   :  { %v17853_v45 = vpop.f32.mrf.mxu1  ;;  %7509 = vmatmul.mubr.bf16.gmra.mxu1 %v17729_v31  ;;  %v17856_v10 = vpop.f32.mrf.mxu0 }
 0x73b   :  { %7888 = vmatprep.mubr.bf16.mxu1 %v19826_v29 }
 0x73c   :  { %v17859_v35 = vpop.f32.mrf.mxu1  ;;  %7244 = vmatmul.mubr.bf16.vlgmr.msra.gmra.mxu0 %v19910_v57  ;;  %v14261_v57 = vld [vmem:[#allocation5 + $0x660] ss:$8 sps:$4 sm:$0xff]  }
 0x73d   :  { %7642 = vmatpush1.bf16.msra.mxu0 %v14240_v25  ;;  %7253 = vmatprep.mubr.bf16.mxu0 %v19826_v29  ;;  %v17863_v19 = vpop.f32.mrf.mxu0  ;;  %v14254_v25 = vld [vmem:[#allocation5 + $0x4c4] ss:$8 sps:$4 sm:$0xff]  }
 0x73e   :  { %v17865_v8 = vpop.f32.mrf.mxu1  ;;  %7643 = vmatprep.subr.bf16.mxu0 %v14248_v50  ;;  %v19911_v50 = vld [vmem:[#allocation56_spill] sm:$0xff] }
 0x73f   :  { %v17869_v23 = vpop.f32.mrf.mxu0 }
 0x740   :  { %v17867_v51 = vpop.f32.mrf.mxu1 }
 0x741   :  { %7644 = vmatpush1.bf16.msra.mxu0 %v14246_v56  ;;  %v14252_v56 = vld [vmem:[#allocation5 + $0x4c0] ss:$8 sps:$4 sm:$0xff]   ;;  %v17877_v39 = vpop.f32.mrf.mxu0 }
 0x742   :  { %7889 = vmatmul.mubr.bf16.vlgmr.msra.gmra.mxu1 %v17518_v12  ;;  %7645 = vmatprep.subr.bf16.mxu0 %v14251_v22  ;;  %v14260_v12 = vld [vmem:[#allocation5 + $0x4b4] ss:$8 sps:$4 sm:$0xff]   ;;  %v14264_v22 = vld [vmem:[#allocation5 + $0x650] ss:$8 sps:$4 sm:$0xff]  }
 0x743   :  { %7898 = vmatprep.mubr.bf16.mxu1 %v19826_v29  ;;  %8287 = vmatpush1.bf16.msra.mxu1 %v14255_v14  ;;  %v17873_v15 = vpop.f32.mrf.mxu1  ;;  %v14272_v14 = vld [vmem:[#allocation5 + $0x644] ss:$8 sps:$4 sm:$0xff]   ;;  %v17881_v37 = vpop.f32.mrf.mxu0 }
 0x744   :  { %7254 = vmatmul.mubr.bf16.gmra.mxu0 %v19911_v50  ;;  %8288 = vmatprep.subr.bf16.mxu1 %v14263_v63  ;;  %v14270_v63 = vld [vmem:[#allocation5 + $0x640] ss:$8 sps:$4 sm:$0xff]  }
 0x745   :  { %7646 = vmatpush1.bf16.msra.mxu0 %v14249_v47  ;;  %7263 = vmatprep.mubr.bf16.mxu0 %v19826_v29  ;;  %v17879_v31 = vpop.f32.mrf.mxu1  ;;  %v14269_v47 = vld [vmem:[#allocation5 + $0x4a4] ss:$8 sps:$4 sm:$0xff]  }
 0x746   :  { %7647 = vmatprep.subr.bf16.mxu0 %v14254_v25 }
 0x747   :  { %8289 = vmatpush1.bf16.msra.mxu1 %v14261_v57  ;;  %v17885_v25 = vpop.f32.mrf.mxu1 }
 0x748   :  { %8290 = vmatprep.subr.bf16.mxu1 %v14266_v53  ;;  %v14278_v53 = vld [vmem:[#allocation5 + $0x634] ss:$8 sps:$4 sm:$0xff]  }
 0x749   :  { %7648 = vmatpush1.bf16.msra.mxu0 %v14252_v56  ;;  %v14267_v56 = vld [vmem:[#allocation5 + $0x4a0] ss:$8 sps:$4 sm:$0xff]  }
 0x74a   :  { %7899 = vmatmul.mubr.bf16.gmra.mxu1 %v17592_v0  ;;  %7649 = vmatprep.subr.bf16.mxu0 %v14260_v12  ;;  %v14275_v0 = vld [vmem:[#allocation5 + $0x494] ss:$8 sps:$4 sm:$0xff]   ;;  %v14276_v12 = vld [vmem:[#allocation5 + $0x630] ss:$8 sps:$4 sm:$0xff]  }
 0x74b   :  { %7908 = vmatprep.mubr.bf16.mxu1 %v19826_v29  ;;  %8291 = vmatpush1.bf16.msra.mxu1 %v14264_v22  ;;  %v17893_v22 = vpop.f32.mrf.mxu1 }
 0x74c   :  { %7264 = vmatmul.mubr.bf16.gmra.mxu0 %v17603_v11  ;;  %8292 = vmatprep.subr.bf16.mxu1 %v14272_v14  ;;  %v14273_v11 = vld [vmem:[#allocation5 + $0x490] ss:$8 sps:$4 sm:$0xff]  }
 0x74d   :  { %v17887_v57 = vpop.f32.mrf.mxu0  ;;  %7273 = vmatprep.mubr.bf16.mxu0 %v19826_v29  ;;  %7650 = vmatpush1.bf16.msra.mxu0 %v14258_v24 }
 0x74e   :  { %7651 = vmatprep.subr.bf16.mxu0 %v14269_v47  ;;  %v14279_v47 = vld [vmem:[#allocation5 + $0x620] ss:$8 sps:$4 sm:$0xff]  }
 0x74f   :  { %v17891_v50 = vpop.f32.mrf.mxu0  ;;  %8293 = vmatpush1.bf16.msra.mxu1 %v14270_v63 }
 0x750   :  { %8294 = vmatprep.subr.bf16.mxu1 %v14278_v53  ;;  %v14287_v53 = vld [vmem:[#allocation5 + $0x614] ss:$8 sps:$4 sm:$0xff]  }
 0x751   :  { %v17895_v3 = vpop.f32.mrf.mxu0  ;;  %7652 = vmatpush1.bf16.msra.mxu0 %v14267_v56  ;;  %v14282_v56 = vld [vmem:[#allocation5 + $0x480] ss:$8 sps:$4 sm:$0xff]  }
 0x752   :  { %v17897_v14 = vpop.f32.mrf.mxu1  ;;  %7909 = vmatmul.mubr.bf16.gmra.mxu1 %v17609_v30  ;;  %7653 = vmatprep.subr.bf16.mxu0 %v14275_v0  ;;  %v14290_v0 = vld [vmem:[#allocation5 + $0x5f4] ss:$8 sps:$4 sm:$0xff]  }
 0x753   :  { %v17900_v24 = vpop.f32.mrf.mxu0  ;;  %7918 = vmatprep.mubr.bf16.mxu1 %v19826_v29  ;;  %8295 = vmatpush1.bf16.msra.mxu1 %v14276_v12 }
 0x754   :  { %v17903_v63 = vpop.f32.mrf.mxu1  ;;  %7274 = vmatmul.mubr.bf16.gmra.mxu0 %v17628_v13  ;;  %8296 = vmatprep.subr.bf16.mxu1 %v14281_v32 }
 0x755   :  { %7283 = vmatprep.mubr.bf16.mxu0 %v19826_v29  ;;  %7654 = vmatpush1.bf16.msra.mxu0 %v14273_v11  ;;  %v17907_v9 = vpop.f32.mrf.mxu0  ;;  %v14291_v11 = vld [vmem:[#allocation5 + $0x600] ss:$8 sps:$4 sm:$0xff]  }
 0x756   :  { %v17909_v30 = vpop.f32.mrf.mxu1  ;;  %7655 = vmatprep.subr.bf16.mxu0 %v14284_v6  ;;  %v14305_v6 = vld [vmem:[#allocation5 + $0x774] ss:$8 sps:$4 sm:$0xff]  }
 0x757   :  { %8297 = vmatpush1.bf16.msra.mxu1 %v14279_v47  ;;  %v17913_v13 = vpop.f32.mrf.mxu0 }
 0x758   :  { %v17911_v12 = vpop.f32.mrf.mxu1  ;;  %8298 = vmatprep.subr.bf16.mxu1 %v14287_v53 }
 0x759   :  { %7656 = vmatpush1.bf16.msra.mxu0 %v14282_v56  ;;  %v17921_v47 = vpop.f32.mrf.mxu0 }
 0x75a   :  { %7919 = vmatmul.mubr.bf16.gmra.mxu1 %v17686_v48  ;;  %8071 = vmatprep.subr.bf16.mxu0 %v14290_v0  ;;  %v17917_v32 = vpop.f32.mrf.mxu1 }
 0x75b   :  { %7928 = vmatprep.mubr.bf16.mxu1 %v19826_v29  ;;  %8299 = vmatpush1.bf16.msra.mxu1 %v14285_v60  ;;  %v17925_v48 = vpop.f32.mrf.mxu0 }
 0x75c   :  { %7284 = vmatmul.mubr.bf16.gmra.mxu0 %v17695_v4  ;;  %8300 = vmatprep.subr.bf16.mxu1 %v14293_v18  ;;  %v17923_v53 = vpop.f32.mrf.mxu1 }
 0x75d   :  { %7293 = vmatprep.mubr.bf16.mxu0 %v19826_v29 }
 0x75e   :  { %v17929_v60 = vpop.f32.mrf.mxu1 }
 0x75f   :  { %8301 = vmatpush1.bf16.msra.mxu1 %v14291_v11 }
 0x760   :  { %8716 = vmatprep.subr.bf16.mxu1 %v14305_v6  ;;  %v17937_v0 = vpop.f32.mrf.mxu1  ;;  %v14288_v6 = vld [vmem:[#allocation5 + $0x5f0] ss:$8 sps:$4 sm:$0xff]  }
 0x762   :  { %7929 = vmatmul.mubr.bf16.gmra.mxu1 %v17700_v59  ;;  %v19913_v59 = vpack.c.bf16 %v17759_v20, %v17706_v43  ;;  %v14299_v43 = vld [vmem:[#allocation5 + $0x5d4] ss:$8 sps:$4 sm:$0xff]  }
 0x763   :  { %7938 = vmatprep.mubr.bf16.mxu1 %v19826_v29 }
 0x764   :  { %v17931_v56 = vpop.f32.mrf.mxu0  ;;  %7294 = vmatmul.mubr.bf16.gmra.mxu0 %v17714_v26 }
 0x765   :  { %7673 = vmatprep.mubr.bf16.mxu0 %v19826_v29 }
 0x766   :  { %v17935_v18 = vpop.f32.mrf.mxu0 }
 0x768   :  { %v17939_v11 = vpop.f32.mrf.mxu0 }
 0x769   :  { %19912 = vst [vmem:[#allocation81_spill] sm:$0xff] %v17939_v11  ;;  %v14297_v11 = vld [vmem:[#allocation5 + $0x5d0] ss:$8 sps:$4 sm:$0xff]  }
 0x76a   :  { %v17941_v4 = vpop.f32.mrf.mxu1  ;;  %7939 = vmatmul.mubr.bf16.gmra.mxu1 %v19913_v59  ;;  %v17946_v41 = vpop.f32.mrf.mxu0  ;;  %v14303_v59 = vld [vmem:[#allocation5 + $0x770] ss:$8 sps:$4 sm:$0xff]  }
 0x76b   :  { %19914 = vst [vmem:[#allocation59_spill] sm:$0xff] %v17946_v41  ;;  %8318 = vmatprep.mubr.bf16.mxu1 %v19826_v29 }
 0x76c   :  { %v17949_v26 = vpop.f32.mrf.mxu1  ;;  %v17951_v5 = vpop.f32.mrf.mxu0  ;;  %7674 = vmatmul.mubr.bf16.vlgmr.msra.gmra.mxu0 %v19902_v58 }
 0x76d   :  { %19915 = vst [vmem:[#allocation30_spill] sm:$0xff] %v17949_v26  ;;  %8072 = vmatpush1.bf16.msra.mxu0 %v14288_v6  ;;  %7683 = vmatprep.mubr.bf16.mxu0 %v19826_v29  ;;  %v14311_v26 = vld [vmem:[#allocation5 + $0x764] ss:$8 sps:$4 sm:$0xff]  }
 0x76e   :  { %v17955_v62 = vpop.f32.mrf.mxu1  ;;  %v17957_v36 = vpop.f32.mrf.mxu0  ;;  %8073 = vmatprep.subr.bf16.mxu0 %v14296_v34  ;;  %v14302_v6 = vld [vmem:[#allocation5 + $0x5c4] ss:$8 sps:$4 sm:$0xff]   ;;  %v14309_v34 = vld [vmem:[#allocation5 + $0x760] ss:$8 sps:$4 sm:$0xff]  }
 0x76f   :  { %19916 = vst [vmem:[#allocation31_spill] sm:$0xff] %v17955_v62  ;;  %19917 = vst [vmem:[#allocation82_spill] sm:$0xff] %v17957_v36 }
 0x770   :  { %v17959_v20 = vpop.f32.mrf.mxu1  ;;  %v17961_v41 = vpop.f32.mrf.mxu0 }
 0x771   :  { %19918 = vst [vmem:[#allocation62_spill] sm:$0xff] %v17959_v20  ;;  %8074 = vmatpush1.bf16.msra.mxu0 %v14294_v46  ;;  %v14314_v46 = vld [vmem:[#allocation5 + $0x754] ss:$8 sps:$4 sm:$0xff]  }
 0x772   :  { %v17963_v38 = vpop.f32.mrf.mxu1  ;;  %8319 = vmatmul.mubr.bf16.vlgmr.msra.gmra.mxu1 %v17561_v2  ;;  %v5965_v58 = vpop.f32.mrf.mxu0  ;;  %8075 = vmatprep.subr.bf16.mxu0 %v14299_v43  ;;  %v14300_v2 = vld [vmem:[#allocation5 + $0x5c0] ss:$8 sps:$4 sm:$0xff]  }
 0x773   :  { %19919 = vst [vmem:[#allocation35_spill] sm:$0xff] %v17963_v38  ;;  %v5966_v62 = vadd.f32 %v5965_v58, %v17837_v7  ;;  %8328 = vmatprep.mubr.bf16.mxu1 %v19826_v29  ;;  %8717 = vmatpush1.bf16.msra.mxu1 %v14303_v59  ;;  %v14308_v58 = vld [vmem:[#allocation5 + $0x5b4] ss:$8 sps:$4 sm:$0xff]  }
 0x774   :  { %v17968_v36 = vpop.f32.mrf.mxu1  ;;  %v5969_v20 = vpop.f32.mrf.mxu0  ;;  %7684 = vmatmul.mubr.bf16.gmra.mxu0 %v17571_v16  ;;  %8718 = vmatprep.subr.bf16.mxu1 %v14311_v26  ;;  %v14312_v16 = vld [vmem:[#allocation5 + $0x750] ss:$8 sps:$4 sm:$0xff]  }
 0x775   :  { %19920 = vst [vmem:[#allocation47_spill] sm:$0xff] %v17968_v36  ;;  %v5970_v38 = vadd.f32 %v5969_v20, %v17843_v27  ;;  %8076 = vmatpush1.bf16.msra.mxu0 %v14297_v11  ;;  %7693 = vmatprep.mubr.bf16.mxu0 %v19826_v29  ;;  %v17974_v43 = vadd.f32 %v17849_v55, %v5966_v62  ;;  %v14320_v11 = vld [vmem:[#allocation5 + $0x744] ss:$8 sps:$4 sm:$0xff]   ;;  %v14306_v55 = vld [vmem:[#allocation5 + $0x5b0] ss:$8 sps:$4 sm:$0xff]  }
 0x776   :  { %v17976_v7 = vpop.f32.mrf.mxu1  ;;  %v5971_v59 = vpop.f32.mrf.mxu0  ;;  %8077 = vmatprep.subr.bf16.mxu0 %v14302_v6 }
 0x777   :  { %19921 = vst [vmem:[#allocation37_spill] sm:$0xff] %v17976_v7  ;;  %v5972_v36 = vadd.f32 %v5971_v59, %v17847_v52  ;;  %8719 = vmatpush1.bf16.msra.mxu1 %v14309_v34  ;;  %v17980_v26 = vadd.f32 %v17853_v45, %v5970_v38  ;;  %v14317_v38 = vld [vmem:[#allocation5 + $0x5a4] ss:$8 sps:$4 sm:$0xff]   ;;  %v14318_v34 = vld [vmem:[#allocation5 + $0x740] ss:$8 sps:$4 sm:$0xff]  }
 0x778   :  { %v17982_v20 = vpop.f32.mrf.mxu1  ;;  %v5973_v27 = vpop.f32.mrf.mxu0  ;;  %8720 = vmatprep.subr.bf16.mxu1 %v14314_v46 }
 0x779   :  { %v5974_v62 = vadd.f32 %v5973_v27, %v17851_v21  ;;  %8078 = vmatpush1.bf16.msra.mxu0 %v14300_v2  ;;  %v17986_v7 = vadd.f32 %v17859_v35, %v5972_v36  ;;  %v14326_v35 = vld [vmem:[#allocation5 + $0x734] ss:$8 sps:$4 sm:$0xff]  }
 0x77a   :  { %v17988_v6 = vpop.f32.mrf.mxu1  ;;  %8329 = vmatmul.mubr.bf16.gmra.mxu1 %v17577_v61  ;;  %v5975_v52 = vpop.f32.mrf.mxu0  ;;  %8079 = vmatprep.subr.bf16.mxu0 %v14308_v58  ;;  %v14323_v58 = vld [vmem:[#allocation5 + $0x594] ss:$8 sps:$4 sm:$0xff]  }
 0x77b   :  { %v5976_v45 = vadd.f32 %v5975_v52, %v17856_v10  ;;  %8338 = vmatprep.mubr.bf16.mxu1 %v19826_v29  ;;  %8721 = vmatpush1.bf16.msra.mxu1 %v14312_v16  ;;  %v17994_v21 = vadd.f32 %v17865_v8, %v5974_v62  ;;  %v14315_v10 = vld [vmem:[#allocation5 + $0x5a0] ss:$8 sps:$4 sm:$0xff]   ;;  %v14329_v62 = vld [vmem:[#allocation5 + $0x724] ss:$8 sps:$4 sm:$0xff]  }
 0x77c   :  { %v17996_v46 = vpop.f32.mrf.mxu1  ;;  %v5979_v36 = vpop.f32.mrf.mxu0  ;;  %7694 = vmatmul.mubr.bf16.gmra.mxu0 %v17595_v17  ;;  %8722 = vmatprep.subr.bf16.mxu1 %v14320_v11  ;;  %v14324_v17 = vld [vmem:[#allocation5 + $0x730] ss:$8 sps:$4 sm:$0xff]  }
 0x77d   :  { %v5980_v61 = vadd.f32 %v5979_v36, %v17863_v19  ;;  %7703 = vmatprep.mubr.bf16.mxu0 %v19826_v29  ;;  %8080 = vmatpush1.bf16.msra.mxu0 %v14306_v55  ;;  %v18002_v2 = vadd.f32 %v17867_v51, %v5976_v45  ;;  %v14321_v55 = vld [vmem:[#allocation5 + $0x590] ss:$8 sps:$4 sm:$0xff]  }
 0x77e   :  { %v18004_v59 = vpop.f32.mrf.mxu1  ;;  %v5981_v8 = vpop.f32.mrf.mxu0  ;;  %8081 = vmatprep.subr.bf16.mxu0 %v14317_v38 }
 0x77f   :  { %v5982_v16 = vadd.f32 %v5981_v8, %v17869_v23  ;;  %8723 = vmatpush1.bf16.msra.mxu1 %v14318_v34  ;;  %v18008_v27 = vadd.f32 %v17873_v15, %v5980_v61  ;;  %v14332_v15 = vld [vmem:[#allocation5 + $0x584] ss:$8 sps:$4 sm:$0xff]   ;;  %v14327_v34 = vld [vmem:[#allocation5 + $0x720] ss:$8 sps:$4 sm:$0xff]   ;;  %v14338_v8 = vld [vmem:[#allocation5 + $0x6f4] ss:$8 sps:$4 sm:$0xff]  }
 0x780   :  { %v18010_v19 = vpop.f32.mrf.mxu1  ;;  %v5983_v11 = vpop.f32.mrf.mxu0  ;;  %8724 = vmatprep.subr.bf16.mxu1 %v14326_v35  ;;  %v14335_v35 = vld [vmem:[#allocation5 + $0x714] ss:$8 sps:$4 sm:$0xff]  }
 0x781   :  { %v5984_v51 = vadd.f32 %v5983_v11, %v17877_v39  ;;  %8082 = vmatpush1.bf16.msra.mxu0 %v14315_v10  ;;  %v18014_v52 = vadd.f32 %v17879_v31, %v5982_v16  ;;  %v14341_v11 = vld [vmem:[#allocation5 + $0x704] ss:$8 sps:$4 sm:$0xff]  }
 0x782   :  { %v18016_v38 = vpop.f32.mrf.mxu1  ;;  %8339 = vmatmul.mubr.bf16.gmra.mxu1 %v17658_v33  ;;  %v5985_v23 = vpop.f32.mrf.mxu0  ;;  %8083 = vmatprep.subr.bf16.mxu0 %v14323_v58 }
 0x783   :  { %v5986_v45 = vadd.f32 %v5985_v23, %v17881_v37  ;;  %8348 = vmatprep.mubr.bf16.mxu1 %v19826_v29  ;;  %8725 = vmatpush1.bf16.msra.mxu1 %v14324_v17  ;;  %v18022_v39 = vadd.f32 %v17885_v25, %v5984_v51  ;;  %v14330_v37 = vld [vmem:[#allocation5 + $0x580] ss:$8 sps:$4 sm:$0xff]  }
 0x784   :  { %v18024_v36 = vpop.f32.mrf.mxu1  ;;  %v5989_v31 = vpop.f32.mrf.mxu0  ;;  %7704 = vmatmul.mubr.bf16.gmra.mxu0 %v17668_v1  ;;  %8726 = vmatprep.subr.bf16.mxu1 %v14329_v62  ;;  %v14333_v1 = vld [vmem:[#allocation5 + $0x710] ss:$8 sps:$4 sm:$0xff]  }
 0x785   :  { %v5990_v33 = vadd.f32 %v5989_v31, %v17887_v57  ;;  %7713 = vmatprep.mubr.bf16.mxu0 %v19826_v29  ;;  %8084 = vmatpush1.bf16.msra.mxu0 %v14321_v55  ;;  %v18030_v61 = vadd.f32 %v17893_v22, %v5986_v45  ;;  %v14339_v55 = vld [vmem:[#allocation5 + $0x700] ss:$8 sps:$4 sm:$0xff]  }
 0x786   :  { %v18032_v10 = vpop.f32.mrf.mxu1  ;;  %v5991_v25 = vpop.f32.mrf.mxu0  ;;  %8085 = vmatprep.subr.bf16.mxu0 %v14332_v15 }
 0x787   :  { %v5992_v58 = vadd.f32 %v5991_v25, %v17891_v50  ;;  %8727 = vmatpush1.bf16.msra.mxu1 %v14327_v34  ;;  %v18036_v16 = vadd.f32 %v17897_v14, %v5990_v33 }
 0x788   :  { %v18038_v57 = vpop.f32.mrf.mxu1  ;;  %v5993_v17 = vpop.f32.mrf.mxu0  ;;  %8728 = vmatprep.subr.bf16.mxu1 %v14335_v35 }
 0x789   :  { %v5994_v22 = vadd.f32 %v5993_v17, %v17895_v3  ;;  %8086 = vmatpush1.bf16.msra.mxu0 %v14330_v37  ;;  %v18042_v62 = vadd.f32 %v17903_v63, %v5992_v58 }
 0x78a   :  { %v18044_v51 = vpop.f32.mrf.mxu1  ;;  %8349 = vmatmul.mubr.bf16.gmra.mxu1 %v17674_v28  ;;  %v5995_v50 = vpop.f32.mrf.mxu0  ;;  %8501 = vmatprep.subr.bf16.mxu0 %v14338_v8 }
 0x78b   :  { %v5996_v14 = vadd.f32 %v5995_v50, %v17900_v24  ;;  %8358 = vmatprep.mubr.bf16.mxu1 %v19826_v29  ;;  %8729 = vmatpush1.bf16.msra.mxu1 %v14333_v1  ;;  %v18050_v23 = vadd.f32 %v17909_v30, %v5994_v22  ;;  %v19925_v50 = vld [vmem:[#allocation81_spill] sm:$0xff] }
 0x78c   :  { %v18052_v3 = vpop.f32.mrf.mxu1  ;;  %v5999_v15 = vpop.f32.mrf.mxu0  ;;  %7714 = vmatmul.mubr.bf16.gmra.mxu0 %v17689_v44  ;;  %8730 = vmatprep.subr.bf16.mxu1 %v14341_v11  ;;  %v19924_v11 = vld [vmem:[#allocation82_spill] sm:$0xff] }
 0x78d   :  { %v6000_v63 = vadd.f32 %v5999_v15, %v17907_v9  ;;  %7723 = vmatprep.mubr.bf16.mxu0 %v19826_v29  ;;  %v18058_v28 = vadd.f32 %v17911_v12, %v5996_v14  ;;  %v14336_v14 = vld [vmem:[#allocation5 + $0x6f0] ss:$8 sps:$4 sm:$0xff]  }
 0x78e   :  { %v18060_v24 = vpop.f32.mrf.mxu1  ;;  %v6001_v45 = vpop.f32.mrf.mxu0 }
 0x78f   :  { %v6002_v34 = vadd.f32 %v6001_v45, %v17913_v13  ;;  %8731 = vmatpush1.bf16.msra.mxu1 %v14339_v55  ;;  %v18064_v30 = vadd.f32 %v17917_v32, %v6000_v63  ;;  %v19926_v55 = vld [vmem:[#allocation30_spill] sm:$0xff]  ;;  %v19929_v45 = vld [vmem:[#allocation88_spill] sm:$0xff] }
 0x790   :  { %v18066_v31 = vpop.f32.mrf.mxu1  ;;  %v6003_v44 = vpop.f32.mrf.mxu0 }
 0x791   :  { %v6004_v35 = vadd.f32 %v6003_v44, %v17921_v47  ;;  %v18070_v9 = vadd.f32 %v17923_v53, %v6002_v34  ;;  %v19922_v47 = vpack.c.bf16 %v17744_v40, %v17733_v49  ;;  %v5964_v34 = vadd.f32 %v17961_v41, %v19929_v45  ;;  %v19930_v44 = vld [vmem:[#allocation59_spill] sm:$0xff]  ;;  %v19935_v41 = vld [vmem:[#allocation62_spill] sm:$0xff] }
 0x792   :  { %v18072_v33 = vpop.f32.mrf.mxu1  ;;  %8359 = vmatmul.mubr.bf16.gmra.mxu1 %v17740_v42  ;;  %v6005_v12 = vpop.f32.mrf.mxu0  ;;  %v19937_v45 = vld [vmem:[#allocation35_spill] sm:$0xff] }
 0x793   :  { %v6006_v37 = vadd.f32 %v6005_v12, %v17925_v48  ;;  %8368 = vmatprep.mubr.bf16.mxu1 %v19826_v29  ;;  %v18078_v13 = vadd.f32 %v17929_v60, %v6004_v35  ;;  %v5960_v60 = vadd.f32 %v17951_v5, %v17823_v54  ;;  %v19927_v5 = vld [vmem:[#allocation18_spill] sm:$0xff]  ;;  %v19931_v12 = vld [vmem:[#allocation28_spill] sm:$0xff] }
 0x794   :  { %v18080_v32 = vpop.f32.mrf.mxu1  ;;  %v6009_v25 = vpop.f32.mrf.mxu0  ;;  %7724 = vmatmul.mubr.bf16.gmra.mxu0 %v19922_v47  ;;  %v19928_v54 = vpack.c.bf16 %v19927_v5, %v17744_v40 }
 0x795   :  { %v6010_v53 = vadd.f32 %v6009_v25, %v17931_v56  ;;  %8103 = vmatprep.mubr.bf16.mxu0 %v19826_v29  ;;  %v18088_v42 = vadd.f32 %v17937_v0, %v6006_v37  ;;  %v19923_v56 = vld [vmem:[#allocation34_spill] sm:$0xff]  ;;  %v6214_v37 = vadd.f32 %v19931_v12, %v5960_v60  ;;  %v19932_v25 = vld [vmem:[#allocation31_spill] sm:$0xff] }
 0x796   :  { %v18090_v48 = vpop.f32.mrf.mxu1  ;;  %v6011_v8 = vpop.f32.mrf.mxu0  ;;  %v5962_v22 = vadd.f32 %v19924_v11, %v19923_v56  ;;  %v14342_v11 = vld [vmem:[#allocation5 + $0x6e0] ss:$8 sps:$4 sm:$0xff]  }
 0x797   :  { %v6012_v58 = vadd.f32 %v6011_v8, %v17935_v18  ;;  %v18096_v1 = vadd.f32 %v17941_v4, %v6010_v53  ;;  %v14344_v18 = vld [vmem:[#allocation5 + $0x6e4] ss:$8 sps:$4 sm:$0xff]  }
 0x798   :  { %v18098_v49 = vpop.f32.mrf.mxu1  ;;  %v6013_v17 = vpop.f32.mrf.mxu0 }
 0x799   :  { %v6014_v0 = vadd.f32 %v6013_v17, %v19925_v50  ;;  %v18104_v15 = vadd.f32 %v19926_v55, %v6012_v58  ;;  %v19933_v58 = vld [vmem:[#allocation33_spill] sm:$0xff] }
 0x79a   :  { %v18106_v63 = vpop.f32.mrf.mxu1  ;;  %8369 = vmatmul.mubr.bf16.gmra.mxu1 %v19928_v54  ;;  %v6015_v4 = vpop.f32.mrf.mxu0  ;;  %v19934_v17 = vld [vmem:[#allocation21_spill] sm:$0xff]  ;;  %v19936_v54 = vld [vmem:[#allocation27_spill] sm:$0xff] }
 0x79b   :  { %v6016_v35 = vadd.f32 %v6015_v4, %v19930_v44  ;;  %8748 = vmatprep.mubr.bf16.mxu1 %v19826_v29  ;;  %v18117_v47 = vadd.f32 %v19932_v25, %v6014_v0  ;;  %v6215_v56 = vadd.f32 %v19934_v17, %v5962_v22  ;;  %v14347_v0 = vld [vmem:[#allocation5 + $0x6d4] ss:$8 sps:$4 sm:$0xff]   ;;  %v6216_v4 = vadd.f32 %v19936_v54, %v5964_v34  ;;  %v19938_v25 = vld [vmem:[#allocation47_spill] sm:$0xff] }
 0x79c   :  { %v18119_v53 = vpop.f32.mrf.mxu1  ;;  %v6375_v8 = vpop.f32.mrf.mxu0  ;;  %8104 = vmatmul.mubr.bf16.vlgmr.msra.gmra.mxu0 %v19933_v58  ;;  %v19939_v58 = vld [vmem:[#allocation57_spill] sm:$0xff]  ;;  %v14350_v17 = vld [vmem:[#allocation5 + $0x6c4] ss:$8 sps:$4 sm:$0xff]   ;;  %v14348_v54 = vld [vmem:[#allocation5 + $0x6c0] ss:$8 sps:$4 sm:$0xff]  }
 0x79d   :  { %v6434_v40 = vadd.f32 %v6375_v8, %v6214_v37  ;;  %8502 = vmatpush1.bf16.msra.mxu0 %v14336_v14  ;;  %8113 = vmatprep.mubr.bf16.mxu0 %v19826_v29  ;;  %v18125_v50 = vadd.f32 %v19935_v41, %v6016_v35  ;;  %v14345_v37 = vld [vmem:[#allocation5 + $0x6d0] ss:$8 sps:$4 sm:$0xff]  }
 0x79e   :  { %v18127_v60 = vpop.f32.mrf.mxu1  ;;  %v6377_v55 = vpop.f32.mrf.mxu0  ;;  %8503 = vmatprep.subr.bf16.mxu0 %v14344_v18 }
 0x79f   :  { %v6435_v5 = vadd.f32 %v6377_v55, %v6215_v56  ;;  %v18131_v44 = vadd.f32 %v19937_v45, %v6434_v40  ;;  %v19940_v40 = vld [vmem:[#allocation37_spill] sm:$0xff]  ;;  %v19941_v55 = vld [vmem:[#allocation58_spill] sm:$0xff] }
 0x7a0   :  { %v18133_v14 = vpop.f32.mrf.mxu1  ;;  %v6379_v22 = vpop.f32.mrf.mxu0  ;;  %v14353_v45 = vld [vmem:[#allocation5 + $0x6b4] ss:$8 sps:$4 sm:$0xff]  }
 0x7a1   :  { %v6436_v12 = vadd.f32 %v6379_v22, %v6216_v4  ;;  %8504 = vmatpush1.bf16.msra.mxu0 %v14342_v11  ;;  %v18136_v35 = vadd.f32 %v19938_v25, %v6435_v5 }
 0x7a2   :  { %v18138_v8 = vpop.f32.mrf.mxu1  ;;  %8749 = vmatmul.mubr.bf16.vlgmr.msra.gmra.mxu1 %v19939_v58  ;;  %v6381_v18 = vpop.f32.mrf.mxu0  ;;  %8505 = vmatprep.subr.bf16.mxu0 %v14347_v0  ;;  %v14351_v58 = vld [vmem:[#allocation5 + $0x6b0] ss:$8 sps:$4 sm:$0xff]  }
 0x7a3   :  { %v6437_v34 = vadd.f32 %v6381_v18, %v17974_v43  ;;  %8758 = vmatprep.mubr.bf16.mxu1 %v19826_v29  ;;  %v18144_v56 = vadd.f32 %v19940_v40, %v6436_v12 }
 0x7a4   :  { %v18146_v41 = vpop.f32.mrf.mxu1  ;;  %v6385_v11 = vpop.f32.mrf.mxu0  ;;  %8114 = vmatmul.mubr.bf16.gmra.mxu0 %v19941_v55  ;;  %v19943_v55 = vld [vmem:[#allocation63_spill] sm:$0xff] }
 0x7a5   :  { %v6438_v5 = vadd.f32 %v6385_v11, %v17980_v26  ;;  %8506 = vmatpush1.bf16.msra.mxu0 %v14345_v37  ;;  %8123 = vmatprep.mubr.bf16.mxu0 %v19826_v29  ;;  %v18152_v0 = vadd.f32 %v17982_v20, %v6437_v34  ;;  %v19942_v34 = vld [vmem:[#allocation61_spill] sm:$0xff] }
 0x7a6   :  { %v18154_v43 = vpop.f32.mrf.mxu1  ;;  %v6387_v4 = vpop.f32.mrf.mxu0  ;;  %8507 = vmatprep.subr.bf16.mxu0 %v14350_v17 }
 0x7a7   :  { %v6439_v22 = vadd.f32 %v6387_v4, %v17986_v7  ;;  %v18158_v12 = vadd.f32 %v17988_v6, %v6438_v5  ;;  %v14356_v7 = vld [vmem:[#allocation5 + $0x6a4] ss:$8 sps:$4 sm:$0xff]   ;;  %v14354_v5 = vld [vmem:[#allocation5 + $0x6a0] ss:$8 sps:$4 sm:$0xff]  }
 0x7a8   :  { %v18160_v25 = vpop.f32.mrf.mxu1  ;;  %v6389_v26 = vpop.f32.mrf.mxu0 }
 0x7a9   :  { %v6440_v37 = vadd.f32 %v6389_v26, %v17994_v21  ;;  %8508 = vmatpush1.bf16.msra.mxu0 %v14348_v54  ;;  %v18164_v20 = vadd.f32 %v17996_v46, %v6439_v22 }
 0x7aa   :  { %v18166_v18 = vpop.f32.mrf.mxu1  ;;  %8759 = vmatmul.mubr.bf16.gmra.mxu1 %v19942_v34  ;;  %v6391_v17 = vpop.f32.mrf.mxu0  ;;  %8509 = vmatprep.subr.bf16.mxu0 %v14353_v45 }
 0x7ab   :  { %v6441_v6 = vadd.f32 %v6391_v17, %v18002_v2  ;;  %8768 = vmatprep.mubr.bf16.mxu1 %v19826_v29  ;;  %v18172_v40 = vadd.f32 %v18004_v59, %v6440_v37  ;;  %v14359_v59 = vld [vmem:[#allocation5 + $0x694] ss:$8 sps:$4 sm:$0xff]  }
 0x7ac   :  { %v18174_v21 = vpop.f32.mrf.mxu1  ;;  %v6395_v11 = vpop.f32.mrf.mxu0  ;;  %8124 = vmatmul.mubr.bf16.gmra.mxu0 %v19943_v55  ;;  %v19944_v17 = vld [vmem:[#allocation29_spill] sm:$0xff] }
 0x7ad   :  { %v6442_v46 = vadd.f32 %v6395_v11, %v18008_v27  ;;  %8133 = vmatprep.mubr.bf16.mxu0 %v19826_v29  ;;  %8510 = vmatpush1.bf16.msra.mxu0 %v14351_v58  ;;  %v18180_v54 = vadd.f32 %v18010_v19, %v6441_v6  ;;  %v14357_v58 = vld [vmem:[#allocation5 + $0x690] ss:$8 sps:$4 sm:$0xff]  }
 0x7ae   :  { %v18182_v2 = vpop.f32.mrf.mxu1  ;;  %v6397_v4 = vpop.f32.mrf.mxu0  ;;  %8511 = vmatprep.subr.bf16.mxu0 %v14356_v7  ;;  %v19945_v55 = vld [vmem:[#allocation65_spill] sm:$0xff] }
 0x7af   :  { %v6443_v45 = vadd.f32 %v6397_v4, %v18014_v52  ;;  %v18186_v22 = vadd.f32 %v18016_v38, %v6442_v46  ;;  %v14362_v52 = vld [vmem:[#allocation5 + $0x684] ss:$8 sps:$4 sm:$0xff]   ;;  %v14360_v46 = vld [vmem:[#allocation5 + $0x680] ss:$8 sps:$4 sm:$0xff]  }
 0x7b0   :  { %v18188_v26 = vpop.f32.mrf.mxu1  ;;  %v6399_v27 = vpop.f32.mrf.mxu0 }
 0x7b1   :  { %v6444_v37 = vadd.f32 %v6399_v27, %v18022_v39  ;;  %8512 = vmatpush1.bf16.msra.mxu0 %v14354_v5  ;;  %v18192_v19 = vadd.f32 %v18024_v36, %v6443_v45 }
 0x7b2   :  { %v18194_v34 = vpop.f32.mrf.mxu1  ;;  %8769 = vmatmul.mubr.bf16.gmra.mxu1 %v19944_v17  ;;  %v6401_v7 = vpop.f32.mrf.mxu0  ;;  %8513 = vmatprep.subr.bf16.mxu0 %v14359_v59 }
 0x7b3   :  { %v6445_v38 = vadd.f32 %v6401_v7, %v18030_v61  ;;  %8778 = vmatprep.mubr.bf16.mxu1 %v19826_v29  ;;  %v18200_v6 = vadd.f32 %v18032_v10, %v6444_v37 }
 0x7b4   :  { %v18202_v39 = vpop.f32.mrf.mxu1  ;;  %v6405_v11 = vpop.f32.mrf.mxu0  ;;  %8134 = vmatmul.mubr.bf16.gmra.mxu0 %v19945_v55 }
 0x7b5   :  { %v6446_v36 = vadd.f32 %v6405_v11, %v18036_v16  ;;  %8143 = vmatprep.mubr.bf16.mxu0 %v19826_v29  ;;  %8514 = vmatpush1.bf16.msra.mxu0 %v14357_v58  ;;  %v18208_v5 = vadd.f32 %v18038_v57, %v6445_v38  ;;  %v19946_v58 = vld [vmem:[#allocation68_spill] sm:$0xff] }
 0x7b6   :  { %v18210_v61 = vpop.f32.mrf.mxu1  ;;  %v6407_v4 = vpop.f32.mrf.mxu0  ;;  %8515 = vmatprep.subr.bf16.mxu0 %v14362_v52 }
 0x7b7   :  { %v6447_v10 = vadd.f32 %v6407_v4, %v18042_v62  ;;  %v18214_v59 = vadd.f32 %v18044_v51, %v6446_v36 }
 0x7b8   :  { %v18216_v45 = vpop.f32.mrf.mxu1  ;;  %v6409_v27 = vpop.f32.mrf.mxu0 }
 0x7b9   :  { %v6448_v16 = vadd.f32 %v6409_v27, %v18050_v23  ;;  %8516 = vmatpush1.bf16.msra.mxu0 %v14360_v46  ;;  %v18220_v37 = vadd.f32 %v18052_v3, %v6447_v10  ;;  %v19947_v23 = vld [vmem:[#allocation79_spill] sm:$0xff] }
 0x7ba   :  { %v18222_v57 = vpop.f32.mrf.mxu1  ;;  %8779 = vmatmul.mubr.bf16.gmra.mxu1 %v19946_v58  ;;  %v6411_v17 = vpop.f32.mrf.mxu0 }
 0x7bb   :  { %v6449_v7 = vadd.f32 %v6411_v17, %v18058_v28  ;;  %8788 = vmatprep.mubr.bf16.mxu1 %v19826_v29  ;;  %v18228_v62 = vadd.f32 %v18060_v24, %v6448_v16  ;;  %v19949_v17 = vld [vmem:[#allocation15_spill] sm:$0xff] }
 0x7bc   :  { %v18230_v51 = vpop.f32.mrf.mxu1  ;;  %v6415_v52 = vpop.f32.mrf.mxu0  ;;  %8144 = vmatmul.mubr.bf16.gmra.mxu0 %v19947_v23 }
 0x7bd   :  { %v6450_v3 = vadd.f32 %v6415_v52, %v18064_v30  ;;  %8153 = vmatprep.mubr.bf16.mxu0 %v19826_v29  ;;  %v18236_v38 = vadd.f32 %v18066_v31, %v6449_v7  ;;  %v19948_v31 = vld [vmem:[#allocation25_spill] sm:$0xff] }
 0x7be   :  { %v18238_v11 = vpop.f32.mrf.mxu1  ;;  %v6417_v28 = vpop.f32.mrf.mxu0 }
 0x7bf   :  { %v6451_v55 = vadd.f32 %v6417_v28, %v18070_v9  ;;  %v18242_v24 = vadd.f32 %v18072_v33, %v6450_v3 }
 0x7c0   :  { %v18244_v36 = vpop.f32.mrf.mxu1  ;;  %v6419_v46 = vpop.f32.mrf.mxu0 }
 0x7c1   :  { %v6452_v4 = vadd.f32 %v6419_v46, %v18078_v13  ;;  %v18248_v30 = vadd.f32 %v18080_v32, %v6451_v55  ;;  %v19950_v13 = vld [vmem:[#allocation76_spill] sm:$0xff]  ;;  %v19953_v46 = vmov 0.0  }
 0x7c2   :  { %v18250_v10 = vpop.f32.mrf.mxu1  ;;  %8789 = vmatmul.mubr.bf16.gmra.mxu1 %v19948_v31  ;;  %v6421_v27 = vpop.f32.mrf.mxu0  ;;  %v19951_v7 = vpack.c.bf16 %v19949_v17, %v19950_v13  ;;  %v19954_v13 = vld [vmem:[#allocation56_spill] sm:$0xff] }
 0x7c3   :  { %v6453_v16 = vadd.f32 %v6421_v27, %v18088_v42  ;;  %8798 = vmatprep.mubr.bf16.mxu1 %v19826_v29  ;;  %v18256_v9 = vadd.f32 %v18090_v48, %v6452_v4  ;;  %v8618_v4 = vpack.c.bf16 %v19953_v46, %v19949_v17 }
 0x7c4   :  { %v18258_v33 = vpop.f32.mrf.mxu1  ;;  %v6425_v58 = vpop.f32.mrf.mxu0  ;;  %8154 = vmatmul.mubr.bf16.gmra.mxu0 %v19951_v7 }
 0x7c5   :  { %v6454_v32 = vadd.f32 %v6425_v58, %v18096_v1  ;;  %8533 = vmatprep.mubr.bf16.mxu0 %v19826_v29  ;;  %v18266_v52 = vadd.f32 %v18098_v49, %v6453_v16 }
 0x7c6   :  { %v18268_v42 = vpop.f32.mrf.mxu1  ;;  %v6427_v23 = vpop.f32.mrf.mxu0 }
 0x7c7   :  { %v6455_v48 = vadd.f32 %v6427_v23, %v18104_v15  ;;  %v18272_v3 = vadd.f32 %v18106_v63, %v6454_v32 }
 0x7c8   :  { %v18274_v28 = vpop.f32.mrf.mxu1  ;;  %v6429_v55 = vpop.f32.mrf.mxu0 }
 0x7c9   :  { %19952 = vst [vmem:[#allocation14_spill] sm:$0xff] %v18274_v28  ;;  %v6456_v1 = vadd.f32 %v6429_v55, %v18117_v47  ;;  %v18280_v31 = vadd.f32 %v18119_v53, %v6455_v48  ;;  %v14392_v28 = vld [vmem:[#allocation7] sm:$0xff]  }
 0x7ca   :  { %v18282_v49 = vpop.f32.mrf.mxu1  ;;  %8799 = vmatmul.mubr.bf16.gmra.mxu1 %v8618_v4  ;;  %v6431_v27 = vpop.f32.mrf.mxu0 }
 0x7cb   :  { %v6457_v15 = vadd.f32 %v6431_v27, %v18125_v50  ;;  %v18286_v63 = vadd.f32 %v18127_v60, %v6456_v1  ;;  %v19957_v27 = vld [vmem:[#allocation60_spill] sm:$0xff] }
 0x7cc   :  { %v18288_v16 = vpop.f32.mrf.mxu1  ;;  %v6815_v58 = vpop.f32.mrf.mxu0  ;;  %8534 = vmatmul.mubr.bf16.vlgmr.msra.gmra.mxu0 %v19954_v13 }
 0x7cd   :  { %v6874_v17 = vadd.f32 %v6815_v58, %v18131_v44  ;;  %8543 = vmatprep.mubr.bf16.mxu0 %v19826_v29  ;;  %v18294_v47 = vadd.f32 %v18133_v14, %v6457_v15 }
 0x7ce   :  { %v18296_v53 = vpop.f32.mrf.mxu1  ;;  %v6817_v7 = vpop.f32.mrf.mxu0 }
 0x7cf   :  { %19955 = vst [vmem:[#allocation64_spill] sm:$0xff] %v18294_v47  ;;  %v6875_v50 = vadd.f32 %v6817_v7, %v18136_v35  ;;  %v18300_v60 = vadd.f32 %v18138_v8, %v6874_v17 }
 0x7d0   :  { %v18302_v32 = vpop.f32.mrf.mxu1  ;;  %v6819_v23 = vpop.f32.mrf.mxu0 }
 0x7d1   :  { %19956 = vst [vmem:[#allocation41_spill] sm:$0xff] %v18302_v32  ;;  %v6876_v48 = vadd.f32 %v6819_v23, %v18144_v56  ;;  %v18306_v44 = vadd.f32 %v18146_v41, %v6875_v50 }
 0x7d2   :  { %v18308_v55 = vpop.f32.mrf.mxu1  ;;  %v6821_v14 = vpop.f32.mrf.mxu0 }
 0x7d3   :  { %v6877_v4 = vadd.f32 %v6821_v14, %v18152_v0  ;;  %v18312_v1 = vadd.f32 %v18154_v43, %v6876_v48  ;;  %v19960_v14 = vld [vmem:[#allocation26_spill] sm:$0xff] }
 0x7d4   :  { %v18314_v35 = vpop.f32.mrf.mxu1  ;;  %v6825_v8 = vpop.f32.mrf.mxu0  ;;  %8544 = vmatmul.mubr.bf16.gmra.mxu0 %v19957_v27 }
 0x7d5   :  { %v6878_v15 = vadd.f32 %v6825_v8, %v18158_v12  ;;  %8553 = vmatprep.mubr.bf16.mxu0 %v19826_v29  ;;  %v18320_v56 = vadd.f32 %v18160_v25, %v6877_v4 }
 0x7d6   :  { %v18322_v41 = vpop.f32.mrf.mxu1  ;;  %v6827_v58 = vpop.f32.mrf.mxu0 }
 0x7d7   :  { %19958 = vst [vmem:[#allocation42_spill] sm:$0xff] %v18320_v56  ;;  %v6879_v0 = vadd.f32 %v6827_v58, %v18164_v20  ;;  %v18326_v43 = vadd.f32 %v18166_v18, %v6878_v15 }
 0x7d8   :  { %v18328_v13 = vpop.f32.mrf.mxu1  ;;  %v6829_v17 = vpop.f32.mrf.mxu0 }
 0x7d9   :  { %19959 = vst [vmem:[#allocation43_spill] sm:$0xff] %v18328_v13  ;;  %v6880_v7 = vadd.f32 %v6829_v17, %v18172_v40  ;;  %v18332_v12 = vadd.f32 %v18174_v21, %v6879_v0 }
 0x7da   :  { %v18334_v50 = vpop.f32.mrf.mxu1  ;;  %v6831_v25 = vpop.f32.mrf.mxu0 }
 0x7db   :  { %v6881_v23 = vadd.f32 %v6831_v25, %v18180_v54  ;;  %v18338_v48 = vadd.f32 %v18182_v2, %v6880_v7 }
 0x7dc   :  { %v18340_v20 = vpop.f32.mrf.mxu1  ;;  %v6835_v18 = vpop.f32.mrf.mxu0  ;;  %8554 = vmatmul.mubr.bf16.gmra.mxu0 %v19960_v14 }
 0x7dd   :  { %v6882_v4 = vadd.f32 %v6835_v18, %v18186_v22  ;;  %8563 = vmatprep.mubr.bf16.mxu0 %v19826_v29  ;;  %v18346_v40 = vadd.f32 %v18188_v26, %v6881_v23 }
 0x7de   :  { %v18348_v21 = vpop.f32.mrf.mxu1  ;;  %v6837_v8 = vpop.f32.mrf.mxu0 }
 0x7df   :  { %v6883_v54 = vadd.f32 %v6837_v8, %v18192_v19  ;;  %v18352_v2 = vadd.f32 %v18194_v34, %v6882_v4  ;;  %v19961_v34 = vld [vmem:[#allocation66_spill] sm:$0xff] }
 0x7e0   :  { %v18354_v27 = vpop.f32.mrf.mxu1  ;;  %v6839_v15 = vpop.f32.mrf.mxu0 }
 0x7e1   :  { %v6884_v58 = vadd.f32 %v6839_v15, %v18200_v6  ;;  %v18358_v22 = vadd.f32 %v18202_v39, %v6883_v54 }
 0x7e2   :  { %v18360_v0 = vpop.f32.mrf.mxu1  ;;  %v18362_v26 = vpop.f32.mrf.mxu0 }
 0x7e3   :  { %v18365_v17 = vadd.f32 %v18210_v61, %v6884_v58 }
 0x7e4   :  { %v18367_v7 = vpop.f32.mrf.mxu1  ;;  %v6845_v19 = vpop.f32.mrf.mxu0  ;;  %8564 = vmatmul.mubr.bf16.gmra.mxu0 %v19961_v34 }
 0x7e5   :  { %v6886_v25 = vadd.f32 %v6845_v19, %v18214_v59  ;;  %8573 = vmatprep.mubr.bf16.mxu0 %v19826_v29 }
 0x7e6   :  { %v18372_v6 = vpop.f32.mrf.mxu1  ;;  %v6847_v39 = vpop.f32.mrf.mxu0 }
 0x7e7   :  { %v6887_v23 = vadd.f32 %v6847_v39, %v18220_v37  ;;  %v18376_v18 = vadd.f32 %v18222_v57, %v6886_v25  ;;  %v19962_v57 = vld [vmem:[#allocation69_spill] sm:$0xff] }
 0x7e8   :  { %v18378_v14 = vpop.f32.mrf.mxu1  ;;  %v6849_v61 = vpop.f32.mrf.mxu0 }
 0x7e9   :  { %v6888_v4 = vadd.f32 %v6849_v61, %v18228_v62  ;;  %v18382_v8 = vadd.f32 %v18230_v51, %v6887_v23  ;;  %v14363_v23 = vld [vmem:[#allocation7 + $0xf8] sm:$0xff]  }
 0x7ea   :  { %v18384_v54 = vpop.f32.mrf.mxu1  ;;  %v18386_v59 = vpop.f32.mrf.mxu0  ;;  %12379 = vmatprep.subr.bf16.mxu0 %v14363_v23 }
 0x7eb   :  { %v18389_v15 = vadd.f32 %v18238_v11, %v6888_v4 }
 0x7ec   :  { %v18391_v58 = vpop.f32.mrf.mxu1  ;;  %v6855_v37 = vpop.f32.mrf.mxu0  ;;  %8574 = vmatmul.mubr.bf16.gmra.mxu0 %v19962_v57 }
 0x7ed   :  { %v6890_v19 = vadd.f32 %v6855_v37, %v18242_v24  ;;  %8583 = vmatprep.mubr.bf16.mxu0 %v19826_v29  ;;  %v19964_v37 = vld [vmem:[#allocation75_spill] sm:$0xff] }
 0x7ee   :  { %v18396_v62 = vpop.f32.mrf.mxu1  ;;  %v6857_v51 = vpop.f32.mrf.mxu0  ;;  %v8403_v57 = vpack.c.bf16 %v19953_v46, %v19964_v37  ;;  %v14367_v37 = vld [vmem:[#allocation7 + $0xf0] sm:$0xff]  }
 0x7ef   :  { %v6891_v34 = vadd.f32 %v6857_v51, %v18248_v30  ;;  %v18400_v25 = vadd.f32 %v18250_v10, %v6890_v19  ;;  %v14364_v30 = vld [vmem:[#allocation7 + $0xb8] sm:$0xff]  }
 0x7f0   :  { %v18402_v39 = vpop.f32.mrf.mxu1  ;;  %v6859_v11 = vpop.f32.mrf.mxu0  ;;  %v14365_v10 = vld [vmem:[#allocation7 + $0x78] sm:$0xff]   ;;  %12380 = vmatpush3.bf16.msra.mxu0 %v14364_v30 }
 0x7f1   :  { %19963 = vst [vmem:[#allocation85_spill] sm:$0xff] %v18402_v39  ;;  %v6892_v61 = vadd.f32 %v6859_v11, %v18256_v9  ;;  %v18406_v4 = vadd.f32 %v18258_v33, %v6891_v34  ;;  %12407 = vmatprep.subr.bf16.mxu1 %v14365_v10  ;;  %v14366_v9 = vld [vmem:[#allocation7 + $0x38] sm:$0xff]   ;;  %12381 = vmatprep.subr.bf16.mxu0 %v14367_v37  ;;  %v14369_v10 = vld [vmem:[#allocation7 + $0x70] sm:$0xff]  }
 0x7f2   :  { %v18408_v24 = vpop.f32.mrf.mxu1  ;;  %v18410_v29 = vpop.f32.mrf.mxu0  ;;  %12408 = vmatpush3.bf16.msra.mxu1 %v14366_v9 }
 0x7f3   :  { %v18415_v19 = vadd.f32 %v18268_v42, %v6892_v61  ;;  %12409 = vmatprep.subr.bf16.mxu1 %v14369_v10 }
 0x7f4   :  { %v18417_v51 = vpop.f32.mrf.mxu1  ;;  %v6865_v13 = vpop.f32.mrf.mxu0  ;;  %8584 = vmatmul.mubr.bf16.gmra.mxu0 %v8403_v57  ;;  %v14368_v57 = vld [vmem:[#allocation7 + $0xb0] sm:$0xff]  }
 0x7f5   :  { %v6894_v33 = vadd.f32 %v6865_v13, %v18272_v3  ;;  %12382 = vmatpush3.bf16.msra.mxu0 %v14368_v57 }
 0x7f6   :  { %v18420_v34 = vpop.f32.mrf.mxu1  ;;  %v6867_v11 = vpop.f32.mrf.mxu0 }
 0x7f7   :  { %v6895_v23 = vadd.f32 %v6867_v11, %v18280_v31  ;;  %v18424_v46 = vadd.f32 %v18282_v49, %v6894_v33  ;;  %v14370_v31 = vld [vmem:[#allocation7 + $0x30] sm:$0xff]   ;;  %v14371_v11 = vld [vmem:[#allocation7 + $0xe8] sm:$0xff]  }
 0x7f8   :  { %v18426_v42 = vpop.f32.mrf.mxu1  ;;  %v6869_v61 = vpop.f32.mrf.mxu0  ;;  %12410 = vmatpush3.bf16.msra.mxu1 %v14370_v31  ;;  %12383 = vmatprep.subr.bf16.mxu0 %v14371_v11  ;;  %v14374_v31 = vld [vmem:[#allocation7 + $0x28] sm:$0xff]  }
 0x7f9   :  { %19965 = vst [vmem:[#allocation67_spill] sm:$0xff] %v18426_v42  ;;  %v6896_v56 = vadd.f32 %v6869_v61, %v18286_v63  ;;  %v18430_v3 = vadd.f32 %v18288_v16, %v6895_v23  ;;  %v14372_v23 = vld [vmem:[#allocation7 + $0xa8] sm:$0xff]  }
 0x7fa   :  { %v18432_v13 = vpop.f32.mrf.mxu1  ;;  %v18434_v30 = vpop.f32.mrf.mxu0  ;;  %v14373_v61 = vld [vmem:[#allocation7 + $0x68] sm:$0xff]   ;;  %12384 = vmatpush3.bf16.msra.mxu0 %v14372_v23  ;;  %v14376_v23 = vld [vmem:[#allocation7 + $0xa0] sm:$0xff]  }
 0x7fb   :  { %19966 = vst [vmem:[#allocation52_spill] sm:$0xff] %v18434_v30  ;;  %v18437_v49 = vadd.f32 %v18296_v53, %v6896_v56  ;;  %12411 = vmatprep.subr.bf16.mxu1 %v14373_v61  ;;  %v14377_v61 = vld [vmem:[#allocation7 + $0x60] sm:$0xff]  }
 0x7fc   :  { %v18439_v9 = vpop.f32.mrf.mxu1  ;;  %v7245_v33 = vpop.f32.mrf.mxu0  ;;  %12412 = vmatpush3.bf16.msra.mxu1 %v14374_v31 }
 0x7fd   :  { %v7304_v63 = vadd.f32 %v7245_v33, %v18300_v60  ;;  %12413 = vmatprep.subr.bf16.mxu1 %v14377_v61  ;;  %v14380_v61 = vld [vmem:[#allocation7 + $0x98] sm:$0xff]  }
 0x7fe   :  { %v18442_v37 = vpop.f32.mrf.mxu1  ;;  %v7247_v16 = vpop.f32.mrf.mxu0 }
 0x7ff   :  { %v7305_v57 = vadd.f32 %v7247_v16, %v18306_v44  ;;  %v18446_v10 = vadd.f32 %v18308_v55, %v7304_v63  ;;  %v14375_v44 = vld [vmem:[#allocation7 + $0xe0] sm:$0xff]  }
 0x800   :  { %v18448_v53 = vpop.f32.mrf.mxu1  ;;  %v7249_v56 = vpop.f32.mrf.mxu0  ;;  %12385 = vmatprep.subr.bf16.mxu0 %v14375_v44  ;;  %v14379_v44 = vld [vmem:[#allocation7 + $0xd8] sm:$0xff]  }
 0x801   :  { %19967 = vst [vmem:[#allocation48_spill] sm:$0xff] %v18448_v53  ;;  %v7306_v32 = vadd.f32 %v7249_v56, %v18312_v1  ;;  %v18452_v60 = vadd.f32 %v18314_v35, %v7305_v57  ;;  %12386 = vmatpush3.bf16.msra.mxu0 %v14376_v23  ;;  %v14378_v57 = vld [vmem:[#allocation7 + $0x20] sm:$0xff]  }
 0x802   :  { %v18454_v33 = vpop.f32.mrf.mxu1  ;;  %v18456_v11 = vpop.f32.mrf.mxu0  ;;  %12414 = vmatpush3.bf16.msra.mxu1 %v14378_v57  ;;  %12387 = vmatprep.subr.bf16.mxu0 %v14379_v44 }
 0x803   :  { %19968 = vst [vmem:[#allocation77_spill] sm:$0xff] %v18456_v11  ;;  %v18459_v55 = vadd.f32 %v18322_v41, %v7306_v32 }
 0x804   :  { %v18461_v63 = vpop.f32.mrf.mxu1  ;;  %v7255_v16 = vpop.f32.mrf.mxu0 }
 0x805   :  { %v7308_v1 = vadd.f32 %v7255_v16, %v18326_v43  ;;  %12388 = vmatpush3.bf16.msra.mxu0 %v14380_v61 }
 0x806   :  { %v18464_v56 = vpop.f32.mrf.mxu1  ;;  %v7257_v35 = vpop.f32.mrf.mxu0 }
 0x807   :  { %v7309_v31 = vadd.f32 %v7257_v35, %v18332_v12  ;;  %v18468_v11 = vadd.f32 %v18334_v50, %v7308_v1  ;;  %v14381_v12 = vld [vmem:[#allocation7 + $0x58] sm:$0xff]  }
 0x808   :  { %v18470_v32 = vpop.f32.mrf.mxu1  ;;  %v7259_v41 = vpop.f32.mrf.mxu0  ;;  %v14382_v1 = vld [vmem:[#allocation7 + $0x18] sm:$0xff]   ;;  %12415 = vmatprep.subr.bf16.mxu1 %v14381_v12 }
 0x809   :  { %19969 = vst [vmem:[#allocation86_spill] sm:$0xff] %v18470_v32  ;;  %v7310_v53 = vadd.f32 %v7259_v41, %v18338_v48  ;;  %v18474_v43 = vadd.f32 %v18340_v20, %v7309_v31  ;;  %12416 = vmatpush3.bf16.msra.mxu1 %v14382_v1  ;;  %v14385_v41 = vld [vmem:[#allocation7 + $0x50] sm:$0xff]  }
 0x80a   :  { %v18476_v16 = vpop.f32.mrf.mxu1  ;;  %v18478_v23 = vpop.f32.mrf.mxu0  ;;  %12417 = vmatprep.subr.bf16.mxu1 %v14385_v41 }
 0x80b   :  { %v18481_v50 = vadd.f32 %v18348_v21, %v7310_v53  ;;  %v14386_v21 = vld [vmem:[#allocation7 + $0x10] sm:$0xff]  }
 0x80c   :  { %v18483_v35 = vpop.f32.mrf.mxu1  ;;  %v7265_v57 = vpop.f32.mrf.mxu0 }
 0x80d   :  { %v7312_v48 = vadd.f32 %v7265_v57, %v18352_v2  ;;  %12418 = vmatpush3.bf16.msra.mxu1 %v14386_v21  ;;  %v14383_v57 = vld [vmem:[#allocation7 + $0xd0] sm:$0xff]   ;;  %v14391_v21 = vld [vmem:[#allocation7 + $0x40] sm:$0xff]  }
 0x80e   :  { %v18486_v20 = vpop.f32.mrf.mxu1  ;;  %v7267_v31 = vpop.f32.mrf.mxu0  ;;  %12389 = vmatprep.subr.bf16.mxu0 %v14383_v57 }
 0x80f   :  { %v7313_v44 = vadd.f32 %v7267_v31, %v18358_v22  ;;  %v18490_v32 = vadd.f32 %v18360_v0, %v7312_v48  ;;  %v14387_v22 = vld [vmem:[#allocation7 + $0x48] sm:$0xff]   ;;  %v14384_v48 = vld [vmem:[#allocation7 + $0x90] sm:$0xff]  }
 0x810   :  { %v18492_v53 = vpop.f32.mrf.mxu1  ;;  %v7269_v42 = vpop.f32.mrf.mxu0  ;;  %v14389_v31 = vld [vmem:[#allocation7 + $0x8] sm:$0xff]   ;;  %12419 = vmatprep.subr.bf16.mxu1 %v14387_v22  ;;  %12390 = vmatpush3.bf16.msra.mxu0 %v14384_v48 }
 0x811   :  { %v7314_v61 = vadd.f32 %v7269_v42, %v18365_v17  ;;  %v18496_v12 = vadd.f32 %v18367_v7, %v7313_v44  ;;  %12420 = vmatpush3.bf16.msra.mxu1 %v14389_v31  ;;  %v14388_v44 = vld [vmem:[#allocation7 + $0xc8] sm:$0xff]   ;;  %v14395_v31 = vld [vmem:[#allocation7 + $0x1f8] sm:$0xff]  }
 0x812   :  { %v18498_v2 = vpop.f32.mrf.mxu1  ;;  %v18500_v1 = vpop.f32.mrf.mxu0  ;;  %12391 = vmatprep.subr.bf16.mxu0 %v14388_v44  ;;  %12421 = vmatprep.subr.bf16.mxu1 %v14391_v21 }
 0x813   :  { %v18503_v0 = vadd.f32 %v18372_v6, %v7314_v61  ;;  %v14390_v61 = vld [vmem:[#allocation7 + $0x88] sm:$0xff]  }
 0x814   :  { %v18505_v30 = vpop.f32.mrf.mxu1  ;;  %v7275_v41 = vpop.f32.mrf.mxu0  ;;  %12392 = vmatpush3.bf16.msra.mxu0 %v14390_v61  ;;  %v14397_v61 = vld [vmem:[#allocation7 + $0x178] sm:$0xff]  }
 0x815   :  { %v7316_v17 = vadd.f32 %v7275_v41, %v18376_v18  ;;  %12422 = vmatpush3.bf16.msra.mxu1 %v14392_v28 }
 0x816   :  { %v18508_v7 = vpop.f32.mrf.mxu1  ;;  %v7277_v42 = vpop.f32.mrf.mxu0  ;;  %12463 = vmatprep.subr.bf16.mxu1 %v14395_v31 }
 0x817   :  { %v7317_v47 = vadd.f32 %v7277_v42, %v18382_v8  ;;  %v18512_v6 = vadd.f32 %v18384_v54, %v7316_v17  ;;  %v14393_v54 = vld [vmem:[#allocation7 + $0xc0] sm:$0xff]  }
 0x818   :  { %v18514_v39 = vpop.f32.mrf.mxu1  ;;  %v7279_v57 = vpop.f32.mrf.mxu0  ;;  %v14394_v17 = vld [vmem:[#allocation7 + $0x80] sm:$0xff]   ;;  %12393 = vmatprep.subr.bf16.mxu0 %v14393_v54 }
 0x819   :  { %v7318_v18 = vadd.f32 %v7279_v57, %v18389_v15  ;;  %v18518_v22 = vadd.f32 %v18391_v58, %v7317_v47  ;;  %12394 = vmatpush3.bf16.msra.mxu0 %v14394_v17 }
 0x81a   :  { %v18520_v48 = vpop.f32.mrf.mxu1  ;;  %v18522_v8 = vpop.f32.mrf.mxu0  ;;  %12435 = vmatprep.subr.bf16.mxu0 %v14397_v61 }
 0x81b   :  { %v18525_v41 = vadd.f32 %v18396_v62, %v7318_v18 }
 0x81c   :  { %v18527_v42 = vpop.f32.mrf.mxu1  ;;  %v7285_v44 = vpop.f32.mrf.mxu0 }
 0x81d   :  { %v7320_v47 = vadd.f32 %v7285_v44, %v18400_v25 }
 0x81e   :  { %v18530_v15 = vpop.f32.mrf.mxu1  ;;  %v7287_v28 = vpop.f32.mrf.mxu0 }
 0x81f   :  { %v7321_v58 = vadd.f32 %v7287_v28, %v18406_v4  ;;  %v18534_v21 = vadd.f32 %v18408_v24, %v7320_v47 }
 0x820   :  { %v18536_v62 = vpop.f32.mrf.mxu1  ;;  %v7289_v57 = vpop.f32.mrf.mxu0 }
 0x821   :  { %v7322_v18 = vadd.f32 %v7289_v57, %v18415_v19  ;;  %v18540_v54 = vadd.f32 %v18417_v51, %v7321_v58 }
 0x822   :  { %v18542_v25 = vpop.f32.mrf.mxu1  ;;  %v18544_v31 = vpop.f32.mrf.mxu0 }
 0x823   :  { %v18547_v17 = vadd.f32 %v18420_v34, %v7322_v18 }
 0x824   :  { %v18549_v4 = vpop.f32.mrf.mxu1  ;;  %v7295_v24 = vpop.f32.mrf.mxu0 }
 0x825   :  { %19970 = vst [vmem:[#allocation50_spill] sm:$0xff] %v18549_v4  ;;  %v7324_v44 = vadd.f32 %v7295_v24, %v18424_v46 }
 0x826   :  { %v18552_v47 = vpop.f32.mrf.mxu1  ;;  %v7297_v28 = vpop.f32.mrf.mxu0 }
 0x827   :  { %v7325_v19 = vadd.f32 %v7297_v28, %v18430_v3  ;;  %v18556_v51 = vadd.f32 %v18432_v13, %v7324_v44 }
 0x828   :  { %v18558_v58 = vpop.f32.mrf.mxu1  ;;  %v7299_v61 = vpop.f32.mrf.mxu0 }
 0x829   :  { %v7326_v57 = vadd.f32 %v7299_v61, %v18437_v49  ;;  %v18562_v34 = vadd.f32 %v18439_v9, %v7325_v19 }
 0x82a   :  { %v18564_v18 = vpop.f32.mrf.mxu1  ;;  %v18566_v4 = vpop.f32.mrf.mxu0 }
 0x82b   :  { %19971 = vst [vmem:[#allocation55_spill] sm:$0xff] %v18564_v18  ;;  %v18569_v46 = vadd.f32 %v18442_v37, %v7326_v57 }
 0x82c   :  { %v18571_v24 = vpop.f32.mrf.mxu1  ;;  %v7675_v3 = vpop.f32.mrf.mxu0 }
 0x82d   :  { %19972 = vst [vmem:[#allocation71_spill] sm:$0xff] %v18571_v24  ;;  %v7734_v13 = vadd.f32 %v7675_v3, %v18446_v10 }
 0x82e   :  { %v18574_v44 = vpop.f32.mrf.mxu1  ;;  %v7677_v28 = vpop.f32.mrf.mxu0 }
 0x82f   :  { %v7735_v49 = vadd.f32 %v7677_v28, %v18452_v60  ;;  %v18578_v9 = vadd.f32 %v18454_v33, %v7734_v13  ;;  %v7311_v33 = vadd.f32 %v18478_v23, %v18346_v40 }
 0x830   :  { %v18580_v19 = vpop.f32.mrf.mxu1  ;;  %v7679_v61 = vpop.f32.mrf.mxu0 }
 0x831   :  { %v7736_v18 = vadd.f32 %v7679_v61, %v18459_v55  ;;  %v18584_v37 = vadd.f32 %v18461_v63, %v7735_v49  ;;  %v6885_v63 = vadd.f32 %v18362_v26, %v18208_v5  ;;  %v7526_v40 = vadd.f32 %v18354_v27, %v7311_v33 }
 0x832   :  { %v18586_v57 = vpop.f32.mrf.mxu1  ;;  %v18588_v24 = vpop.f32.mrf.mxu0 }
 0x833   :  { %v18591_v10 = vadd.f32 %v18464_v56, %v7736_v18  ;;  %v7100_v5 = vadd.f32 %v18216_v45, %v6885_v63  ;;  %v6889_v45 = vadd.f32 %v18386_v59, %v18236_v38 }
 0x834   :  { %v18593_v3 = vpop.f32.mrf.mxu1  ;;  %v7685_v60 = vpop.f32.mrf.mxu0 }
 0x835   :  { %19973 = vst [vmem:[#allocation78_spill] sm:$0xff] %v18593_v3  ;;  %v7738_v13 = vadd.f32 %v7685_v60, %v18468_v11  ;;  %v7104_v38 = vadd.f32 %v18244_v36, %v6889_v45  ;;  %v6893_v36 = vadd.f32 %v18410_v29, %v18266_v52 }
 0x836   :  { %v18598_v28 = vpop.f32.mrf.mxu1  ;;  %v7687_v55 = vpop.f32.mrf.mxu0 }
 0x837   :  { %v7739_v49 = vadd.f32 %v7687_v55, %v18474_v43  ;;  %v18604_v61 = vadd.f32 %v18476_v16, %v7738_v13  ;;  %v7315_v55 = vadd.f32 %v18500_v1, %v7100_v5  ;;  %v7319_v5 = vadd.f32 %v18522_v8, %v7104_v38 }
 0x838   :  { %v18606_v56 = vpop.f32.mrf.mxu1  ;;  %v7689_v18 = vpop.f32.mrf.mxu0 }
 0x839   :  { %v7740_v3 = vadd.f32 %v7689_v18, %v18481_v50  ;;  %v18611_v11 = vadd.f32 %v18483_v35, %v7739_v49 }
 0x83a   :  { %v18613_v23 = vpop.f32.mrf.mxu1  ;;  %v7691_v60 = vpop.f32.mrf.mxu0 }
 0x83b   :  { %v7741_v26 = vadd.f32 %v7691_v60, %v7526_v40  ;;  %v18617_v43 = vadd.f32 %v18486_v20, %v7740_v3 }
 0x83c   :  { %v18619_v16 = vpop.f32.mrf.mxu1  ;;  %v7695_v13 = vpop.f32.mrf.mxu0 }
 0x83d   :  { %v7742_v50 = vadd.f32 %v7695_v13, %v18490_v32  ;;  %v18624_v27 = vadd.f32 %v18492_v53, %v7741_v26  ;;  %v7530_v32 = vadd.f32 %v18378_v14, %v7315_v55 }
 0x83e   :  { %v18626_v35 = vpop.f32.mrf.mxu1  ;;  %v7697_v33 = vpop.f32.mrf.mxu0 }
 0x83f   :  { %v7743_v63 = vadd.f32 %v7697_v33, %v18496_v12  ;;  %v18632_v20 = vadd.f32 %v18498_v2, %v7742_v50 }
 0x840   :  { %v18634_v3 = vpop.f32.mrf.mxu1  ;;  %v7699_v49 = vpop.f32.mrf.mxu0 }
 0x841   :  { %19974 = vst [vmem:[#allocation87_spill] sm:$0xff] %v18634_v3  ;;  %v7744_v1 = vadd.f32 %v7699_v49, %v18503_v0  ;;  %v18639_v53 = vadd.f32 %v18505_v30, %v7743_v63  ;;  %v19982_v49 = vld [vmem:[#allocation14_spill] sm:$0xff] }
 0x842   :  { %v18641_v18 = vpop.f32.mrf.mxu1  ;;  %v7701_v40 = vpop.f32.mrf.mxu0  ;;  %v7108_v52 = vadd.f32 %v19982_v49, %v6893_v36 }
 0x843   :  { %19975 = vst [vmem:[#allocation74_spill] sm:$0xff] %v18641_v18  ;;  %v7745_v59 = vadd.f32 %v7701_v40, %v7530_v32  ;;  %v18645_v12 = vadd.f32 %v18508_v7, %v7744_v1 }
 0x844   :  { %v18647_v2 = vpop.f32.mrf.mxu1  ;;  %v7705_v60 = vpop.f32.mrf.mxu0  ;;  %v7323_v32 = vadd.f32 %v18544_v31, %v7108_v52 }
 0x845   :  { %19976 = vst [vmem:[#allocation70_spill] sm:$0xff] %v18647_v2  ;;  %v7746_v0 = vadd.f32 %v7705_v60, %v18512_v6  ;;  %v18652_v14 = vadd.f32 %v18514_v39, %v7745_v59  ;;  %v19980_v6 = vld [vmem:[#allocation85_spill] sm:$0xff]  ;;  %v19987_v59 = vld [vmem:[#allocation64_spill] sm:$0xff] }
 0x846   :  { %v18654_v30 = vpop.f32.mrf.mxu1  ;;  %v7707_v26 = vpop.f32.mrf.mxu0  ;;  %v7534_v33 = vadd.f32 %v19980_v6, %v7319_v5  ;;  %v19988_v60 = vld [vmem:[#allocation52_spill] sm:$0xff] }
 0x847   :  { %19977 = vst [vmem:[#allocation23_spill] sm:$0xff] %v18652_v14  ;;  %19978 = vst [vmem:[#allocation84_spill] sm:$0xff] %v18654_v30  ;;  %v7747_v13 = vadd.f32 %v7707_v26, %v18518_v22  ;;  %v18660_v7 = vadd.f32 %v18520_v48, %v7746_v0  ;;  %v6897_v5 = vadd.f32 %v19988_v60, %v19987_v59  ;;  %v19993_v59 = vld [vmem:[#allocation55_spill] sm:$0xff] }
 0x848   :  { %v18662_v55 = vpop.f32.mrf.mxu1  ;;  %v7709_v50 = vpop.f32.mrf.mxu0 }
 0x849   :  { %19979 = vst [vmem:[#allocation72_spill] sm:$0xff] %v18662_v55  ;;  %v7748_v8 = vadd.f32 %v7709_v50, %v18525_v41  ;;  %v18667_v39 = vadd.f32 %v18527_v42, %v7747_v13  ;;  %v19990_v13 = vld [vmem:[#allocation67_spill] sm:$0xff]  ;;  %v19991_v50 = vld [vmem:[#allocation50_spill] sm:$0xff] }
 0x84a   :  { %v18669_v45 = vpop.f32.mrf.mxu1  ;;  %v7711_v63 = vpop.f32.mrf.mxu0 }
 0x84b   :  { %19981 = vst [vmem:[#allocation24_spill] sm:$0xff] %v18667_v39  ;;  %v7749_v29 = vadd.f32 %v7711_v63, %v7534_v33  ;;  %v18673_v22 = vadd.f32 %v18530_v15, %v7748_v8  ;;  %v19992_v33 = vld [vmem:[#allocation41_spill] sm:$0xff] }
 0x84c   :  { %v18675_v48 = vpop.f32.mrf.mxu1  ;;  %v7715_v1 = vpop.f32.mrf.mxu0  ;;  %v7112_v63 = vadd.f32 %v19992_v33, %v6897_v5 }
 0x84d   :  { %19983 = vst [vmem:[#allocation12_spill] sm:$0xff] %v18673_v22  ;;  %19984 = vst [vmem:[#allocation73_spill] sm:$0xff] %v18675_v48  ;;  %v7750_v41 = vadd.f32 %v7715_v1, %v18534_v21  ;;  %v18680_v40 = vadd.f32 %v18536_v62, %v7749_v29  ;;  %v7538_v21 = vadd.f32 %v19990_v13, %v7323_v32  ;;  %v19994_v13 = vld [vmem:[#allocation48_spill] sm:$0xff] }
 0x84e   :  { %v18682_v42 = vpop.f32.mrf.mxu1  ;;  %v7717_v38 = vpop.f32.mrf.mxu0 }
 0x84f   :  { %19985 = vst [vmem:[#allocation32_spill] sm:$0xff] %v18680_v40  ;;  %19986 = vst [vmem:[#allocation17_spill] sm:$0xff] %v18682_v42  ;;  %v7751_v0 = vadd.f32 %v7717_v38, %v18540_v54  ;;  %v7965_v15 = vadd.f32 %v18542_v25, %v7750_v41  ;;  %v7327_v25 = vadd.f32 %v18566_v4, %v7112_v63 }
 0x850   :  { %v18688_v26 = vpop.f32.mrf.mxu1  ;;  %v7719_v36 = vpop.f32.mrf.mxu0 }
 0x851   :  { %19989 = vst [vmem:[#allocation53_spill] sm:$0xff] %v18688_v26  ;;  %v7752_v31 = vadd.f32 %v7719_v36, %v18547_v17  ;;  %v7966_v62 = vadd.f32 %v19991_v50, %v7751_v0 }
 0x852   :  { %v8360_v8 = vpop.f32.mrf.mxu1  ;;  %v7721_v6 = vpop.f32.mrf.mxu0 }
 0x853   :  { %v7753_v49 = vadd.f32 %v7721_v6, %v7538_v21  ;;  %v7967_v52 = vadd.f32 %v18552_v47, %v7752_v31  ;;  %v7542_v47 = vadd.f32 %v19994_v13, %v7327_v25  ;;  %v19995_v31 = vld [vmem:[#allocation71_spill] sm:$0xff] }
 0x854   :  { %v8362_v29 = vpop.f32.mrf.mxu1  ;;  %v7725_v54 = vpop.f32.mrf.mxu0 }
 0x855   :  { %v7754_v1 = vadd.f32 %v7725_v54, %v18556_v51  ;;  %v7968_v41 = vadd.f32 %v18558_v58, %v7753_v49 }
 0x856   :  { %v8364_v17 = vpop.f32.mrf.mxu1  ;;  %v7727_v38 = vpop.f32.mrf.mxu0 }
 0x857   :  { %v7755_v32 = vadd.f32 %v7727_v38, %v18562_v34  ;;  %v7969_v60 = vadd.f32 %v19993_v59, %v7754_v1 }
 0x858   :  { %v8366_v0 = vpop.f32.mrf.mxu1  ;;  %v7729_v36 = vpop.f32.mrf.mxu0 }
 0x859   :  { %v7756_v5 = vadd.f32 %v7729_v36, %v18569_v46  ;;  %v7970_v21 = vadd.f32 %v19995_v31, %v7755_v32 }
 0x85a   :  { %v8370_v50 = vpop.f32.mrf.mxu1  ;;  %v7731_v4 = vpop.f32.mrf.mxu0 }
 0x85b   :  { %v7757_v6 = vadd.f32 %v7731_v4, %v7542_v47  ;;  %v7971_v51 = vadd.f32 %v18574_v44, %v7756_v5 }
 0x85c   :  { %v8372_v58 = vpop.f32.mrf.mxu1  ;;  %v8105_v33 = vpop.f32.mrf.mxu0 }
 0x85d   :  { %v18705_v63 = vadd.f32 %v18580_v19, %v7757_v6 }
 0x85e   :  { %v18707_v34 = vpop.f32.mrf.mxu1  ;;  %v8107_v49 = vpop.f32.mrf.mxu0 }
 0x860   :  { %v18709_v54 = vpop.f32.mrf.mxu1  ;;  %v8109_v46 = vpop.f32.mrf.mxu0 }
 0x862   :  { %v18711_v1 = vpop.f32.mrf.mxu1  ;;  %v8111_v25 = vpop.f32.mrf.mxu0 }
 0x864   :  { %v18713_v38 = vpop.f32.mrf.mxu0  ;;  %v18715_v32 = vpop.f32.mrf.mxu1 }
 0x866   :  { %v18717_v59 = vpop.f32.mrf.mxu0  ;;  %v18721_v36 = vpop.f32.mrf.mxu1 }
 0x868   :  { %v18719_v44 = vpop.f32.mrf.mxu0  ;;  %v18727_v13 = vpop.f32.mrf.mxu1 }
 0x869   :  { %19996 = vst [vmem:[#allocation80_spill] sm:$0xff] %v18727_v13 }
 0x86a   :  { %v18723_v19 = vpop.f32.mrf.mxu0  ;;  %v18733_v4 = vpop.f32.mrf.mxu1 }
 0x86b   :  { %19997 = vst [vmem:[#allocation83_spill] sm:$0xff] %v18733_v4 }
 0x86c   :  { %v18725_v5 = vpop.f32.mrf.mxu0  ;;  %v18737_v42 = vpop.f32.mrf.mxu1 }
 0x86d   :  { %19999 = vst [vmem:[#allocation13_spill] sm:$0xff] %v18737_v42 }
 0x86e   :  { %v18729_v47 = vpop.f32.mrf.mxu0  ;;  %v18747_v55 = vpop.f32.mrf.mxu1 }
 0x86f   :  { %20003 = vst [vmem:[#allocation19_spill] sm:$0xff] %v18747_v55 }
 0x870   :  { %v18731_v31 = vpop.f32.mrf.mxu0  ;;  %v18751_v4 = vpop.f32.mrf.mxu1 }
 0x871   :  { %20005 = vst [vmem:[#allocation44_spill] sm:$0xff] %v18751_v4  ;;  %v20008_v4 = vld [vmem:[#allocation43_spill] sm:$0xff] }
 0x872   :  { %v18735_v6 = vpop.f32.mrf.mxu0 }
 0x873   :  { %19998 = vst [vmem:[#allocation36_spill] sm:$0xff] %v18735_v6 }
 0x874   :  { %v8135_v26 = vpop.f32.mrf.mxu0 }
 0x875   :  { %v8176_v40 = vadd.f32 %v8135_v26, %v18660_v7  ;;  %v20006_v7 = vld [vmem:[#allocation42_spill] sm:$0xff]  ;;  %v20007_v26 = vld [vmem:[#allocation77_spill] sm:$0xff] }
 0x876   :  { %v18740_v48 = vpop.f32.mrf.mxu0 }
 0x877   :  { %20000 = vst [vmem:[#allocation11_spill] sm:$0xff] %v18740_v48  ;;  %v18743_v22 = vadd.f32 %v18669_v45, %v8176_v40  ;;  %v7307_v48 = vadd.f32 %v20007_v26, %v20006_v7  ;;  %v18757_v45 = vpop.f32.mrf.mxu1 }
 0x878   :  { %v18745_v39 = vpop.f32.mrf.mxu0 }
 0x879   :  { %20001 = vst [vmem:[#allocation20_spill] sm:$0xff] %v18743_v22  ;;  %20002 = vst [vmem:[#allocation16_spill] sm:$0xff] %v18745_v39  ;;  %v8835_v22 = vlaneseq }
 0x87a   :  { %v18749_v30 = vpop.f32.mrf.mxu0 }
 0x87b   :  { %20004 = vst [vmem:[#allocation38_spill] sm:$0xff] %v18749_v30 }
 0x87c   :  { %v8145_v2 = vpop.f32.mrf.mxu0 }
 0x87d   :  { %v8180_v13 = vadd.f32 %v8145_v2, %v7965_v15  ;;  %v7522_v2 = vadd.f32 %v20008_v4, %v7307_v48 }
 0x87e   :  { %v8147_v18 = vpop.f32.mrf.mxu0 }
 0x87f   :  { %v8181_v3 = vadd.f32 %v8147_v18, %v7966_v62  ;;  %v18753_v42 = vadd.f32 %v8360_v8, %v8180_v13  ;;  %v18764_v18 = vpop.f32.mrf.mxu1  ;;  %v8836_v8 = vshrl.u32 %v8835_v22, 7  ;;  %v7737_v7 = vadd.f32 %v18588_v24, %v7522_v2  ;;  %v20009_v22 = vld [vmem:[#allocation86_spill] sm:$0xff]  ;;  %v8833_v24 = vld [vmem:[%s19262_s6] sm:$0x3] }
 0x880   :  { %v8149_v6 = vpop.f32.mrf.mxu0  ;;  %v20010_v2 = vld [vmem:[#allocation78_spill] sm:$0xff] }
 0x881   :  { %v8182_v40 = vadd.f32 %v8149_v6, %v7967_v52  ;;  %v18759_v39 = vadd.f32 %v8362_v29, %v8181_v3  ;;  %v8164_v52 = vadd.f32 %v8105_v33, %v18578_v9  ;;  %v8837_v4 = vsub.s32 0, %v8836_v8 }
 0x882   :  { %v8151_v55 = vpop.f32.mrf.mxu0  ;;  %v8841_v9 = vsub.s32 1, %v8836_v8 }
 0x883   :  { %v8183_v30 = vadd.f32 %v8151_v55, %v7968_v41  ;;  %v18761_v14 = vadd.f32 %v8364_v17, %v8182_v40  ;;  %v8165_v41 = vadd.f32 %v8107_v49, %v18584_v37  ;;  %v18773_v17 = vpop.f32.mrf.mxu1  ;;  %v8379_v37 = vadd.f32 %v18586_v57, %v8164_v52 }
 0x884   :  { %v8155_v15 = vpop.f32.mrf.mxu0  ;;  %v18789_v40 = vrot.slane %v8833_v24, %v8837_v4  ;;  %v8169_v57 = vadd.f32 %v18717_v59, %v18611_v11  ;;  %v18802_v8 = vrot.slane %v8833_v24, %v8841_v9  ;;  %v8172_v11 = vadd.f32 %v18725_v5, %v18632_v20 }
 0x885   :  { %v8184_v62 = vadd.f32 %v8155_v15, %v7969_v60  ;;  %v18766_v13 = vadd.f32 %v8366_v0, %v8183_v30  ;;  %v7952_v30 = vadd.f32 %v20009_v22, %v7737_v7  ;;  %v8166_v0 = vadd.f32 %v8109_v46, %v18591_v10  ;;  %v18787_v33 = vpop.f32.mrf.mxu1 }
 0x886   :  { %v8157_v26 = vpop.f32.mrf.mxu0  ;;  %v8380_v15 = vadd.f32 %v20010_v2, %v8165_v41  ;;  %v8168_v10 = vadd.f32 %v18713_v38, %v18604_v61 }
 0x887   :  { %v8185_v3 = vadd.f32 %v8157_v26, %v7970_v21  ;;  %v18770_v29 = vadd.f32 %v8370_v50, %v8184_v62  ;;  %v8381_v7 = vadd.f32 %v18598_v28, %v8166_v0  ;;  %v18810_v38 = vpop.f32.mrf.mxu1 }
 0x888   :  { %v8159_v55 = vpop.f32.mrf.mxu0  ;;  %v8383_v52 = vadd.f32 %v18613_v23, %v8168_v10  ;;  %v20018_v10 = vld [vmem:[#allocation84_spill] sm:$0xff] }
 0x889   :  { %v8186_v48 = vadd.f32 %v8159_v55, %v7971_v51  ;;  %v18775_v6 = vadd.f32 %v8372_v58, %v8185_v3  ;;  %v8167_v51 = vadd.f32 %v8111_v25, %v7952_v30  ;;  %v20011_v3 = vld [vmem:[#allocation23_spill] sm:$0xff]  ;;  %v20012_v55 = vld [vmem:[#allocation36_spill] sm:$0xff]  ;;  %v18826_v4 = vpop.f32.mrf.mxu1  ;;  %v20014_v30 = vld [vmem:[#allocation74_spill] sm:$0xff] }
 0x88a   :  { %v8161_v60 = vpop.f32.mrf.mxu0  ;;  %v8175_v41 = vadd.f32 %v20012_v55, %v20011_v3  ;;  %v20024_v3 = vld [vmem:[#allocation11_spill] sm:$0xff] }
 0x88b   :  { %v8187_v21 = vadd.f32 %v8161_v60, %v18705_v63  ;;  %v18785_v50 = vadd.f32 %v18707_v34, %v8186_v48  ;;  %v8170_v63 = vadd.f32 %v18719_v44, %v18617_v43  ;;  %v8382_v61 = vadd.f32 %v18606_v56, %v8167_v51  ;;  %v20013_v48 = vld [vmem:[#allocation87_spill] sm:$0xff] }
 0x88c   :  { %v8535_v58 = vpop.f32.mrf.mxu0  ;;  %v8173_v44 = vadd.f32 %v18729_v47, %v18639_v53  ;;  %v8387_v60 = vadd.f32 %v20014_v30, %v8172_v11 }
 0x88d   :  { %v8594_v49 = vadd.f32 %v8535_v58, %v8379_v37  ;;  %v18793_v62 = vadd.f32 %v18709_v54, %v8187_v21  ;;  %v8171_v54 = vadd.f32 %v18723_v19, %v18624_v27  ;;  %v8384_v27 = vadd.f32 %v18619_v16, %v8169_v57  ;;  %v20017_v37 = vld [vmem:[#allocation83_spill] sm:$0xff] }
 0x88e   :  { %v8537_v34 = vpop.f32.mrf.mxu0  ;;  %v8385_v56 = vadd.f32 %v18626_v35, %v8170_v63  ;;  %v20019_v63 = vld [vmem:[#allocation72_spill] sm:$0xff] }
 0x88f   :  { %v8809_v46 = vadd.f32 %v18711_v1, %v8594_v49  ;;  %v8595_v25 = vadd.f32 %v8537_v34, %v8380_v15  ;;  %v8386_v23 = vadd.f32 %v20013_v48, %v8171_v54  ;;  %v18840_v34 = vadd.f32 %v20019_v63, %v8175_v41  ;;  %v20026_v41 = vld [vmem:[#allocation16_spill] sm:$0xff] }
 0x890   :  { %v8539_v26 = vpop.f32.mrf.mxu0  ;;  %v14402_v63 = vld [vmem:[#allocation7 + $0x1e8] sm:$0xff]  }
 0x891   :  { %v8845_v43 = vadd.f32 %v18789_v40, %v8809_v46  ;;  %v8810_v1 = vadd.f32 %v18715_v32, %v8595_v25  ;;  %v8596_v59 = vadd.f32 %v8539_v26, %v8381_v7  ;;  %v8174_v32 = vadd.f32 %v18731_v31, %v18645_v12  ;;  %v20016_v31 = vld [vmem:[#allocation70_spill] sm:$0xff]  ;;  %v18842_v46 = vpop.f32.mrf.mxu1  ;;  %v20021_v26 = vld [vmem:[#allocation13_spill] sm:$0xff] }
 0x892   :  { %v8541_v28 = vpop.f32.mrf.mxu0  ;;  %v8388_v0 = vadd.f32 %v20016_v31, %v8173_v44  ;;  %v20020_v25 = vmov 0.0  }
 0x893   :  { %vm8869_vm3 = vcmp.ge.f32.partialorder %v8845_v43, 0.0  ;;  %v8893_v19 = vmul.f32 0.1, %v8845_v43  ;;  %v8846_v20 = vadd.f32 %v18802_v8, %v8810_v1  ;;  %v8811_v5 = vadd.f32 %v18721_v36, %v8596_v59  ;;  %v20015_v36 = vld [vmem:[#allocation80_spill] sm:$0xff] }
 0x894   :  { %v8597_v53 = vadd.f32 %v8541_v28, %v8382_v61  ;;  %v8545_v47 = vpop.f32.mrf.mxu0  ;;  %v8389_v57 = vadd.f32 %v20018_v10, %v8174_v32  ;;  %v14396_v28 = vld [vmem:[#allocation7 + $0x1b8] sm:$0xff]   ;;  %v20023_v32 = vld [vmem:[#allocation24_spill] sm:$0xff] }
 0x895   :  { %v8894_v16 = vmul.f32 0.1, %v8846_v20  ;;  %v8847_v35 = vadd.f32 %v18789_v40, %v8811_v5  ;;  %v8598_v22 = vadd.f32 %v8545_v47, %v8383_v52  ;;  %v18830_v24 = vsel %vm8869_vm3, %v8845_v43, %v8893_v19  ;;  %v20022_v19 = vld [vmem:[#allocation19_spill] sm:$0xff]  ;;  %v14398_v5 = vld [vmem:[#allocation7 + $0x1f0] sm:$0xff]  }
 0x896   :  { %v8812_v9 = vadd.f32 %v20015_v36, %v8597_v53  ;;  %v8547_v12 = vpop.f32.mrf.mxu0  ;;  %vm8870_vm4 = vcmp.ge.f32.partialorder %v8846_v20, 0.0  ;;  %v9029_v7 = vpack.c.bf16 %v18830_v24, %v20020_v25  ;;  %v8177_v55 = vadd.f32 %v20024_v3, %v20023_v32 }
 0x897   :  { %vm8871_vm5 = vcmp.ge.f32.partialorder %v8847_v35, 0.0  ;;  %v8895_v21 = vmul.f32 0.1, %v8847_v35  ;;  %v8813_v51 = vadd.f32 %v20017_v37, %v8598_v22  ;;  %v8599_v58 = vadd.f32 %v8547_v12, %v8384_v27  ;;  %v14399_v12 = vld [vmem:[#allocation7 + $0x138] sm:$0xff]  }
 0x898   :  { %v8848_v49 = vadd.f32 %v18802_v8, %v8812_v9  ;;  %v8549_v2 = vpop.f32.mrf.mxu0  ;;  %v18836_v15 = vsel %vm8870_vm4, %v8846_v20, %v8894_v16 }
 0x899   :  { %v8849_v54 = vadd.f32 %v18789_v40, %v8813_v51  ;;  %v8814_v61 = vadd.f32 %v20021_v26, %v8599_v58  ;;  %v8600_v11 = vadd.f32 %v8549_v2, %v8385_v56  ;;  %v18848_v43 = vsel %vm8871_vm5, %v8847_v35, %v8895_v21  ;;  %v20025_v56 = vld [vmem:[#allocation12_spill] sm:$0xff]  ;;  %v18860_v35 = vpop.f32.mrf.mxu1  ;;  %v14400_v51 = vld [vmem:[#allocation7 + $0x1b0] sm:$0xff]  }
 0x89a   :  { %v8896_v1 = vmul.f32 0.1, %v8848_v49  ;;  %v8551_v59 = vpop.f32.mrf.mxu0  ;;  %v9030_v44 = vpack.c.bf16 %v18836_v15, %v20020_v25  ;;  %vm8872_vm6 = vcmp.ge.f32.partialorder %v8848_v49, 0.0  ;;  %v8178_v53 = vadd.f32 %v20026_v41, %v20025_v56  ;;  %v20027_v21 = vld [vmem:[#allocation44_spill] sm:$0xff]  ;;  %v14401_v58 = vld [vmem:[#allocation7 + $0x170] sm:$0xff]   ;;  %v14406_v56 = vld [vmem:[#allocation7 + $0x1e0] sm:$0xff]  }
 0x89b   :  { %vm8873_vm7 = vcmp.ge.f32.partialorder %v8849_v54, 0.0  ;;  %v8897_v52 = vmul.f32 0.1, %v8849_v54  ;;  %v8850_v27 = vadd.f32 %v18802_v8, %v8814_v61  ;;  %v8815_v20 = vadd.f32 %v20022_v19, %v8600_v11  ;;  %v20028_v61 = vld [vmem:[#allocation73_spill] sm:$0xff]  ;;  %v20029_v41 = vld [vmem:[#allocation32_spill] sm:$0xff] }
 0x89c   :  { %v8601_v47 = vadd.f32 %v8551_v59, %v8386_v23  ;;  %9375 = vmatprep.mubr.bf16.mxu1 %v9030_v44  ;;  %v8555_v48 = vpop.f32.mrf.mxu0  ;;  %v18858_v16 = vsel %vm8872_vm6, %v8848_v49, %v8896_v1  ;;  %v9065_v31 = vpack.c.bf16 %v18848_v43, %v20020_v25  ;;  %v8392_v11 = vadd.f32 %v20028_v61, %v8177_v55  ;;  %v18878_v59 = vpop.f32.mrf.mxu1  ;;  %v14410_v61 = vld [vmem:[#allocation7 + $0x1d8] sm:$0xff]  }
 0x89d   :  { %v8898_v22 = vmul.f32 0.1, %v8850_v27  ;;  %v8851_v30 = vadd.f32 %v18789_v40, %v8815_v20  ;;  %9376 = vmatmul.mubr.bf16.vlgmr.msra.gmra.mxu1 %v9029_v7  ;;  %v8602_v36 = vadd.f32 %v8555_v48, %v8387_v60  ;;  %v9066_v9 = vpack.c.bf16 %v18858_v16, %v20020_v25 }
 0x89e   :  { %v8816_v23 = vadd.f32 %v20027_v21, %v8601_v47  ;;  %12464 = vmatpush3.bf16.msra.mxu1 %v14396_v28  ;;  %v8557_v37 = vpop.f32.mrf.mxu0  ;;  %vm8874_vm8 = vcmp.ge.f32.partialorder %v8850_v27, 0.0  ;;  %v18869_v49 = vsel %vm8873_vm7, %v8849_v54, %v8897_v52  ;;  %v14403_v28 = vld [vmem:[#allocation7 + $0x130] sm:$0xff]   ;;  %v20030_v47 = vld [vmem:[#allocation38_spill] sm:$0xff] }
 0x89f   :  { %vm8875_vm9 = vcmp.ge.f32.partialorder %v8851_v30, 0.0  ;;  %v8899_v2 = vmul.f32 0.1, %v8851_v30  ;;  %v8817_v60 = vadd.f32 %v18757_v45, %v8602_v36  ;;  %v8603_v10 = vadd.f32 %v8557_v37, %v8388_v0  ;;  %9230 = vmatprep.mubr.bf16.mxu0 %v9066_v9  ;;  %12465 = vmatprep.subr.bf16.mxu1 %v14398_v5  ;;  %v14405_v5 = vld [vmem:[#allocation7 + $0x168] sm:$0xff]   ;;  %v20031_v36 = vld [vmem:[#allocation17_spill] sm:$0xff] }
 0x8a0   :  { %v8852_v7 = vadd.f32 %v18802_v8, %v8816_v23  ;;  %9231 = vmatmul.mubr.bf16.vlgmr.msra.gmra.mxu0 %v9065_v31  ;;  %v8559_v26 = vpop.f32.mrf.mxu0  ;;  %v18874_v1 = vsel %vm8874_vm8, %v8850_v27, %v8898_v22  ;;  %v9392_v54 = vpack.c.bf16 %v18869_v49, %v18830_v24  ;;  %v14404_v27 = vld [vmem:[#allocation7 + $0x1a8] sm:$0xff]   ;;  %v8179_v48 = vadd.f32 %v20030_v47, %v20029_v41  ;;  %v18895_v31 = vpop.f32.mrf.mxu1 }
 0x8a1   :  { %v8853_v44 = vadd.f32 %v18789_v40, %v8817_v60  ;;  %v8818_v45 = vadd.f32 %v18764_v18, %v8603_v10  ;;  %12436 = vmatpush3.bf16.msra.mxu0 %v14399_v12  ;;  %v8604_v0 = vadd.f32 %v8559_v26, %v8389_v57  ;;  %v18883_v52 = vsel %vm8875_vm9, %v8851_v30, %v8899_v2  ;;  %v20032_v37 = vld [vmem:[#allocation20_spill] sm:$0xff]  ;;  %v14409_v60 = vld [vmem:[#allocation7 + $0x160] sm:$0xff]  }
 0x8a2   :  { %v8900_v19 = vmul.f32 0.1, %v8852_v7  ;;  %12466 = vmatpush3.bf16.msra.mxu1 %v14400_v51  ;;  %v8561_v20 = vpop.f32.mrf.mxu0  ;;  %12437 = vmatprep.subr.bf16.mxu0 %v14401_v58  ;;  %vm8876_vm10 = vcmp.ge.f32.partialorder %v8852_v7, 0.0  ;;  %v9578_v32 = vpack.c.bf16 %v18883_v52, %v18848_v43  ;;  %v9393_v3 = vpack.c.bf16 %v18874_v1, %v18836_v15  ;;  %v14434_v43 = vld [vmem:[#allocation7 + $0x2e8] sm:$0xff]  }
 0x8a3   :  { %vm8877_vm11 = vcmp.ge.f32.partialorder %v8853_v44, 0.0  ;;  %v8901_v18 = vmul.f32 0.1, %v8853_v44  ;;  %v8854_v57 = vadd.f32 %v18802_v8, %v8818_v45  ;;  %v8819_v55 = vadd.f32 %v18773_v17, %v8604_v0  ;;  %12467 = vmatprep.subr.bf16.mxu1 %v14402_v63  ;;  %v14407_v17 = vld [vmem:[#allocation7 + $0x128] sm:$0xff]  }
 0x8a4   :  { %v8605_v22 = vadd.f32 %v8561_v20, %v18840_v34  ;;  %v8565_v30 = vpop.f32.mrf.mxu0  ;;  %v8393_v9 = vadd.f32 %v20031_v36, %v8178_v53  ;;  %v8924_v12 = vsel %vm8876_vm10, %v8852_v7, %v8900_v19  ;;  %v14408_v34 = vld [vmem:[#allocation7 + $0x1a0] sm:$0xff]   ;;  %v14437_v24 = vld [vmem:[#allocation7 + $0x268] sm:$0xff]  }
 0x8a5   :  { %v8902_v21 = vmul.f32 0.1, %v8854_v57  ;;  %v8855_v23 = vadd.f32 %v18789_v40, %v8819_v55  ;;  %12438 = vmatpush3.bf16.msra.mxu0 %v14403_v28  ;;  %v8606_v51 = vadd.f32 %v8565_v30, %v20032_v37  ;;  %vm8878_vm12 = vcmp.ge.f32.partialorder %v8854_v57, 0.0  ;;  %v14411_v20 = vld [vmem:[#allocation7 + $0x120] sm:$0xff]   ;;  %v14412_v55 = vld [vmem:[#allocation7 + $0x198] sm:$0xff]   ;;  %v14414_v30 = vld [vmem:[#allocation7 + $0x1d0] sm:$0xff]  }
 0x8a6   :  { %v8820_v58 = vadd.f32 %v18787_v33, %v8605_v22  ;;  %12468 = vmatpush3.bf16.msra.mxu1 %v14404_v27  ;;  %v8567_v2 = vpop.f32.mrf.mxu0  ;;  %12439 = vmatprep.subr.bf16.mxu0 %v14405_v5  ;;  %v18901_v53 = vsel %vm8877_vm11, %v8853_v44, %v8901_v18  ;;  %v9579_v10 = vpack.c.bf16 %v8924_v12, %v18858_v16  ;;  %v18913_v44 = vpop.f32.mrf.mxu1  ;;  %v20033_v5 = vld [vmem:[#allocation53_spill] sm:$0xff] }
 0x8a7   :  { %vm8879_vm13 = vcmp.ge.f32.partialorder %v8855_v23, 0.0  ;;  %v8903_v63 = vmul.f32 0.1, %v8855_v23  ;;  %v8821_v7 = vadd.f32 %v18810_v38, %v8606_v51  ;;  %v8607_v26 = vadd.f32 %v8567_v2, %v8392_v11  ;;  %12469 = vmatprep.subr.bf16.mxu1 %v14406_v56  ;;  %v14413_v56 = vld [vmem:[#allocation7 + $0x158] sm:$0xff]  }
 0x8a8   :  { %v8856_v45 = vadd.f32 %v18802_v8, %v8820_v58  ;;  %v8569_v33 = vpop.f32.mrf.mxu0  ;;  %v18907_v0 = vsel %vm8878_vm12, %v8854_v57, %v8902_v21  ;;  %v18911_v28 = vpack.c.bf16 %v18901_v53, %v18869_v49  ;;  %v8394_v18 = vadd.f32 %v20033_v5, %v8179_v48  ;;  %v14415_v58 = vld [vmem:[#allocation7 + $0x118] sm:$0xff]   ;;  %v14420_v5 = vld [vmem:[#allocation7 + $0x188] sm:$0xff]   ;;  %v14438_v49 = vld [vmem:[#allocation7 + $0x2e0] sm:$0xff]  }
 0x8a9   :  { %v8857_v16 = vadd.f32 %v18789_v40, %v8821_v7  ;;  %v8822_v19 = vadd.f32 %v18826_v4, %v8607_v26  ;;  %12440 = vmatpush3.bf16.msra.mxu0 %v14407_v17  ;;  %v8608_v38 = vadd.f32 %v8569_v33, %v8393_v9  ;;  %v18919_v11 = vpack.c.bf16 %v18907_v0, %v18874_v1  ;;  %v14422_v1 = vld [vmem:[#allocation7 + $0x1c0] sm:$0xff]  }
 0x8aa   :  { %v8904_v27 = vmul.f32 0.1, %v8856_v45  ;;  %12470 = vmatpush3.bf16.msra.mxu1 %v14408_v34  ;;  %v8571_v57 = vpop.f32.mrf.mxu0  ;;  %12441 = vmatprep.subr.bf16.mxu0 %v14409_v60  ;;  %vm8880_vm14 = vcmp.ge.f32.partialorder %v8856_v45, 0.0  ;;  %v18923_v41 = vsel %vm8879_vm13, %v8855_v23, %v8903_v63  ;;  %v8796_v23 = vpop.f32.mrf.mxu1  ;;  %v14416_v60 = vld [vmem:[#allocation7 + $0x190] sm:$0xff]  }
 0x8ab   :  { %vm8881_vm15 = vcmp.ge.f32.partialorder %v8857_v16, 0.0  ;;  %v8905_v4 = vmul.f32 0.1, %v8857_v16  ;;  %v8858_v47 = vadd.f32 %v18802_v8, %v8822_v19  ;;  %v8823_v22 = vadd.f32 %v18842_v46, %v8608_v38  ;;  %9383 = vmatprep.mubr.bf16.mxu1 %v18919_v11  ;;  %12471 = vmatprep.subr.bf16.mxu1 %v14410_v61  ;;  %v14417_v63 = vld [vmem:[#allocation7 + $0x150] sm:$0xff]  }
 0x8ac   :  { %v8609_v36 = vadd.f32 %v8571_v57, %v8394_v18  ;;  %9384 = vmatmul.mubr.bf16.gmra.mxu1 %v18911_v28  ;;  %v8575_v48 = vpop.f32.mrf.mxu0  ;;  %v8928_v9 = vsel %vm8880_vm14, %v8856_v45, %v8904_v27  ;;  %v18931_v21 = vpack.c.bf16 %v18923_v41, %v18883_v52  ;;  %v14419_v38 = vld [vmem:[#allocation7 + $0x110] sm:$0xff]  }
 0x8ad   :  { %v8906_v37 = vmul.f32 0.1, %v8858_v47  ;;  %v8859_v51 = vadd.f32 %v18789_v40, %v8823_v22  ;;  %12442 = vmatpush3.bf16.msra.mxu0 %v14411_v20  ;;  %v8610_v46 = vadd.f32 %v8575_v48, %v18753_v42  ;;  %9743 = vmatprep.mubr.bf16.mxu1 %v9579_v10  ;;  %v18935_v17 = vpack.c.bf16 %v8928_v9, %v8924_v12  ;;  %v14418_v12 = vld [vmem:[#allocation7 + $0x1c8] sm:$0xff]  }
 0x8ae   :  { %v8824_v2 = vadd.f32 %v18860_v35, %v8609_v36  ;;  %12472 = vmatpush3.bf16.msra.mxu1 %v14412_v55  ;;  %v8577_v34 = vpop.f32.mrf.mxu0  ;;  %12443 = vmatprep.subr.bf16.mxu0 %v14413_v56  ;;  %vm8882_vm1 = vcmp.ge.f32.partialorder %v8858_v47, 0.0  ;;  %v18939_v7 = vsel %vm8881_vm15, %v8857_v16, %v8905_v4  ;;  %v8800_v16 = vpop.f32.mrf.mxu1  ;;  %v14423_v36 = vld [vmem:[#allocation7 + $0x108] sm:$0xff]  }
 0x8af   :  { %vm8883_vm2 = vcmp.ge.f32.partialorder %v8859_v51, 0.0  ;;  %v8907_v26 = vmul.f32 0.1, %v8859_v51  ;;  %v8825_v61 = vadd.f32 %v18878_v59, %v8610_v46  ;;  %v8611_v42 = vadd.f32 %v8577_v34, %v18759_v39  ;;  %9238 = vmatprep.mubr.bf16.mxu0 %v18935_v17  ;;  %12473 = vmatprep.subr.bf16.mxu1 %v14414_v30 }
 0x8b0   :  { %v8860_v35 = vadd.f32 %v18802_v8, %v8824_v2  ;;  %9239 = vmatmul.mubr.bf16.gmra.mxu0 %v18931_v21  ;;  %v8579_v10 = vpop.f32.mrf.mxu0  ;;  %v8930_v45 = vsel %vm8882_vm1, %v8858_v47, %v8906_v37  ;;  %v18948_v33 = vpack.c.bf16 %v18939_v7, %v18901_v53  ;;  %v14421_v53 = vld [vmem:[#allocation7 + $0x148] sm:$0xff]   ;;  %v8802_v47 = vpop.f32.mrf.mxu1 }
 0x8b1   :  { %v8861_v19 = vadd.f32 %v18789_v40, %v8825_v61  ;;  %v8826_v59 = vadd.f32 %v18895_v31, %v8611_v42  ;;  %12444 = vmatpush3.bf16.msra.mxu0 %v14415_v58  ;;  %v8612_v39 = vadd.f32 %v8579_v10, %v18761_v14  ;;  %9557 = vmatprep.mubr.bf16.mxu0 %v9393_v3 }
 0x8b2   :  { %v8908_v20 = vmul.f32 0.1, %v8860_v35  ;;  %12474 = vmatpush3.bf16.msra.mxu1 %v14416_v60  ;;  %v8581_v27 = vpop.f32.mrf.mxu0  ;;  %12445 = vmatprep.subr.bf16.mxu0 %v14417_v63  ;;  %vm8884_vm3 = vcmp.ge.f32.partialorder %v8860_v35, 0.0  ;;  %v18957_v18 = vpack.c.bf16 %v8930_v45, %v18907_v0  ;;  %v8931_v31 = vsel %vm8883_vm2, %v8859_v51, %v8907_v26  ;;  %v14425_v51 = vld [vmem:[#allocation7 + $0x140] sm:$0xff]   ;;  %v8804_v63 = vpop.f32.mrf.mxu1 }
 0x8b3   :  { %vm8885_vm4 = vcmp.ge.f32.partialorder %v8861_v19, 0.0  ;;  %v8909_v57 = vmul.f32 0.1, %v8861_v19  ;;  %v8862_v14 = vadd.f32 %v18802_v8, %v8826_v59  ;;  %v8827_v15 = vadd.f32 %v18913_v44, %v8612_v39  ;;  %12475 = vmatprep.subr.bf16.mxu1 %v14418_v12  ;;  %v14427_v12 = vld [vmem:[#allocation7 + $0x100] sm:$0xff]  }
 0x8b4   :  { %v8613_v3 = vadd.f32 %v8581_v27, %v18766_v13  ;;  %v8585_v55 = vpop.f32.mrf.mxu0  ;;  %v8932_v56 = vsel %vm8884_vm3, %v8860_v35, %v8908_v20  ;;  %v18964_v4 = vpack.c.bf16 %v8931_v31, %v18923_v41  ;;  %v14424_v13 = vld [vmem:[#allocation7 + $0x180] sm:$0xff]  }
 0x8b5   :  { %v8910_v0 = vmul.f32 0.1, %v8862_v14  ;;  %v8863_v22 = vadd.f32 %v18789_v40, %v8827_v15  ;;  %12446 = vmatpush3.bf16.msra.mxu0 %v14419_v38  ;;  %v8614_v30 = vadd.f32 %v8585_v55, %v18770_v29  ;;  %v18968_v48 = vpack.c.bf16 %v8932_v56, %v8928_v9  ;;  %v14426_v29 = vld [vmem:[#allocation7 + $0x2f8] sm:$0xff]   ;;  %v14430_v38 = vld [vmem:[#allocation7 + $0x2f0] sm:$0xff]  }
 0x8b6   :  { %v8828_v44 = vadd.f32 %v8796_v23, %v8613_v3  ;;  %12476 = vmatpush3.bf16.msra.mxu1 %v14420_v5  ;;  %v8587_v37 = vpop.f32.mrf.mxu0  ;;  %12447 = vmatprep.subr.bf16.mxu0 %v14421_v53  ;;  %vm8886_vm5 = vcmp.ge.f32.partialorder %v8862_v14, 0.0  ;;  %v18971_v41 = vsel %vm8885_vm4, %v8861_v19, %v8909_v57  ;;  %v8806_v5 = vpop.f32.mrf.mxu1 }
 0x8b7   :  { %vm8887_vm6 = vcmp.ge.f32.partialorder %v8863_v22, 0.0  ;;  %v8911_v46 = vmul.f32 0.1, %v8863_v22  ;;  %v8829_v58 = vadd.f32 %v8800_v16, %v8614_v30  ;;  %v8615_v2 = vadd.f32 %v8587_v37, %v18775_v6  ;;  %12477 = vmatprep.subr.bf16.mxu1 %v14422_v1  ;;  %v14428_v16 = vld [vmem:[#allocation7 + $0x2b8] sm:$0xff]   ;;  %v14433_v1 = vld [vmem:[#allocation7 + $0x270] sm:$0xff]   ;;  %v14436_v30 = vld [vmem:[#allocation7 + $0x2a8] sm:$0xff]  }
 0x8b8   :  { %v8864_v9 = vadd.f32 %v18802_v8, %v8828_v44  ;;  %v8589_v34 = vpop.f32.mrf.mxu0  ;;  %v18975_v23 = vsel %vm8886_vm5, %v8862_v14, %v8910_v0  ;;  %v18979_v60 = vpack.c.bf16 %v18971_v41, %v18939_v7  ;;  %v14431_v14 = vld [vmem:[#allocation7 + $0x238] sm:$0xff]   ;;  %v14440_v37 = vld [vmem:[#allocation7 + $0x2a0] sm:$0xff]  }
 0x8b9   :  { %v8865_v26 = vadd.f32 %v18789_v40, %v8829_v58  ;;  %v8830_v61 = vadd.f32 %v8802_v47, %v8615_v2  ;;  %12448 = vmatpush3.bf16.msra.mxu0 %v14423_v36  ;;  %v8616_v42 = vadd.f32 %v8589_v34, %v18785_v50  ;;  %v18984_v6 = vpack.c.bf16 %v18975_v23, %v8930_v45  ;;  %v14429_v50 = vld [vmem:[#allocation7 + $0x278] sm:$0xff]   ;;  %v14435_v47 = vld [vmem:[#allocation7 + $0x230] sm:$0xff]   ;;  %v14439_v36 = vld [vmem:[#allocation7 + $0x228] sm:$0xff]  }
 0x8ba   :  { %v8912_v35 = vmul.f32 0.1, %v8864_v9  ;;  %12478 = vmatpush3.bf16.msra.mxu1 %v14424_v13  ;;  %v8591_v10 = vpop.f32.mrf.mxu0  ;;  %12449 = vmatprep.subr.bf16.mxu0 %v14425_v51  ;;  %vm8888_vm7 = vcmp.ge.f32.partialorder %v8864_v9, 0.0  ;;  %v18987_v7 = vsel %vm8887_vm6, %v8863_v22, %v8911_v46  ;;  %v14441_v13 = vld [vmem:[#allocation7 + $0x260] sm:$0xff]   ;;  %v14442_v51 = vld [vmem:[#allocation7 + $0x2d8] sm:$0xff]   ;;  %v14449_v34 = vld [vmem:[#allocation7 + $0x250] sm:$0xff]  }
 0x8bb   :  { %vm8889_vm8 = vcmp.ge.f32.partialorder %v8865_v26, 0.0  ;;  %v8913_v19 = vmul.f32 0.1, %v8865_v26  ;;  %v8866_v59 = vadd.f32 %v18802_v8, %v8830_v61  ;;  %v8831_v39 = vadd.f32 %v8804_v63, %v8616_v42  ;;  %12519 = vmatprep.subr.bf16.mxu1 %v14426_v29  ;;  %v14443_v46 = vld [vmem:[#allocation7 + $0x220] sm:$0xff]   ;;  %v14444_v58 = vld [vmem:[#allocation7 + $0x298] sm:$0xff]   ;;  %v14446_v29 = vld [vmem:[#allocation7 + $0x2d0] sm:$0xff]  }
 0x8bc   :  { %v8617_v45 = vadd.f32 %v8591_v10, %v18793_v62  ;;  %v18991_v20 = vsel %vm8888_vm7, %v8864_v9, %v8912_v35  ;;  %v18994_v27 = vpack.c.bf16 %v18987_v7, %v8931_v31  ;;  %v14432_v31 = vld [vmem:[#allocation7 + $0x2b0] sm:$0xff]   ;;  %v14445_v2 = vld [vmem:[#allocation7 + $0x258] sm:$0xff]   ;;  %v14450_v63 = vld [vmem:[#allocation7 + $0x2c8] sm:$0xff]  }
 0x8bd   :  { %v8914_v53 = vmul.f32 0.1, %v8866_v59  ;;  %v8867_v57 = vadd.f32 %v18789_v40, %v8831_v39  ;;  %9744 = vmatmul.mubr.bf16.vlgmr.msra.gmra.mxu1 %v9578_v32  ;;  %12450 = vmatpush3.bf16.msra.mxu0 %v14427_v12  ;;  %v19001_v15 = vpack.c.bf16 %v18991_v20, %v8932_v56  ;;  %vm8890_vm9 = vcmp.ge.f32.partialorder %v8866_v59, 0.0  ;;  %v14447_v9 = vld [vmem:[#allocation7 + $0x218] sm:$0xff]   ;;  %v14453_v61 = vld [vmem:[#allocation7 + $0x248] sm:$0xff]   ;;  %v14454_v42 = vld [vmem:[#allocation7 + $0x2c0] sm:$0xff]  }
 0x8be   :  { %v8832_v62 = vadd.f32 %v8806_v5, %v8617_v45  ;;  %9751 = vmatprep.mubr.bf16.mxu1 %v18968_v48  ;;  %12520 = vmatpush3.bf16.msra.mxu1 %v14428_v16  ;;  %v19005_v3 = vsel %vm8889_vm8, %v8865_v26, %v8913_v19  ;;  %v14451_v26 = vld [vmem:[#allocation7 + $0x210] sm:$0xff]   ;;  %v14455_v12 = vld [vmem:[#allocation7 + $0x208] sm:$0xff]   ;;  %v14456_v35 = vld [vmem:[#allocation7 + $0x280] sm:$0xff]  }
 0x8bf   :  { %vm8891_vm10 = vcmp.ge.f32.partialorder %v8867_v57, 0.0  ;;  %v8915_v40 = vmul.f32 0.1, %v8867_v57  ;;  %12491 = vmatprep.subr.bf16.mxu0 %v14429_v50  ;;  %12521 = vmatprep.subr.bf16.mxu1 %v14430_v38  ;;  %v19007_v52 = vsel %vm8890_vm9, %v8866_v59, %v8914_v53  ;;  %v10132_v32 = vpack.c.bf16 %v19005_v3, %v18971_v41  ;;  %v14457_v10 = vld [vmem:[#allocation7 + $0x240] sm:$0xff]   ;;  %v14458_v16 = vld [vmem:[#allocation7 + $0x3f8] sm:$0xff]   ;;  %v14462_v50 = vld [vmem:[#allocation7 + $0x3f0] sm:$0xff]  }
 0x8c0   :  { %v8868_v55 = vadd.f32 %v18802_v8, %v8832_v62  ;;  %9558 = vmatmul.mubr.bf16.vlgmr.msra.gmra.mxu0 %v9392_v54  ;;  %v10133_v56 = vpack.c.bf16 %v19007_v52, %v18975_v23  ;;  %v14459_v19 = vld [vmem:[#allocation7 + $0x200] sm:$0xff]   ;;  %v14460_v59 = vld [vmem:[#allocation7 + $0x3b8] sm:$0xff]   ;;  %v14464_v45 = vld [vmem:[#allocation7 + $0x3b0] sm:$0xff]  }
 0x8c1   :  { %9565 = vmatprep.mubr.bf16.mxu0 %v18957_v18  ;;  %12492 = vmatpush3.bf16.msra.mxu0 %v14431_v14  ;;  %v19018_v0 = vsel %vm8891_vm10, %v8867_v57, %v8915_v40  ;;  %v14461_v39 = vld [vmem:[#allocation7 + $0x378] sm:$0xff]   ;;  %v14465_v5 = vld [vmem:[#allocation7 + $0x370] sm:$0xff]   ;;  %v14466_v53 = vld [vmem:[#allocation7 + $0x3e8] sm:$0xff]  }
 0x8c2   :  { %v8916_v22 = vmul.f32 0.1, %v8868_v55  ;;  %12522 = vmatpush3.bf16.msra.mxu1 %v14432_v31  ;;  %12493 = vmatprep.subr.bf16.mxu0 %v14433_v1  ;;  %vm8892_vm11 = vcmp.ge.f32.partialorder %v8868_v55, 0.0  ;;  %v10316_v8 = vpack.c.bf16 %v19018_v0, %v18987_v7  ;;  %v14463_v38 = vld [vmem:[#allocation7 + $0x338] sm:$0xff]   ;;  %v14467_v57 = vld [vmem:[#allocation7 + $0x330] sm:$0xff]   ;;  %v14468_v14 = vld [vmem:[#allocation7 + $0x3a8] sm:$0xff]  }
 0x8c3   :  { %12523 = vmatprep.subr.bf16.mxu1 %v14434_v43  ;;  %v14470_v62 = vld [vmem:[#allocation7 + $0x3e0] sm:$0xff]   ;;  %v14471_v31 = vld [vmem:[#allocation7 + $0x328] sm:$0xff]   ;;  %v14508_v7 = vld [vmem:[#allocation7 + $0x498] sm:$0xff]  }
 0x8c4   :  { %v19022_v54 = vsel %vm8892_vm11, %v8868_v55, %v8916_v22  ;;  %v14472_v1 = vld [vmem:[#allocation7 + $0x3a0] sm:$0xff]   ;;  %v14476_v55 = vld [vmem:[#allocation7 + $0x398] sm:$0xff]   ;;  %v14478_v22 = vld [vmem:[#allocation7 + $0x3d0] sm:$0xff]  }
 0x8c5   :  { %9752 = vmatmul.mubr.bf16.gmra.mxu1 %v18964_v4  ;;  %12494 = vmatpush3.bf16.msra.mxu0 %v14435_v47  ;;  %v10317_v44 = vpack.c.bf16 %v19022_v54, %v18991_v20  ;;  %v14473_v40 = vld [vmem:[#allocation7 + $0x360] sm:$0xff]   ;;  %v14477_v47 = vld [vmem:[#allocation7 + $0x358] sm:$0xff]   ;;  %v14501_v20 = vld [vmem:[#allocation7 + $0x468] sm:$0xff]  }
 0x8c6   :  { %12524 = vmatpush3.bf16.msra.mxu1 %v14436_v30  ;;  %10111 = vmatprep.mubr.bf16.mxu1 %v18935_v17  ;;  %v14448_v17 = vld [vmem:[#allocation7 + $0x290] sm:$0xff]   ;;  %v14475_v43 = vld [vmem:[#allocation7 + $0x320] sm:$0xff]   ;;  %v14479_v30 = vld [vmem:[#allocation7 + $0x318] sm:$0xff]  }
 0x8c7   :  { %12495 = vmatprep.subr.bf16.mxu0 %v14437_v24  ;;  %12525 = vmatprep.subr.bf16.mxu1 %v14438_v49  ;;  %v14481_v24 = vld [vmem:[#allocation7 + $0x350] sm:$0xff]   ;;  %v14482_v49 = vld [vmem:[#allocation7 + $0x3c8] sm:$0xff]   ;;  %v14505_v23 = vld [vmem:[#allocation7 + $0x460] sm:$0xff]  }
 0x8c8   :  { %9566 = vmatmul.mubr.bf16.gmra.mxu0 %v18948_v33  ;;  %v14515_v41 = vld [vmem:[#allocation7 + $0x410] sm:$0xff]  }
 0x8c9   :  { %12496 = vmatpush3.bf16.msra.mxu0 %v14439_v36  ;;  %9927 = vmatprep.mubr.bf16.mxu0 %v18919_v11  ;;  %v14452_v11 = vld [vmem:[#allocation7 + $0x288] sm:$0xff]   ;;  %v14483_v36 = vld [vmem:[#allocation7 + $0x310] sm:$0xff]  }
 0x8ca   :  { %12526 = vmatpush3.bf16.msra.mxu1 %v14440_v37  ;;  %12497 = vmatprep.subr.bf16.mxu0 %v14441_v13  ;;  %v14485_v37 = vld [vmem:[#allocation7 + $0x348] sm:$0xff]   ;;  %v14486_v13 = vld [vmem:[#allocation7 + $0x3c0] sm:$0xff]  }
 0x8cb   :  { %12527 = vmatprep.subr.bf16.mxu1 %v14442_v51  ;;  %v14487_v51 = vld [vmem:[#allocation7 + $0x308] sm:$0xff]  }
 0x8cd   :  { %12498 = vmatpush3.bf16.msra.mxu0 %v14443_v46  ;;  %v14488_v46 = vld [vmem:[#allocation7 + $0x380] sm:$0xff]  }
 0x8ce   :  { %12528 = vmatpush3.bf16.msra.mxu1 %v14444_v58  ;;  %12499 = vmatprep.subr.bf16.mxu0 %v14445_v2  ;;  %v14489_v58 = vld [vmem:[#allocation7 + $0x340] sm:$0xff]   ;;  %v14490_v2 = vld [vmem:[#allocation7 + $0x4f8] sm:$0xff]  }
 0x8cf   :  { %12529 = vmatprep.subr.bf16.mxu1 %v14446_v29  ;;  %v14491_v29 = vld [vmem:[#allocation7 + $0x300] sm:$0xff]  }
 0x8d1   :  { %12500 = vmatpush3.bf16.msra.mxu0 %v14447_v9  ;;  %v14492_v9 = vld [vmem:[#allocation7 + $0x4b8] sm:$0xff]  }
 0x8d2   :  { %12530 = vmatpush3.bf16.msra.mxu1 %v14448_v17  ;;  %12501 = vmatprep.subr.bf16.mxu0 %v14449_v34  ;;  %v14493_v17 = vld [vmem:[#allocation7 + $0x478] sm:$0xff]   ;;  %v14494_v34 = vld [vmem:[#allocation7 + $0x4f0] sm:$0xff]  }
 0x8d3   :  { %12531 = vmatprep.subr.bf16.mxu1 %v14450_v63  ;;  %v14495_v63 = vld [vmem:[#allocation7 + $0x438] sm:$0xff]  }
 0x8d5   :  { %12502 = vmatpush3.bf16.msra.mxu0 %v14451_v26  ;;  %v14496_v26 = vld [vmem:[#allocation7 + $0x4b0] sm:$0xff]  }
 0x8d6   :  { %12532 = vmatpush3.bf16.msra.mxu1 %v14452_v11  ;;  %12503 = vmatprep.subr.bf16.mxu0 %v14453_v61  ;;  %v14497_v11 = vld [vmem:[#allocation7 + $0x470] sm:$0xff]   ;;  %v14498_v61 = vld [vmem:[#allocation7 + $0x4e8] sm:$0xff]  }
 0x8d7   :  { %12533 = vmatprep.subr.bf16.mxu1 %v14454_v42  ;;  %v14500_v42 = vld [vmem:[#allocation7 + $0x4a8] sm:$0xff]  }
 0x8d9   :  { %12504 = vmatpush3.bf16.msra.mxu0 %v14455_v12  ;;  %v14503_v12 = vld [vmem:[#allocation7 + $0x428] sm:$0xff]  }
 0x8da   :  { %12534 = vmatpush3.bf16.msra.mxu1 %v14456_v35  ;;  %12505 = vmatprep.subr.bf16.mxu0 %v14457_v10  ;;  %v14507_v35 = vld [vmem:[#allocation7 + $0x420] sm:$0xff]   ;;  %v14510_v10 = vld [vmem:[#allocation7 + $0x4d0] sm:$0xff]  }
 0x8db   :  { %12575 = vmatprep.subr.bf16.mxu1 %v14458_v16  ;;  %v14512_v16 = vld [vmem:[#allocation7 + $0x490] sm:$0xff]  }
 0x8dd   :  { %10112 = vmatmul.mubr.bf16.vlgmr.msra.gmra.mxu1 %v18931_v21  ;;  %12506 = vmatpush3.bf16.msra.mxu0 %v14459_v19  ;;  %v14469_v21 = vld [vmem:[#allocation7 + $0x368] sm:$0xff]   ;;  %v14513_v19 = vld [vmem:[#allocation7 + $0x450] sm:$0xff]  }
 0x8de   :  { %10119 = vmatprep.mubr.bf16.mxu1 %v19001_v15  ;;  %12576 = vmatpush3.bf16.msra.mxu1 %v14460_v59  ;;  %v14514_v59 = vld [vmem:[#allocation7 + $0x4c8] sm:$0xff]  }
 0x8df   :  { %12547 = vmatprep.subr.bf16.mxu0 %v14461_v39  ;;  %12577 = vmatprep.subr.bf16.mxu1 %v14462_v50  ;;  %v14518_v39 = vld [vmem:[#allocation7 + $0x4c0] sm:$0xff]   ;;  %v14519_v50 = vld [vmem:[#allocation7 + $0x408] sm:$0xff]  }
 0x8e0   :  { %9928 = vmatmul.mubr.bf16.vlgmr.msra.gmra.mxu0 %v18911_v28  ;;  %v14474_v28 = vld [vmem:[#allocation7 + $0x3d8] sm:$0xff]  }
 0x8e1   :  { %9935 = vmatprep.mubr.bf16.mxu0 %v18984_v6  ;;  %12548 = vmatpush3.bf16.msra.mxu0 %v14463_v38  ;;  %v14520_v38 = vld [vmem:[#allocation7 + $0x480] sm:$0xff]  }
 0x8e2   :  { %12578 = vmatpush3.bf16.msra.mxu1 %v14464_v45  ;;  %12549 = vmatprep.subr.bf16.mxu0 %v14465_v5  ;;  %v14521_v45 = vld [vmem:[#allocation7 + $0x440] sm:$0xff]  }
 0x8e3   :  { %12579 = vmatprep.subr.bf16.mxu1 %v14466_v53  ;;  %v14522_v5 = vld [vmem:[#allocation7 + $0x400] sm:$0xff]   ;;  %v10685_v53 = vpack.c.bf16 %v20020_v25, %v19022_v54 }
 0x8e4   :  { %v14528_v54 = vld [vmem:[%s19265_s9 + $0x20] sm:$0xff]  }
 0x8e5   :  { %10120 = vmatmul.mubr.bf16.gmra.mxu1 %v18994_v27  ;;  %12550 = vmatpush3.bf16.msra.mxu0 %v14467_v57  ;;  %v10501_v57 = vpack.c.bf16 %v20020_v25, %v19007_v52  ;;  %v14526_v52 = vld [vmem:[%s19265_s9 + $0x28] sm:$0xff]  }
 0x8e6   :  { %12580 = vmatpush3.bf16.msra.mxu1 %v14468_v14  ;;  %10479 = vmatprep.mubr.bf16.mxu1 %v18968_v48  ;;  %v14480_v48 = vld [vmem:[#allocation7 + $0x390] sm:$0xff]   ;;  %v10684_v14 = vpack.c.bf16 %v20020_v25, %v19018_v0 }
 0x8e7   :  { %12551 = vmatprep.subr.bf16.mxu0 %v14469_v21  ;;  %12581 = vmatprep.subr.bf16.mxu1 %v14470_v62  ;;  %v10500_v21 = vpack.c.bf16 %v20020_v25, %v19005_v3  ;;  %v14525_v3 = vld [vmem:[%s19265_s9 + $0x78] sm:$0xff]   ;;  %v14527_v0 = vld [vmem:[%s19265_s9 + $0x70] sm:$0xff]   ;;  %v14529_v62 = vld [vmem:[%s19265_s9 + $0x68] sm:$0xff]  }
 0x8e8   :  { %9936 = vmatmul.mubr.bf16.gmra.mxu0 %v18979_v60 }
 0x8e9   :  { %12552 = vmatpush3.bf16.msra.mxu0 %v14471_v31  ;;  %10295 = vmatprep.mubr.bf16.mxu0 %v18957_v18  ;;  %v14484_v18 = vld [vmem:[#allocation7 + $0x388] sm:$0xff]   ;;  %v14530_v31 = vld [vmem:[%s19265_s9 + $0x18] sm:$0xff]  }
 0x8ea   :  { %12582 = vmatpush3.bf16.msra.mxu1 %v14472_v1  ;;  %12553 = vmatprep.subr.bf16.mxu0 %v14473_v40 }
 0x8eb   :  { %12583 = vmatprep.subr.bf16.mxu1 %v14474_v28  ;;  %v14531_v28 = vld [vmem:[%s19265_s9 + $0x60] sm:$0xff]  }
 0x8ed   :  { %12554 = vmatpush3.bf16.msra.mxu0 %v14475_v43  ;;  %v14532_v43 = vld [vmem:[%s19265_s9 + $0x10] sm:$0xff]  }
 0x8ee   :  { %12584 = vmatpush3.bf16.msra.mxu1 %v14476_v55  ;;  %12555 = vmatprep.subr.bf16.mxu0 %v14477_v47 }
 0x8ef   :  { %12585 = vmatprep.subr.bf16.mxu1 %v14478_v22  ;;  %v14533_v22 = vld [vmem:[%s19265_s9 + $0x58] sm:$0xff]  }
 0x8f1   :  { %12556 = vmatpush3.bf16.msra.mxu0 %v14479_v30  ;;  %v14534_v30 = vld [vmem:[%s19265_s9 + $0x8] sm:$0xff]  }
 0x8f2   :  { %12586 = vmatpush3.bf16.msra.mxu1 %v14480_v48  ;;  %12557 = vmatprep.subr.bf16.mxu0 %v14481_v24 }
 0x8f3   :  { %12587 = vmatprep.subr.bf16.mxu1 %v14482_v49  ;;  %v14535_v49 = vld [vmem:[%s19265_s9 + $0x50] sm:$0xff]  }
 0x8f5   :  { %12558 = vmatpush3.bf16.msra.mxu0 %v14483_v36  ;;  %v14536_v36 = vld [vmem:[%s19265_s9] sm:$0xff]  }
 0x8f6   :  { %12588 = vmatpush3.bf16.msra.mxu1 %v14484_v18  ;;  %12559 = vmatprep.subr.bf16.mxu0 %v14485_v37 }
 0x8f7   :  { %12589 = vmatprep.subr.bf16.mxu1 %v14486_v13 }
 0x8f9   :  { %12560 = vmatpush3.bf16.msra.mxu0 %v14487_v51  ;;  %v14537_v51 = vld [vmem:[%s19265_s9 + $0x48] sm:$0xff]  }
 0x8fa   :  { %12590 = vmatpush3.bf16.msra.mxu1 %v14488_v46  ;;  %12561 = vmatprep.subr.bf16.mxu0 %v14489_v58 }
 0x8fb   :  { %12631 = vmatprep.subr.bf16.mxu1 %v14490_v2  ;;  %v14538_v2 = vld [vmem:[%s19265_s9 + $0x40] sm:$0xff]  }
 0x8fd   :  { %10480 = vmatmul.mubr.bf16.vlgmr.msra.gmra.mxu1 %v18964_v4  ;;  %12562 = vmatpush3.bf16.msra.mxu0 %v14491_v29  ;;  %v14499_v4 = vld [vmem:[#allocation7 + $0x430] sm:$0xff]  }
 0x8fe   :  { %10487 = vmatprep.mubr.bf16.mxu1 %v10317_v44  ;;  %12632 = vmatpush3.bf16.msra.mxu1 %v14492_v9  ;;  %v14502_v44 = vld [vmem:[#allocation7 + $0x4e0] sm:$0xff]  }
 0x8ff   :  { %12603 = vmatprep.subr.bf16.mxu0 %v14493_v17  ;;  %12633 = vmatprep.subr.bf16.mxu1 %v14494_v34 }
 0x900   :  { %10296 = vmatmul.mubr.bf16.vlgmr.msra.gmra.mxu0 %v18948_v33  ;;  %v14504_v33 = vld [vmem:[#allocation7 + $0x4a0] sm:$0xff]  }
 0x901   :  { %10303 = vmatprep.mubr.bf16.mxu0 %v10133_v56  ;;  %12604 = vmatpush3.bf16.msra.mxu0 %v14495_v63  ;;  %v14506_v56 = vld [vmem:[#allocation7 + $0x4d8] sm:$0xff]  }
 0x902   :  { %12634 = vmatpush3.bf16.msra.mxu1 %v14496_v26  ;;  %12605 = vmatprep.subr.bf16.mxu0 %v14497_v11 }
 0x903   :  { %12635 = vmatprep.subr.bf16.mxu1 %v14498_v61 }
 0x905   :  { %10488 = vmatmul.mubr.bf16.gmra.mxu1 %v10316_v8  ;;  %12606 = vmatpush3.bf16.msra.mxu0 %v14499_v4  ;;  %v14509_v8 = vld [vmem:[#allocation7 + $0x458] sm:$0xff]  }
 0x906   :  { %12636 = vmatpush3.bf16.msra.mxu1 %v14500_v42  ;;  %10847 = vmatprep.mubr.bf16.mxu1 %v19001_v15  ;;  %v14511_v15 = vld [vmem:[#allocation7 + $0x418] sm:$0xff]  }
 0x907   :  { %12607 = vmatprep.subr.bf16.mxu0 %v14501_v20  ;;  %12637 = vmatprep.subr.bf16.mxu1 %v14502_v44 }
 0x908   :  { %10304 = vmatmul.mubr.bf16.gmra.mxu0 %v10132_v32  ;;  %v14517_v32 = vld [vmem:[#allocation7 + $0x448] sm:$0xff]  }
 0x909   :  { %12608 = vmatpush3.bf16.msra.mxu0 %v14503_v12  ;;  %10663 = vmatprep.mubr.bf16.mxu0 %v18984_v6  ;;  %v14516_v6 = vld [vmem:[#allocation7 + $0x488] sm:$0xff]  }
 0x90a   :  { %12638 = vmatpush3.bf16.msra.mxu1 %v14504_v33  ;;  %12609 = vmatprep.subr.bf16.mxu0 %v14505_v23 }
 0x90b   :  { %12639 = vmatprep.subr.bf16.mxu1 %v14506_v56 }
 0x90d   :  { %12610 = vmatpush3.bf16.msra.mxu0 %v14507_v35 }
 0x90e   :  { %12640 = vmatpush3.bf16.msra.mxu1 %v14508_v7  ;;  %12611 = vmatprep.subr.bf16.mxu0 %v14509_v8 }
 0x90f   :  { %12641 = vmatprep.subr.bf16.mxu1 %v14510_v10 }
 0x911   :  { %12612 = vmatpush3.bf16.msra.mxu0 %v14511_v15 }
 0x912   :  { %12642 = vmatpush3.bf16.msra.mxu1 %v14512_v16  ;;  %12613 = vmatprep.subr.bf16.mxu0 %v14513_v19 }
 0x913   :  { %12643 = vmatprep.subr.bf16.mxu1 %v14514_v59 }
 0x915   :  { %12614 = vmatpush3.bf16.msra.mxu0 %v14515_v41 }
 0x916   :  { %12644 = vmatpush3.bf16.msra.mxu1 %v14516_v6  ;;  %12615 = vmatprep.subr.bf16.mxu0 %v14517_v32 }
 0x917   :  { %12645 = vmatprep.subr.bf16.mxu1 %v14518_v39 }
 0x919   :  { %12616 = vmatpush3.bf16.msra.mxu0 %v14519_v50 }
 0x91a   :  { %12646 = vmatpush3.bf16.msra.mxu1 %v14520_v38  ;;  %12617 = vmatprep.subr.bf16.mxu0 %v14521_v45 }
 0x91b   :  { %13858 = vmatprep.subr.bf16.mxu1 %v20020_v25 }
 0x91d   :  { %10848 = vmatmul.mubr.bf16.vlgmr.msra.gmra.mxu1 %v18994_v27  ;;  %12618 = vmatpush3.bf16.msra.mxu0 %v14522_v5  ;;  %v14523_v27 = vld [vmem:[%s19265_s9 + $0x38] sm:$0xff]  }
 0x91e   :  { %10855 = vmatprep.mubr.bf16.mxu1 %v10685_v53  ;;  %13838 = vmatprep.subr.bf16.mxu0 %v20020_v25 }
 0x91f   :  { %13859 = vmatpush3.bf16.msra.mxu1 %v14523_v27 }
 0x920   :  { %10664 = vmatmul.mubr.bf16.vlgmr.msra.gmra.mxu0 %v18979_v60  ;;  %v14524_v60 = vld [vmem:[%s19265_s9 + $0x30] sm:$0xff]   ;;  %13860 = vmatprep.subr.bf16.mxu1 %v20020_v25 }
 0x921   :  { %10671 = vmatprep.mubr.bf16.mxu0 %v10501_v57  ;;  %13839 = vmatpush3.bf16.msra.mxu0 %v14525_v3 }
 0x922   :  { %13840 = vmatprep.subr.bf16.mxu0 %v20020_v25 }
 0x923   :  { %13861 = vmatpush3.bf16.msra.mxu1 %v14524_v60 }
 0x924   :  { %13862 = vmatprep.subr.bf16.mxu1 %v20020_v25 }
 0x925   :  { %10856 = vmatmul.mubr.bf16.gmra.mxu1 %v10684_v14  ;;  %13841 = vmatpush3.bf16.msra.mxu0 %v14527_v0 }
 0x926   :  { %13874 = vmatprep.mubr.msk.bf16.mxu1 %vm14605_vm0, %v20020_v25  ;;  %13842 = vmatprep.subr.bf16.mxu0 %v20020_v25 }
 0x927   :  { %13863 = vmatpush3.bf16.msra.mxu1 %v14526_v52 }
 0x928   :  { %10672 = vmatmul.mubr.bf16.gmra.mxu0 %v10500_v21  ;;  %13864 = vmatprep.subr.bf16.mxu1 %v20020_v25 }
 0x929   :  { %13854 = vmatprep.mubr.msk.bf16.mxu0 %vm14605_vm0, %v20020_v25  ;;  %13843 = vmatpush3.bf16.msra.mxu0 %v14529_v62 }
 0x92a   :  { %13844 = vmatprep.subr.bf16.mxu0 %v20020_v25 }
 0x92b   :  { %13865 = vmatpush3.bf16.msra.mxu1 %v14528_v54 }
 0x92c   :  { %13866 = vmatprep.subr.bf16.mxu1 %v20020_v25 }
 0x92d   :  { %13845 = vmatpush3.bf16.msra.mxu0 %v14531_v28 }
 0x92e   :  { %13846 = vmatprep.subr.bf16.mxu0 %v20020_v25 }
 0x92f   :  { %13867 = vmatpush3.bf16.msra.mxu1 %v14530_v31 }
 0x930   :  { %13868 = vmatprep.subr.bf16.mxu1 %v20020_v25 }
 0x931   :  { %13847 = vmatpush3.bf16.msra.mxu0 %v14533_v22 }
 0x932   :  { %13848 = vmatprep.subr.bf16.mxu0 %v20020_v25 }
 0x933   :  { %13869 = vmatpush3.bf16.msra.mxu1 %v14532_v43 }
 0x934   :  { %13870 = vmatprep.subr.bf16.mxu1 %v20020_v25 }
 0x935   :  { %13849 = vmatpush3.bf16.msra.mxu0 %v14535_v49 }
 0x936   :  { %13850 = vmatprep.subr.bf16.mxu0 %v20020_v25 }
 0x937   :  { %13871 = vmatpush3.bf16.msra.mxu1 %v14534_v30 }
 0x938   :  { %13872 = vmatprep.subr.bf16.mxu1 %v20020_v25 }
 0x939   :  { %13851 = vmatpush3.bf16.msra.mxu0 %v14537_v51 }
 0x93a   :  { %13852 = vmatprep.subr.bf16.mxu0 %v20020_v25 }
 0x93b   :  { %13873 = vmatpush3.bf16.msra.mxu1 %v14536_v36 }
 0x93d   :  { %13853 = vmatpush3.bf16.msra.mxu0 %v14538_v2 }
 0x93e   :  { %13878 = vmatprep.subr.bf16.mxu0 %v20020_v25 }
 0x95d   :  { %v19100_v1 = vpop.f32.mrf.mxu1 }
 0x95f   :  { %v19112_v55 = vpop.f32.mrf.mxu1 }
 0x960   :  { %v19104_v40 = vpop.f32.mrf.mxu0  ;;  %v12425_v22 = vadd.f32 %v19112_v55, %v19100_v1 }
 0x961   :  { %v19124_v48 = vpop.f32.mrf.mxu1 }
 0x962   :  { %v19116_v47 = vpop.f32.mrf.mxu0 }
 0x963   :  { %v19136_v18 = vpop.f32.mrf.mxu1  ;;  %v12397_v28 = vadd.f32 %v19116_v47, %v19104_v40 }
 0x964   :  { %v19128_v24 = vpop.f32.mrf.mxu0  ;;  %v12428_v25 = vadd.f32 %v19136_v18, %v19124_v48 }
 0x965   :  { %v9378_v36 = vadd.f32 %v12425_v22, %v12397_v28 }
 0x966   :  { %v12399_v13 = vpop.f32.mrf.mxu0 }
 0x967   :  { %v12400_v51 = vadd.f32 %v12399_v13, %v19128_v24 }
 0x96c   :  { %v19138_v37 = vpop.f32.mrf.mxu1 }
 0x96e   :  { %v19146_v58 = vpop.f32.mrf.mxu1 }
 0x96f   :  { %v12431_v55 = vadd.f32 %v19146_v58, %v19138_v37 }
 0x970   :  { %v19144_v46 = vpop.f32.mrf.mxu0  ;;  %v19152_v9 = vpop.f32.mrf.mxu1 }
 0x972   :  { %v12402_v29 = vpop.f32.mrf.mxu0  ;;  %v19157_v34 = vpop.f32.mrf.mxu1 }
 0x973   :  { %v12403_v40 = vadd.f32 %v12402_v29, %v19144_v46 }
 0x974   :  { %v19155_v17 = vpop.f32.mrf.mxu0 }
 0x975   :  { %v9386_v18 = vadd.f32 %v12431_v55, %v12403_v40 }
 0x976   :  { %v12405_v26 = vpop.f32.mrf.mxu0 }
 0x977   :  { %v12406_v48 = vadd.f32 %v12405_v26, %v19155_v17 }
 0x97d   :  { %v12479_v63 = vpop.f32.mrf.mxu1 }
 0x97f   :  { %v12480_v61 = vpop.f32.mrf.mxu1 }
 0x980   :  { %v12451_v11 = vpop.f32.mrf.mxu0  ;;  %v12481_v47 = vadd.f32 %v12480_v61, %v12479_v63 }
 0x981   :  { %v12482_v42 = vpop.f32.mrf.mxu1 }
 0x982   :  { %v12452_v4 = vpop.f32.mrf.mxu0 }
 0x983   :  { %v12483_v44 = vpop.f32.mrf.mxu1  ;;  %v12453_v30 = vadd.f32 %v12452_v4, %v12451_v11 }
 0x984   :  { %v12454_v20 = vpop.f32.mrf.mxu0 }
 0x985   :  { %v19159_v33 = vpop.f32.mrf.mxu1 }
 0x986   :  { %v12455_v12 = vpop.f32.mrf.mxu0 }
 0x987   :  { %v19161_v56 = vpop.f32.mrf.mxu1 }
 0x988   :  { %v12457_v23 = vpop.f32.mrf.mxu0 }
 0x989   :  { %v19163_v7 = vpop.f32.mrf.mxu1 }
 0x98a   :  { %v12458_v35 = vpop.f32.mrf.mxu0 }
 0x98b   :  { %v19165_v10 = vpop.f32.mrf.mxu1  ;;  %v12459_v4 = vadd.f32 %v12458_v35, %v12457_v23  ;;  %v12487_v35 = vadd.f32 %v19161_v56, %v19159_v33 }
 0x98c   :  { %v12460_v8 = vpop.f32.mrf.mxu0 }
 0x98d   :  { %v9576_v63 = vadd.f32 %v12459_v4, %v9386_v18 }
 0x98e   :  { %v12461_v16 = vpop.f32.mrf.mxu0 }
 0x98f   :  { %v12462_v46 = vadd.f32 %v12461_v16, %v12460_v8 }
 0x99d   :  { %v12535_v15 = vpop.f32.mrf.mxu1 }
 0x99f   :  { %v12536_v59 = vpop.f32.mrf.mxu1 }
 0x9a0   :  { %v12507_v19 = vpop.f32.mrf.mxu0  ;;  %v12537_v61 = vadd.f32 %v12536_v59, %v12535_v15  ;;  %v12490_v15 = vadd.f32 %v19165_v10, %v19163_v7 }
 0x9a1   :  { %v12538_v6 = vpop.f32.mrf.mxu1 }
 0x9a2   :  { %v12508_v41 = vpop.f32.mrf.mxu0 }
 0x9a3   :  { %v12539_v39 = vpop.f32.mrf.mxu1 }
 0x9a4   :  { %v12510_v32 = vpop.f32.mrf.mxu0 }
 0x9a5   :  { %v19167_v38 = vpop.f32.mrf.mxu1 }
 0x9a6   :  { %v12511_v50 = vpop.f32.mrf.mxu0 }
 0x9a7   :  { %v19169_v5 = vpop.f32.mrf.mxu1  ;;  %v12512_v28 = vadd.f32 %v12511_v50, %v12510_v32  ;;  %v12540_v50 = vadd.f32 %v12539_v39, %v12538_v6 }
 0x9a8   :  { %v12513_v45 = vpop.f32.mrf.mxu0  ;;  %20034 = vst [vmem:[#allocation22_spill] sm:$0xff] %v19169_v5  ;;  %v12509_v5 = vadd.f32 %v12508_v41, %v12507_v19 }
 0x9a9   :  { %v19171_v57 = vpop.f32.mrf.mxu1 }
 0x9aa   :  { %v12514_v53 = vpop.f32.mrf.mxu0  ;;  %20035 = vst [vmem:[#allocation46_spill] sm:$0xff] %v19171_v57  ;;  %v12456_v57 = vadd.f32 %v12455_v12, %v12454_v20  ;;  %v12484_v20 = vadd.f32 %v12483_v44, %v12482_v42 }
 0x9ab   :  { %v19173_v21 = vpop.f32.mrf.mxu1  ;;  %v12515_v17 = vadd.f32 %v12514_v53, %v12513_v45 }
 0x9ac   :  { %v12516_v14 = vpop.f32.mrf.mxu0  ;;  %20036 = vst [vmem:[#allocation39_spill] sm:$0xff] %v19173_v21  ;;  %v9574_v21 = vadd.f32 %v12453_v30, %v9378_v36 }
 0x9ae   :  { %v12517_v60 = vpop.f32.mrf.mxu0  ;;  %v9760_v24 = vadd.f32 %v12481_v47, %v9574_v21 }
 0x9af   :  { %v12518_v16 = vadd.f32 %v12517_v60, %v12516_v14  ;;  %v20039_v56 = vld [vmem:[#allocation22_spill] sm:$0xff] }
 0x9b0   :  { %v9944_v12 = vadd.f32 %v12509_v5, %v9760_v24  ;;  %v9762_v5 = vadd.f32 %v12487_v35, %v9576_v63  ;;  %v12543_v45 = vadd.f32 %v20039_v56, %v19167_v38 }
 0x9b2   :  { %v10128_v26 = vadd.f32 %v12537_v61, %v9944_v12 }
 0x9b3   :  { %v20043_v40 = vld [vmem:[#allocation39_spill] sm:$0xff] }
 0x9bd   :  { %v12591_v27 = vpop.f32.mrf.mxu1 }
 0x9bf   :  { %v12592_v52 = vpop.f32.mrf.mxu1 }
 0x9c0   :  { %v12563_v3 = vpop.f32.mrf.mxu0  ;;  %v12593_v21 = vadd.f32 %v12592_v52, %v12591_v27 }
 0x9c1   :  { %v19175_v54 = vpop.f32.mrf.mxu1 }
 0x9c2   :  { %v12564_v0 = vpop.f32.mrf.mxu0  ;;  %20037 = vst [vmem:[#allocation49_spill] sm:$0xff] %v19175_v54  ;;  %v9381_v54 = vadd.f32 %v12428_v25, %v12400_v51  ;;  %v12434_v25 = vadd.f32 %v19157_v34, %v19152_v9  ;;  %v20042_v51 = vld [vmem:[#allocation46_spill] sm:$0xff] }
 0x9c3   :  { %v19177_v31 = vpop.f32.mrf.mxu1  ;;  %v12565_v37 = vadd.f32 %v12564_v0, %v12563_v3  ;;  %v12546_v47 = vadd.f32 %v20043_v40, %v20042_v51  ;;  %v11934_v51 = vld [vmem:[%s19266_s10] ss:$0 sm:$0xff] }
 0x9c4   :  { %v12566_v62 = vpop.f32.mrf.mxu0  ;;  %20038 = vst [vmem:[#allocation45_spill] sm:$0xff] %v19177_v31  ;;  %v9575_v11 = vadd.f32 %v12456_v57, %v9381_v54  ;;  %v9389_v23 = vadd.f32 %v12434_v25, %v12406_v48  ;;  %v9946_v57 = vadd.f32 %v12515_v17, %v9762_v5 }
 0x9c5   :  { %v19183_v49 = vpop.f32.mrf.mxu1  ;;  %v10312_v9 = vadd.f32 %v12565_v37, %v10128_v26 }
 0x9c6   :  { %v12567_v43 = vpop.f32.mrf.mxu0  ;;  %v9761_v19 = vadd.f32 %v12484_v20, %v9575_v11  ;;  %v9577_v44 = vadd.f32 %v12462_v46, %v9389_v23  ;;  %v10130_v14 = vadd.f32 %v12543_v45, %v9946_v57 }
 0x9c7   :  { %v19188_v31 = vpop.f32.mrf.mxu1  ;;  %v12568_v34 = vadd.f32 %v12567_v43, %v12566_v62  ;;  %v10496_v39 = vadd.f32 %v12593_v21, %v10312_v9 }
 0x9c8   :  { %v12569_v2 = vpop.f32.mrf.mxu0  ;;  %v9945_v41 = vadd.f32 %v12512_v28, %v9761_v19  ;;  %v9763_v53 = vadd.f32 %v12490_v15, %v9577_v44  ;;  %v12599_v12 = vadd.f32 %v19188_v31, %v19183_v49 }
 0x9c9   :  { %v19193_v13 = vpop.f32.mrf.mxu1  ;;  %v20040_v36 = vld [vmem:[#allocation49_spill] sm:$0xff] }
 0x9ca   :  { %v12570_v1 = vpop.f32.mrf.mxu0  ;;  %v10129_v3 = vadd.f32 %v12540_v50, %v9945_v41  ;;  %v9947_v43 = vadd.f32 %v12518_v16, %v9763_v53 }
 0x9cb   :  { %v12601_v58 = vpop.f32.mrf.mxu1  ;;  %v12571_v6 = vadd.f32 %v12570_v1, %v12569_v2  ;;  %v20041_v7 = vld [vmem:[#allocation45_spill] sm:$0xff]  ;;  %v11901_v2 = vld [vmem:[%s19264_s8] ss:$0 sm:$0xff] }
 0x9cc   :  { %v12572_v29 = vpop.f32.mrf.mxu0  ;;  %v10313_v54 = vadd.f32 %v12568_v34, %v10129_v3  ;;  %v12596_v10 = vadd.f32 %v20041_v7, %v20040_v36  ;;  %v10131_v18 = vadd.f32 %v12546_v47, %v9947_v43  ;;  %v12602_v35 = vadd.f32 %v12601_v58, %v19193_v13  ;;  %v14543_v43 = vld [vmem:[%s19267_s11 + $0x18] sm:$0xff]   ;;  %v14545_v36 = vld [vmem:[%s19267_s11 + $0x8] sm:$0xff]   ;;  %v14546_v7 = vld [vmem:[%s19267_s11] sm:$0xff]  }
 0x9cd   :  { %v10314_v55 = vadd.f32 %v12571_v6, %v10130_v14  ;;  %v14540_v6 = vld [vmem:[%s19267_s11 + $0x30] sm:$0xff]  }
 0x9ce   :  { %v12573_v32 = vpop.f32.mrf.mxu0  ;;  %v10497_v4 = vadd.f32 %v12596_v10, %v10313_v54 }
 0x9cf   :  { %v12574_v38 = vadd.f32 %v12573_v32, %v12572_v29  ;;  %v10498_v37 = vadd.f32 %v12599_v12, %v10314_v55 }
 0x9d1   :  { %v10315_v29 = vadd.f32 %v12574_v38, %v10131_v18 }
 0x9d3   :  { %v10499_v50 = vadd.f32 %v12602_v35, %v10315_v29 }
 0x9dd   :  { %v12647_v42 = vpop.f32.mrf.mxu1 }
 0x9df   :  { %v12648_v8 = vpop.f32.mrf.mxu1 }
 0x9e0   :  { %v12619_v59 = vpop.f32.mrf.mxu0  ;;  %v12649_v60 = vadd.f32 %v12648_v8, %v12647_v42 }
 0x9e1   :  { %v12650_v33 = vpop.f32.mrf.mxu1 }
 0x9e2   :  { %v12620_v0 = vpop.f32.mrf.mxu0 }
 0x9e3   :  { %v12621_v22 = vadd.f32 %v12620_v0, %v12619_v59  ;;  %v12651_v62 = vpop.f32.mrf.mxu1  ;;  %v14539_v0 = vld [vmem:[%s19267_s11 + $0x38] sm:$0xff]  }
 0x9e4   :  { %v12622_v30 = vpop.f32.mrf.mxu0  ;;  %v12652_v25 = vadd.f32 %v12651_v62, %v12650_v33  ;;  %v14542_v62 = vld [vmem:[%s19267_s11 + $0x20] sm:$0xff]  }
 0x9e5   :  { %v10680_v27 = vadd.f32 %v12621_v22, %v10496_v39  ;;  %v12653_v52 = vpop.f32.mrf.mxu1  ;;  %v20044_v39 = vmov 0.0   ;;  %v14541_v22 = vld [vmem:[%s19267_s11 + $0x28] sm:$0xff]  }
 0x9e6   :  { %v12623_v1 = vpop.f32.mrf.mxu0 }
 0x9e7   :  { %v10864_v11 = vadd.f32 %v12649_v60, %v10680_v27  ;;  %v12624_v24 = vadd.f32 %v12623_v1, %v12622_v30  ;;  %v12654_v48 = vpop.f32.mrf.mxu1  ;;  %v14544_v30 = vld [vmem:[%s19267_s11 + $0x10] sm:$0xff]  }
 0x9e8   :  { %v12625_v20 = vpop.f32.mrf.mxu0  ;;  %v12655_v42 = vadd.f32 %v12654_v48, %v12653_v52 }
 0x9e9   :  { %v10875_v28 = vadd.f32 %v11901_v2, %v10864_v11  ;;  %v10681_v46 = vadd.f32 %v12624_v24, %v10497_v4  ;;  %v12656_v63 = vpop.f32.mrf.mxu1  ;;  %v11935_v24 = vld [vmem:[%s19268_s12] ss:$0 sm:$0xff] }
 0x9ea   :  { %v12626_v61 = vpop.f32.mrf.mxu0 }
 0x9eb   :  { %v10865_v19 = vadd.f32 %v12652_v25, %v10681_v46  ;;  %v12627_v23 = vadd.f32 %v12626_v61, %v12625_v20  ;;  %v10883_v17 = vmul.f32 0.1, %v10875_v28  ;;  %v12657_v32 = vpop.f32.mrf.mxu1  ;;  %vm10879_vm12 = vcmp.ge.f32.partialorder %v10875_v28, 0.0 }
 0x9ec   :  { %v12628_v41 = vpop.f32.mrf.mxu0  ;;  %v12658_v34 = vadd.f32 %v12657_v32, %v12656_v63 }
 0x9ed   :  { %v10876_v26 = vadd.f32 %v11901_v2, %v10865_v19  ;;  %v10682_v44 = vadd.f32 %v12627_v23, %v10498_v37  ;;  %v10887_v8 = vsel %vm10879_vm12, %v10875_v28, %v10883_v17 }
 0x9ee   :  { %v12629_v31 = vpop.f32.mrf.mxu0 }
 0x9ef   :  { %vm10880_vm13 = vcmp.ge.f32.partialorder %v10876_v26, 0.0  ;;  %v10884_v49 = vmul.f32 0.1, %v10876_v26  ;;  %v10866_v5 = vadd.f32 %v12655_v42, %v10682_v44  ;;  %v12630_v9 = vadd.f32 %v12629_v31, %v12628_v41 }
 0x9f1   :  { %v10888_v15 = vsel %vm10880_vm13, %v10876_v26, %v10884_v49  ;;  %v10877_v16 = vadd.f32 %v11901_v2, %v10866_v5  ;;  %v10683_v59 = vadd.f32 %v12630_v9, %v10499_v50 }
 0x9f2   :  { %v10891_v57 = vmax.f32 %v10887_v8, %v10888_v15 }
 0x9f3   :  { %v10867_v13 = vadd.f32 %v12658_v34, %v10683_v59  ;;  %v10885_v21 = vmul.f32 0.1, %v10877_v16  ;;  %vm10881_vm14 = vcmp.ge.f32.partialorder %v10877_v16, 0.0 }
 0x9f4   :  { %v10893_v58 = vpack.c.bf16 %v10891_v57, %v10891_v57 }
 0x9f5   :  { %v10878_v3 = vadd.f32 %v11901_v2, %v10867_v13  ;;  %v10889_v56 = vsel %vm10881_vm14, %v10877_v16, %v10885_v21 }
 0x9f6   :  { %13875 = vmatmul.mubr.bf16.vlgmr.msra.gmra.mxu1 %v10893_v58 }
 0x9f7   :  { %vm10882_vm15 = vcmp.ge.f32.partialorder %v10878_v3, 0.0  ;;  %v10886_v33 = vmul.f32 0.1, %v10878_v3 }
 0x9f9   :  { %v10890_v45 = vsel %vm10882_vm15, %v10878_v3, %v10886_v33 }
 0x9fa   :  { %v10892_v53 = vmax.f32 %v10889_v56, %v10890_v45 }
 0x9fc   :  { %v10910_v54 = vpack.c.bf16 %v10892_v53, %v10892_v53 }
 0x9fe   :  { %13855 = vmatmul.mubr.bf16.vlgmr.msra.gmra.mxu0 %v10910_v54 }
 0x9ff   :  { %13879 = vmatpush3.bf16.msra.mxu0 %v14539_v0  ;;  %13894 = vmatprep.mubr.msk.bf16.mxu0 %vm14605_vm0, %v20044_v39 }
 0xa00   :  { %13880 = vmatprep.subr.bf16.mxu0 %v20044_v39 }
 0xa03   :  { %13881 = vmatpush3.bf16.msra.mxu0 %v14540_v6 }
 0xa04   :  { %13882 = vmatprep.subr.bf16.mxu0 %v20044_v39 }
 0xa07   :  { %13883 = vmatpush3.bf16.msra.mxu0 %v14541_v22 }
 0xa08   :  { %13884 = vmatprep.subr.bf16.mxu0 %v20044_v39 }
 0xa0b   :  { %13885 = vmatpush3.bf16.msra.mxu0 %v14542_v62 }
 0xa0c   :  { %13886 = vmatprep.subr.bf16.mxu0 %v20044_v39 }
 0xa0f   :  { %13887 = vmatpush3.bf16.msra.mxu0 %v14543_v43 }
 0xa10   :  { %13888 = vmatprep.subr.bf16.mxu0 %v20044_v39 }
 0xa13   :  { %13889 = vmatpush3.bf16.msra.mxu0 %v14544_v30 }
 0xa14   :  { %13890 = vmatprep.subr.bf16.mxu0 %v20044_v39 }
 0xa17   :  { %13891 = vmatpush3.bf16.msra.mxu0 %v14545_v36 }
 0xa18   :  { %13892 = vmatprep.subr.bf16.mxu0 %v20044_v39 }
 0xa1b   :  { %13893 = vmatpush3.bf16.msra.mxu0 %v14546_v7 }
 0xab6   :  { %v11098_v10 = vpop.f32.mrf.mxu1 }
 0xab8   :  { %v13876_v14 = vpop.f32.mrf.mxu1 }
 0xaba   :  { %v11101_v60 = vpop.f32.mrf.mxu1 }
 0xabc   :  { %v13877_v27 = vpop.f32.mrf.mxu1 }
 0xabe   :  { %v11010_v52 = vpop.f32.mrf.mxu0 }
 0xabf   :  { %v11099_v40 = vadd.f32 %v11098_v10, %v11010_v52 }
 0xac0   :  { %v13856_v47 = vpop.f32.mrf.mxu0 }
 0xac1   :  { %v11111_v38 = vadd.f32 %v11934_v51, %v11099_v40 }
 0xac2   :  { %v11013_v2 = vpop.f32.mrf.mxu0 }
 0xac3   :  { %vm11112_vm0 = vcmp.ge.f32.partialorder %v11111_v38, 0.0  ;;  %v11113_v1 = vmul.f32 0.1, %v11111_v38 }
 0xac4   :  { %v13857_v55 = vpop.f32.mrf.mxu0 }
 0xac5   :  { %v11114_v11 = vsel %vm11112_vm0, %v11111_v38, %v11113_v1 }
 0xac6   :  { %v11115_v4 = vpack.c.bf16 %v11114_v11, %v11114_v11 }
 0xac8   :  { %13895 = vmatmul.mubr.bf16.vlgmr.msra.gmra.mxu0 %v11115_v4 }
 0xb88   :  { %v11221_v48 = vpop.f32.mrf.mxu0 }
 0xb89   :  { %v11222_v18 = vadd.f32 %v11935_v24, %v11221_v48 }
 0xb8a   :  { %v13896_v20 = vpop.f32.mrf.mxu0 }
 0xb8b   :  { %vm11227_vm1 = vcmp.ge.f32.partialorder %v11222_v18, 0.0  ;;  %v11228_v12 = vmul.f32 0.1, %v11222_v18 }
 0xb8c   :  { %v11224_v28 = vpop.f32.mrf.mxu0 }
 0xb8d   :  { %v11229_v25 = vsel %vm11227_vm1, %v11222_v18, %v11228_v12 }
 0xb8e   :  { %v11230_v46 = vsub.f32 0.0, %v11229_v25  ;;  %v13897_v63 = vpop.f32.mrf.mxu0 }
 0xb90   :  { %v11231_v29 = vmul.f32 1.442695, %v11230_v46 }
 0xb92   :  { %14547 = vpow2.f32 %v11231_v29 }
 0xb9f   :  { %v14548_v61 = vpop.eup %14547 }
 0xba0   :  { %v11233_v19 = vadd.f32 1.0, %v14548_v61 }
 0xba2   :  { %14549 = vrcp.f32 %v11233_v19 }
 0xbaf   :  { %v14550_v37 = vpop.eup %14549 }
 0xbb0   :  { %11236 = vst [vmem:[%s19269_s13] sm:$0xff] %v14550_v37 }
 0xbb1   :  { %11241 = vsyncpa [#allocation6], 1 }
 0xbb2   :  { %11242 = vsyncpa [#allocation8], 1 }

</bundles_post_ra>
